<compile_context>
chip_gen: v5e
topology: v5e:2x2
jax: 0.10.0
libtpu: 0.0.40
codegen_flags: <defaults>
</compile_context>

<pallas_src>
import jax
import jax.numpy as jnp
import numpy as np
from jax.experimental import pallas as pl
from jax.experimental.pallas import tpu as pltpu

BLOCK_B = 8  # images per grid step (sublane-aligned; ~1.2 MiB VMEM per step)


# ----------------------------------------------------------------------------
# Fused forward kernel: one grid step == BLOCK_B images, everything in VMEM.
#
# Internal layouts (f32):
#   input  x_ref : (Bt, 34, 102)        rows=(b, h_pad), lanes = w_pad*3 + cin
#   conv1  h1    : (Bt*32, 192)         rows=(b, h),     lanes = w*6  + cout
#   pool         : (Bt*16, 96)          rows=(b, h/2),   lanes = w/2*6 + c
#   conv2  h2    : (Bt*16, 256)         rows=(b, h),     lanes = w*16 + cout
#   lin1 in      : (Bt, 4096)           lanes = h*256 + w*16 + c
#   output       : (Bt, 128)            lanes 0..9 valid (lane-dense store)
# ----------------------------------------------------------------------------
def _net_kernel(x_ref, w1_ref, b1_ref, se_ref, so_ref, wpad_ref, w2_ref,
                b2_ref, w3_ref, b3_ref, w4_ref, b4_ref, o_ref, pad_s):
    f32 = jnp.float32
    bt = x_ref.shape[0]

    # ---- conv1: 3 banded matmuls (one per H tap), then bias + ReLU ----------
    acc = None
    for di in range(3):
        rows = x_ref[:, di:di + 32, :].reshape(bt * 32, 102)
        t = jnp.dot(rows, w1_ref[di], preferred_element_type=f32)
        acc = t if acc is None else acc + t
    h1 = jnp.maximum(acc + b1_ref[...], 0.0)                      # (Bt*32, 192)

    # ---- 2x2 max pool --------------------------------------------------------
    # W direction: select even / odd columns with 0/1 matmuls, take the max.
    wpool = jnp.maximum(
        jnp.dot(h1, se_ref[...], preferred_element_type=f32),
        jnp.dot(h1, so_ref[...], preferred_element_type=f32))     # (Bt*32, 96)
    # H direction: adjacent-row max (rows are b*32 + h, so pairs are adjacent).
    pooled = jnp.max(wpool.reshape(bt * 16, 2, 96), axis=1)       # (Bt*16, 96)

    # ---- conv2 reflect padding ----------------------------------------------
    # W pad via a 0/1 matrix (96 -> 108 lanes, reflect at the edges).
    padded_w = jnp.dot(pooled, wpad_ref[...],
                       preferred_element_type=f32)                # (Bt*16, 108)
    # H pad via a small VMEM scratch (per-image reflect of rows 1 and 14).
    pad_s[:, 1:17, :] = padded_w.reshape(bt, 16, 108)
    pad_s[:, 0:1, :] = pad_s[:, 2:3, :]        # top    pad <- row h=1
    pad_s[:, 17:18, :] = pad_s[:, 15:16, :]    # bottom pad <- row h=14

    # ---- conv2: 3 banded matmuls + bias (no ReLU) ----------------------------
    acc2 = None
    for di in range(3):
        rows = pad_s[:, di:di + 16, :].reshape(bt * 16, 108)
        t = jnp.dot(rows, w2_ref[di], preferred_element_type=f32)
        acc2 = t if acc2 is None else acc2 + t
    h2 = acc2 + b2_ref[...]                                       # (Bt*16, 256)

    # ---- lin1 (4096 -> 100) + ReLU: single big matmul ------------------------
    flat = h2.reshape(bt, 4096)                 # lanes ordered (h, w, c)
    y = jnp.dot(flat, w3_ref[...], preferred_element_type=f32) + b3_ref[...]
    y = jnp.maximum(y, 0.0)                                       # (Bt, 100)

    # ---- lin2 (100 -> 10, padded to 128 lanes for a dense store) -------------
    o_ref[...] = jnp.dot(y, w4_ref[...],
                         preferred_element_type=f32) + b4_ref[...]  # (Bt, 128)


# ----------------------------------------------------------------------------
# Wrapper: single pallas_call over batch tiles.
# ----------------------------------------------------------------------------
def net_forward(kp, x, *, block_b=BLOCK_B):
    """x: (B, 3, 32, 32) NCHW float32 -> (B, 10) logits."""
    B = x.shape[0]
    assert x.shape[1:] == (3, 32, 32), "Net assumes 3x32x32 inputs"

    # One-time layout work in XLA (cheap, done once per call on the input):
    # NCHW -> NHWC, reflect-pad H/W, fuse (W, C) into the lane axis.
    xp = jnp.transpose(x, (0, 2, 3, 1))                      # (B, 32, 32, 3)
    xp = jnp.pad(xp, ((0, 0), (1, 1), (1, 1), (0, 0)), mode="reflect")
    xp = xp.reshape(B, 34, 34 * 3)                           # (B, 34, 102)

    # Pad the batch to a multiple of the batch tile.
    bp = ((B + block_b - 1) // block_b) * block_b
    if bp != B:
        xp = jnp.pad(xp, ((0, bp - B), (0, 0), (0, 0)))
    grid = (bp // block_b,)

    out = pl.pallas_call(
        _net_kernel,
        out_shape=jax.ShapeDtypeStruct((bp, 128), jnp.float32),
        grid=grid,
        in_specs=[
            pl.BlockSpec((block_b, 34, 102), lambda i: (i, 0, 0)),  # input tile
            pl.BlockSpec((3, 102, 192), lambda i: (0, 0, 0)),       # conv1 bands
            pl.BlockSpec((1, 192), lambda i: (0, 0)),               # conv1 bias
            pl.BlockSpec((192, 96), lambda i: (0, 0)),              # pool even sel
            pl.BlockSpec((192, 96), lambda i: (0, 0)),              # pool odd sel
            pl.BlockSpec((96, 108), lambda i: (0, 0)),              # W reflect pad
            pl.BlockSpec((3, 108, 256), lambda i: (0, 0, 0)),       # conv2 bands
            pl.BlockSpec((1, 256), lambda i: (0, 0)),               # conv2 bias
            pl.BlockSpec((4096, 100), lambda i: (0, 0)),            # lin1 weight
            pl.BlockSpec((1, 100), lambda i: (0, 0)),               # lin1 bias
            pl.BlockSpec((100, 128), lambda i: (0, 0)),             # lin2 weight
            pl.BlockSpec((1, 128), lambda i: (0, 0)),               # lin2 bias
        ],
        out_specs=pl.BlockSpec((block_b, 128), lambda i: (i, 0)),   # lane-dense
        scratch_shapes=[pltpu.VMEM((block_b, 18, 108), jnp.float32)],
        compiler_params=pltpu.CompilerParams(
            dimension_semantics=("parallel",),          # batch tiles across TCs
            vmem_limit_bytes=32 * 1024 * 1024),         # explicit for v5e default
    )(xp, kp["w1"], kp["b1"], kp["se"], kp["so"], kp["wpad"],
      kp["w2"], kp["b2"], kp["w3"], kp["b3"], kp["w4"], kp["b4"])
    return out[:B, :10]


# ----------------------------------------------------------------------------
# Parameters (PyTorch-default-style uniform init, PyTorch layout)
# ----------------------------------------------------------------------------
def init_params(key):
    def uni(k, shape, fan_in):
        bound = 1.0 / np.sqrt(fan_in)
        return jax.random.uniform(k, shape, jnp.float32, -bound, bound)

    ks = jax.random.split(key, 8)
    return {
        "conv1_w": uni(ks[0], (6, 3, 3, 3), 3 * 9),
        "conv1_b": uni(ks[1], (6,), 3 * 9),
        "conv2_w": uni(ks[2], (16, 6, 3, 3), 6 * 9),
        "conv2_b": uni(ks[3], (16,), 6 * 9),
        "lin1_w": uni(ks[4], (100, 16 * 16 * 16), 16 * 16 * 16),
        "lin1_b": uni(ks[5], (100,), 16 * 16 * 16),
        "lin2_w": uni(ks[6], (10, 100), 100),
        "lin2_b": uni(ks[7], (10,), 100),
    }


def prepare_params(params):
    """ONE-TIME repack of PyTorch-layout params into kernel layout:
    banded conv matrices, pool selection matrices, padded lin2."""
    c1 = np.asarray(params["conv1_w"], np.float32)   # (6, 3, 3, 3)  OIHW
    c2 = np.asarray(params["conv2_w"], np.float32)   # (16, 6, 3, 3) OIHW

    # conv1 banded weights: w1[di, (wo+dj)*3 + ci, wo*6 + co] = c1[co, ci, di, dj]
    w1 = np.zeros((3, 34 * 3, 32 * 6), np.float32)
    for di in range(3):
        for dj in range(3):
            blk = c1[:, :, di, dj].T                 # (ci, co)
            for wo in range(32):
                wi = wo + dj
                w1[di, wi * 3:(wi + 1) * 3, wo * 6:(wo + 1) * 6] = blk

    # conv2 banded weights: w2[di, (wo+dj)*6 + ci, wo*16 + co] = c2[co, ci, di, dj]
    w2 = np.zeros((3, 18 * 6, 16 * 16), np.float32)
    for di in range(3):
        for dj in range(3):
            blk = c2[:, :, di, dj].T                 # (ci, co)
            for wo in range(16):
                wi = wo + dj
                w2[di, wi * 6:(wi + 1) * 6, wo * 16:(wo + 1) * 16] = blk

    # 2x2 pool W-selection matrices: lanes (w*6+c) -> (wo*6+c), w = 2*wo (+1)
    se = np.zeros((192, 96), np.float32)
    so = np.zeros((192, 96), np.float32)
    for wo in range(16):
        for c in range(6):
            se[(2 * wo) * 6 + c, wo * 6 + c] = 1.0
            so[(2 * wo + 1) * 6 + c, wo * 6 + c] = 1.0

    # W reflect-pad matrix for conv2 input: 96 -> 108 lanes (pad = 1, reflect)
    wpad = np.zeros((96, 108), np.float32)
    for w in range(16):
        for c in range(6):
            wpad[w * 6 + c, (w + 1) * 6 + c] = 1.0
    for c in range(6):
        wpad[1 * 6 + c, 0 * 6 + c] = 1.0             # left pad  <- w = 1
        wpad[14 * 6 + c, 17 * 6 + c] = 1.0           # right pad <- w = 14

    # lin1 weight: kernel flatten order is (h, w, c); PyTorch columns are (c, h, w)
    w3 = np.asarray(params["lin1_w"], np.float32).reshape(100, 16, 16, 16)
    w3 = np.transpose(w3, (2, 3, 1, 0)).reshape(4096, 100)       # (h, w, c) x out

    # lin2 padded to 128 output lanes for a dense store (wrapper slices :10)
    w4 = np.zeros((100, 128), np.float32)
    w4[:, :10] = np.asarray(params["lin2_w"], np.float32).T
    b4 = np.zeros((1, 128), np.float32)
    b4[0, :10] = np.asarray(params["lin2_b"], np.float32)

    # conv biases broadcast over the fused (w, c) lane axis
    b1 = np.tile(np.asarray(params["conv1_b"], np.float32), 32).reshape(1, 192)
    b2 = np.tile(np.asarray(params["conv2_b"], np.float32), 16).reshape(1, 256)
    b3 = np.asarray(params["lin1_b"], np.float32).reshape(1, 100)

    packed = dict(w1=w1, b1=b1, se=se, so=so, wpad=wpad, w2=w2, b2=b2,
                  w3=w3, b3=b3, w4=w4, b4=b4)
    return {k: jnp.asarray(v) for k, v in packed.items()}


# ----------------------------------------------------------------------------
# Pure-JAX reference (sanity check of the Pallas path)
# ----------------------------------------------------------------------------
def net_forward_ref(params, x):
    def conv(x, w, b):
        xp = jnp.pad(x, ((0, 0), (0, 0), (1, 1), (1, 1)), mode="reflect")
        y = jax.lax.conv_general_dilated(
            xp, w, window_strides=(1, 1), padding="VALID",
            dimension_numbers=("NCHW", "OIHW", "NCHW"))
        return y + b[None, :, None, None]

    h = jax.nn.relu(conv(x, params["conv1_w"], params["conv1_b"]))
    h = jax.lax.reduce_window(h, -jnp.inf, jax.lax.max,
                              (1, 1, 2, 2), (1, 1, 2, 2), "VALID")
    h = conv(h, params["conv2_w"], params["conv2_b"])
    h = h.reshape(h.shape[0], -1)
    h = jax.nn.relu(h @ params["lin1_w"].T + params["lin1_b"])
    return h @ params["lin2_w"].T + params["lin2_b"]


if __name__ == "__main__":
    x = jax.random.normal(jax.random.PRNGKey(0), (16, 3, 32, 32), jnp.float32)
    params = init_params(jax.random.PRNGKey(42))
    kparams = prepare_params(params)                 # one-time weight repack

    out = jax.block_until_ready(jax.jit(net_forward)(kparams, x))

    ref = jax.block_until_ready(net_forward_ref(params, x))
    np.testing.assert_allclose(np.asarray(out), np.asarray(ref),
                               rtol=2e-3, atol=2e-3)

    assert out.shape == (16, 10) and out.dtype == jnp.float32
    print("KERNEL_OK")
</pallas_src>

<mosaic_0001>
module attributes {stable_mosaic.version = 11 : i64} {
  func.func @_net_kernel(%arg0: i32, %arg1: memref<8x34x102xf32, #tpu.memory_space<vmem>>, %arg2: memref<3x102x192xf32, #tpu.memory_space<vmem>>, %arg3: memref<1x192xf32, #tpu.memory_space<vmem>>, %arg4: memref<192x96xf32, #tpu.memory_space<vmem>>, %arg5: memref<192x96xf32, #tpu.memory_space<vmem>>, %arg6: memref<96x108xf32, #tpu.memory_space<vmem>>, %arg7: memref<3x108x256xf32, #tpu.memory_space<vmem>>, %arg8: memref<1x256xf32, #tpu.memory_space<vmem>>, %arg9: memref<4096x100xf32, #tpu.memory_space<vmem>>, %arg10: memref<1x100xf32, #tpu.memory_space<vmem>>, %arg11: memref<100x128xf32, #tpu.memory_space<vmem>>, %arg12: memref<1x128xf32, #tpu.memory_space<vmem>>, %arg13: memref<8x128xf32, #tpu.memory_space<vmem>>, %arg14: memref<8x18x108xf32, #tpu.memory_space<vmem>>) attributes {dimension_semantics = [#tpu.dimension_semantics<parallel>], iteration_bounds = array<i64: 2>, scalar_prefetch = 0 : i64, scratch_operands = 1 : i64, tpu.core_type = #tpu.core_type<tc>, window_params = [{transform_indices = @transform_0, window_bounds = array<i64: 8, 34, 102>}, {pipeline_mode = #tpu.pipeline_mode<synchronous>, transform_indices = @transform_1, window_bounds = array<i64: 3, 102, 192>}, {pipeline_mode = #tpu.pipeline_mode<synchronous>, transform_indices = @transform_2, window_bounds = array<i64: 1, 192>}, {pipeline_mode = #tpu.pipeline_mode<synchronous>, transform_indices = @transform_3, window_bounds = array<i64: 192, 96>}, {pipeline_mode = #tpu.pipeline_mode<synchronous>, transform_indices = @transform_4, window_bounds = array<i64: 192, 96>}, {pipeline_mode = #tpu.pipeline_mode<synchronous>, transform_indices = @transform_5, window_bounds = array<i64: 96, 108>}, {pipeline_mode = #tpu.pipeline_mode<synchronous>, transform_indices = @transform_6, window_bounds = array<i64: 3, 108, 256>}, {pipeline_mode = #tpu.pipeline_mode<synchronous>, transform_indices = @transform_7, window_bounds = array<i64: 1, 256>}, {pipeline_mode = #tpu.pipeline_mode<synchronous>, transform_indices = @transform_8, window_bounds = array<i64: 4096, 100>}, {pipeline_mode = #tpu.pipeline_mode<synchronous>, transform_indices = @transform_9, window_bounds = array<i64: 1, 100>}, {pipeline_mode = #tpu.pipeline_mode<synchronous>, transform_indices = @transform_10, window_bounds = array<i64: 100, 128>}, {pipeline_mode = #tpu.pipeline_mode<synchronous>, transform_indices = @transform_11, window_bounds = array<i64: 1, 128>}, {transform_indices = @transform_12, window_bounds = array<i64: 8, 128>}]} {
    %c0 = arith.constant 0 : index
    %c0_0 = arith.constant 0 : index
    %c0_1 = arith.constant 0 : index
    %0 = vector.load %arg1[%c0, %c0_0, %c0_1] : memref<8x34x102xf32, #tpu.memory_space<vmem>>, vector<8x32x102xf32>
    %1 = vector.shape_cast %0 : vector<8x32x102xf32> to vector<256x102xf32>
    %c0_2 = arith.constant 0 : index
    %c0_3 = arith.constant 0 : index
    %c0_4 = arith.constant 0 : index
    %2 = vector.load %arg2[%c0_2, %c0_3, %c0_4] : memref<3x102x192xf32, #tpu.memory_space<vmem>>, vector<1x102x192xf32>
    %3 = vector.shape_cast %2 : vector<1x102x192xf32> to vector<102x192xf32>
    %cst = arith.constant dense<0.000000e+00> : vector<256x192xf32>
    %4 = tpu.matmul %1, %3, %cst {dimension_numbers = #tpu.dot_dimension_numbers<[1], [0], [0], [1], [0, 0, 1, 1], [], []>} : vector<256x102xf32>, vector<102x192xf32>, vector<256x192xf32> -> vector<256x192xf32>
    %c0_5 = arith.constant 0 : index
    %c1 = arith.constant 1 : index
    %c0_6 = arith.constant 0 : index
    %5 = vector.load %arg1[%c0_5, %c1, %c0_6] : memref<8x34x102xf32, #tpu.memory_space<vmem>>, vector<8x32x102xf32>
    %6 = vector.shape_cast %5 : vector<8x32x102xf32> to vector<256x102xf32>
    %c1_7 = arith.constant 1 : index
    %c0_8 = arith.constant 0 : index
    %c0_9 = arith.constant 0 : index
    %7 = vector.load %arg2[%c1_7, %c0_8, %c0_9] : memref<3x102x192xf32, #tpu.memory_space<vmem>>, vector<1x102x192xf32>
    %8 = vector.shape_cast %7 : vector<1x102x192xf32> to vector<102x192xf32>
    %cst_10 = arith.constant dense<0.000000e+00> : vector<256x192xf32>
    %9 = tpu.matmul %6, %8, %cst_10 {dimension_numbers = #tpu.dot_dimension_numbers<[1], [0], [0], [1], [0, 0, 1, 1], [], []>} : vector<256x102xf32>, vector<102x192xf32>, vector<256x192xf32> -> vector<256x192xf32>
    %10 = arith.addf %4, %9 : vector<256x192xf32>
    %c0_11 = arith.constant 0 : index
    %c2 = arith.constant 2 : index
    %c0_12 = arith.constant 0 : index
    %11 = vector.load %arg1[%c0_11, %c2, %c0_12] : memref<8x34x102xf32, #tpu.memory_space<vmem>>, vector<8x32x102xf32>
    %12 = vector.shape_cast %11 : vector<8x32x102xf32> to vector<256x102xf32>
    %c2_13 = arith.constant 2 : index
    %c0_14 = arith.constant 0 : index
    %c0_15 = arith.constant 0 : index
    %13 = vector.load %arg2[%c2_13, %c0_14, %c0_15] : memref<3x102x192xf32, #tpu.memory_space<vmem>>, vector<1x102x192xf32>
    %14 = vector.shape_cast %13 : vector<1x102x192xf32> to vector<102x192xf32>
    %cst_16 = arith.constant dense<0.000000e+00> : vector<256x192xf32>
    %15 = tpu.matmul %12, %14, %cst_16 {dimension_numbers = #tpu.dot_dimension_numbers<[1], [0], [0], [1], [0, 0, 1, 1], [], []>} : vector<256x102xf32>, vector<102x192xf32>, vector<256x192xf32> -> vector<256x192xf32>
    %16 = arith.addf %10, %15 : vector<256x192xf32>
    %c0_17 = arith.constant 0 : index
    %c0_18 = arith.constant 0 : index
    %17 = vector.load %arg3[%c0_17, %c0_18] : memref<1x192xf32, #tpu.memory_space<vmem>>, vector<1x192xf32>
    %18 = vector.broadcast %17 : vector<1x192xf32> to vector<256x192xf32>
    %19 = arith.addf %16, %18 : vector<256x192xf32>
    %cst_19 = arith.constant 0.000000e+00 : f32
    %20 = vector.broadcast %cst_19 : f32 to vector<256x192xf32>
    %21 = arith.maximumf %19, %20 : vector<256x192xf32>
    %c0_20 = arith.constant 0 : index
    %c0_21 = arith.constant 0 : index
    %22 = vector.load %arg4[%c0_20, %c0_21] : memref<192x96xf32, #tpu.memory_space<vmem>>, vector<192x96xf32>
    %cst_22 = arith.constant dense<0.000000e+00> : vector<256x96xf32>
    %23 = tpu.matmul %21, %22, %cst_22 {dimension_numbers = #tpu.dot_dimension_numbers<[1], [0], [0], [1], [0, 0, 1, 1], [], []>} : vector<256x192xf32>, vector<192x96xf32>, vector<256x96xf32> -> vector<256x96xf32>
    %c0_23 = arith.constant 0 : index
    %c0_24 = arith.constant 0 : index
    %24 = vector.load %arg5[%c0_23, %c0_24] : memref<192x96xf32, #tpu.memory_space<vmem>>, vector<192x96xf32>
    %cst_25 = arith.constant dense<0.000000e+00> : vector<256x96xf32>
    %25 = tpu.matmul %21, %24, %cst_25 {dimension_numbers = #tpu.dot_dimension_numbers<[1], [0], [0], [1], [0, 0, 1, 1], [], []>} : vector<256x192xf32>, vector<192x96xf32>, vector<256x96xf32> -> vector<256x96xf32>
    %26 = arith.maximumf %23, %25 : vector<256x96xf32>
    %27 = vector.shape_cast %26 : vector<256x96xf32> to vector<128x2x96xf32>
    %cst_26 = arith.constant dense<0xFF800000> : vector<128x96xf32>
    %28 = vector.multi_reduction <maximumf>, %27, %cst_26 [1] : vector<128x2x96xf32> to vector<128x96xf32>
    %c0_27 = arith.constant 0 : index
    %c0_28 = arith.constant 0 : index
    %29 = vector.load %arg6[%c0_27, %c0_28] : memref<96x108xf32, #tpu.memory_space<vmem>>, vector<96x108xf32>
    %cst_29 = arith.constant dense<0.000000e+00> : vector<128x108xf32>
    %30 = tpu.matmul %28, %29, %cst_29 {dimension_numbers = #tpu.dot_dimension_numbers<[1], [0], [0], [1], [0, 0, 1, 1], [], []>} : vector<128x96xf32>, vector<96x108xf32>, vector<128x108xf32> -> vector<128x108xf32>
    %31 = vector.shape_cast %30 : vector<128x108xf32> to vector<8x16x108xf32>
    %c0_30 = arith.constant 0 : index
    %c1_31 = arith.constant 1 : index
    %c0_32 = arith.constant 0 : index
    %32 = vector.load %arg14[%c0_30, %c1_31, %c0_32] : memref<8x18x108xf32, #tpu.memory_space<vmem>>, vector<8x16x108xf32>
    tpu.vector_store %arg14[%c0_30, %c1_31, %c0_32], %31 {strides = array<i32>} : memref<8x18x108xf32, #tpu.memory_space<vmem>>, vector<8x16x108xf32>,
    %c0_33 = arith.constant 0 : index
    %c2_34 = arith.constant 2 : index
    %c0_35 = arith.constant 0 : index
    %33 = vector.load %arg14[%c0_33, %c2_34, %c0_35] : memref<8x18x108xf32, #tpu.memory_space<vmem>>, vector<8x1x108xf32>
    %c0_36 = arith.constant 0 : index
    %c0_37 = arith.constant 0 : index
    %c0_38 = arith.constant 0 : index
    %34 = vector.load %arg14[%c0_36, %c0_37, %c0_38] : memref<8x18x108xf32, #tpu.memory_space<vmem>>, vector<8x1x108xf32>
    tpu.vector_store %arg14[%c0_36, %c0_37, %c0_38], %33 {strides = array<i32>} : memref<8x18x108xf32, #tpu.memory_space<vmem>>, vector<8x1x108xf32>,
    %c0_39 = arith.constant 0 : index
    %c15 = arith.constant 15 : index
    %c0_40 = arith.constant 0 : index
    %35 = vector.load %arg14[%c0_39, %c15, %c0_40] : memref<8x18x108xf32, #tpu.memory_space<vmem>>, vector<8x1x108xf32>
    %c0_41 = arith.constant 0 : index
    %c17 = arith.constant 17 : index
    %c0_42 = arith.constant 0 : index
    %36 = vector.load %arg14[%c0_41, %c17, %c0_42] : memref<8x18x108xf32, #tpu.memory_space<vmem>>, vector<8x1x108xf32>
    tpu.vector_store %arg14[%c0_41, %c17, %c0_42], %35 {strides = array<i32>} : memref<8x18x108xf32, #tpu.memory_space<vmem>>, vector<8x1x108xf32>,
    %c0_43 = arith.constant 0 : index
    %c0_44 = arith.constant 0 : index
    %c0_45 = arith.constant 0 : index
    %37 = vector.load %arg14[%c0_43, %c0_44, %c0_45] : memref<8x18x108xf32, #tpu.memory_space<vmem>>, vector<8x16x108xf32>
    %38 = vector.shape_cast %37 : vector<8x16x108xf32> to vector<128x108xf32>
    %c0_46 = arith.constant 0 : index
    %c0_47 = arith.constant 0 : index
    %c0_48 = arith.constant 0 : index
    %39 = vector.load %arg7[%c0_46, %c0_47, %c0_48] : memref<3x108x256xf32, #tpu.memory_space<vmem>>, vector<1x108x256xf32>
    %40 = vector.shape_cast %39 : vector<1x108x256xf32> to vector<108x256xf32>
    %cst_49 = arith.constant dense<0.000000e+00> : vector<128x256xf32>
    %41 = tpu.matmul %38, %40, %cst_49 {dimension_numbers = #tpu.dot_dimension_numbers<[1], [0], [0], [1], [0, 0, 1, 1], [], []>} : vector<128x108xf32>, vector<108x256xf32>, vector<128x256xf32> -> vector<128x256xf32>
    %c0_50 = arith.constant 0 : index
    %c1_51 = arith.constant 1 : index
    %c0_52 = arith.constant 0 : index
    %42 = vector.load %arg14[%c0_50, %c1_51, %c0_52] : memref<8x18x108xf32, #tpu.memory_space<vmem>>, vector<8x16x108xf32>
    %43 = vector.shape_cast %42 : vector<8x16x108xf32> to vector<128x108xf32>
    %c1_53 = arith.constant 1 : index
    %c0_54 = arith.constant 0 : index
    %c0_55 = arith.constant 0 : index
    %44 = vector.load %arg7[%c1_53, %c0_54, %c0_55] : memref<3x108x256xf32, #tpu.memory_space<vmem>>, vector<1x108x256xf32>
    %45 = vector.shape_cast %44 : vector<1x108x256xf32> to vector<108x256xf32>
    %cst_56 = arith.constant dense<0.000000e+00> : vector<128x256xf32>
    %46 = tpu.matmul %43, %45, %cst_56 {dimension_numbers = #tpu.dot_dimension_numbers<[1], [0], [0], [1], [0, 0, 1, 1], [], []>} : vector<128x108xf32>, vector<108x256xf32>, vector<128x256xf32> -> vector<128x256xf32>
    %47 = arith.addf %41, %46 : vector<128x256xf32>
    %c0_57 = arith.constant 0 : index
    %c2_58 = arith.constant 2 : index
    %c0_59 = arith.constant 0 : index
    %48 = vector.load %arg14[%c0_57, %c2_58, %c0_59] : memref<8x18x108xf32, #tpu.memory_space<vmem>>, vector<8x16x108xf32>
    %49 = vector.shape_cast %48 : vector<8x16x108xf32> to vector<128x108xf32>
    %c2_60 = arith.constant 2 : index
    %c0_61 = arith.constant 0 : index
    %c0_62 = arith.constant 0 : index
    %50 = vector.load %arg7[%c2_60, %c0_61, %c0_62] : memref<3x108x256xf32, #tpu.memory_space<vmem>>, vector<1x108x256xf32>
    %51 = vector.shape_cast %50 : vector<1x108x256xf32> to vector<108x256xf32>
    %cst_63 = arith.constant dense<0.000000e+00> : vector<128x256xf32>
    %52 = tpu.matmul %49, %51, %cst_63 {dimension_numbers = #tpu.dot_dimension_numbers<[1], [0], [0], [1], [0, 0, 1, 1], [], []>} : vector<128x108xf32>, vector<108x256xf32>, vector<128x256xf32> -> vector<128x256xf32>
    %53 = arith.addf %47, %52 : vector<128x256xf32>
    %c0_64 = arith.constant 0 : index
    %c0_65 = arith.constant 0 : index
    %54 = vector.load %arg8[%c0_64, %c0_65] : memref<1x256xf32, #tpu.memory_space<vmem>>, vector<1x256xf32>
    %55 = vector.broadcast %54 : vector<1x256xf32> to vector<128x256xf32>
    %56 = arith.addf %53, %55 : vector<128x256xf32>
    %57 = vector.shape_cast %56 : vector<128x256xf32> to vector<8x4096xf32>
    %c0_66 = arith.constant 0 : index
    %c0_67 = arith.constant 0 : index
    %58 = vector.load %arg9[%c0_66, %c0_67] : memref<4096x100xf32, #tpu.memory_space<vmem>>, vector<4096x100xf32>
    %cst_68 = arith.constant dense<0.000000e+00> : vector<8x100xf32>
    %59 = tpu.matmul %57, %58, %cst_68 {dimension_numbers = #tpu.dot_dimension_numbers<[1], [0], [0], [1], [0, 0, 1, 1], [], []>} : vector<8x4096xf32>, vector<4096x100xf32>, vector<8x100xf32> -> vector<8x100xf32>
    %c0_69 = arith.constant 0 : index
    %c0_70 = arith.constant 0 : index
    %60 = vector.load %arg10[%c0_69, %c0_70] : memref<1x100xf32, #tpu.memory_space<vmem>>, vector<1x100xf32>
    %61 = vector.broadcast %60 : vector<1x100xf32> to vector<8x100xf32>
    %62 = arith.addf %59, %61 : vector<8x100xf32>
    %cst_71 = arith.constant 0.000000e+00 : f32
    %63 = vector.broadcast %cst_71 : f32 to vector<8x100xf32>
    %64 = arith.maximumf %62, %63 : vector<8x100xf32>
    %c0_72 = arith.constant 0 : index
    %c0_73 = arith.constant 0 : index
    %65 = vector.load %arg11[%c0_72, %c0_73] : memref<100x128xf32, #tpu.memory_space<vmem>>, vector<100x128xf32>
    %cst_74 = arith.constant dense<0.000000e+00> : vector<8x128xf32>
    %66 = tpu.matmul %64, %65, %cst_74 {dimension_numbers = #tpu.dot_dimension_numbers<[1], [0], [0], [1], [0, 0, 1, 1], [], []>} : vector<8x100xf32>, vector<100x128xf32>, vector<8x128xf32> -> vector<8x128xf32>
    %c0_75 = arith.constant 0 : index
    %c0_76 = arith.constant 0 : index
    %67 = vector.load %arg12[%c0_75, %c0_76] : memref<1x128xf32, #tpu.memory_space<vmem>>, vector<1x128xf32>
    %68 = vector.broadcast %67 : vector<1x128xf32> to vector<8x128xf32>
    %69 = arith.addf %66, %68 : vector<8x128xf32>
    %c0_77 = arith.constant 0 : index
    %c0_78 = arith.constant 0 : index
    %70 = vector.load %arg13[%c0_77, %c0_78] : memref<8x128xf32, #tpu.memory_space<vmem>>, vector<8x128xf32>
    tpu.vector_store %arg13[%c0_77, %c0_78], %69 {strides = array<i32>} : memref<8x128xf32, #tpu.memory_space<vmem>>, vector<8x128xf32>,
    return
  }
  func.func @transform_0(%arg0: i32) -> (i32, i32, i32) {
    %c0_i32 = arith.constant 0 : i32
    %c0_i32_0 = arith.constant 0 : i32
    %c0_i32_1 = arith.constant 0 : i32
    return %arg0, %c0_i32, %c0_i32_0 : i32, i32, i32
  }
  func.func @transform_1(%arg0: i32) -> (i32, i32, i32) {
    %c0_i32 = arith.constant 0 : i32
    %c0_i32_0 = arith.constant 0 : i32
    %c0_i32_1 = arith.constant 0 : i32
    %c0_i32_2 = arith.constant 0 : i32
    return %c0_i32, %c0_i32_0, %c0_i32_1 : i32, i32, i32
  }
  func.func @transform_2(%arg0: i32) -> (i32, i32) {
    %c0_i32 = arith.constant 0 : i32
    %c0_i32_0 = arith.constant 0 : i32
    %c0_i32_1 = arith.constant 0 : i32
    return %c0_i32, %c0_i32_0 : i32, i32
  }
  func.func @transform_3(%arg0: i32) -> (i32, i32) {
    %c0_i32 = arith.constant 0 : i32
    %c0_i32_0 = arith.constant 0 : i32
    %c0_i32_1 = arith.constant 0 : i32
    return %c0_i32, %c0_i32_0 : i32, i32
  }
  func.func @transform_4(%arg0: i32) -> (i32, i32) {
    %c0_i32 = arith.constant 0 : i32
    %c0_i32_0 = arith.constant 0 : i32
    %c0_i32_1 = arith.constant 0 : i32
    return %c0_i32, %c0_i32_0 : i32, i32
  }
  func.func @transform_5(%arg0: i32) -> (i32, i32) {
    %c0_i32 = arith.constant 0 : i32
    %c0_i32_0 = arith.constant 0 : i32
    %c0_i32_1 = arith.constant 0 : i32
    return %c0_i32, %c0_i32_0 : i32, i32
  }
  func.func @transform_6(%arg0: i32) -> (i32, i32, i32) {
    %c0_i32 = arith.constant 0 : i32
    %c0_i32_0 = arith.constant 0 : i32
    %c0_i32_1 = arith.constant 0 : i32
    %c0_i32_2 = arith.constant 0 : i32
    return %c0_i32, %c0_i32_0, %c0_i32_1 : i32, i32, i32
  }
  func.func @transform_7(%arg0: i32) -> (i32, i32) {
    %c0_i32 = arith.constant 0 : i32
    %c0_i32_0 = arith.constant 0 : i32
    %c0_i32_1 = arith.constant 0 : i32
    return %c0_i32, %c0_i32_0 : i32, i32
  }
  func.func @transform_8(%arg0: i32) -> (i32, i32) {
    %c0_i32 = arith.constant 0 : i32
    %c0_i32_0 = arith.constant 0 : i32
    %c0_i32_1 = arith.constant 0 : i32
    return %c0_i32, %c0_i32_0 : i32, i32
  }
  func.func @transform_9(%arg0: i32) -> (i32, i32) {
    %c0_i32 = arith.constant 0 : i32
    %c0_i32_0 = arith.constant 0 : i32
    %c0_i32_1 = arith.constant 0 : i32
    return %c0_i32, %c0_i32_0 : i32, i32
  }
  func.func @transform_10(%arg0: i32) -> (i32, i32) {
    %c0_i32 = arith.constant 0 : i32
    %c0_i32_0 = arith.constant 0 : i32
    %c0_i32_1 = arith.constant 0 : i32
    return %c0_i32, %c0_i32_0 : i32, i32
  }
  func.func @transform_11(%arg0: i32) -> (i32, i32) {
    %c0_i32 = arith.constant 0 : i32
    %c0_i32_0 = arith.constant 0 : i32
    %c0_i32_1 = arith.constant 0 : i32
    return %c0_i32, %c0_i32_0 : i32, i32
  }
  func.func @transform_12(%arg0: i32) -> (i32, i32) {
    %c0_i32 = arith.constant 0 : i32
    %c0_i32_0 = arith.constant 0 : i32
    return %arg0, %c0_i32 : i32, i32
  }
}

</mosaic_0001>

<bundles_post_ra>
// kernel: net_forward.1
= control target key start
LH: loop header
LB: loop body
LE: loop exit
PB: predicated region body
PF: predicated region fallthrough
CT: control target
= control target key end

     0   :  { %s12433_s0 = inlined_call_operand.vmem [shape: f32[16,34,102], index: 0, kind: input, shape index: {}]   ;;  %s12434_s1 = inlined_call_operand.vmem [shape: f32[3,102,192], index: 1, kind: input, shape index: {}]   ;;  %s12435_s2 = inlined_call_operand.vmem [shape: f32[1,192], index: 2, kind: input, shape index: {}]   ;;  %s12436_s3 = inlined_call_operand.vmem [shape: f32[192,96], index: 3, kind: input, shape index: {}]   ;;  %s12437_s4 = inlined_call_operand.vmem [shape: f32[192,96], index: 4, kind: input, shape index: {}]   ;;  %s12438_s5 = inlined_call_operand.vmem [shape: f32[96,108], index: 5, kind: input, shape index: {}]   ;;  %s12439_s6 = inlined_call_operand.vmem [shape: f32[3,108,256], index: 6, kind: input, shape index: {}]   ;;  %s12440_s7 = inlined_call_operand.vmem [shape: f32[1,256], index: 7, kind: input, shape index: {}]   ;;  %s12441_s8 = inlined_call_operand.vmem [shape: f32[4096,100], index: 8, kind: input, shape index: {}]   ;;  %s12442_s9 = inlined_call_operand.vmem [shape: f32[1,100], index: 9, kind: input, shape index: {}]   ;;  %s12443_s10 = inlined_call_operand.vmem [shape: f32[100,128], index: 10, kind: input, shape index: {}]   ;;  %s12444_s11 = inlined_call_operand.vmem [shape: f32[1,128], index: 11, kind: input, shape index: {}]   ;;  %s12445_s12 = inlined_call_operand.hbm [shape: f32[16,128], index: 12, kind: output, shape index: {}]  }
   0x1   :  { %12537 = sst [smem:[#allocation62_spill]] %s12433_s0 }
   0x2   :  { %17 = vsyncpa [#allocation4], 0 }
   0x3   :  { %19 = vsyncpa [#allocation4 + $0x1], 0  ;;  %s7056_s21 = smov 0   ;;  %s7058_s22 = smov 0  }
   0x4   :  { %s7060_s23 = smov 0   ;;  %s7062_s24 = smov 0  }
   0x5 LB: > { %12538 = sst [smem:[#allocation6_spill]] %s6984_s23  ;;  %s12446_s25 = sadd.s32 4294967295, %s6988_s24   ;;  %s6988_s24 = sphi %s7062_s24, %s12759_s24   ;;  %s6984_s23 = sphi %s7060_s23, %s12761_s23   ;;  %s6980_s22 = sphi %s7058_s22, %s12763_s22   ;;  %s6976_s21 = sphi %s7056_s21, %s12762_s21  }
   0x6   : > { %s6359_s26 = sadd.s32 4294967294, %s6988_s24   ;;  %s7079_s27 = sadd.s32 1, %s6988_s24  }
   0x7   : > { %12539 = sst [smem:[#allocation7_spill]] %s7079_s27  ;;  %s289_s28 = sadd.s32 1, %s6984_s23 }
   0x8   : > { %s286_s29 = ssub.s32 %s6988_s24, %s7079_s27  ;;  %p299_p0 = scmp.ne.s32.totalorder %s6984_s23, %s6980_s22 }
   0x9   : > { %p287_p1 = scmp.eq.s32.totalorder %s286_s29, 0  ;;  %p300_p2 = scmp.eq.s32.totalorder %s12446_s25, 1 }
   0xa   : > { %p305_p3 = scmp.ne.s32.totalorder %s6980_s22, %s6976_s21  ;;  %p306_p4 = scmp.eq.s32.totalorder %s6359_s26, 1 }
   0xb   : > { %s7091_s30 = scalar_select %p287_p1, %s6984_s23, %s289_s28  }
   0xc   : > { %p7093_p5 = por %p300_p2, %p299_p0  ;;  %p7097_p6 = por %p306_p4, %p305_p3 }
   0xd   : > { %12540 = sst [smem:[#allocation8_spill]] %s7091_s30  ;;  %p6362_p7 = scmp.ge.s32.totalorder %s6988_s24, 1 }
   0xe   : > { %p367_p8 = scmp.lt.s32.totalorder %s6988_s24, 3 }
  0x10   : > { %p368_p9 = pnand %p6362_p7, %p367_p8 }
  0x12   : > { %371 = sbr.rel (%p368_p9) target bundleno = 2110 (0x83e), region = 68 }
  0x17   : > { %v6390_v0 = vld [vmem:[%s12434_s1 + $0x190] sm:$0x3f]  ;;  %vm631_vm0 = vcmask 1045504   ;;  %v6391_v1 = vld [vmem:[%s12434_s1 + $0x198] sm:$0x3f]  ;;  %v6388_v2 = vld [vmem:[%s12434_s1 + $0x180] sm:$0xff] }
  0x18   : > { %6392 = vmatpush.msk.msra.mxu0 %vm631_vm0, %v6390_v0  ;;  %6425 = vmatpush.msk.msra.mxu1 %vm631_vm0, %v6391_v1  ;;  %v473_v3 = vld [vmem:[%s12434_s1 + $0xc0] sm:$0x3f]  ;;  %v6389_v4 = vld [vmem:[%s12434_s1 + $0x188] sm:$0xff]  ;;  %v471_v5 = vld [vmem:[%s12434_s1 + $0xb0] sm:$0xff]  ;;  %s12543_s19 = sadd.s32 4294967295, %s6988_s24   ;;  %s12544_s0 = sld [smem:[#allocation62_spill]] }
  0x19   : > { %6458 = vmatpush.msk.msra.mxu2 %vm631_vm0, %v473_v3  ;;  %v6386_v6 = vld [vmem:[%s12434_s1 + $0x170] sm:$0xff]  ;;  %v6387_v7 = vld [vmem:[%s12434_s1 + $0x178] sm:$0xff]  ;;  %v469_v8 = vld [vmem:[%s12434_s1 + $0xa0] sm:$0xff]  ;;  %s7144_s20 = sshll.u32 %s12543_s19, 3  ;;  %vm534_vm1 = vcmask 834560   ;;  %vm1801_vm2 = vcmask 523264  }
  0x1a   : > { %642 = vmatpush.msra.mxu0 %v6388_v2  ;;  %755 = vmatpush.msra.mxu1 %v6389_v4  ;;  %v6384_v9 = vld [vmem:[%s12434_s1 + $0x160] sm:$0xff]  ;;  %v6385_v10 = vld [vmem:[%s12434_s1 + $0x168] sm:$0xff]  ;;  %v467_v11 = vld [vmem:[%s12434_s1 + $0x90] sm:$0xff]  ;;  %p411_p10 = scmp.lt.s32.totalorder %s7144_s20, 15  ;;  %vm2630_vm3 = vcmask 779264   ;;  %vm3667_vm4 = vcmask 1041409   ;;  %s6295_s23 = scalar_lea.hbm %s12445_s12, %s7144_s20 }
  0x1b   : > { %970 = vmatpush.msra.mxu2 %v471_v5  ;;  %v6382_v12 = vld [vmem:[%s12434_s1 + $0x150] sm:$0xff]  ;;  %v6383_v13 = vld [vmem:[%s12434_s1 + $0x158] sm:$0xff]  ;;  %v465_v14 = vld [vmem:[%s12434_s1 + $0x80] sm:$0xff]  ;;  %vm3669_vm5 = vcmask 1042434   ;;  %vm3671_vm6 = vcmask 1043459   ;;  %vm3673_vm7 = vcmask 1044484  }
  0x1c   : > { %643 = vmatpush.msra.mxu0 %v6386_v6  ;;  %756 = vmatpush.msra.mxu1 %v6387_v7  ;;  %v6380_v15 = vld [vmem:[%s12434_s1 + $0x140] sm:$0xff]  ;;  %v6381_v16 = vld [vmem:[%s12434_s1 + $0x148] sm:$0xff]  ;;  %v463_v17 = vld [vmem:[%s12434_s1 + $0x70] sm:$0xff]  ;;  %s412_s29 = scalar_select %p411_p10, %s7144_s20, 15  ;;  %vm3675_vm8 = vcmask 1045509   ;;  %vm3677_vm9 = vcmask 1046534  }
  0x1d   : > { %971 = vmatpush.msra.mxu2 %v469_v8  ;;  %v6378_v18 = vld [vmem:[%s12434_s1 + $0x130] sm:$0xff]  ;;  %v6379_v19 = vld [vmem:[%s12434_s1 + $0x138] sm:$0xff]  ;;  %v461_v20 = vld [vmem:[%s12434_s1 + $0x60] sm:$0xff]  ;;  %vm3679_vm10 = vcmask 1047559   ;;  %vm3786_vm11 = vcmask 785408   ;;  %vm4071_vm12 = vcmask 1043456  }
  0x1e   : > { %644 = vmatpush.msra.mxu0 %v6384_v9  ;;  %757 = vmatpush.msra.mxu1 %v6385_v10  ;;  %v6376_v21 = vld [vmem:[%s12434_s1 + $0x120] sm:$0xff]  ;;  %v6377_v22 = vld [vmem:[%s12434_s1 + $0x128] sm:$0xff]  ;;  %v459_v23 = vld [vmem:[%s12434_s1 + $0x50] sm:$0xff]  ;;  %s6876_s17 = smul.u32 40, %s412_s29  ;;  %vm3884_vm13 = vcmask 883712   ;;  %vm3909_vm14 = vcmask 876544  }
  0x1f   : > { %972 = vmatpush.msra.mxu2 %v467_v11  ;;  %v6374_v24 = vld [vmem:[%s12434_s1 + $0x110] sm:$0xff]  ;;  %v6375_v25 = vld [vmem:[%s12434_s1 + $0x118] sm:$0xff]  ;;  %v457_v26 = vld [vmem:[%s12434_s1 + $0x40] sm:$0xff]  ;;  %vm6256_vm15 = vcmask 818176   ;;  %s407_s29 = sand.u32 1, %s6980_s22   ;;  %s6299_s26 = sshll.u32 %s6295_s23, 4  ;;  %s6300_s26 = int_to_ptr.hbm [resolvable:$true] %s6299_s26 }
  0x20   : > { %645 = vmatpush.msra.mxu0 %v6382_v12  ;;  %758 = vmatpush.msra.mxu1 %v6383_v13  ;;  %v6372_v27 = vld [vmem:[%s12434_s1 + $0x100] sm:$0xff]  ;;  %v6373_v28 = vld [vmem:[%s12434_s1 + $0x108] sm:$0xff]  ;;  %v455_v29 = vld [vmem:[%s12434_s1 + $0x30] sm:$0xff]  ;;  %s7220_s27 = scalar_lea.vmem %s12544_s0, %s6876_s17  ;;  %s6363_s15 = sshll.u32 %s407_s29, 3 }
  0x21   : > { %973 = vmatpush.msra.mxu2 %v465_v14  ;;  %v6370_v30 = vld [vmem:[%s12434_s1 + $0xf0] sm:$0xff]  ;;  %v6371_v31 = vld [vmem:[%s12434_s1 + $0xf8] sm:$0xff]  ;;  %v453_v32 = vld [vmem:[%s12434_s1 + $0x20] sm:$0xff]  ;;  %s409_s25 = scalar_lea.vmem [#allocation3], %s6363_s15  ;;  %s6940_s28 = sshra.s32 %s6300_s26, 4  ;;  %s6941_s28 = int_to_ptr.hbm [resolvable:$true] %s6940_s28 }
  0x22   : > { %646 = vmatpush.msra.mxu0 %v6380_v15  ;;  %759 = vmatpush.msra.mxu1 %v6381_v16  ;;  %v6368_v33 = vld [vmem:[%s12434_s1 + $0xe0] sm:$0xff]  ;;  %v6369_v34 = vld [vmem:[%s12434_s1 + $0xe8] sm:$0xff]  ;;  %v451_v35 = vld [vmem:[%s12434_s1 + $0x10] sm:$0xff]  ;;  %s6297_s19 = sshll.u32 %s409_s25, 4  ;;  %s6942_s0 = scalar_lea.hbm %s6941_s28, 8  ;;  %s6298_s19 = int_to_ptr.vmem [resolvable:$true] %s6297_s19 }
  0x23   : > { %974 = vmatpush.msra.mxu2 %v463_v17  ;;  %v6366_v36 = vld [vmem:[%s12434_s1 + $0xd0] sm:$0xff]  ;;  %v6367_v37 = vld [vmem:[%s12434_s1 + $0xd8] sm:$0xff]  ;;  %v449_v38 = vld [vmem:[%s12434_s1] sm:$0xff]  ;;  %p6943_p11 = scmp.ne.s32.totalorder %s6941_s28, %s6942_s0  ;;  %s6946_s16 = scalar_lea.hbm %s12445_s12, 16 }
  0x24   : > { %647 = vmatpush.msra.mxu0 %v6378_v18  ;;  %760 = vmatpush.msra.mxu1 %v6379_v19  ;;  %v475_v39 = vld [vmem:[%s7220_s27 + $0x1] sm:$0xff]  ;;  %v476_v41 = vld [vmem:[%s7220_s27 + $0x9] sm:$0xff]  ;;  %v477_v43 = vld [vmem:[%s7220_s27 + $0x11] sm:$0xff]  ;;  %p6947_p0 = scmp.lt.s32.totalorder %s6941_s28, %s12445_s12  ;;  %p6948_p1 = scmp.lt.s32.totalorder %s6946_s16, %s6942_s0 }
  0x25   : > { %975 = vmatpush.msra.mxu2 %v461_v20  ;;  %v7236_v40 = vld [vmem:[%s7220_s27] sm:$0xff]  ;;  %v7244_v42 = vld [vmem:[%s7220_s27 + $0x8] sm:$0xff]  ;;  %v7252_v44 = vld [vmem:[%s7220_s27 + $0x10] sm:$0xff]  ;;  %p6944_p12 = pnand %p6943_p11, %p7093_p5 }
  0x26   : > { %648 = vmatpush.msra.mxu0 %v6376_v21  ;;  %761 = vmatpush.msra.mxu1 %v6377_v22  ;;  %v478_v45 = vld [vmem:[%s7220_s27 + $0x19] sm:$0xff]  ;;  %v479_v47 = vld [vmem:[%s7220_s27 + $0x29] sm:$0xff]  ;;  %v480_v49 = vld [vmem:[%s7220_s27 + $0x31] sm:$0xff]  ;;  %p6949_p2 = por %p6948_p1, %p6947_p0 }
  0x27   : > { %976 = vmatpush.msra.mxu2 %v459_v23  ;;  %v7260_v46 = vld [vmem:[%s7220_s27 + $0x18] sm:$0xff]  ;;  %v7268_v48 = vld [vmem:[%s7220_s27 + $0x28] sm:$0xff]  ;;  %v7276_v50 = vld [vmem:[%s7220_s27 + $0x30] sm:$0xff]  ;;  %p6945_p13 = pneg %p6944_p12 }
  0x28   : > { %649 = vmatpush.msra.mxu0 %v6374_v24  ;;  %762 = vmatpush.msra.mxu1 %v6375_v25  ;;  %v481_v51 = vld [vmem:[%s7220_s27 + $0x39] sm:$0xff]  ;;  %v474_v53 = vld [vmem:[%s12434_s1 + $0xc8] sm:$0x3f]  ;;  %v483_v60 = vld [vmem:[%s7220_s27 + $0x51] sm:$0xff] }
  0x29   : > { %977 = vmatpush.msra.mxu2 %v457_v26  ;;  %v7284_v52 = vld [vmem:[%s7220_s27 + $0x38] sm:$0xff]  ;;  %6491 = vmatpush.msk.msra.mxu3 %vm631_vm0, %v474_v53  ;;  %v482_v55 = vld [vmem:[%s7220_s27 + $0x41] sm:$0xff]  ;;  %v7319_v62 = vld [vmem:[%s7220_s27 + $0x50] sm:$0xff]  ;;  %p6950_p3 = pnand %p6949_p2, %p6945_p13 }
  0x2a   : > { %650 = vmatpush.msra.mxu0 %v6372_v27  ;;  %763 = vmatpush.msra.mxu1 %v6373_v28  ;;  %v472_v54 = vld [vmem:[%s12434_s1 + $0xb8] sm:$0xff]  ;;  %v7299_v56 = vld [vmem:[%s7220_s27 + $0x40] sm:$0xff]  ;;  %v470_v57 = vld [vmem:[%s12434_s1 + $0xa8] sm:$0xff] }
  0x2b   : > { %978 = vmatpush.msra.mxu2 %v455_v29  ;;  %1083 = vmatpush.msra.mxu3 %v472_v54  ;;  %v468_v58 = vld [vmem:[%s12434_s1 + $0x98] sm:$0xff]  ;;  %v466_v59 = vld [vmem:[%s12434_s1 + $0x88] sm:$0xff]  ;;  %v7356_v9 = vld [vmem:[%s7220_s27 + $0x60] sm:$0xff] }
  0x2c   : > { %651 = vmatpush.msra.mxu0 %v6370_v30  ;;  %764 = vmatpush.msra.mxu1 %v6371_v31  ;;  %v464_v61 = vld [vmem:[%s12434_s1 + $0x78] sm:$0xff]  ;;  %v462_v63 = vld [vmem:[%s12434_s1 + $0x68] sm:$0xff]  ;;  %v6548_v12 = vld [vmem:[%s12434_s1 + $0x260] sm:$0x3f] }
  0x2d   : > { %979 = vmatpush.msra.mxu2 %v453_v32  ;;  %1084 = vmatpush.msra.mxu3 %v470_v57  ;;  %v460_v0 = vld [vmem:[%s12434_s1 + $0x58] sm:$0xff]  ;;  %v458_v1 = vld [vmem:[%s12434_s1 + $0x48] sm:$0xff]  ;;  %v7390_v16 = vld [vmem:[%s7220_s27 + $0x80] sm:$0xff] }
  0x2e   : > { %652 = vmatpush.msra.mxu0 %v6368_v33  ;;  %765 = vmatpush.msra.mxu1 %v6369_v34  ;;  %v484_v2 = vld [vmem:[%s7220_s27 + $0x59] sm:$0xff]  ;;  %v454_v5 = vld [vmem:[%s12434_s1 + $0x28] sm:$0xff]  ;;  %v6546_v18 = vld [vmem:[%s12434_s1 + $0x250] sm:$0xff] }
  0x2f   : > { %980 = vmatpush.msra.mxu2 %v451_v35  ;;  %1085 = vmatpush.msra.mxu3 %v468_v58  ;;  %v456_v3 = vld [vmem:[%s12434_s1 + $0x38] sm:$0xff]  ;;  %v450_v7 = vld [vmem:[%s12434_s1 + $0x8] sm:$0xff]  ;;  %v7413_v21 = vld [vmem:[%s7220_s27 + $0x90] sm:$0xff] }
  0x30   : > { %653 = vmatpush.msra.mxu0 %v6366_v36  ;;  %766 = vmatpush.msra.mxu1 %v6367_v37  ;;  %v7339_v4 = vld [vmem:[%s7220_s27 + $0x58] sm:$0xff]  ;;  %v485_v8 = vld [vmem:[%s7220_s27 + $0x61] sm:$0xff]  ;;  %v486_v10 = vld [vmem:[%s7220_s27 + $0x69] sm:$0xff] }
  0x31   : > { %981 = vmatpush.msra.mxu2 %v449_v38  ;;  %6393 = vmatmul.msk.f32.vlgmr.msra.gmra.mxu0 %vm534_vm1, %v475_v39  ;;  %v452_v6 = vld [vmem:[%s12434_s1 + $0x18] sm:$0xff]  ;;  %v7366_v11 = vld [vmem:[%s7220_s27 + $0x68] sm:$0xff]  ;;  %v7425_v25 = vld [vmem:[%s7220_s27 + $0xa0] sm:$0xff] }
  0x32   : > { %6426 = vmatmul.msk.f32.vlgmr.msra.gmra.mxu1 %vm534_vm1, %v475_v39  ;;  %6459 = vmatmul.msk.f32.vlgmr.msra.gmra.mxu2 %vm534_vm1, %v7236_v40  ;;  %v487_v13 = vld [vmem:[%s7220_s27 + $0x79] sm:$0xff]  ;;  %v488_v15 = vld [vmem:[%s7220_s27 + $0x81] sm:$0xff]  ;;  %v489_v17 = vld [vmem:[%s7220_s27 + $0x89] sm:$0xff] }
  0x33   : > { %1086 = vmatpush.msra.mxu3 %v466_v59  ;;  %6550 = vmatpush.msk.msrb.mxu0 %vm631_vm0, %v6548_v12  ;;  %v7380_v14 = vld [vmem:[%s7220_s27 + $0x78] sm:$0xff]  ;;  %v7403_v19 = vld [vmem:[%s7220_s27 + $0x88] sm:$0xff]  ;;  %v6544_v26 = vld [vmem:[%s12434_s1 + $0x240] sm:$0xff] }
  0x34   : > { %v490_v20 = vld [vmem:[%s7220_s27 + $0x91] sm:$0xff]  ;;  %v491_v23 = vld [vmem:[%s7220_s27 + $0xa1] sm:$0xff]  ;;  %v492_v30 = vld [vmem:[%s7220_s27 + $0xa9] sm:$0xff] }
  0x35   : > { %1087 = vmatpush.msra.mxu3 %v464_v61  ;;  %1357 = vmatpush.msrb.mxu0 %v6546_v18  ;;  %v7442_v32 = vld [vmem:[%s7220_s27 + $0xa8] sm:$0xff]  ;;  %v493_v36 = vld [vmem:[%s7220_s27 + $0xb1] sm:$0xff]  ;;  %v6540_v58 = vld [vmem:[%s12434_s1 + $0x220] sm:$0xff] }
  0x36   : > { %v7456_v38 = vld [vmem:[%s7220_s27 + $0xb0] sm:$0xff]  ;;  %v6549_v18 = vld [vmem:[%s12434_s1 + $0x268] sm:$0x3f] }
  0x37   : > { %1088 = vmatpush.msra.mxu3 %v462_v63  ;;  %1358 = vmatpush.msrb.mxu0 %v6544_v26  ;;  %v7501_v57 = vld [vmem:[%s7220_s27 + $0xd0] sm:$0xff] }
  0x38   : > { %6583 = vmatpush.msk.msrb.mxu1 %vm631_vm0, %v6549_v18 }
  0x39   : > { %6394 = vmatmul.msk.f32.gmra.mxu0 %vm534_vm1, %v476_v41  ;;  %1089 = vmatpush.msra.mxu3 %v460_v0  ;;  %v7518_v0 = vld [vmem:[%s7220_s27 + $0xd8] sm:$0xff] }
  0x3a   : > { %6427 = vmatmul.msk.f32.gmra.mxu1 %vm534_vm1, %v476_v41  ;;  %6460 = vmatmul.msk.f32.gmra.mxu2 %vm534_vm1, %v7244_v42 }
  0x3b   : > { %1090 = vmatpush.msra.mxu3 %v458_v1 }
  0x3d   : > { %1091 = vmatpush.msra.mxu3 %v456_v3 }
  0x3f   : > { %1092 = vmatpush.msra.mxu3 %v454_v5 }
  0x41   : > { %6395 = vmatmul.msk.f32.gmra.mxu0 %vm534_vm1, %v477_v43  ;;  %1093 = vmatpush.msra.mxu3 %v452_v6  ;;  %v7532_v6 = vld [vmem:[%s7220_s27 + $0xe0] sm:$0xff] }
  0x42   : > { %6428 = vmatmul.msk.f32.gmra.mxu1 %vm534_vm1, %v477_v43  ;;  %6461 = vmatmul.msk.f32.gmra.mxu2 %vm534_vm1, %v7252_v44  ;;  %v6542_v43 = vld [vmem:[%s12434_s1 + $0x230] sm:$0xff] }
  0x43   : > { %1094 = vmatpush.msra.mxu3 %v450_v7  ;;  %1359 = vmatpush.msrb.mxu0 %v6542_v43 }
  0x44   : > { %6492 = vmatmul.msk.f32.vlgmr.msra.gmra.mxu3 %vm534_vm1, %v7236_v40 }
  0x45   : > { %1360 = vmatpush.msrb.mxu0 %v6540_v58  ;;  %v6529_v58 = vld [vmem:[%s12434_s1 + $0x1c8] sm:$0xff] }
  0x49   : > { %6396 = vmatmul.msk.f32.gmra.mxu0 %vm534_vm1, %v478_v45 }
  0x4a   : > { %6429 = vmatmul.msk.f32.gmra.mxu1 %vm534_vm1, %v478_v45  ;;  %6462 = vmatmul.msk.f32.gmra.mxu2 %vm534_vm1, %v7260_v46  ;;  %v7473_v45 = vld [vmem:[%s7220_s27 + $0xb8] sm:$0xff] }
  0x4c   : > { %6493 = vmatmul.msk.f32.gmra.mxu3 %vm534_vm1, %v7244_v42  ;;  %v494_v42 = vld [vmem:[%s7220_s27 + $0xb9] sm:$0xff] }
  0x51   : > { %6397 = vmatmul.msk.f32.gmra.mxu0 %vm534_vm1, %v479_v47 }
  0x52   : > { %6430 = vmatmul.msk.f32.gmra.mxu1 %vm534_vm1, %v479_v47  ;;  %6463 = vmatmul.msk.f32.gmra.mxu2 %vm534_vm1, %v7268_v48 }
  0x54   : > { %6494 = vmatmul.msk.f32.gmra.mxu3 %vm534_vm1, %v7252_v44 }
  0x59   : > { %6398 = vmatmul.msk.f32.gmra.mxu0 %vm534_vm1, %v480_v49 }
  0x5a   : > { %6431 = vmatmul.msk.f32.gmra.mxu1 %vm534_vm1, %v480_v49  ;;  %6464 = vmatmul.msk.f32.gmra.mxu2 %vm534_vm1, %v7276_v50  ;;  %v495_v49 = vld [vmem:[%s7220_s27 + $0xc9] sm:$0xff] }
  0x5c   : > { %6495 = vmatmul.msk.f32.gmra.mxu3 %vm534_vm1, %v7260_v46 }
  0x61   : > { %6399 = vmatmul.msk.f32.gmra.mxu0 %vm534_vm1, %v481_v51 }
  0x62   : > { %6432 = vmatmul.msk.f32.gmra.mxu1 %vm534_vm1, %v481_v51  ;;  %6465 = vmatmul.msk.f32.gmra.mxu2 %vm534_vm1, %v7284_v52  ;;  %v7487_v51 = vld [vmem:[%s7220_s27 + $0xc8] sm:$0xff] }
  0x64   : > { %6496 = vmatmul.msk.f32.gmra.mxu3 %vm534_vm1, %v7268_v48 }
  0x69   : > { %6400 = vmatmul.msk.f32.gmra.mxu0 %vm534_vm1, %v482_v55 }
  0x6a   : > { %6433 = vmatmul.msk.f32.gmra.mxu1 %vm534_vm1, %v482_v55  ;;  %6466 = vmatmul.msk.f32.gmra.mxu2 %vm534_vm1, %v7299_v56  ;;  %v496_v55 = vld [vmem:[%s7220_s27 + $0xd1] sm:$0xff] }
  0x6c   : > { %6497 = vmatmul.msk.f32.gmra.mxu3 %vm534_vm1, %v7276_v50 }
  0x71   : > { %6401 = vmatmul.msk.f32.gmra.mxu0 %vm534_vm1, %v483_v60 }
  0x72   : > { %6434 = vmatmul.msk.f32.gmra.mxu1 %vm534_vm1, %v483_v60  ;;  %6467 = vmatmul.msk.f32.gmra.mxu2 %vm534_vm1, %v7319_v62 }
  0x74   : > { %6498 = vmatmul.msk.f32.gmra.mxu3 %vm534_vm1, %v7284_v52 }
  0x79   : > { %6402 = vmatmul.msk.f32.gmra.mxu0 %vm534_vm1, %v484_v2 }
  0x7a   : > { %6435 = vmatmul.msk.f32.gmra.mxu1 %vm534_vm1, %v484_v2  ;;  %6468 = vmatmul.msk.f32.gmra.mxu2 %vm534_vm1, %v7339_v4 }
  0x7c   : > { %6499 = vmatmul.msk.f32.gmra.mxu3 %vm534_vm1, %v7299_v56 }
  0x81   : > { %6403 = vmatmul.msk.f32.gmra.mxu0 %vm534_vm1, %v485_v8 }
  0x82   : > { %6436 = vmatmul.msk.f32.gmra.mxu1 %vm534_vm1, %v485_v8  ;;  %6469 = vmatmul.msk.f32.gmra.mxu2 %vm534_vm1, %v7356_v9 }
  0x84   : > { %6500 = vmatmul.msk.f32.gmra.mxu3 %vm534_vm1, %v7319_v62  ;;  %v497_v62 = vld [vmem:[%s7220_s27 + $0xd9] sm:$0xff] }
  0x89   : > { %6404 = vmatmul.msk.f32.gmra.mxu0 %vm534_vm1, %v486_v10 }
  0x8a   : > { %6437 = vmatmul.msk.f32.gmra.mxu1 %vm534_vm1, %v486_v10  ;;  %6470 = vmatmul.msk.f32.gmra.mxu2 %vm534_vm1, %v7366_v11  ;;  %v499_v10 = vld [vmem:[%s7220_s27 + $0xf1] sm:$0xff] }
  0x8c   : > { %6501 = vmatmul.msk.f32.gmra.mxu3 %vm534_vm1, %v7339_v4  ;;  %v498_v4 = vld [vmem:[%s7220_s27 + $0xe1] sm:$0xff] }
  0x91   : > { %6405 = vmatmul.msk.f32.gmra.mxu0 %vm534_vm1, %v487_v13 }
  0x92   : > { %6438 = vmatmul.msk.f32.gmra.mxu1 %vm534_vm1, %v487_v13  ;;  %6471 = vmatmul.msk.f32.gmra.mxu2 %vm534_vm1, %v7380_v14  ;;  %v7551_v13 = vld [vmem:[%s7220_s27 + $0xf0] sm:$0xff] }
  0x94   : > { %6502 = vmatmul.msk.f32.gmra.mxu3 %vm534_vm1, %v7356_v9 }
  0x99   : > { %6406 = vmatmul.msk.f32.gmra.mxu0 %vm534_vm1, %v488_v15 }
  0x9a   : > { %6439 = vmatmul.msk.f32.gmra.mxu1 %vm534_vm1, %v488_v15  ;;  %6472 = vmatmul.msk.f32.gmra.mxu2 %vm534_vm1, %v7390_v16  ;;  %v500_v15 = vld [vmem:[%s7220_s27 + $0xf9] sm:$0xff] }
  0x9c   : > { %6503 = vmatmul.msk.f32.gmra.mxu3 %vm534_vm1, %v7366_v11  ;;  %v6538_v11 = vld [vmem:[%s12434_s1 + $0x210] sm:$0xff] }
  0x9d   : > { %1361 = vmatpush.msrb.mxu0 %v6538_v11 }
  0xa1   : > { %6407 = vmatmul.msk.f32.gmra.mxu0 %vm534_vm1, %v489_v17 }
  0xa2   : > { %6440 = vmatmul.msk.f32.gmra.mxu1 %vm534_vm1, %v489_v17  ;;  %6473 = vmatmul.msk.f32.gmra.mxu2 %vm534_vm1, %v7403_v19  ;;  %v7565_v17 = vld [vmem:[%s7220_s27 + $0xf8] sm:$0xff] }
  0xa4   : > { %6504 = vmatmul.msk.f32.gmra.mxu3 %vm534_vm1, %v7380_v14 }
  0xa9   : > { %6408 = vmatmul.msk.f32.gmra.mxu0 %vm534_vm1, %v490_v20 }
  0xaa   : > { %6441 = vmatmul.msk.f32.gmra.mxu1 %vm534_vm1, %v490_v20  ;;  %6474 = vmatmul.msk.f32.gmra.mxu2 %vm534_vm1, %v7413_v21  ;;  %v6545_v20 = vld [vmem:[%s12434_s1 + $0x248] sm:$0xff] }
  0xac   : > { %6505 = vmatmul.msk.f32.gmra.mxu3 %vm534_vm1, %v7390_v16 }
  0xae   : > { %v655_v22 = vpop.f32.mrf.mxu0 }
  0xaf   : > { %v7422_v24 = vpop.f32.mrf.mxu1 }
  0xb1   : > { %6409 = vmatmul.msk.f32.gmra.mxu0 %vm534_vm1, %v491_v23 }
  0xb2   : > { %6442 = vmatmul.msk.f32.gmra.mxu1 %vm534_vm1, %v491_v23  ;;  %6475 = vmatmul.msk.f32.gmra.mxu2 %vm534_vm1, %v7425_v25  ;;  %v6543_v23 = vld [vmem:[%s12434_s1 + $0x238] sm:$0xff] }
  0xb4   : > { %6506 = vmatmul.msk.f32.gmra.mxu3 %vm534_vm1, %v7403_v19  ;;  %v6547_v19 = vld [vmem:[%s12434_s1 + $0x258] sm:$0xff] }
  0xb5   : > { %v983_v27 = vpop.f32.mrf.mxu2  ;;  %1470 = vmatpush.msrb.mxu1 %v6547_v19  ;;  %v7688_v19 = vld [vmem:[%s7220_s27 + $0x120] sm:$0xff] }
  0xb6   : > { %v7436_v28 = vadd.f32 %v983_v27, %v655_v22  ;;  %v658_v29 = vpop.f32.mrf.mxu0  ;;  %v501_v22 = vld [vmem:[%s7220_s27 + $0x101] sm:$0xff] }
  0xb7   : > { %v7439_v31 = vpop.f32.mrf.mxu1  ;;  %1471 = vmatpush.msrb.mxu1 %v6545_v20  ;;  %v7592_v27 = vld [vmem:[%s7220_s27 + $0x100] sm:$0xff] }
  0xb9   : > { %6410 = vmatmul.msk.f32.gmra.mxu0 %vm534_vm1, %v492_v30  ;;  %1472 = vmatpush.msrb.mxu1 %v6543_v23  ;;  %v505_v23 = vld [vmem:[%s7220_s27 + $0x129] sm:$0xff] }
  0xba   : > { %6443 = vmatmul.msk.f32.gmra.mxu1 %vm534_vm1, %v492_v30  ;;  %6476 = vmatmul.msk.f32.gmra.mxu2 %vm534_vm1, %v7442_v32  ;;  %v6541_v30 = vld [vmem:[%s12434_s1 + $0x228] sm:$0xff] }
  0xbb   : > { %1473 = vmatpush.msrb.mxu1 %v6541_v30  ;;  %v7704_v30 = vld [vmem:[%s7220_s27 + $0x128] sm:$0xff] }
  0xbc   : > { %6507 = vmatmul.msk.f32.gmra.mxu3 %vm534_vm1, %v7413_v21 }
  0xbd   : > { %v986_v33 = vpop.f32.mrf.mxu2 }
  0xbe   : > { %v7450_v34 = vadd.f32 %v986_v33, %v658_v29  ;;  %v661_v35 = vpop.f32.mrf.mxu0  ;;  %v6536_v29 = vld [vmem:[%s12434_s1 + $0x200] sm:$0xff]  ;;  %v6539_v33 = vld [vmem:[%s12434_s1 + $0x218] sm:$0xff] }
  0xbf   : > { %v7453_v37 = vpop.f32.mrf.mxu1  ;;  %1362 = vmatpush.msrb.mxu0 %v6536_v29  ;;  %1474 = vmatpush.msrb.mxu1 %v6539_v33 }
  0xc1   : > { %6411 = vmatmul.msk.f32.gmra.mxu0 %vm534_vm1, %v493_v36 }
  0xc2   : > { %6444 = vmatmul.msk.f32.gmra.mxu1 %vm534_vm1, %v493_v36  ;;  %6477 = vmatmul.msk.f32.gmra.mxu2 %vm534_vm1, %v7456_v38 }
  0xc4   : > { %6508 = vmatmul.msk.f32.gmra.mxu3 %vm534_vm1, %v7425_v25  ;;  %v6537_v25 = vld [vmem:[%s12434_s1 + $0x208] sm:$0xff] }
  0xc5   : > { %v989_v39 = vpop.f32.mrf.mxu2  ;;  %1475 = vmatpush.msrb.mxu1 %v6537_v25  ;;  %v506_v25 = vld [vmem:[%s7220_s27 + $0x131] sm:$0xff] }
  0xc6   : > { %v7464_v40 = vadd.f32 %v989_v39, %v661_v35  ;;  %v664_v41 = vpop.f32.mrf.mxu0  ;;  %v502_v39 = vld [vmem:[%s7220_s27 + $0x109] sm:$0xff] }
  0xc7   : > { %v7470_v44 = vpop.f32.mrf.mxu1  ;;  %v7609_v35 = vpop.f32.mrf.mxu3 }
  0xc9   : > { %6412 = vmatmul.msk.f32.gmra.mxu0 %vm534_vm1, %v494_v42 }
  0xca   : > { %6445 = vmatmul.msk.f32.gmra.mxu1 %vm534_vm1, %v494_v42  ;;  %6478 = vmatmul.msk.f32.gmra.mxu2 %vm534_vm1, %v7473_v45  ;;  %v6535_v42 = vld [vmem:[%s12434_s1 + $0x1f8] sm:$0xff] }
  0xcb   : > { %1476 = vmatpush.msrb.mxu1 %v6535_v42 }
  0xcc   : > { %6509 = vmatmul.msk.f32.gmra.mxu3 %vm534_vm1, %v7442_v32  ;;  %v6531_v32 = vld [vmem:[%s12434_s1 + $0x1d8] sm:$0xff] }
  0xcd   : > { %v992_v46 = vpop.f32.mrf.mxu2 }
  0xce   : > { %v7481_v47 = vadd.f32 %v992_v46, %v664_v41  ;;  %v667_v48 = vpop.f32.mrf.mxu0  ;;  %v6534_v41 = vld [vmem:[%s12434_s1 + $0x1f0] sm:$0xff]  ;;  %v7626_v46 = vld [vmem:[%s7220_s27 + $0x108] sm:$0xff] }
  0xcf   : > { %v7484_v50 = vpop.f32.mrf.mxu1  ;;  %1363 = vmatpush.msrb.mxu0 %v6534_v41  ;;  %v7720_v41 = vld [vmem:[%s7220_s27 + $0x130] sm:$0xff] }
  0xd1   : > { %6413 = vmatmul.msk.f32.gmra.mxu0 %vm534_vm1, %v495_v49 }
  0xd2   : > { %6446 = vmatmul.msk.f32.gmra.mxu1 %vm534_vm1, %v495_v49  ;;  %6479 = vmatmul.msk.f32.gmra.mxu2 %vm534_vm1, %v7487_v51  ;;  %v6532_v49 = vld [vmem:[%s12434_s1 + $0x1e0] sm:$0xff] }
  0xd3   : > { %1364 = vmatpush.msrb.mxu0 %v6532_v49 }
  0xd4   : > { %6510 = vmatmul.msk.f32.gmra.mxu3 %vm534_vm1, %v7456_v38  ;;  %v504_v38 = vld [vmem:[%s7220_s27 + $0x121] sm:$0xff] }
  0xd5   : > { %v995_v52 = vpop.f32.mrf.mxu2 }
  0xd6   : > { %v7495_v53 = vadd.f32 %v995_v52, %v667_v48  ;;  %v670_v54 = vpop.f32.mrf.mxu0  ;;  %v6533_v48 = vld [vmem:[%s12434_s1 + $0x1e8] sm:$0xff]  ;;  %v6530_v52 = vld [vmem:[%s12434_s1 + $0x1d0] sm:$0xff] }
  0xd7   : > { %v7498_v56 = vpop.f32.mrf.mxu1  ;;  %1477 = vmatpush.msrb.mxu1 %v6533_v48  ;;  %1365 = vmatpush.msrb.mxu0 %v6530_v52  ;;  %v1192_v48 = vld [vmem:[%s7220_s27 + $0x2] sm:$0xff]  ;;  %v1193_v52 = vld [vmem:[%s7220_s27 + $0xa] sm:$0xff] }
  0xd9   : > { %6414 = vmatmul.msk.f32.gmra.mxu0 %vm534_vm1, %v496_v55  ;;  %1478 = vmatpush.msrb.mxu1 %v6531_v32 }
  0xda   : > { %6447 = vmatmul.msk.f32.gmra.mxu1 %vm534_vm1, %v496_v55  ;;  %6480 = vmatmul.msk.f32.gmra.mxu2 %vm534_vm1, %v7501_v57  ;;  %v6528_v55 = vld [vmem:[%s12434_s1 + $0x1c0] sm:$0xff] }
  0xdb   : > { %1479 = vmatpush.msrb.mxu1 %v6529_v58  ;;  %1366 = vmatpush.msrb.mxu0 %v6528_v55  ;;  %v1194_v58 = vld [vmem:[%s7220_s27 + $0x12] sm:$0xff] }
  0xdc   : > { %6511 = vmatmul.msk.f32.gmra.mxu3 %vm534_vm1, %v7473_v45 }
  0xdd   : > { %v998_v59 = vpop.f32.mrf.mxu2 }
  0xde   : > { %v7512_v60 = vadd.f32 %v998_v59, %v670_v54  ;;  %v673_v61 = vpop.f32.mrf.mxu0  ;;  %v7646_v54 = vpop.f32.mrf.mxu3 }
  0xdf   : > { %v7515_v63 = vpop.f32.mrf.mxu1 }
  0xe1   : > { %6415 = vmatmul.msk.f32.gmra.mxu0 %vm534_vm1, %v497_v62 }
  0xe2   : > { %6448 = vmatmul.msk.f32.gmra.mxu1 %vm534_vm1, %v497_v62  ;;  %6481 = vmatmul.msk.f32.gmra.mxu2 %vm534_vm1, %v7518_v0  ;;  %v6527_v62 = vld [vmem:[%s12434_s1 + $0x1b8] sm:$0xff] }
  0xe3   : > { %1480 = vmatpush.msrb.mxu1 %v6527_v62 }
  0xe4   : > { %6512 = vmatmul.msk.f32.gmra.mxu3 %vm534_vm1, %v7487_v51 }
  0xe5   : > { %v1001_v1 = vpop.f32.mrf.mxu2 }
  0xe6   : > { %v7526_v2 = vadd.f32 %v1001_v1, %v673_v61  ;;  %v676_v3 = vpop.f32.mrf.mxu0  ;;  %v503_v61 = vld [vmem:[%s7220_s27 + $0x119] sm:$0xff]  ;;  %v7680_v11 = vpop.f32.mrf.mxu3 }
  0xe7   : > { %v7529_v5 = vpop.f32.mrf.mxu1 }
  0xe9   : > { %6416 = vmatmul.msk.f32.gmra.mxu0 %vm534_vm1, %v498_v4 }
  0xea   : > { %6449 = vmatmul.msk.f32.gmra.mxu1 %vm534_vm1, %v498_v4  ;;  %6482 = vmatmul.msk.f32.gmra.mxu2 %vm534_vm1, %v7532_v6  ;;  %v6525_v4 = vld [vmem:[%s12434_s1 + $0x1a8] sm:$0xff] }
  0xeb   : > { %1481 = vmatpush.msrb.mxu1 %v6525_v4  ;;  %v1195_v4 = vld [vmem:[%s7220_s27 + $0x1a] sm:$0xff] }
  0xec   : > { %6513 = vmatmul.msk.f32.gmra.mxu3 %vm534_vm1, %v7501_v57 }
  0xed   : > { %v1004_v7 = vpop.f32.mrf.mxu2 }
  0xee   : > { %v7540_v8 = vadd.f32 %v1004_v7, %v676_v3  ;;  %v7542_v9 = vpop.f32.mrf.mxu0  ;;  %v7663_v3 = vld [vmem:[%s7220_s27 + $0x118] sm:$0xff]  ;;  %v6526_v7 = vld [vmem:[%s12434_s1 + $0x1b0] sm:$0xff]  ;;  %v7696_v20 = vpop.f32.mrf.mxu3 }
  0xef   : > { %v7548_v12 = vpop.f32.mrf.mxu1  ;;  %1367 = vmatpush.msrb.mxu0 %v6526_v7 }
  0xf1   : > { %6417 = vmatmul.msk.f32.gmra.mxu0 %vm534_vm1, %v499_v10 }
  0xf2   : > { %6450 = vmatmul.msk.f32.gmra.mxu1 %vm534_vm1, %v499_v10  ;;  %6483 = vmatmul.msk.f32.gmra.mxu2 %vm534_vm1, %v7551_v13  ;;  %v6524_v10 = vld [vmem:[%s12434_s1 + $0x1a0] sm:$0xff] }
  0xf3   : > { %1368 = vmatpush.msrb.mxu0 %v6524_v10 }
  0xf4   : > { %6514 = vmatmul.msk.f32.gmra.mxu3 %vm534_vm1, %v7518_v0 }
  0xf5   : > { %v7769_v10 = vpop.f32.mrf.mxu2 }
  0xf6   : > { %v7559_v14 = vpop.f32.mrf.mxu0  ;;  %v7712_v45 = vpop.f32.mrf.mxu3 }
  0xf7   : > { %v7562_v16 = vpop.f32.mrf.mxu1 }
  0xf9   : > { %6418 = vmatmul.msk.f32.gmra.mxu0 %vm534_vm1, %v500_v15 }
  0xfa   : > { %6451 = vmatmul.msk.f32.gmra.mxu1 %vm534_vm1, %v500_v15  ;;  %6484 = vmatmul.msk.f32.gmra.mxu2 %vm534_vm1, %v7565_v17 }
  0xfc   : > { %6515 = vmatmul.msk.f32.gmra.mxu3 %vm534_vm1, %v7532_v6 }
  0xfe   : > { %v7583_v21 = vpop.f32.mrf.mxu0  ;;  %v7728_v51 = vpop.f32.mrf.mxu3 }
  0xff   : > { %v7589_v26 = vpop.f32.mrf.mxu1 }
 0x101   : > { %6419 = vmatmul.msk.f32.gmra.mxu0 %vm534_vm1, %v501_v22 }
 0x102   : > { %6452 = vmatmul.msk.f32.gmra.mxu1 %vm534_vm1, %v501_v22  ;;  %6485 = vmatmul.msk.f32.gmra.mxu2 %vm534_vm1, %v7592_v27 }
 0x104   : > { %6516 = vmatmul.msk.f32.gmra.mxu3 %vm534_vm1, %v7551_v13 }
 0x106   : > { %v7614_v36 = vpop.f32.mrf.mxu0  ;;  %v7744_v55 = vpop.f32.mrf.mxu3 }
 0x107   : > { %v7623_v43 = vpop.f32.mrf.mxu1 }
 0x109   : > { %6420 = vmatmul.msk.f32.gmra.mxu0 %vm534_vm1, %v502_v39 }
 0x10a   : > { %6453 = vmatmul.msk.f32.gmra.mxu1 %vm534_vm1, %v502_v39  ;;  %6486 = vmatmul.msk.f32.gmra.mxu2 %vm534_vm1, %v7626_v46 }
 0x10c   : > { %6517 = vmatmul.msk.f32.gmra.mxu3 %vm534_vm1, %v7565_v17  ;;  %v7783_v17 = vpop.f32.mrf.mxu2 }
 0x10e   : > { %v7654_v59 = vpop.f32.mrf.mxu0  ;;  %v7758_v62 = vpop.f32.mrf.mxu3 }
 0x10f   : > { %v7660_v1 = vpop.f32.mrf.mxu1 }
 0x111   : > { %6421 = vmatmul.msk.f32.gmra.mxu0 %vm534_vm1, %v503_v61 }
 0x112   : > { %6454 = vmatmul.msk.f32.gmra.mxu1 %vm534_vm1, %v503_v61  ;;  %6487 = vmatmul.msk.f32.gmra.mxu2 %vm534_vm1, %v7663_v3 }
 0x114   : > { %6518 = vmatmul.msk.f32.gmra.mxu3 %vm534_vm1, %v7592_v27  ;;  %v7796_v27 = vpop.f32.mrf.mxu2 }
 0x116   : > { %v7682_v15 = vpop.f32.mrf.mxu0  ;;  %v7772_v13 = vpop.f32.mrf.mxu3 }
 0x117   : > { %v7685_v18 = vpop.f32.mrf.mxu1 }
 0x119   : > { %6422 = vmatmul.msk.f32.gmra.mxu0 %vm534_vm1, %v504_v38 }
 0x11a   : > { %6455 = vmatmul.msk.f32.gmra.mxu1 %vm534_vm1, %v504_v38  ;;  %6488 = vmatmul.msk.f32.gmra.mxu2 %vm534_vm1, %v7688_v19 }
 0x11c   : > { %6519 = vmatmul.msk.f32.gmra.mxu3 %vm534_vm1, %v7626_v46 }
 0x11e   : > { %v7698_v22 = vpop.f32.mrf.mxu0 }
 0x11f   : > { %v7701_v29 = vpop.f32.mrf.mxu1 }
 0x121   : > { %6423 = vmatmul.msk.f32.gmra.mxu0 %vm534_vm1, %v505_v23 }
 0x122   : > { %6456 = vmatmul.msk.f32.gmra.mxu1 %vm534_vm1, %v505_v23  ;;  %6489 = vmatmul.msk.f32.gmra.mxu2 %vm534_vm1, %v7704_v30  ;;  %v1196_v23 = vld [vmem:[%s7220_s27 + $0x2a] sm:$0xff] }
 0x124   : > { %6520 = vmatmul.msk.f32.gmra.mxu3 %vm534_vm1, %v7663_v3 }
 0x126   : > { %v7714_v33 = vpop.f32.mrf.mxu0 }
 0x127   : > { %12545 = vst [vmem:[#allocation9_spill] sm:$0xff] %v7714_v33  ;;  %v7717_v39 = vpop.f32.mrf.mxu1 }
 0x128   : > { %12546 = vst [vmem:[#allocation10_spill] sm:$0xff] %v7717_v39 }
 0x129   : > { %6424 = vmatmul.msk.f32.gmra.mxu0 %vm534_vm1, %v506_v25 }
 0x12a   : > { %6457 = vmatmul.msk.f32.gmra.mxu1 %vm534_vm1, %v506_v25  ;;  %6490 = vmatmul.msk.f32.gmra.mxu2 %vm534_vm1, %v7720_v41 }
 0x12c   : > { %6521 = vmatmul.msk.f32.gmra.mxu3 %vm534_vm1, %v7688_v19 }
 0x12e   : > { %v7730_v42 = vpop.f32.mrf.mxu0 }
 0x12f   : > { %12547 = vst [vmem:[#allocation11_spill] sm:$0xff] %v7730_v42  ;;  %v7733_v49 = vpop.f32.mrf.mxu1 }
 0x130   : > { %12548 = vst [vmem:[#allocation12_spill] sm:$0xff] %v7733_v49 }
 0x131   : > { %6551 = vmatmul.msk.f32.vlgmr.msrb.gmra.mxu0 %vm534_vm1, %v1192_v48 }
 0x132   : > { %6584 = vmatmul.msk.f32.vlgmr.msrb.gmra.mxu1 %vm534_vm1, %v1192_v48  ;;  %v7785_v48 = vpop.f32.mrf.mxu3 }
 0x134   : > { %6522 = vmatmul.msk.f32.gmra.mxu3 %vm534_vm1, %v7704_v30  ;;  %v1791_v30 = vld [vmem:[%s12436_s3 + $0x70] sm:$0xff] }
 0x136   : > { %v7739_v57 = vpop.f32.mrf.mxu0 }
 0x137   : > { %12549 = vst [vmem:[#allocation13_spill] sm:$0xff] %v7739_v57  ;;  %v7742_v32 = vpop.f32.mrf.mxu1 }
 0x138   : > { %12550 = vst [vmem:[#allocation14_spill] sm:$0xff] %v7742_v32  ;;  %v1780_v32 = vld [vmem:[%s12436_s3 + $0x18] sm:$0xff] }
 0x139   : > { %6552 = vmatmul.msk.f32.gmra.mxu0 %vm534_vm1, %v1193_v52 }
 0x13a   : > { %6585 = vmatmul.msk.f32.gmra.mxu1 %vm534_vm1, %v1193_v52 }
 0x13c   : > { %6523 = vmatmul.msk.f32.gmra.mxu3 %vm534_vm1, %v7720_v41 }
 0x13e   : > { %v7750_v0 = vpop.f32.mrf.mxu0 }
 0x13f   : > { %12551 = vst [vmem:[#allocation15_spill] sm:$0xff] %v7750_v0  ;;  %v7753_v61 = vpop.f32.mrf.mxu1 }
 0x140   : > { %12552 = vst [vmem:[#allocation16_spill] sm:$0xff] %v7753_v61  ;;  %v1203_v61 = vld [vmem:[%s7220_s27 + $0x6a] sm:$0xff] }
 0x141   : > { %6553 = vmatmul.msk.f32.gmra.mxu0 %vm534_vm1, %v1194_v58 }
 0x142   : > { %6586 = vmatmul.msk.f32.gmra.mxu1 %vm534_vm1, %v1194_v58  ;;  %v1197_v58 = vld [vmem:[%s7220_s27 + $0x32] sm:$0xff] }
 0x146   : > { %v7761_v6 = vpop.f32.mrf.mxu0 }
 0x147   : > { %12553 = vst [vmem:[#allocation17_spill] sm:$0xff] %v7761_v6  ;;  %v7764_v7 = vpop.f32.mrf.mxu1  ;;  %v1201_v6 = vld [vmem:[%s7220_s27 + $0x5a] sm:$0xff] }
 0x148   : > { %12554 = vst [vmem:[#allocation18_spill] sm:$0xff] %v7764_v7  ;;  %v7803_v7 = vpop.f32.mrf.mxu3 }
 0x149   : > { %6554 = vmatmul.msk.f32.gmra.mxu0 %vm534_vm1, %v1195_v4 }
 0x14a   : > { %6587 = vmatmul.msk.f32.gmra.mxu1 %vm534_vm1, %v1195_v4 }
 0x14e   : > { %v7774_v38 = vpop.f32.mrf.mxu0 }
 0x14f   : > { %12555 = vst [vmem:[#allocation19_spill] sm:$0xff] %v7774_v38  ;;  %v7777_v25 = vpop.f32.mrf.mxu1 }
 0x150   : > { %12556 = vst [vmem:[#allocation20_spill] sm:$0xff] %v7777_v25  ;;  %v1198_v25 = vld [vmem:[%s7220_s27 + $0x3a] sm:$0xff] }
 0x151   : > { %6555 = vmatmul.msk.f32.gmra.mxu0 %vm534_vm1, %v1196_v23 }
 0x152   : > { %6588 = vmatmul.msk.f32.gmra.mxu1 %vm534_vm1, %v1196_v23 }
 0x156   : > { %v7787_v52 = vpop.f32.mrf.mxu0 }
 0x157   : > { %12557 = vst [vmem:[#allocation21_spill] sm:$0xff] %v7787_v52  ;;  %v7790_v4 = vpop.f32.mrf.mxu1 }
 0x158   : > { %12558 = vst [vmem:[#allocation22_spill] sm:$0xff] %v7790_v4 }
 0x159   : > { %6556 = vmatmul.msk.f32.gmra.mxu0 %vm534_vm1, %v1197_v58 }
 0x15a   : > { %6589 = vmatmul.msk.f32.gmra.mxu1 %vm534_vm1, %v1197_v58  ;;  %v1199_v58 = vld [vmem:[%s7220_s27 + $0x42] sm:$0xff] }
 0x15e   : > { %v7798_v23 = vpop.f32.mrf.mxu0 }
 0x15f   : > { %12559 = vst [vmem:[#allocation23_spill] sm:$0xff] %v7798_v23  ;;  %v7801_v38 = vpop.f32.mrf.mxu1  ;;  %v7814_v23 = vpop.f32.mrf.mxu2 }
 0x160   : > { %12560 = vst [vmem:[#allocation24_spill] sm:$0xff] %v7801_v38  ;;  %v7819_v38 = vpop.f32.mrf.mxu3 }
 0x161   : > { %6557 = vmatmul.msk.f32.gmra.mxu0 %vm534_vm1, %v1198_v25 }
 0x162   : > { %6590 = vmatmul.msk.f32.gmra.mxu1 %vm534_vm1, %v1198_v25  ;;  %v1200_v25 = vld [vmem:[%s7220_s27 + $0x52] sm:$0xff] }
 0x166   : > { %v7809_v46 = vpop.f32.mrf.mxu0 }
 0x167   : > { %12561 = vst [vmem:[#allocation25_spill] sm:$0xff] %v7809_v46  ;;  %v7812_v4 = vpop.f32.mrf.mxu1 }
 0x168   : > { %12562 = vst [vmem:[#allocation26_spill] sm:$0xff] %v7812_v4  ;;  %v7830_v4 = vpop.f32.mrf.mxu2  ;;  %v7833_v19 = vpop.f32.mrf.mxu3 }
 0x169   : > { %6558 = vmatmul.msk.f32.gmra.mxu0 %vm534_vm1, %v1199_v58 }
 0x16a   : > { %6591 = vmatmul.msk.f32.gmra.mxu1 %vm534_vm1, %v1199_v58  ;;  %v1792_v58 = vld [vmem:[%s12436_s3 + $0x78] sm:$0xff] }
 0x16b   : > { %1898 = vmatpush.msrb.mxu2 %v1792_v58  ;;  %v1789_v58 = vld [vmem:[%s12436_s3 + $0x60] sm:$0xff] }
 0x16d   : > { %1899 = vmatpush.msrb.mxu2 %v1791_v30  ;;  %v1202_v30 = vld [vmem:[%s7220_s27 + $0x62] sm:$0xff] }
 0x16e   : > { %v7822_v3 = vpop.f32.mrf.mxu0 }
 0x16f   : > { %12563 = vst [vmem:[#allocation27_spill] sm:$0xff] %v7822_v3  ;;  %v7825_v52 = vpop.f32.mrf.mxu1 }
 0x170   : > { %12564 = vst [vmem:[#allocation28_spill] sm:$0xff] %v7825_v52 }
 0x171   : > { %6559 = vmatmul.msk.f32.gmra.mxu0 %vm534_vm1, %v1200_v25 }
 0x172   : > { %6592 = vmatmul.msk.f32.gmra.mxu1 %vm534_vm1, %v1200_v25  ;;  %v1790_v25 = vld [vmem:[%s12436_s3 + $0x68] sm:$0xff] }
 0x173   : > { %1900 = vmatpush.msrb.mxu2 %v1790_v25  ;;  %v1787_v25 = vld [vmem:[%s12436_s3 + $0x50] sm:$0xff] }
 0x175   : > { %1901 = vmatpush.msrb.mxu2 %v1789_v58  ;;  %v1786_v58 = vld [vmem:[%s12436_s3 + $0x48] sm:$0xff] }
 0x176   : > { %v7835_v46 = vpop.f32.mrf.mxu0 }
 0x177   : > { %12565 = vst [vmem:[#allocation29_spill] sm:$0xff] %v7835_v46  ;;  %v7841_v52 = vpop.f32.mrf.mxu1  ;;  %v7853_v46 = vpop.f32.mrf.mxu2 }
 0x178   : > { %12566 = vst [vmem:[#allocation30_spill] sm:$0xff] %v7841_v52  ;;  %v7858_v52 = vpop.f32.mrf.mxu3 }
 0x179   : > { %6560 = vmatmul.msk.f32.gmra.mxu0 %vm534_vm1, %v1201_v6 }
 0x17a   : > { %6593 = vmatmul.msk.f32.gmra.mxu1 %vm534_vm1, %v1201_v6  ;;  %v1788_v6 = vld [vmem:[%s12436_s3 + $0x58] sm:$0xff] }
 0x17b   : > { %1902 = vmatpush.msrb.mxu2 %v1788_v6 }
 0x17d   : > { %1903 = vmatpush.msrb.mxu2 %v1787_v25  ;;  %v1784_v25 = vld [vmem:[%s12436_s3 + $0x38] sm:$0xff] }
 0x17e   : > { %v7860_v41 = vpop.f32.mrf.mxu0 }
 0x17f   : > { %12567 = vst [vmem:[#allocation31_spill] sm:$0xff] %v7860_v41  ;;  %v7866_v3 = vpop.f32.mrf.mxu1  ;;  %1904 = vmatpush.msrb.mxu2 %v1786_v58  ;;  %v1785_v41 = vld [vmem:[%s12436_s3 + $0x40] sm:$0xff]  ;;  %v7879_v6 = vpop.f32.mrf.mxu2 }
 0x180   : > { %12568 = vst [vmem:[#allocation32_spill] sm:$0xff] %v7866_v3  ;;  %v7892_v58 = vpop.f32.mrf.mxu3 }
 0x181   : > { %6561 = vmatmul.msk.f32.gmra.mxu0 %vm534_vm1, %v1202_v30  ;;  %1905 = vmatpush.msrb.mxu2 %v1785_v41  ;;  %v1783_v41 = vld [vmem:[%s12436_s3 + $0x30] sm:$0xff] }
 0x182   : > { %6594 = vmatmul.msk.f32.gmra.mxu1 %vm534_vm1, %v1202_v30  ;;  %v1800_v30 = vld [vmem:[%s12436_s3 + $0xb8] sm:$0xff] }
 0x183   : > { %1906 = vmatpush.msrb.mxu2 %v1784_v25  ;;  %2019 = vmatpush.msrb.mxu3 %v1800_v30  ;;  %v1782_v25 = vld [vmem:[%s12436_s3 + $0x28] sm:$0xff] }
 0x184   : > { %v1798_v30 = vld [vmem:[%s12436_s3 + $0xa8] sm:$0xff] }
 0x185   : > { %1907 = vmatpush.msrb.mxu2 %v1783_v41  ;;  %v1797_v41 = vld [vmem:[%s12436_s3 + $0xa0] sm:$0xff] }
 0x186   : > { %v7881_v3 = vpop.f32.mrf.mxu0 }
 0x187   : > { %12569 = vst [vmem:[#allocation33_spill] sm:$0xff] %v7881_v3  ;;  %v7890_v0 = vpop.f32.mrf.mxu1  ;;  %v1799_v3 = vld [vmem:[%s12436_s3 + $0xb0] sm:$0xff]  ;;  %1908 = vmatpush.msrb.mxu2 %v1782_v25  ;;  %v1796_v25 = vld [vmem:[%s12436_s3 + $0x98] sm:$0xff]  ;;  %v7925_v57 = vpop.f32.mrf.mxu2 }
 0x188   : > { %12570 = vst [vmem:[#allocation34_spill] sm:$0xff] %v7890_v0  ;;  %2020 = vmatpush.msrb.mxu3 %v1799_v3  ;;  %v1781_v0 = vld [vmem:[%s12436_s3 + $0x20] sm:$0xff] }
 0x189   : > { %6562 = vmatmul.msk.f32.gmra.mxu0 %vm534_vm1, %v1203_v61  ;;  %1909 = vmatpush.msrb.mxu2 %v1781_v0  ;;  %v1204_v3 = vld [vmem:[%s7220_s27 + $0x7a] sm:$0xff]  ;;  %12573 = vst [vmem:[#allocation37_spill] sm:$0xff] %v7925_v57  ;;  %v1779_v0 = vld [vmem:[%s12436_s3 + $0x10] sm:$0xff] }
 0x18a   : > { %6595 = vmatmul.msk.f32.gmra.mxu1 %vm534_vm1, %v1203_v61  ;;  %2021 = vmatpush.msrb.mxu3 %v1798_v30 }
 0x18b   : > { %1910 = vmatpush.msrb.mxu2 %v1780_v32  ;;  %v1778_v32 = vld [vmem:[%s12436_s3 + $0x8] sm:$0xff] }
 0x18c   : > { %2022 = vmatpush.msrb.mxu3 %v1797_v41  ;;  %v1795_v41 = vld [vmem:[%s12436_s3 + $0x90] sm:$0xff] }
 0x18d   : > { %1911 = vmatpush.msrb.mxu2 %v1779_v0 }
 0x18e   : > { %v7914_v61 = vpop.f32.mrf.mxu0  ;;  %2023 = vmatpush.msrb.mxu3 %v1796_v25  ;;  %v1794_v25 = vld [vmem:[%s12436_s3 + $0x88] sm:$0xff] }
 0x18f   : > { %12571 = vst [vmem:[#allocation35_spill] sm:$0xff] %v7914_v61  ;;  %v7923_v30 = vpop.f32.mrf.mxu1  ;;  %v7934_v61 = vpop.f32.mrf.mxu3  ;;  %1912 = vmatpush.msrb.mxu2 %v1778_v32 }
 0x190   : > { %12572 = vst [vmem:[#allocation36_spill] sm:$0xff] %v7923_v30  ;;  %2024 = vmatpush.msrb.mxu3 %v1795_v41  ;;  %v1777_v30 = vld [vmem:[%s12436_s3] sm:$0xff]  ;;  %v7955_v32 = vpop.f32.mrf.mxu2 }
 0x191   : > { %6563 = vmatmul.msk.f32.gmra.mxu0 %vm534_vm1, %v1204_v3  ;;  %12574 = vst [vmem:[#allocation38_spill] sm:$0xff] %v7934_v61  ;;  %1913 = vmatpush.msrb.mxu2 %v1777_v30  ;;  %v1205_v41 = vld [vmem:[%s7220_s27 + $0x82] sm:$0xff]  ;;  %v1206_v61 = vld [vmem:[%s7220_s27 + $0x8a] sm:$0xff] }
 0x192   : > { %6596 = vmatmul.msk.f32.gmra.mxu1 %vm534_vm1, %v1204_v3  ;;  %2025 = vmatpush.msrb.mxu3 %v1794_v25  ;;  %v1793_v3 = vld [vmem:[%s12436_s3 + $0x80] sm:$0xff]  ;;  %12577 = vst [vmem:[#allocation41_spill] sm:$0xff] %v7955_v32 }
 0x194   : > { %2026 = vmatpush.msrb.mxu3 %v1793_v3 }
 0x196   : > { %v7949_v0 = vpop.f32.mrf.mxu0 }
 0x197   : > { %12575 = vst [vmem:[#allocation39_spill] sm:$0xff] %v7949_v0  ;;  %v7952_v49 = vpop.f32.mrf.mxu1  ;;  %v7958_v25 = vpop.f32.mrf.mxu3  ;;  %v1207_v0 = vld [vmem:[%s7220_s27 + $0x92] sm:$0xff] }
 0x198   : > { %12576 = vst [vmem:[#allocation40_spill] sm:$0xff] %v7952_v49  ;;  %v7967_v30 = vpop.f32.mrf.mxu2 }
 0x199   : > { %6564 = vmatmul.msk.f32.gmra.mxu0 %vm534_vm1, %v1205_v41  ;;  %12578 = vst [vmem:[#allocation42_spill] sm:$0xff] %v7958_v25  ;;  %v1208_v25 = vld [vmem:[%s7220_s27 + $0xa2] sm:$0xff] }
 0x19a   : > { %6597 = vmatmul.msk.f32.gmra.mxu1 %vm534_vm1, %v1205_v41  ;;  %12581 = vst [vmem:[#allocation45_spill] sm:$0xff] %v7967_v30 }
 0x19e   : > { %v7960_v42 = vpop.f32.mrf.mxu0 }
 0x19f   : > { %12579 = vst [vmem:[#allocation43_spill] sm:$0xff] %v7960_v42  ;;  %v7963_v39 = vpop.f32.mrf.mxu1  ;;  %v7969_v3 = vpop.f32.mrf.mxu3 }
 0x1a0   : > { %12580 = vst [vmem:[#allocation44_spill] sm:$0xff] %v7963_v39  ;;  %v1643_v39 = vld [vmem:[%s12435_s2] sm:$0x3]  ;;  %v7985_v30 = vpop.f32.mrf.mxu2 }
 0x1a1   : > { %6565 = vmatmul.msk.f32.gmra.mxu0 %vm534_vm1, %v1206_v61  ;;  %12582 = vst [vmem:[#allocation46_spill] sm:$0xff] %v7969_v3  ;;  %v7981_v42 = vperm.slane %v1643_v39, 0 }
 0x1a2   : > { %6598 = vmatmul.msk.f32.gmra.mxu1 %vm534_vm1, %v1206_v61  ;;  %v1097_v61 = vadd.f32 %v7609_v35, %v7422_v24 }
 0x1a6   : > { %v7971_v49 = vpop.f32.mrf.mxu0 }
 0x1a7   : > { %12583 = vst [vmem:[#allocation47_spill] sm:$0xff] %v7971_v49  ;;  %v7974_v41 = vpop.f32.mrf.mxu1  ;;  %v7987_v49 = vperm.slane %v1643_v39, 1 }
 0x1a8   : > { %12584 = vst [vmem:[#allocation48_spill] sm:$0xff] %v7974_v41 }
 0x1a9   : > { %6566 = vmatmul.msk.f32.gmra.mxu0 %vm534_vm1, %v1207_v0 }
 0x1aa   : > { %6599 = vmatmul.msk.f32.gmra.mxu1 %vm534_vm1, %v1207_v0  ;;  %v7991_v0 = vpop.f32.mrf.mxu3 }
 0x1ab   : > { %12585 = vst [vmem:[#allocation49_spill] sm:$0xff] %v7991_v0 }
 0x1ae   : > { %v1370_v3 = vpop.f32.mrf.mxu0 }
 0x1af   : > { %v1579_v41 = vadd.f32 %v1370_v3, %v7436_v28  ;;  %v1483_v32 = vpop.f32.mrf.mxu1  ;;  %v1100_v28 = vadd.f32 %v7646_v54, %v7439_v31 }
 0x1b0   : > { %v1580_v57 = vadd.f32 %v1483_v32, %v1097_v61 }
 0x1b1   : > { %v7994_v33 = vadd.f32 %v7981_v42, %v1579_v41  ;;  %6567 = vmatmul.msk.f32.gmra.mxu0 %vm534_vm1, %v1208_v25  ;;  %v8012_v41 = vpop.f32.mrf.mxu2 }
 0x1b2   : > { %v7998_v24 = vadd.f32 %v7987_v49, %v1580_v57  ;;  %6600 = vmatmul.msk.f32.gmra.mxu1 %vm534_vm1, %v1208_v25  ;;  %v1209_v57 = vld [vmem:[%s7220_s27 + $0xaa] sm:$0xff] }
 0x1b3   : > { %v12450_v35 = vmax.f32 %v7994_v33, 0.0 }
 0x1b4   : > { %v12451_v39 = vmax.f32 %v7998_v24, 0.0 }
 0x1b5   : > { %1914 = vmatmul.f32.vlgmr.msrb.gmra.mxu2 %v12450_v35  ;;  %v8018_v35 = vpop.f32.mrf.mxu3 }
 0x1b6   : > { %6616 = vmatmul.msk.f32.vlgmr.msrb.gmra.mxu3 %vm1801_vm2, %v12451_v39  ;;  %v1373_v32 = vpop.f32.mrf.mxu0 }
 0x1b7   : > { %v1581_v25 = vadd.f32 %v1373_v32, %v7450_v34  ;;  %v1486_v3 = vpop.f32.mrf.mxu1 }
 0x1b8   : > { %v1582_v61 = vadd.f32 %v1486_v3, %v1100_v28  ;;  %v1103_v28 = vadd.f32 %v7680_v11, %v7453_v37 }
 0x1b9   : > { %v8015_v0 = vadd.f32 %v7981_v42, %v1581_v25  ;;  %6568 = vmatmul.msk.f32.gmra.mxu0 %vm534_vm1, %v1209_v57  ;;  %v1210_v25 = vld [vmem:[%s7220_s27 + $0xb2] sm:$0xff] }
 0x1ba   : > { %v8021_v31 = vadd.f32 %v7987_v49, %v1582_v61  ;;  %6601 = vmatmul.msk.f32.gmra.mxu1 %vm534_vm1, %v1209_v57 }
 0x1bb   : > { %v12452_v54 = vmax.f32 %v8015_v0, 0.0 }
 0x1bc   : > { %12586 = vst [vmem:[#allocation50_spill] sm:$0xff] %v8021_v31  ;;  %v12453_v34 = vmax.f32 %v8021_v31, 0.0 }
 0x1bd   : > { %1917 = vmatmul.f32.gmra.mxu2 %v12452_v54  ;;  %v8039_v54 = vpop.f32.mrf.mxu2  ;;  %v8045_v11 = vpop.f32.mrf.mxu3 }
 0x1be   : > { %6617 = vmatmul.msk.f32.gmra.mxu3 %vm1801_vm2, %v12453_v34  ;;  %v1376_v32 = vpop.f32.mrf.mxu0 }
 0x1bf   : > { %v1583_v3 = vadd.f32 %v1376_v32, %v7464_v40  ;;  %v1489_v57 = vpop.f32.mrf.mxu1 }
 0x1c0   : > { %v1584_v61 = vadd.f32 %v1489_v57, %v1103_v28  ;;  %v1106_v28 = vadd.f32 %v7696_v20, %v7470_v44 }
 0x1c1   : > { %v8036_v39 = vadd.f32 %v7981_v42, %v1583_v3  ;;  %6569 = vmatmul.msk.f32.gmra.mxu0 %vm534_vm1, %v1210_v25  ;;  %v1211_v3 = vld [vmem:[%s7220_s27 + $0xba] sm:$0xff] }
 0x1c2   : > { %v8042_v37 = vadd.f32 %v7987_v49, %v1584_v61  ;;  %6602 = vmatmul.msk.f32.gmra.mxu1 %vm534_vm1, %v1210_v25 }
 0x1c3   : > { %v12455_v34 = vmax.f32 %v8036_v39, 0.0 }
 0x1c4   : > { %12587 = vst [vmem:[#allocation51_spill] sm:$0xff] %v8042_v37  ;;  %v12456_v40 = vmax.f32 %v8042_v37, 0.0 }
 0x1c5   : > { %1920 = vmatmul.f32.gmra.mxu2 %v12455_v34  ;;  %v8067_v20 = vpop.f32.mrf.mxu2  ;;  %v8070_v37 = vpop.f32.mrf.mxu3 }
 0x1c6   : > { %6618 = vmatmul.msk.f32.gmra.mxu3 %vm1801_vm2, %v12456_v40  ;;  %v1379_v32 = vpop.f32.mrf.mxu0 }
 0x1c7   : > { %v1585_v25 = vadd.f32 %v1379_v32, %v7481_v47  ;;  %v1492_v57 = vpop.f32.mrf.mxu1  ;;  %v1109_v47 = vadd.f32 %v7712_v45, %v7484_v50  ;;  %v1212_v32 = vld [vmem:[%s7220_s27 + $0xca] sm:$0xff] }
 0x1c8   : > { %v1586_v61 = vadd.f32 %v1492_v57, %v1106_v28 }
 0x1c9   : > { %v8059_v31 = vadd.f32 %v7981_v42, %v1585_v25  ;;  %6570 = vmatmul.msk.f32.gmra.mxu0 %vm534_vm1, %v1211_v3 }
 0x1ca   : > { %v8063_v34 = vadd.f32 %v7987_v49, %v1586_v61  ;;  %6603 = vmatmul.msk.f32.gmra.mxu1 %vm534_vm1, %v1211_v3 }
 0x1cb   : > { %v12458_v44 = vmax.f32 %v8059_v31, 0.0 }
 0x1cc   : > { %v12459_v40 = vmax.f32 %v8063_v34, 0.0 }
 0x1cd   : > { %1923 = vmatmul.f32.gmra.mxu2 %v12458_v44 }
 0x1ce   : > { %6619 = vmatmul.msk.f32.gmra.mxu3 %vm1801_vm2, %v12459_v40  ;;  %v1382_v28 = vpop.f32.mrf.mxu0 }
 0x1cf   : > { %v1587_v3 = vadd.f32 %v1382_v28, %v7495_v53  ;;  %v1495_v25 = vpop.f32.mrf.mxu1  ;;  %v1112_v53 = vadd.f32 %v7728_v51, %v7498_v56 }
 0x1d0   : > { %v1588_v57 = vadd.f32 %v1495_v25, %v1109_v47  ;;  %v8095_v47 = vpop.f32.mrf.mxu2 }
 0x1d1   : > { %v8082_v61 = vadd.f32 %v7981_v42, %v1587_v3  ;;  %6571 = vmatmul.msk.f32.gmra.mxu0 %vm534_vm1, %v1212_v32  ;;  %v1213_v3 = vld [vmem:[%s7220_s27 + $0xd2] sm:$0xff] }
 0x1d2   : > { %v8086_v44 = vadd.f32 %v7987_v49, %v1588_v57  ;;  %6604 = vmatmul.msk.f32.gmra.mxu1 %vm534_vm1, %v1212_v32  ;;  %v8101_v32 = vpop.f32.mrf.mxu3 }
 0x1d3   : > { %v12460_v50 = vmax.f32 %v8082_v61, 0.0 }
 0x1d4   : > { %12588 = vst [vmem:[#allocation52_spill] sm:$0xff] %v8086_v44  ;;  %v12461_v45 = vmax.f32 %v8086_v44, 0.0 }
 0x1d5   : > { %1926 = vmatmul.f32.gmra.mxu2 %v12460_v50 }
 0x1d6   : > { %6620 = vmatmul.msk.f32.gmra.mxu3 %vm1801_vm2, %v12461_v45  ;;  %v1385_v28 = vpop.f32.mrf.mxu0 }
 0x1d7   : > { %v1589_v25 = vadd.f32 %v1385_v28, %v7512_v60  ;;  %v1498_v57 = vpop.f32.mrf.mxu1  ;;  %v1115_v60 = vadd.f32 %v7744_v55, %v7515_v63  ;;  %v1214_v28 = vld [vmem:[%s7220_s27 + $0xda] sm:$0xff] }
 0x1d8   : > { %v1590_v40 = vadd.f32 %v1498_v57, %v1112_v53 }
 0x1d9   : > { %v8105_v50 = vadd.f32 %v7981_v42, %v1589_v25  ;;  %6572 = vmatmul.msk.f32.gmra.mxu0 %vm534_vm1, %v1213_v3  ;;  %v8123_v25 = vpop.f32.mrf.mxu2 }
 0x1da   : > { %v8109_v56 = vadd.f32 %v7987_v49, %v1590_v40  ;;  %6605 = vmatmul.msk.f32.gmra.mxu1 %vm534_vm1, %v1213_v3  ;;  %v8125_v44 = vpop.f32.mrf.mxu3 }
 0x1db   : > { %v12463_v51 = vmax.f32 %v8105_v50, 0.0 }
 0x1dc   : > { %12589 = vst [vmem:[#allocation53_spill] sm:$0xff] %v8109_v56  ;;  %v12464_v45 = vmax.f32 %v8109_v56, 0.0 }
 0x1dd   : > { %1929 = vmatmul.f32.gmra.mxu2 %v12463_v51 }
 0x1de   : > { %6621 = vmatmul.msk.f32.gmra.mxu3 %vm1801_vm2, %v12464_v45  ;;  %v1388_v53 = vpop.f32.mrf.mxu0 }
 0x1df   : > { %v1591_v40 = vadd.f32 %v1388_v53, %v7526_v2  ;;  %v1501_v3 = vpop.f32.mrf.mxu1 }
 0x1e0   : > { %v1592_v57 = vadd.f32 %v1501_v3, %v1115_v60  ;;  %v1118_v60 = vadd.f32 %v7758_v62, %v7529_v5 }
 0x1e1   : > { %v8128_v51 = vadd.f32 %v7981_v42, %v1591_v40  ;;  %6573 = vmatmul.msk.f32.gmra.mxu0 %vm534_vm1, %v1214_v28  ;;  %v1215_v40 = vld [vmem:[%s7220_s27 + $0xe2] sm:$0xff] }
 0x1e2   : > { %v8132_v63 = vadd.f32 %v7987_v49, %v1592_v57  ;;  %6606 = vmatmul.msk.f32.gmra.mxu1 %vm534_vm1, %v1214_v28  ;;  %v8156_v62 = vpop.f32.mrf.mxu3 }
 0x1e3   : > { %v12465_v55 = vmax.f32 %v8128_v51, 0.0 }
 0x1e4   : > { %12590 = vst [vmem:[#allocation54_spill] sm:$0xff] %v8132_v63  ;;  %v12466_v2 = vmax.f32 %v8132_v63, 0.0 }
 0x1e5   : > { %1932 = vmatmul.f32.gmra.mxu2 %v12465_v55  ;;  %v8150_v55 = vpop.f32.mrf.mxu2 }
 0x1e6   : > { %6622 = vmatmul.msk.f32.gmra.mxu3 %vm1801_vm2, %v12466_v2  ;;  %v1391_v53 = vpop.f32.mrf.mxu0 }
 0x1e7   : > { %v1593_v3 = vadd.f32 %v1391_v53, %v7540_v8  ;;  %v1504_v28 = vpop.f32.mrf.mxu1  ;;  %v1121_v53 = vadd.f32 %v7772_v13, %v7548_v12  ;;  %v2139_v12 = vld [vmem:[%s12437_s4 + $0x78] sm:$0xff] }
 0x1e8   : > { %v1594_v57 = vadd.f32 %v1504_v28, %v1118_v60  ;;  %v1008_v60 = vadd.f32 %v7769_v10, %v7542_v9  ;;  %2148 = vmatpush.msra.mxu0 %v2139_v12  ;;  %6860 = vmatpush.msra.mxu1 %v2139_v12  ;;  %v2137_v12 = vld [vmem:[%s12437_s4 + $0x68] sm:$0xff] }
 0x1e9   : > { %v8147_v45 = vadd.f32 %v7981_v42, %v1593_v3  ;;  %6574 = vmatmul.msk.f32.gmra.mxu0 %vm534_vm1, %v1215_v40  ;;  %v1216_v3 = vld [vmem:[%s7220_s27 + $0xf2] sm:$0xff] }
 0x1ea   : > { %v8153_v5 = vadd.f32 %v7987_v49, %v1594_v57  ;;  %6607 = vmatmul.msk.f32.gmra.mxu1 %vm534_vm1, %v1215_v40 }
 0x1eb   : > { %v12482_v2 = vmax.f32 %v8147_v45, 0.0 }
 0x1ec   : > { %v12469_v8 = vmax.f32 %v8153_v5, 0.0 }
 0x1ed   : > { %1935 = vmatmul.f32.gmra.mxu2 %v12482_v2  ;;  %v8182_v13 = vpop.f32.mrf.mxu2 }
 0x1ee   : > { %6623 = vmatmul.msk.f32.gmra.mxu3 %vm1801_vm2, %v12469_v8  ;;  %v1394_v40 = vpop.f32.mrf.mxu0 }
 0x1ef   : > { %v1595_v28 = vadd.f32 %v1394_v40, %v1008_v60  ;;  %v1507_v57 = vpop.f32.mrf.mxu1  ;;  %v8190_v40 = vpop.f32.mrf.mxu3 }
 0x1f0   : > { %v1596_v63 = vadd.f32 %v1507_v57, %v1121_v53  ;;  %v1011_v53 = vadd.f32 %v7783_v17, %v7559_v14  ;;  %v1217_v57 = vld [vmem:[%s7220_s27 + $0xfa] sm:$0xff] }
 0x1f1   : > { %v8171_v56 = vadd.f32 %v7981_v42, %v1595_v28  ;;  %6575 = vmatmul.msk.f32.gmra.mxu0 %vm534_vm1, %v1216_v3 }
 0x1f2   : > { %v8175_v9 = vadd.f32 %v7987_v49, %v1596_v63  ;;  %6608 = vmatmul.msk.f32.gmra.mxu1 %vm534_vm1, %v1216_v3  ;;  %v2138_v63 = vld [vmem:[%s12437_s4 + $0x70] sm:$0xff]  ;;  %v1124_v3 = vadd.f32 %v7785_v48, %v7562_v16 }
 0x1f3   : > { %v12470_v10 = vmax.f32 %v8171_v56, 0.0  ;;  %2149 = vmatpush.msra.mxu0 %v2138_v63  ;;  %6861 = vmatpush.msra.mxu1 %v2138_v63  ;;  %v2135_v63 = vld [vmem:[%s12437_s4 + $0x58] sm:$0xff] }
 0x1f4   : > { %12591 = vst [vmem:[#allocation55_spill] sm:$0xff] %v8175_v9  ;;  %v12471_v60 = vmax.f32 %v8175_v9, 0.0 }
 0x1f5   : > { %1938 = vmatmul.f32.gmra.mxu2 %v12470_v10  ;;  %2150 = vmatpush.msra.mxu0 %v2137_v12  ;;  %v2136_v10 = vld [vmem:[%s12437_s4 + $0x60] sm:$0xff] }
 0x1f6   : > { %6624 = vmatmul.msk.f32.gmra.mxu3 %vm1801_vm2, %v12471_v60  ;;  %v1397_v28 = vpop.f32.mrf.mxu0  ;;  %6862 = vmatpush.msra.mxu1 %v2137_v12  ;;  %v8228_v12 = vpop.f32.mrf.mxu2 }
 0x1f7   : > { %v1597_v14 = vadd.f32 %v1397_v28, %v1011_v53  ;;  %v1510_v17 = vpop.f32.mrf.mxu1  ;;  %2151 = vmatpush.msra.mxu0 %v2136_v10  ;;  %v2134_v28 = vld [vmem:[%s12437_s4 + $0x50] sm:$0xff] }
 0x1f8   : > { %v1598_v8 = vadd.f32 %v1510_v17, %v1124_v3  ;;  %6863 = vmatpush.msra.mxu1 %v2136_v10 }
 0x1f9   : > { %v8207_v16 = vadd.f32 %v7981_v42, %v1597_v14  ;;  %6576 = vmatmul.msk.f32.gmra.mxu0 %vm534_vm1, %v1217_v57  ;;  %v1218_v14 = vld [vmem:[%s7220_s27 + $0x102] sm:$0xff] }
 0x1fa   : > { %v8211_v48 = vadd.f32 %v7987_v49, %v1598_v8  ;;  %6609 = vmatmul.msk.f32.gmra.mxu1 %vm534_vm1, %v1217_v57  ;;  %2152 = vmatpush.msra.mxu0 %v2135_v63  ;;  %v1014_v8 = vadd.f32 %v7796_v27, %v7583_v21  ;;  %v1127_v57 = vadd.f32 %v7803_v7, %v7589_v26  ;;  %v2133_v21 = vld [vmem:[%s12437_s4 + $0x48] sm:$0xff]  ;;  %v8237_v27 = vpop.f32.mrf.mxu3  ;;  %v2132_v26 = vld [vmem:[%s12437_s4 + $0x40] sm:$0xff] }
 0x1fb   : > { %v12481_v53 = vmax.f32 %v8207_v16, 0.0  ;;  %6864 = vmatpush.msra.mxu1 %v2135_v63 }
 0x1fc   : > { %12592 = vst [vmem:[#allocation56_spill] sm:$0xff] %v8211_v48  ;;  %v12472_v3 = vmax.f32 %v8211_v48, 0.0  ;;  %2153 = vmatpush.msra.mxu0 %v2134_v28 }
 0x1fd   : > { %1941 = vmatmul.f32.gmra.mxu2 %v12481_v53  ;;  %6865 = vmatpush.msra.mxu1 %v2134_v28  ;;  %v2131_v28 = vld [vmem:[%s12437_s4 + $0x38] sm:$0xff] }
 0x1fe   : > { %6625 = vmatmul.msk.f32.gmra.mxu3 %vm1801_vm2, %v12472_v3  ;;  %v1400_v10 = vpop.f32.mrf.mxu0  ;;  %2154 = vmatpush.msra.mxu0 %v2133_v21 }
 0x1ff   : > { %v1599_v17 = vadd.f32 %v1400_v10, %v1014_v8  ;;  %v1513_v63 = vpop.f32.mrf.mxu1  ;;  %6866 = vmatpush.msra.mxu1 %v2133_v21  ;;  %v2130_v10 = vld [vmem:[%s12437_s4 + $0x30] sm:$0xff] }
 0x200   : > { %v1600_v60 = vadd.f32 %v1513_v63, %v1127_v57  ;;  %2155 = vmatpush.msra.mxu0 %v2132_v26  ;;  %v2129_v63 = vld [vmem:[%s12437_s4 + $0x28] sm:$0xff] }
 0x201   : > { %v8243_v7 = vadd.f32 %v7981_v42, %v1599_v17  ;;  %6577 = vmatmul.msk.f32.gmra.mxu0 %vm534_vm1, %v1218_v14  ;;  %6867 = vmatpush.msra.mxu1 %v2132_v26  ;;  %v1219_v17 = vld [vmem:[%s7220_s27 + $0x10a] sm:$0xff] }
 0x202   : > { %v8247_v3 = vadd.f32 %v7987_v49, %v1600_v60  ;;  %6610 = vmatmul.msk.f32.gmra.mxu1 %vm534_vm1, %v1218_v14  ;;  %2156 = vmatpush.msra.mxu0 %v2131_v28  ;;  %v1017_v60 = vadd.f32 %v7814_v23, %v7614_v36  ;;  %v1130_v14 = vadd.f32 %v7819_v38, %v7623_v43  ;;  %v8271_v23 = vpop.f32.mrf.mxu2  ;;  %v2128_v43 = vld [vmem:[%s12437_s4 + $0x20] sm:$0xff]  ;;  %v8276_v38 = vpop.f32.mrf.mxu3 }
 0x203   : > { %v12474_v8 = vmax.f32 %v8243_v7, 0.0  ;;  %6868 = vmatpush.msra.mxu1 %v2131_v28 }
 0x204   : > { %12593 = vst [vmem:[#allocation57_spill] sm:$0xff] %v8247_v3  ;;  %v12473_v57 = vmax.f32 %v8247_v3, 0.0  ;;  %2157 = vmatpush.msra.mxu0 %v2130_v10 }
 0x205   : > { %1944 = vmatmul.f32.gmra.mxu2 %v12474_v8  ;;  %6869 = vmatpush.msra.mxu1 %v2130_v10  ;;  %v2127_v10 = vld [vmem:[%s12437_s4 + $0x18] sm:$0xff] }
 0x206   : > { %6626 = vmatmul.msk.f32.gmra.mxu3 %vm1801_vm2, %v12473_v57  ;;  %v1403_v21 = vpop.f32.mrf.mxu0  ;;  %2158 = vmatpush.msra.mxu0 %v2129_v63 }
 0x207   : > { %v1601_v26 = vadd.f32 %v1403_v21, %v1017_v60  ;;  %v1516_v36 = vpop.f32.mrf.mxu1  ;;  %6870 = vmatpush.msra.mxu1 %v2129_v63  ;;  %v2126_v63 = vld [vmem:[%s12437_s4 + $0x10] sm:$0xff] }
 0x208   : > { %v1602_v28 = vadd.f32 %v1516_v36, %v1130_v14  ;;  %2159 = vmatpush.msra.mxu0 %v2128_v43 }
 0x209   : > { %v8279_v57 = vadd.f32 %v7981_v42, %v1601_v26  ;;  %6578 = vmatmul.msk.f32.gmra.mxu0 %vm534_vm1, %v1219_v17  ;;  %6871 = vmatpush.msra.mxu1 %v2128_v43  ;;  %v1020_v26 = vadd.f32 %v7830_v4, %v7654_v59  ;;  %v2125_v43 = vld [vmem:[%s12437_s4 + $0x8] sm:$0xff] }
 0x20a   : > { %v8283_v60 = vadd.f32 %v7987_v49, %v1602_v28  ;;  %6611 = vmatmul.msk.f32.gmra.mxu1 %vm534_vm1, %v1219_v17  ;;  %2160 = vmatpush.msra.mxu0 %v2127_v10  ;;  %v1133_v17 = vadd.f32 %v7833_v19, %v7660_v1  ;;  %v1220_v28 = vld [vmem:[%s7220_s27 + $0x11a] sm:$0xff] }
 0x20b   : > { %v12476_v14 = vmax.f32 %v8279_v57, 0.0  ;;  %6872 = vmatpush.msra.mxu1 %v2127_v10  ;;  %v2124_v1 = vld [vmem:[%s12437_s4] sm:$0xff]  ;;  %v8314_v10 = vpop.f32.mrf.mxu2 }
 0x20c   : > { %12594 = vst [vmem:[#allocation58_spill] sm:$0xff] %v8283_v60  ;;  %v12475_v21 = vmax.f32 %v8283_v60, 0.0  ;;  %2161 = vmatpush.msra.mxu0 %v2126_v63 }
 0x20d   : > { %1947 = vmatmul.f32.gmra.mxu2 %v12476_v14  ;;  %6873 = vmatpush.msra.mxu1 %v2126_v63  ;;  %v8320_v63 = vpop.f32.mrf.mxu3 }
 0x20e   : > { %6627 = vmatmul.msk.f32.gmra.mxu3 %vm1801_vm2, %v12475_v21  ;;  %v1406_v36 = vpop.f32.mrf.mxu0  ;;  %2162 = vmatpush.msra.mxu0 %v2125_v43 }
 0x20f   : > { %v1603_v8 = vadd.f32 %v1406_v36, %v1020_v26  ;;  %v1519_v59 = vpop.f32.mrf.mxu1  ;;  %6874 = vmatpush.msra.mxu1 %v2125_v43  ;;  %v1136_v36 = vadd.f32 %v7858_v52, %v7685_v18  ;;  %v1221_v43 = vld [vmem:[%s7220_s27 + $0x122] sm:$0xff] }
 0x210   : > { %v1604_v4 = vadd.f32 %v1519_v59, %v1133_v17  ;;  %2163 = vmatpush.msra.mxu0 %v2124_v1  ;;  %v1023_v17 = vadd.f32 %v7853_v46, %v7682_v15 }
 0x211   : > { %v8311_v19 = vadd.f32 %v7981_v42, %v1603_v8  ;;  %6579 = vmatmul.msk.f32.gmra.mxu0 %vm534_vm1, %v1220_v28  ;;  %6875 = vmatpush.msra.mxu1 %v2124_v1 }
 0x212   : > { %v8317_v21 = vadd.f32 %v7987_v49, %v1604_v4  ;;  %6612 = vmatmul.msk.f32.gmra.mxu1 %vm534_vm1, %v1220_v28 }
 0x213   : > { %v12480_v26 = vmax.f32 %v8311_v19, 0.0  ;;  %v8343_v52 = vpop.f32.mrf.mxu2 }
 0x214   : > { %12595 = vst [vmem:[#allocation59_spill] sm:$0xff] %v8317_v21  ;;  %v12477_v8 = vmax.f32 %v8317_v21, 0.0 }
 0x215   : > { %1950 = vmatmul.f32.gmra.mxu2 %v12480_v26 }
 0x216   : > { %6628 = vmatmul.msk.f32.gmra.mxu3 %vm1801_vm2, %v12477_v8  ;;  %v1409_v28 = vpop.f32.mrf.mxu0 }
 0x217   : > { %v1605_v59 = vadd.f32 %v1409_v28, %v1023_v17  ;;  %v1522_v4 = vpop.f32.mrf.mxu1  ;;  %v1026_v17 = vadd.f32 %v7879_v6, %v7698_v22  ;;  %v1139_v28 = vadd.f32 %v7892_v58, %v7701_v29 }
 0x218   : > { %v1606_v1 = vadd.f32 %v1522_v4, %v1136_v36  ;;  %v8348_v36 = vpop.f32.mrf.mxu3 }
 0x219   : > { %v8335_v14 = vadd.f32 %v7981_v42, %v1605_v59  ;;  %6580 = vmatmul.msk.f32.gmra.mxu0 %vm534_vm1, %v1221_v43  ;;  %v1222_v59 = vld [vmem:[%s7220_s27 + $0x12a] sm:$0xff] }
 0x21a   : > { %v8339_v15 = vadd.f32 %v7987_v49, %v1606_v1  ;;  %6613 = vmatmul.msk.f32.gmra.mxu1 %vm534_vm1, %v1221_v43 }
 0x21b   : > { %v12479_v18 = vmax.f32 %v8335_v14, 0.0 }
 0x21c   : > { %12596 = vst [vmem:[#allocation60_spill] sm:$0xff] %v8339_v15  ;;  %v12478_v46 = vmax.f32 %v8339_v15, 0.0 }
 0x21d   : > { %1953 = vmatmul.f32.gmra.mxu2 %v12479_v18  ;;  %v12599_v18 = vld [vmem:[#allocation37_spill] sm:$0xff] }
 0x21e   : > { %6629 = vmatmul.msk.f32.gmra.mxu3 %vm1801_vm2, %v12478_v46  ;;  %v1412_v43 = vpop.f32.mrf.mxu0  ;;  %v12598_v46 = vld [vmem:[#allocation9_spill] sm:$0xff] }
 0x21f   : > { %v1607_v4 = vadd.f32 %v1412_v43, %v1026_v17  ;;  %v1525_v1 = vpop.f32.mrf.mxu1  ;;  %v1029_v26 = vadd.f32 %v12599_v18, %v12598_v46  ;;  %v12600_v17 = vld [vmem:[#allocation10_spill] sm:$0xff] }
 0x220   : > { %v1608_v8 = vadd.f32 %v1525_v1, %v1139_v28  ;;  %v12601_v28 = vld [vmem:[#allocation38_spill] sm:$0xff]  ;;  %v8380_v1 = vpop.f32.mrf.mxu3 }
 0x221   : > { %v8359_v22 = vadd.f32 %v7981_v42, %v1607_v4  ;;  %6581 = vmatmul.msk.f32.gmra.mxu0 %vm534_vm1, %v1222_v59  ;;  %v1142_v43 = vadd.f32 %v12601_v28, %v12600_v17  ;;  %v8374_v4 = vpop.f32.mrf.mxu2 }
 0x222   : > { %v8363_v6 = vadd.f32 %v7987_v49, %v1608_v8  ;;  %6614 = vmatmul.msk.f32.gmra.mxu1 %vm534_vm1, %v1222_v59  ;;  %v1223_v59 = vld [vmem:[%s7220_s27 + $0x132] sm:$0xff]  ;;  %s6285_s27 = scalar_lea.sflag [#allocation4], %s407_s29 }
 0x223   : > { %v12485_v29 = vmax.f32 %v8359_v22, 0.0 }
 0x224   : > { %12597 = vst [vmem:[#allocation61_spill] sm:$0xff] %v8363_v6  ;;  %v12484_v58 = vmax.f32 %v8363_v6, 0.0 }
 0x225   : > { %1956 = vmatmul.f32.gmra.mxu2 %v12485_v29  ;;  %v12604_v29 = vld [vmem:[#allocation41_spill] sm:$0xff] }
 0x226   : > { %6630 = vmatmul.msk.f32.gmra.mxu3 %vm1801_vm2, %v12484_v58  ;;  %v1415_v8 = vpop.f32.mrf.mxu0  ;;  %v12603_v58 = vld [vmem:[#allocation11_spill] sm:$0xff] }
 0x227   : > { %v1609_v53 = vadd.f32 %v1415_v8, %v1029_v26  ;;  %v1528_v2 = vpop.f32.mrf.mxu1  ;;  %v1032_v6 = vadd.f32 %v12604_v29, %v12603_v58  ;;  %v12607_v58 = vmax.f32 %v7994_v33, 0.0 }
 0x228   : > { %v1610_v15 = vadd.f32 %v1528_v2, %v1142_v43  ;;  %v12605_v2 = vld [vmem:[#allocation12_spill] sm:$0xff]  ;;  %v8403_v60 = vpop.f32.mrf.mxu3 }
 0x229   : > { %v8383_v18 = vadd.f32 %v7981_v42, %v1609_v53  ;;  %6582 = vmatmul.msk.f32.gmra.mxu0 %vm534_vm1, %v1223_v59  ;;  %v12606_v53 = vld [vmem:[#allocation42_spill] sm:$0xff] }
 0x22a   : > { %v8387_v46 = vadd.f32 %v7987_v49, %v1610_v15  ;;  %6615 = vmatmul.msk.f32.gmra.mxu1 %vm534_vm1, %v1223_v59  ;;  %v1145_v26 = vadd.f32 %v12606_v53, %v12605_v2  ;;  %v8401_v59 = vpop.f32.mrf.mxu2 }
 0x22b   : > { %v12490_v17 = vmax.f32 %v8383_v18, 0.0 }
 0x22c   : > { %12602 = vst [vmem:[#allocation9_spill] sm:$0xff] %v8387_v46  ;;  %v12489_v28 = vmax.f32 %v8387_v46, 0.0 }
 0x22d   : > { %1959 = vmatmul.f32.gmra.mxu2 %v12490_v17 }
 0x22e   : > { %6631 = vmatmul.msk.f32.gmra.mxu3 %vm1801_vm2, %v12489_v28  ;;  %v1418_v15 = vpop.f32.mrf.mxu0 }
 0x22f   : > { %v1611_v43 = vadd.f32 %v1418_v15, %v1032_v6  ;;  %v1531_v8 = vpop.f32.mrf.mxu1  ;;  %v12609_v6 = vld [vmem:[#allocation13_spill] sm:$0xff] }
 0x230   : > { %v1612_v21 = vadd.f32 %v1531_v8, %v1145_v26  ;;  %v12610_v15 = vld [vmem:[#allocation45_spill] sm:$0xff]  ;;  %v12611_v26 = vld [vmem:[#allocation14_spill] sm:$0xff] }
 0x231   : > { %v8406_v29 = vadd.f32 %v7981_v42, %v1611_v43  ;;  %2164 = vmatmul.f32.vlgmr.msra.gmra.mxu0 %v12607_v58  ;;  %v1035_v17 = vadd.f32 %v12610_v15, %v12609_v6  ;;  %v12612_v8 = vld [vmem:[#allocation46_spill] sm:$0xff]  ;;  %v12613_v6 = vmax.f32 %v8015_v0, 0.0 }
 0x232   : > { %v8411_v2 = vadd.f32 %v7987_v49, %v1612_v21  ;;  %v1148_v43 = vadd.f32 %v12612_v8, %v12611_v26 }
 0x233   : > { %v12496_v53 = vmax.f32 %v8406_v29, 0.0 }
 0x234   : > { %12608 = vst [vmem:[#allocation37_spill] sm:$0xff] %v8411_v2  ;;  %v12495_v28 = vmax.f32 %v8411_v2, 0.0 }
 0x235   : > { %1962 = vmatmul.f32.gmra.mxu2 %v12496_v53 }
 0x236   : > { %6632 = vmatmul.msk.f32.gmra.mxu3 %vm1801_vm2, %v12495_v28  ;;  %v1421_v33 = vpop.f32.mrf.mxu0 }
 0x237   : > { %v1613_v21 = vadd.f32 %v1421_v33, %v1035_v17  ;;  %v1534_v58 = vpop.f32.mrf.mxu1  ;;  %v12614_v17 = vld [vmem:[#allocation15_spill] sm:$0xff]  ;;  %v12615_v33 = vld [vmem:[#allocation16_spill] sm:$0xff] }
 0x238   : > { %v1614_v46 = vadd.f32 %v1534_v58, %v1148_v43  ;;  %v1915_v3 = vpop.f32.mrf.mxu2  ;;  %v1038_v43 = vadd.f32 %v7985_v30, %v12614_v17  ;;  %v12617_v30 = vmax.f32 %v8036_v39, 0.0 }
 0x239   : > { %v8425_v48 = vadd.f32 %v7981_v42, %v1613_v21  ;;  %v2028_v9 = vpop.f32.mrf.mxu3  ;;  %2167 = vmatmul.f32.gmra.mxu0 %v12613_v6  ;;  %v12616_v21 = vld [vmem:[#allocation49_spill] sm:$0xff] }
 0x23a   : > { %v8430_v15 = vadd.f32 %v7987_v49, %v1614_v46  ;;  %v8432_v26 = vadd.f32 %v2028_v9, %v1915_v3  ;;  %v1151_v58 = vadd.f32 %v12616_v21, %v12615_v33 }
 0x23b   : > { %v12499_v8 = vmax.f32 %v8425_v48, 0.0 }
 0x23c   : > { %v12498_v28 = vmax.f32 %v8430_v15, 0.0 }
 0x23d   : > { %1965 = vmatmul.f32.gmra.mxu2 %v12499_v8 }
 0x23e   : > { %6633 = vmatmul.msk.f32.gmra.mxu3 %vm1801_vm2, %v12498_v28  ;;  %v1424_v0 = vpop.f32.mrf.mxu0 }
 0x23f   : > { %v1615_v9 = vadd.f32 %v1424_v0, %v1038_v43  ;;  %v1537_v3 = vpop.f32.mrf.mxu1  ;;  %v12618_v43 = vld [vmem:[#allocation17_spill] sm:$0xff]  ;;  %v12619_v0 = vld [vmem:[#allocation18_spill] sm:$0xff] }
 0x240   : > { %v1616_v46 = vadd.f32 %v1537_v3, %v1151_v58  ;;  %v1918_v6 = vpop.f32.mrf.mxu2  ;;  %v1041_v58 = vadd.f32 %v8012_v41, %v12618_v43  ;;  %v12620_v41 = vmax.f32 %v8059_v31, 0.0 }
 0x241   : > { %v8446_v53 = vadd.f32 %v7981_v42, %v1615_v9  ;;  %v2031_v2 = vpop.f32.mrf.mxu3  ;;  %2170 = vmatmul.f32.gmra.mxu0 %v12617_v30  ;;  %v1154_v9 = vadd.f32 %v8018_v35, %v12619_v0 }
 0x242   : > { %v8451_v17 = vadd.f32 %v7987_v49, %v1616_v46  ;;  %v8453_v33 = vadd.f32 %v2031_v2, %v1918_v6 }
 0x243   : > { %v12501_v21 = vmax.f32 %v8446_v53, 0.0 }
 0x244   : > { %v12500_v28 = vmax.f32 %v8451_v17, 0.0 }
 0x245   : > { %1968 = vmatmul.f32.gmra.mxu2 %v12501_v21 }
 0x246   : > { %6634 = vmatmul.msk.f32.gmra.mxu3 %vm1801_vm2, %v12500_v28  ;;  %v1427_v39 = vpop.f32.mrf.mxu0 }
 0x247   : > { %v1617_v2 = vadd.f32 %v1427_v39, %v1041_v58  ;;  %v1540_v3 = vpop.f32.mrf.mxu1  ;;  %v12621_v58 = vld [vmem:[#allocation19_spill] sm:$0xff]  ;;  %v12622_v39 = vld [vmem:[#allocation20_spill] sm:$0xff] }
 0x248   : > { %v1618_v46 = vadd.f32 %v1540_v3, %v1154_v9  ;;  %v1921_v6 = vpop.f32.mrf.mxu2  ;;  %v1044_v9 = vadd.f32 %v8039_v54, %v12621_v58  ;;  %v12623_v54 = vmax.f32 %v8082_v61, 0.0 }
 0x249   : > { %v8467_v30 = vadd.f32 %v7981_v42, %v1617_v2  ;;  %v2034_v8 = vpop.f32.mrf.mxu3  ;;  %2173 = vmatmul.f32.gmra.mxu0 %v12620_v41  ;;  %v1157_v2 = vadd.f32 %v8045_v11, %v12622_v39 }
 0x24a   : > { %v8472_v43 = vadd.f32 %v7987_v49, %v1618_v46  ;;  %v8474_v35 = vadd.f32 %v2034_v8, %v1921_v6 }
 0x24b   : > { %v12503_v0 = vmax.f32 %v8467_v30, 0.0 }
 0x24c   : > { %v12502_v28 = vmax.f32 %v8472_v43, 0.0 }
 0x24d   : > { %1971 = vmatmul.f32.gmra.mxu2 %v12503_v0 }
 0x24e   : > { %6635 = vmatmul.msk.f32.gmra.mxu3 %vm1801_vm2, %v12502_v28  ;;  %v1430_v31 = vpop.f32.mrf.mxu0 }
 0x24f   : > { %v1619_v8 = vadd.f32 %v1430_v31, %v1044_v9  ;;  %v1543_v3 = vpop.f32.mrf.mxu1  ;;  %v12624_v9 = vld [vmem:[#allocation21_spill] sm:$0xff]  ;;  %v12625_v31 = vld [vmem:[#allocation22_spill] sm:$0xff] }
 0x250   : > { %v1620_v46 = vadd.f32 %v1543_v3, %v1157_v2  ;;  %v1924_v6 = vpop.f32.mrf.mxu2  ;;  %v1047_v2 = vadd.f32 %v8067_v20, %v12624_v9  ;;  %v12626_v20 = vmax.f32 %v8105_v50, 0.0 }
 0x251   : > { %v8488_v41 = vadd.f32 %v7981_v42, %v1619_v8  ;;  %v2037_v21 = vpop.f32.mrf.mxu3  ;;  %2176 = vmatmul.f32.gmra.mxu0 %v12623_v54  ;;  %v1160_v8 = vadd.f32 %v8070_v37, %v12625_v31 }
 0x252   : > { %v8493_v58 = vadd.f32 %v7987_v49, %v1620_v46  ;;  %v8495_v11 = vadd.f32 %v2037_v21, %v1924_v6 }
 0x253   : > { %v12505_v39 = vmax.f32 %v8488_v41, 0.0 }
 0x254   : > { %v12504_v28 = vmax.f32 %v8493_v58, 0.0 }
 0x255   : > { %1974 = vmatmul.f32.gmra.mxu2 %v12505_v39 }
 0x256   : > { %6636 = vmatmul.msk.f32.gmra.mxu3 %vm1801_vm2, %v12504_v28  ;;  %v1433_v61 = vpop.f32.mrf.mxu0 }
 0x257   : > { %v1621_v21 = vadd.f32 %v1433_v61, %v1047_v2  ;;  %v1546_v3 = vpop.f32.mrf.mxu1  ;;  %v12629_v2 = vld [vmem:[#allocation23_spill] sm:$0xff]  ;;  %v12630_v61 = vld [vmem:[#allocation24_spill] sm:$0xff] }
 0x258   : > { %v1622_v46 = vadd.f32 %v1546_v3, %v1160_v8  ;;  %v1927_v6 = vpop.f32.mrf.mxu2  ;;  %v1050_v8 = vadd.f32 %v8095_v47, %v12629_v2  ;;  %v12631_v47 = vmax.f32 %v8128_v51, 0.0 }
 0x259   : > { %v8509_v54 = vadd.f32 %v7981_v42, %v1621_v21  ;;  %v2040_v0 = vpop.f32.mrf.mxu3  ;;  %2179 = vmatmul.f32.gmra.mxu0 %v12626_v20  ;;  %v1163_v21 = vadd.f32 %v8101_v32, %v12630_v61 }
 0x25a   : > { %v8514_v9 = vadd.f32 %v7987_v49, %v1622_v46  ;;  %v8516_v37 = vadd.f32 %v2040_v0, %v1927_v6 }
 0x25b   : > { %v12507_v31 = vmax.f32 %v8509_v54, 0.0 }
 0x25c   : > { %12627 = vst [vmem:[#allocation10_spill] sm:$0xff] %v8514_v9  ;;  %v12506_v28 = vmax.f32 %v8514_v9, 0.0 }
 0x25d   : > { %12628 = vst [vmem:[#allocation38_spill] sm:$0xff] %v8516_v37  ;;  %1977 = vmatmul.f32.gmra.mxu2 %v12507_v31 }
 0x25e   : > { %6637 = vmatmul.msk.f32.gmra.mxu3 %vm1801_vm2, %v12506_v28  ;;  %v1436_v50 = vpop.f32.mrf.mxu0 }
 0x25f   : > { %v1623_v0 = vadd.f32 %v1436_v50, %v1050_v8  ;;  %v1549_v3 = vpop.f32.mrf.mxu1  ;;  %v12634_v8 = vld [vmem:[#allocation25_spill] sm:$0xff]  ;;  %v12635_v50 = vld [vmem:[#allocation26_spill] sm:$0xff] }
 0x260   : > { %v1624_v46 = vadd.f32 %v1549_v3, %v1163_v21  ;;  %v1930_v6 = vpop.f32.mrf.mxu2  ;;  %v1053_v21 = vadd.f32 %v8123_v25, %v12634_v8  ;;  %v12636_v25 = vmax.f32 %v8147_v45, 0.0 }
 0x261   : > { %v8530_v20 = vadd.f32 %v7981_v42, %v1623_v0  ;;  %v2043_v39 = vpop.f32.mrf.mxu3  ;;  %2182 = vmatmul.f32.gmra.mxu0 %v12631_v47  ;;  %v1166_v0 = vadd.f32 %v8125_v44, %v12635_v50 }
 0x262   : > { %v8535_v2 = vadd.f32 %v7987_v49, %v1624_v46  ;;  %v8537_v32 = vadd.f32 %v2043_v39, %v1930_v6 }
 0x263   : > { %v12509_v61 = vmax.f32 %v8530_v20, 0.0 }
 0x264   : > { %12632 = vst [vmem:[#allocation11_spill] sm:$0xff] %v8535_v2  ;;  %v12508_v28 = vmax.f32 %v8535_v2, 0.0  ;;  %v12706_v2 = vld [vmem:[#allocation59_spill] sm:$0xff] }
 0x265   : > { %12633 = vst [vmem:[#allocation41_spill] sm:$0xff] %v8537_v32  ;;  %1980 = vmatmul.f32.gmra.mxu2 %v12509_v61 }
 0x266   : > { %6638 = vmatmul.msk.f32.gmra.mxu3 %vm1801_vm2, %v12508_v28  ;;  %v1439_v51 = vpop.f32.mrf.mxu0 }
 0x267   : > { %v1625_v39 = vadd.f32 %v1439_v51, %v1053_v21  ;;  %v1552_v3 = vpop.f32.mrf.mxu1  ;;  %v12639_v21 = vld [vmem:[#allocation27_spill] sm:$0xff]  ;;  %v12640_v51 = vld [vmem:[#allocation28_spill] sm:$0xff] }
 0x268   : > { %v1626_v46 = vadd.f32 %v1552_v3, %v1166_v0  ;;  %v1933_v6 = vpop.f32.mrf.mxu2  ;;  %v1056_v0 = vadd.f32 %v8150_v55, %v12639_v21  ;;  %v12641_v55 = vmax.f32 %v8171_v56, 0.0 }
 0x269   : > { %v8551_v47 = vadd.f32 %v7981_v42, %v1625_v39  ;;  %v2046_v31 = vpop.f32.mrf.mxu3  ;;  %2185 = vmatmul.f32.gmra.mxu0 %v12636_v25  ;;  %v1169_v39 = vadd.f32 %v8156_v62, %v12640_v51 }
 0x26a   : > { %v8556_v8 = vadd.f32 %v7987_v49, %v1626_v46  ;;  %v8558_v44 = vadd.f32 %v2046_v31, %v1933_v6 }
 0x26b   : > { %v12513_v50 = vmax.f32 %v8551_v47, 0.0 }
 0x26c   : > { %12637 = vst [vmem:[#allocation12_spill] sm:$0xff] %v8556_v8  ;;  %v12510_v28 = vmax.f32 %v8556_v8, 0.0  ;;  %v12703_v8 = vld [vmem:[#allocation58_spill] sm:$0xff] }
 0x26d   : > { %12638 = vst [vmem:[#allocation42_spill] sm:$0xff] %v8558_v44  ;;  %1983 = vmatmul.f32.gmra.mxu2 %v12513_v50 }
 0x26e   : > { %6639 = vmatmul.msk.f32.gmra.mxu3 %vm1801_vm2, %v12510_v28  ;;  %v1442_v45 = vpop.f32.mrf.mxu0 }
 0x26f   : > { %v1627_v31 = vadd.f32 %v1442_v45, %v1056_v0  ;;  %v1555_v3 = vpop.f32.mrf.mxu1  ;;  %v12644_v0 = vld [vmem:[#allocation29_spill] sm:$0xff]  ;;  %v12645_v45 = vld [vmem:[#allocation30_spill] sm:$0xff] }
 0x270   : > { %v1628_v46 = vadd.f32 %v1555_v3, %v1169_v39  ;;  %v1936_v6 = vpop.f32.mrf.mxu2  ;;  %v1059_v39 = vadd.f32 %v8182_v13, %v12644_v0  ;;  %v12646_v0 = vmax.f32 %v8207_v16, 0.0 }
 0x271   : > { %v8572_v25 = vadd.f32 %v7981_v42, %v1627_v31  ;;  %v2049_v61 = vpop.f32.mrf.mxu3  ;;  %2188 = vmatmul.f32.gmra.mxu0 %v12641_v55  ;;  %v1172_v31 = vadd.f32 %v8190_v40, %v12645_v45 }
 0x272   : > { %v8577_v21 = vadd.f32 %v7987_v49, %v1628_v46  ;;  %v8579_v62 = vadd.f32 %v2049_v61, %v1936_v6 }
 0x273   : > { %v12512_v51 = vmax.f32 %v8572_v25, 0.0 }
 0x274   : > { %12642 = vst [vmem:[#allocation13_spill] sm:$0xff] %v8577_v21  ;;  %v12511_v28 = vmax.f32 %v8577_v21, 0.0 }
 0x275   : > { %12643 = vst [vmem:[#allocation45_spill] sm:$0xff] %v8579_v62  ;;  %1986 = vmatmul.f32.gmra.mxu2 %v12512_v51 }
 0x276   : > { %6640 = vmatmul.msk.f32.gmra.mxu3 %vm1801_vm2, %v12511_v28  ;;  %v1445_v56 = vpop.f32.mrf.mxu0 }
 0x277   : > { %v1629_v61 = vadd.f32 %v1445_v56, %v1059_v39  ;;  %v1558_v3 = vpop.f32.mrf.mxu1  ;;  %v12648_v39 = vld [vmem:[#allocation31_spill] sm:$0xff]  ;;  %v12649_v56 = vld [vmem:[#allocation32_spill] sm:$0xff] }
 0x278   : > { %v1630_v46 = vadd.f32 %v1558_v3, %v1172_v31  ;;  %v8592_v6 = vpop.f32.mrf.mxu2  ;;  %v1062_v31 = vadd.f32 %v8228_v12, %v12648_v39  ;;  %v12650_v39 = vmax.f32 %v8243_v7, 0.0 }
 0x279   : > { %v8595_v55 = vadd.f32 %v7981_v42, %v1629_v61  ;;  %v8597_v13 = vpop.f32.mrf.mxu3  ;;  %2191 = vmatmul.f32.gmra.mxu0 %v12646_v0  ;;  %v1175_v61 = vadd.f32 %v8237_v27, %v12649_v56 }
 0x27a   : > { %v8602_v40 = vadd.f32 %v7987_v49, %v1630_v46 }
 0x27b   : > { %v12515_v45 = vmax.f32 %v8595_v55, 0.0 }
 0x27c   : > { %12647 = vst [vmem:[#allocation14_spill] sm:$0xff] %v8602_v40  ;;  %v12514_v28 = vmax.f32 %v8602_v40, 0.0 }
 0x27d   : > { %1989 = vmatmul.f32.gmra.mxu2 %v12515_v45 }
 0x27e   : > { %6641 = vmatmul.msk.f32.gmra.mxu3 %vm1801_vm2, %v12514_v28  ;;  %v1448_v16 = vpop.f32.mrf.mxu0 }
 0x27f   : > { %v1631_v3 = vadd.f32 %v1448_v16, %v1062_v31  ;;  %v1561_v46 = vpop.f32.mrf.mxu1  ;;  %v12652_v31 = vld [vmem:[#allocation33_spill] sm:$0xff]  ;;  %v12653_v16 = vld [vmem:[#allocation34_spill] sm:$0xff] }
 0x280   : > { %v1632_v0 = vadd.f32 %v1561_v46, %v1175_v61  ;;  %v8615_v51 = vpop.f32.mrf.mxu2  ;;  %v1065_v61 = vadd.f32 %v8271_v23, %v12652_v31  ;;  %v2147_v46 = vld [vmem:[%s12437_s4 + $0xb8] sm:$0xff]  ;;  %v2146_v31 = vld [vmem:[%s12437_s4 + $0xb0] sm:$0xff] }
 0x281   : > { %v8618_v50 = vadd.f32 %v7981_v42, %v1631_v3  ;;  %v8620_v12 = vpop.f32.mrf.mxu3  ;;  %2194 = vmatmul.f32.gmra.mxu0 %v12650_v39  ;;  %v1178_v3 = vadd.f32 %v8276_v38, %v12653_v16  ;;  %2269 = vmatpush.msrb.mxu1 %v2147_v46 }
 0x282   : > { %v8625_v27 = vadd.f32 %v7987_v49, %v1632_v0 }
 0x283   : > { %v12517_v56 = vmax.f32 %v8618_v50, 0.0  ;;  %2270 = vmatpush.msrb.mxu1 %v2146_v31 }
 0x284   : > { %12651 = vst [vmem:[#allocation46_spill] sm:$0xff] %v8625_v27  ;;  %v12516_v28 = vmax.f32 %v8625_v27, 0.0 }
 0x285   : > { %1992 = vmatmul.f32.gmra.mxu2 %v12517_v56 }
 0x286   : > { %6642 = vmatmul.msk.f32.gmra.mxu3 %vm1801_vm2, %v12516_v28  ;;  %v1451_v7 = vpop.f32.mrf.mxu0  ;;  %v12654_v28 = vmax.f32 %v8279_v57, 0.0 }
 0x287   : > { %v1633_v0 = vadd.f32 %v1451_v7, %v1065_v61  ;;  %v1564_v39 = vpop.f32.mrf.mxu1 }
 0x288   : > { %v1634_v45 = vadd.f32 %v1564_v39, %v1178_v3  ;;  %v8641_v23 = vpop.f32.mrf.mxu2  ;;  %v2145_v3 = vld [vmem:[%s12437_s4 + $0xa8] sm:$0xff] }
 0x289   : > { %v8647_v38 = vadd.f32 %v7981_v42, %v1633_v0  ;;  %v8649_v16 = vpop.f32.mrf.mxu3  ;;  %2197 = vmatmul.f32.gmra.mxu0 %v12654_v28  ;;  %2271 = vmatpush.msrb.mxu1 %v2145_v3  ;;  %v2144_v0 = vld [vmem:[%s12437_s4 + $0xa0] sm:$0xff]  ;;  %v12656_v39 = vld [vmem:[#allocation35_spill] sm:$0xff]  ;;  %v12657_v28 = vld [vmem:[#allocation36_spill] sm:$0xff] }
 0x28a   : > { %v8654_v61 = vadd.f32 %v7987_v49, %v1634_v45  ;;  %v1068_v57 = vadd.f32 %v8314_v10, %v12656_v39  ;;  %v1181_v45 = vadd.f32 %v8320_v63, %v12657_v28  ;;  %v2143_v3 = vld [vmem:[%s12437_s4 + $0x98] sm:$0xff]  ;;  %v8962_v37 = vadd.f32 %v8649_v16, %v8641_v23 }
 0x28b   : > { %v12520_v7 = vmax.f32 %v8647_v38, 0.0  ;;  %2272 = vmatpush.msrb.mxu1 %v2144_v0  ;;  %v2142_v0 = vld [vmem:[%s12437_s4 + $0x90] sm:$0xff]  ;;  %v12702_v62 = vmax.f32 %v8647_v38, 0.0 }
 0x28c   : > { %12655 = vst [vmem:[#allocation15_spill] sm:$0xff] %v8654_v61  ;;  %v12519_v46 = vmax.f32 %v8654_v61, 0.0 }
 0x28d   : > { %1995 = vmatmul.f32.gmra.mxu2 %v12520_v7  ;;  %2273 = vmatpush.msrb.mxu1 %v2143_v3  ;;  %v12660_v3 = vld [vmem:[#allocation39_spill] sm:$0xff] }
 0x28e   : > { %6643 = vmatmul.msk.f32.gmra.mxu3 %vm1801_vm2, %v12519_v46  ;;  %v1454_v31 = vpop.f32.mrf.mxu0  ;;  %v12658_v46 = vmax.f32 %v8311_v19, 0.0  ;;  %v1071_v19 = vadd.f32 %v8343_v52, %v12660_v3 }
 0x28f   : > { %v1635_v56 = vadd.f32 %v1454_v31, %v1068_v57  ;;  %v1567_v27 = vpop.f32.mrf.mxu1  ;;  %2274 = vmatpush.msrb.mxu1 %v2142_v0 }
 0x290   : > { %v1636_v10 = vadd.f32 %v1567_v27, %v1181_v45  ;;  %v8676_v39 = vpop.f32.mrf.mxu2  ;;  %v2141_v27 = vld [vmem:[%s12437_s4 + $0x88] sm:$0xff]  ;;  %v2140_v45 = vld [vmem:[%s12437_s4 + $0x80] sm:$0xff] }
 0x291   : > { %v8682_v63 = vadd.f32 %v7981_v42, %v1635_v56  ;;  %v8684_v28 = vpop.f32.mrf.mxu3  ;;  %2200 = vmatmul.f32.gmra.mxu0 %v12658_v46  ;;  %2275 = vmatpush.msrb.mxu1 %v2141_v27  ;;  %v12661_v46 = vld [vmem:[#allocation40_spill] sm:$0xff] }
 0x292   : > { %v8689_v57 = vadd.f32 %v7987_v49, %v1636_v10  ;;  %v1184_v10 = vadd.f32 %v8348_v36, %v12661_v46 }
 0x293   : > { %v12525_v56 = vmax.f32 %v8682_v63, 0.0  ;;  %2276 = vmatpush.msrb.mxu1 %v2140_v45  ;;  %v12662_v45 = vmax.f32 %v8335_v14, 0.0  ;;  %v12705_v44 = vmax.f32 %v8682_v63, 0.0 }
 0x294   : > { %12659 = vst [vmem:[#allocation16_spill] sm:$0xff] %v8689_v57  ;;  %v12524_v31 = vmax.f32 %v8689_v57, 0.0 }
 0x295   : > { %1998 = vmatmul.f32.gmra.mxu2 %v12525_v56 }
 0x296   : > { %6644 = vmatmul.msk.f32.gmra.mxu3 %vm1801_vm2, %v12524_v31  ;;  %v1457_v0 = vpop.f32.mrf.mxu0 }
 0x297   : > { %v1637_v7 = vadd.f32 %v1457_v0, %v1071_v19  ;;  %v1570_v61 = vpop.f32.mrf.mxu1  ;;  %v12664_v19 = vld [vmem:[#allocation43_spill] sm:$0xff] }
 0x298   : > { %v1638_v27 = vadd.f32 %v1570_v61, %v1184_v10  ;;  %v8708_v40 = vpop.f32.mrf.mxu2  ;;  %v1074_v61 = vadd.f32 %v8374_v4, %v12664_v19  ;;  %v12666_v4 = vmax.f32 %v8359_v22, 0.0 }
 0x299   : > { %v8711_v21 = vadd.f32 %v7981_v42, %v1637_v7  ;;  %v8713_v52 = vpop.f32.mrf.mxu3  ;;  %2203 = vmatmul.f32.gmra.mxu0 %v12662_v45  ;;  %v12665_v7 = vld [vmem:[#allocation44_spill] sm:$0xff] }
 0x29a   : > { %v8718_v36 = vadd.f32 %v7987_v49, %v1638_v27  ;;  %v1187_v10 = vadd.f32 %v8380_v1, %v12665_v7 }
 0x29b   : > { %v12528_v3 = vmax.f32 %v8711_v21, 0.0  ;;  %v12709_v38 = vmax.f32 %v8711_v21, 0.0  ;;  %v3535_v21 = vld [vmem:[%s12438_s5 + $0x40] sm:$0xff] }
 0x29c   : > { %12663 = vst [vmem:[#allocation49_spill] sm:$0xff] %v8718_v36  ;;  %v12527_v46 = vmax.f32 %v8718_v36, 0.0 }
 0x29d   : > { %2001 = vmatmul.f32.gmra.mxu2 %v12528_v3 }
 0x29e   : > { %6645 = vmatmul.msk.f32.gmra.mxu3 %vm1801_vm2, %v12527_v46  ;;  %v1460_v14 = vpop.f32.mrf.mxu0  ;;  %v12668_v46 = vld [vmem:[#allocation47_spill] sm:$0xff] }
 0x29f   : > { %v1639_v0 = vadd.f32 %v1460_v14, %v1074_v61  ;;  %v1573_v27 = vpop.f32.mrf.mxu1  ;;  %v1077_v61 = vadd.f32 %v8401_v59, %v12668_v46  ;;  %v12670_v59 = vmax.f32 %v8383_v18, 0.0  ;;  %v12673_v18 = vmax.f32 %v7998_v24, 0.0  ;;  %v12678_v24 = vld [vmem:[#allocation51_spill] sm:$0xff] }
 0x2a0   : > { %v1640_v45 = vadd.f32 %v1573_v27, %v1187_v10  ;;  %v8731_v31 = vpop.f32.mrf.mxu2  ;;  %v12669_v10 = vld [vmem:[#allocation48_spill] sm:$0xff] }
 0x2a1   : > { %v1709_v56 = vadd.f32 %v7981_v42, %v1639_v0  ;;  %v8734_v57 = vpop.f32.mrf.mxu3  ;;  %2206 = vmatmul.f32.gmra.mxu0 %v12666_v4  ;;  %v1190_v14 = vadd.f32 %v8403_v60, %v12669_v10  ;;  %v12672_v10 = vmax.f32 %v8406_v29, 0.0  ;;  %v12677_v29 = vmax.f32 %v8446_v53, 0.0 }
 0x2a2   : > { %v8739_v19 = vadd.f32 %v7987_v49, %v1640_v45  ;;  %v12682_v53 = vmax.f32 %v8488_v41, 0.0  ;;  %v12688_v41 = vmax.f32 %v8530_v20, 0.0 }
 0x2a3   : > { %v1773_v1 = vmax.f32 %v1709_v56, 0.0 }
 0x2a4   : > { %12667 = vst [vmem:[#allocation17_spill] sm:$0xff] %v8739_v19  ;;  %v12530_v7 = vmax.f32 %v8739_v19, 0.0  ;;  %v12697_v19 = vld [vmem:[#allocation56_spill] sm:$0xff] }
 0x2a5   : > { %2004 = vmatmul.f32.gmra.mxu2 %v1773_v1  ;;  %2254 = vmatmul.f32.vlgmr.msra.gmra.mxu1 %v1773_v1  ;;  %v12698_v36 = vmax.f32 %v12697_v19, 0.0  ;;  %v12704_v19 = vmax.f32 %v12703_v8, 0.0 }
 0x2a6   : > { %6646 = vmatmul.msk.f32.gmra.mxu3 %vm1801_vm2, %v12530_v7  ;;  %v1463_v22 = vpop.f32.mrf.mxu0 }
 0x2a7   : > { %v1641_v0 = vadd.f32 %v1463_v22, %v1077_v61  ;;  %v1576_v27 = vpop.f32.mrf.mxu1  ;;  %v12674_v22 = vmax.f32 %v8425_v48, 0.0  ;;  %v12680_v48 = vmax.f32 %v8467_v30, 0.0  ;;  %v12685_v30 = vmax.f32 %v8509_v54, 0.0 }
 0x2a8   : > { %v1642_v45 = vadd.f32 %v1576_v27, %v1190_v14  ;;  %v8749_v4 = vpop.f32.mrf.mxu2 }
 0x2a9   : > { %v1711_v56 = vadd.f32 %v7981_v42, %v1641_v0  ;;  %v8752_v3 = vpop.f32.mrf.mxu3  ;;  %2209 = vmatmul.f32.gmra.mxu0 %v12670_v59  ;;  %v12675_v0 = vld [vmem:[#allocation50_spill] sm:$0xff]  ;;  %v12679_v59 = vmax.f32 %v12678_v24, 0.0 }
 0x2aa   : > { %v8757_v46 = vadd.f32 %v7987_v49, %v1642_v45  ;;  %v12676_v27 = vmax.f32 %v12675_v0, 0.0 }
 0x2ab   : > { %v1775_v60 = vmax.f32 %v1711_v56, 0.0 }
 0x2ac   : > { %12671 = vst [vmem:[#allocation18_spill] sm:$0xff] %v8757_v46  ;;  %v12529_v1 = vmax.f32 %v8757_v46, 0.0 }
 0x2ad   : > { %2007 = vmatmul.f32.gmra.mxu2 %v1775_v60  ;;  %2257 = vmatmul.f32.gmra.mxu1 %v1775_v60 }
 0x2ae   : > { %6647 = vmatmul.msk.f32.gmra.mxu3 %vm1801_vm2, %v12529_v1 }
 0x2b0   : > { %v8763_v61 = vpop.f32.mrf.mxu2 }
 0x2b1   : > { %v8765_v42 = vpop.f32.mrf.mxu3  ;;  %2212 = vmatmul.f32.gmra.mxu0 %v12672_v10 }
 0x2b2   : > { %v8986_v23 = vadd.f32 %v8765_v42, %v8763_v61 }
 0x2b5   : > { %6648 = vmatmul.msk.f32.vlgmr.msrb.gmra.mxu1 %vm1801_vm2, %v12673_v18  ;;  %v12681_v18 = vmax.f32 %v8063_v34, 0.0  ;;  %v12686_v34 = vld [vmem:[#allocation53_spill] sm:$0xff] }
 0x2b8   : > { %v8772_v49 = vpop.f32.mrf.mxu2 }
 0x2b9   : > { %v8774_v14 = vpop.f32.mrf.mxu3  ;;  %2215 = vmatmul.f32.gmra.mxu0 %v12674_v22 }
 0x2bd   : > { %6649 = vmatmul.msk.f32.gmra.mxu1 %vm1801_vm2, %v12676_v27  ;;  %v12683_v27 = vld [vmem:[#allocation52_spill] sm:$0xff] }
 0x2c0   : > { %v8781_v45 = vpop.f32.mrf.mxu2 }
 0x2c1   : > { %v8783_v56 = vpop.f32.mrf.mxu3  ;;  %2218 = vmatmul.f32.gmra.mxu0 %v12677_v29  ;;  %v12684_v29 = vmax.f32 %v12683_v27, 0.0 }
 0x2c2   : > { %v8994_v16 = vadd.f32 %v8783_v56, %v8781_v45 }
 0x2c5   : > { %6650 = vmatmul.msk.f32.gmra.mxu1 %vm1801_vm2, %v12679_v59 }
 0x2c8   : > { %v8790_v60 = vpop.f32.mrf.mxu2 }
 0x2c9   : > { %v8792_v10 = vpop.f32.mrf.mxu3  ;;  %2221 = vmatmul.f32.gmra.mxu0 %v12680_v48  ;;  %v12687_v48 = vmax.f32 %v12686_v34, 0.0  ;;  %v12692_v34 = vmax.f32 %v8153_v5, 0.0 }
 0x2cd   : > { %6651 = vmatmul.msk.f32.gmra.mxu1 %vm1801_vm2, %v12681_v18 }
 0x2d0   : > { %v8799_v22 = vpop.f32.mrf.mxu2 }
 0x2d1   : > { %v8801_v0 = vpop.f32.mrf.mxu3  ;;  %2224 = vmatmul.f32.gmra.mxu0 %v12682_v53  ;;  %v12689_v53 = vld [vmem:[#allocation54_spill] sm:$0xff] }
 0x2d2   : > { %v12690_v27 = vmax.f32 %v12689_v53, 0.0  ;;  %v12693_v53 = vmax.f32 %v8572_v25, 0.0  ;;  %v12699_v25 = vmax.f32 %v8618_v50, 0.0 }
 0x2d5   : > { %6652 = vmatmul.msk.f32.gmra.mxu1 %vm1801_vm2, %v12684_v29  ;;  %v8826_v29 = vpop.f32.mrf.mxu0 }
 0x2d8   : > { %v8808_v24 = vpop.f32.mrf.mxu2 }
 0x2d9   : > { %v8810_v59 = vpop.f32.mrf.mxu3  ;;  %2227 = vmatmul.f32.gmra.mxu0 %v12685_v30  ;;  %v12691_v30 = vmax.f32 %v8551_v47, 0.0  ;;  %v12696_v47 = vmax.f32 %v8595_v55, 0.0  ;;  %v12700_v55 = vld [vmem:[#allocation57_spill] sm:$0xff] }
 0x2da   : > { %v9007_v61 = vadd.f32 %v8810_v59, %v8808_v24 }
 0x2dd   : > { %6653 = vmatmul.msk.f32.gmra.mxu1 %vm1801_vm2, %v12687_v48  ;;  %v8837_v48 = vpop.f32.mrf.mxu0 }
 0x2e0   : > { %v8817_v18 = vpop.f32.mrf.mxu2 }
 0x2e1   : > { %v8819_v1 = vpop.f32.mrf.mxu3  ;;  %2230 = vmatmul.f32.gmra.mxu0 %v12688_v41 }
 0x2e2   : > { %v9011_v42 = vadd.f32 %v8819_v1, %v8817_v18 }
 0x2e5   : > { %6654 = vmatmul.msk.f32.gmra.mxu1 %vm1801_vm2, %v12690_v27  ;;  %v12694_v27 = vld [vmem:[#allocation55_spill] sm:$0xff] }
 0x2e6   : > { %v12695_v46 = vmax.f32 %v12694_v27, 0.0 }
 0x2e8   : > { %v8828_v7 = vpop.f32.mrf.mxu2 }
 0x2e9   : > { %v8830_v54 = vpop.f32.mrf.mxu3  ;;  %2233 = vmatmul.f32.gmra.mxu0 %v12691_v30  ;;  %v8850_v30 = vpop.f32.mrf.mxu0 }
 0x2ed   : > { %6655 = vmatmul.msk.f32.gmra.mxu1 %vm1801_vm2, %v12692_v34 }
 0x2f0   : > { %v8839_v20 = vpop.f32.mrf.mxu2 }
 0x2f1   : > { %v8841_v41 = vpop.f32.mrf.mxu3  ;;  %2236 = vmatmul.f32.gmra.mxu0 %v12693_v53  ;;  %v8861_v53 = vpop.f32.mrf.mxu0 }
 0x2f2   : > { %v9022_v1 = vadd.f32 %v8841_v41, %v8839_v20 }
 0x2f5   : > { %6656 = vmatmul.msk.f32.gmra.mxu1 %vm1801_vm2, %v12695_v46 }
 0x2f8   : > { %v8852_v5 = vpop.f32.mrf.mxu2 }
 0x2f9   : > { %2239 = vmatmul.f32.gmra.mxu0 %v12696_v47  ;;  %v8854_v34 = vpop.f32.mrf.mxu3  ;;  %v12701_v47 = vmax.f32 %v12700_v55, 0.0  ;;  %v12707_v55 = vmax.f32 %v12706_v2, 0.0  ;;  %v3537_v2 = vld [vmem:[%s12438_s5 + $0x50] sm:$0xff] }
 0x2fa   : > { %v9026_v18 = vadd.f32 %v8854_v34, %v8852_v5 }
 0x2fd   : > { %6657 = vmatmul.msk.f32.gmra.mxu1 %vm1801_vm2, %v12698_v36  ;;  %v8875_v36 = vpop.f32.mrf.mxu0 }
 0x300   : > { %v8863_v27 = vpop.f32.mrf.mxu2 }
 0x301   : > { %2242 = vmatmul.f32.gmra.mxu0 %v12699_v25  ;;  %v8865_v46 = vpop.f32.mrf.mxu3 }
 0x305   : > { %6658 = vmatmul.msk.f32.gmra.mxu1 %vm1801_vm2, %v12701_v47  ;;  %v8886_v47 = vpop.f32.mrf.mxu0 }
 0x306   : > { %12708 = vst [vmem:[#allocation19_spill] sm:$0xff] %v8886_v47 }
 0x308   : > { %v8877_v50 = vpop.f32.mrf.mxu2 }
 0x309   : > { %2245 = vmatmul.f32.gmra.mxu0 %v12702_v62  ;;  %v8879_v25 = vpop.f32.mrf.mxu3 }
 0x30d   : > { %6659 = vmatmul.msk.f32.gmra.mxu1 %vm1801_vm2, %v12704_v19  ;;  %v3538_v19 = vld [vmem:[%s12438_s5 + $0x58] sm:$0xff] }
 0x30e   : > { %3823 = vmatpush.msra.mxu2 %v3538_v19 }
 0x310   : > { %v8888_v62 = vpop.f32.mrf.mxu2  ;;  %3824 = vmatpush.msra.mxu2 %v3537_v2  ;;  %v3534_v2 = vld [vmem:[%s12438_s5 + $0x38] sm:$0xff] }
 0x311   : > { %2248 = vmatmul.f32.gmra.mxu0 %v12705_v44  ;;  %v8890_v8 = vpop.f32.mrf.mxu3  ;;  %v12710_v44 = vld [vmem:[#allocation60_spill] sm:$0xff] }
 0x312   : > { %v12711_v63 = vmax.f32 %v12710_v44, 0.0  ;;  %v12713_v44 = vld [vmem:[#allocation61_spill] sm:$0xff]  ;;  %v9039_v20 = vadd.f32 %v8890_v8, %v8888_v62 }
 0x315   : > { %6660 = vmatmul.msk.f32.gmra.mxu1 %vm1801_vm2, %v12707_v55  ;;  %v3536_v55 = vld [vmem:[%s12438_s5 + $0x48] sm:$0xff] }
 0x316   : > { %3825 = vmatpush.msra.mxu2 %v3536_v55  ;;  %v3533_v55 = vld [vmem:[%s12438_s5 + $0x30] sm:$0xff] }
 0x318   : > { %3826 = vmatpush.msra.mxu2 %v3535_v21  ;;  %v8911_v19 = vpop.f32.mrf.mxu2  ;;  %v3532_v21 = vld [vmem:[%s12438_s5 + $0x28] sm:$0xff] }
 0x319   : > { %2251 = vmatmul.f32.gmra.mxu0 %v12709_v38  ;;  %v8913_v32 = vpop.f32.mrf.mxu3 }
 0x31a   : > { %3827 = vmatpush.msra.mxu2 %v3534_v2  ;;  %v3530_v2 = vld [vmem:[%s12438_s5 + $0x18] sm:$0xff]  ;;  %v9043_v41 = vadd.f32 %v8913_v32, %v8911_v19 }
 0x31c   : > { %3828 = vmatpush.msra.mxu2 %v3533_v55  ;;  %v12716_v55 = vld [vmem:[#allocation9_spill] sm:$0xff] }
 0x31d   : > { %6661 = vmatmul.msk.f32.gmra.mxu1 %vm1801_vm2, %v12711_v63  ;;  %v12714_v63 = vmax.f32 %v12713_v44, 0.0  ;;  %v12717_v47 = vmax.f32 %v12716_v55, 0.0  ;;  %v8953_v55 = vadd.f32 %v8597_v13, %v8592_v6  ;;  %v12718_v13 = vld [vmem:[#allocation37_spill] sm:$0xff] }
 0x31e   : > { %3829 = vmatpush.msra.mxu2 %v3532_v21  ;;  %v3529_v21 = vld [vmem:[%s12438_s5 + $0x10] sm:$0xff] }
 0x320   : > { %v8935_v44 = vpop.f32.mrf.mxu2 }
 0x322   : > { %v8909_v38 = vpop.f32.mrf.mxu1 }
 0x323   : > { %12712 = vst [vmem:[#allocation20_spill] sm:$0xff] %v8909_v38  ;;  %v3531_v38 = vld [vmem:[%s12438_s5 + $0x20] sm:$0xff] }
 0x324   : > { %3830 = vmatpush.msra.mxu2 %v3531_v38  ;;  %v3528_v38 = vld [vmem:[%s12438_s5 + $0x8] sm:$0xff] }
 0x325   : > { %6662 = vmatmul.msk.f32.gmra.mxu1 %vm1801_vm2, %v12714_v63  ;;  %v8937_v63 = vpop.f32.mrf.mxu3 }
 0x326   : > { %3831 = vmatpush.msra.mxu2 %v3530_v2  ;;  %v3527_v2 = vld [vmem:[%s12438_s5] sm:$0xff]  ;;  %v9052_v8 = vadd.f32 %v8937_v63, %v8935_v44 }
 0x328   : > { %3832 = vmatpush.msra.mxu2 %v3529_v21  ;;  %v8958_v21 = vadd.f32 %v8620_v12, %v8615_v51  ;;  %v8978_v51 = vadd.f32 %v8752_v3, %v8749_v4  ;;  %v12719_v12 = vmax.f32 %v12718_v13, 0.0  ;;  %v9003_v4 = vadd.f32 %v8801_v0, %v8799_v22  ;;  %12721 = vst [vmem:[#allocation22_spill] sm:$0xff] %v9052_v8 }
 0x32a   : > { %v8930_v9 = vpop.f32.mrf.mxu1  ;;  %3833 = vmatpush.msra.mxu2 %v3528_v38  ;;  %v8966_v38 = vadd.f32 %v8684_v28, %v8676_v39  ;;  %v8998_v39 = vadd.f32 %v8792_v10, %v8790_v60 }
 0x32b   : > { %12715 = vst [vmem:[#allocation21_spill] sm:$0xff] %v8930_v9 }
 0x32c   : > { %3834 = vmatpush.msra.mxu2 %v3527_v2  ;;  %v8970_v2 = vadd.f32 %v8713_v52, %v8708_v40  ;;  %v8990_v40 = vadd.f32 %v8774_v14, %v8772_v49  ;;  %v9015_v14 = vadd.f32 %v8830_v54, %v8828_v7  ;;  %v9030_v7 = vadd.f32 %v8865_v46, %v8863_v27 }
 0x32d   : > { %6663 = vmatmul.msk.f32.gmra.mxu1 %vm1801_vm2, %v12717_v47  ;;  %v2118_v28 = vpop.f32.mrf.mxu3 }
 0x332   : > { %v2278_v9 = vpop.f32.mrf.mxu1 }
 0x333   : > { %v2279_v47 = vadd.f32 %v2278_v9, %v8826_v29  ;;  %v8974_v9 = vadd.f32 %v8734_v57, %v8731_v31 }
 0x335   : > { %v2374_v6 = vmax.f32 %v8432_v26, %v2279_v47  ;;  %6664 = vmatmul.msk.f32.gmra.mxu1 %vm1801_vm2, %v12719_v12  ;;  %v2005_v26 = vpop.f32.mrf.mxu2  ;;  %v9035_v12 = vadd.f32 %v8879_v25, %v8877_v50 }
 0x337   : > { %v2438_v57 = vrot.slane %v2374_v6, 2  ;;  %v2439_v31 = vrot.slane %v2374_v6, 4  ;;  %v2440_v52 = vrot.slane %v2374_v6, 6  ;;  %v2631_v3 = vsel %vm2630_vm3, %v2374_v6, -inf }
 0x338   : > { %v2632_v49 = vrot.slane %v2631_v3, 4 }
 0x339   : > { %v2638_v45 = vsel %vm2630_vm3, %v2438_v57, -inf  ;;  %v2645_v56 = vsel %vm2630_vm3, %v2439_v31, -inf  ;;  %v2652_v60 = vsel %vm2630_vm3, %v2440_v52, -inf }
 0x33a   : > { %v2633_v10 = vmax.f32 %v2631_v3, %v2632_v49  ;;  %v2639_v22 = vrot.slane %v2638_v45, 4  ;;  %v2646_v0 = vrot.slane %v2645_v56, 4  ;;  %v2653_v24 = vrot.slane %v2652_v60, 4  ;;  %v2281_v59 = vpop.f32.mrf.mxu1 }
 0x33b   : > { %v2282_v29 = vadd.f32 %v2281_v59, %v8837_v48  ;;  %v12720_v48 = vmax.f32 %v8430_v15, 0.0  ;;  %v2121_v15 = vpop.f32.mrf.mxu3 }
 0x33c   : > { %v2634_v54 = vrot.slane %v2633_v10, 2  ;;  %v2640_v47 = vmax.f32 %v2638_v45, %v2639_v22  ;;  %v2647_v6 = vmax.f32 %v2645_v56, %v2646_v0  ;;  %v2654_v13 = vmax.f32 %v2652_v60, %v2653_v24 }
 0x33d   : > { %v2375_v5 = vmax.f32 %v8453_v33, %v2282_v29  ;;  %6665 = vmatmul.msk.f32.gmra.mxu1 %vm1801_vm2, %v12720_v48  ;;  %v2008_v52 = vpop.f32.mrf.mxu2  ;;  %v9057_v29 = vadd.f32 %v2118_v28, %v2005_v26 }
 0x33e   : > { %v2635_v34 = vmax.f32 %v2633_v10, %v2634_v54  ;;  %v2641_v27 = vrot.slane %v2640_v47, 2  ;;  %v2648_v46 = vrot.slane %v2647_v6, 2  ;;  %v2655_v57 = vrot.slane %v2654_v13, 2 }
 0x33f   : > { %v2441_v50 = vrot.slane %v2375_v5, 2  ;;  %v2442_v25 = vrot.slane %v2375_v5, 4  ;;  %v2443_v31 = vrot.slane %v2375_v5, 6  ;;  %v2659_v62 = vsel %vm2630_vm3, %v2375_v5, -inf  ;;  %12722 = vst [vmem:[#allocation23_spill] sm:$0xff] %v9057_v29  ;;  %v12732_v29 = vld [vmem:[#allocation11_spill] sm:$0xff] }
 0x340   : > { %v2636_v32 = vrot.slane %v2635_v34, 1  ;;  %v2642_v19 = vmax.f32 %v2640_v47, %v2641_v27  ;;  %v2649_v33 = vmax.f32 %v2647_v6, %v2648_v46  ;;  %v2660_v3 = vrot.slane %v2659_v62, 4 }
 0x341   : > { %v2666_v49 = vsel %vm2630_vm3, %v2441_v50, -inf  ;;  %v2673_v45 = vsel %vm2630_vm3, %v2442_v25, -inf  ;;  %v2680_v56 = vsel %vm2630_vm3, %v2443_v31, -inf  ;;  %v2656_v22 = vmax.f32 %v2654_v13, %v2655_v57 }
 0x342   : > { %v2643_v60 = vrot.slane %v2642_v19, 1  ;;  %v2650_v10 = vrot.slane %v2649_v33, 1  ;;  %v2284_v0 = vpop.f32.mrf.mxu1  ;;  %v2661_v24 = vmax.f32 %v2659_v62, %v2660_v3  ;;  %v2667_v44 = vrot.slane %v2666_v49, 4  ;;  %v9067_v3 = vpop.f32.mrf.mxu0 }
 0x343   : > { %v2674_v63 = vrot.slane %v2673_v45, 4  ;;  %v2681_v59 = vrot.slane %v2680_v56, 4  ;;  %v9059_v54 = vadd.f32 %v2121_v15, %v2008_v52  ;;  %v2637_v47 = vmax.f32 %v2635_v34, %v2636_v32 }
 0x344   : > { %v2285_v6 = vadd.f32 %v2284_v0, %v8850_v30  ;;  %v2662_v5 = vrot.slane %v2661_v24, 2  ;;  %v2668_v48 = vmax.f32 %v2666_v49, %v2667_v44  ;;  %v12724_v50 = vmax.f32 %v8451_v17, 0.0 }
 0x345   : > { %12723 = vst [vmem:[#allocation24_spill] sm:$0xff] %v9059_v54  ;;  %v2675_v27 = vmax.f32 %v2673_v45, %v2674_v63  ;;  %v2682_v46 = vmax.f32 %v2680_v56, %v2681_v59  ;;  %v2644_v13 = vmax.f32 %v2642_v19, %v2643_v60  ;;  %v2651_v57 = vmax.f32 %v2649_v33, %v2650_v10 }
 0x346   : > { %6666 = vmatmul.msk.f32.gmra.mxu1 %vm1801_vm2, %v12724_v50  ;;  %v2657_v25 = vrot.slane %v2656_v22, 1  ;;  %v2376_v31 = vmax.f32 %v8474_v35, %v2285_v6  ;;  %v2663_v26 = vmax.f32 %v2661_v24, %v2662_v5  ;;  %v2669_v28 = vrot.slane %v2668_v48, 2 }
 0x347   : > { %v2676_v62 = vrot.slane %v2675_v27, 2  ;;  %v2683_v34 = vrot.slane %v2682_v46, 2 }
 0x348   : > { %v2444_v32 = vrot.slane %v2376_v31, 2  ;;  %v2445_v30 = vrot.slane %v2376_v31, 4  ;;  %v2446_v52 = vrot.slane %v2376_v31, 6  ;;  %v2687_v15 = vsel %vm2630_vm3, %v2376_v31, -inf }
 0x349   : > { %v2664_v17 = vrot.slane %v2663_v26, 1  ;;  %v2670_v49 = vmax.f32 %v2668_v48, %v2669_v28  ;;  %v2677_v45 = vmax.f32 %v2675_v27, %v2676_v62  ;;  %v2688_v19 = vrot.slane %v2687_v15, 4 }
 0x34a   : > { %v2658_v33 = vmax.f32 %v2656_v22, %v2657_v25  ;;  %v2694_v56 = vsel %vm2630_vm3, %v2444_v32, -inf  ;;  %v2701_v35 = vsel %vm2630_vm3, %v2445_v30, -inf  ;;  %v2708_v60 = vsel %vm2630_vm3, %v2446_v52, -inf  ;;  %v2287_v10 = vpop.f32.mrf.mxu1 }
 0x34b   : > { %v2671_v0 = vrot.slane %v2670_v49, 1  ;;  %v2689_v24 = vmax.f32 %v2687_v15, %v2688_v19  ;;  %v2695_v44 = vrot.slane %v2694_v56, 4  ;;  %v2684_v63 = vmax.f32 %v2682_v46, %v2683_v34 }
 0x34c   : > { %v2702_v59 = vrot.slane %v2701_v35, 4  ;;  %v2709_v6 = vrot.slane %v2708_v60, 4  ;;  %v2288_v5 = vadd.f32 %v2287_v10, %v8861_v53  ;;  %v2678_v48 = vrot.slane %v2677_v45, 1  ;;  %v9086_v10 = vpop.f32.mrf.mxu0 }
 0x34d   : > { %v3668_v22 = vsel %vm3667_vm4, %v2644_v13, %v2637_v47  ;;  %v2665_v27 = vmax.f32 %v2663_v26, %v2664_v17  ;;  %v2690_v50 = vrot.slane %v2689_v24, 2  ;;  %v2696_v25 = vmax.f32 %v2694_v56, %v2695_v44 }
 0x34e   : > { %v12725_v31 = vmax.f32 %v8472_v43, 0.0  ;;  %v2703_v28 = vmax.f32 %v2701_v35, %v2702_v59  ;;  %v2710_v62 = vmax.f32 %v2708_v60, %v2709_v6  ;;  %v9078_v46 = vmax.f32 %v8495_v11, %v2288_v5 }
 0x34f   : > { %v2672_v34 = vmax.f32 %v2670_v49, %v2671_v0  ;;  %v2691_v53 = vmax.f32 %v2689_v24, %v2690_v50  ;;  %v2697_v32 = vrot.slane %v2696_v25, 2  ;;  %v2679_v30 = vmax.f32 %v2677_v45, %v2678_v48 }
 0x350   : > { %6667 = vmatmul.msk.f32.gmra.mxu1 %vm1801_vm2, %v12725_v31  ;;  %v2685_v52 = vrot.slane %v2684_v63, 1  ;;  %v2704_v47 = vrot.slane %v2703_v28, 2  ;;  %v2711_v13 = vrot.slane %v2710_v62, 2  ;;  %v2447_v26 = vrot.slane %v9078_v46, 2 }
 0x351   : > { %v2448_v43 = vrot.slane %v9078_v46, 4  ;;  %v2692_v15 = vrot.slane %v2691_v53, 1  ;;  %v2698_v17 = vmax.f32 %v2696_v25, %v2697_v32  ;;  %v2715_v19 = vsel %vm2630_vm3, %v9078_v46, -inf }
 0x352   : > { %v3670_v11 = vsel %vm3669_vm5, %v2651_v57, %v3668_v22  ;;  %v2705_v49 = vmax.f32 %v2703_v28, %v2704_v47  ;;  %v2712_v56 = vmax.f32 %v2710_v62, %v2711_v13  ;;  %v2716_v35 = vrot.slane %v2715_v19, 4  ;;  %v2290_v60 = vpop.f32.mrf.mxu1  ;;  %v12727_v13 = vld [vmem:[#allocation38_spill] sm:$0xff] }
 0x353   : > { %v2722_v45 = vsel %vm2630_vm3, %v2447_v26, -inf  ;;  %v2699_v0 = vrot.slane %v2698_v17, 1  ;;  %v2729_v44 = vsel %vm2630_vm3, %v2448_v43, -inf  ;;  %v2686_v59 = vmax.f32 %v2684_v63, %v2685_v52 }
 0x354   : > { %v2723_v24 = vrot.slane %v2722_v45, 4  ;;  %v2706_v6 = vrot.slane %v2705_v49, 1  ;;  %v2713_v5 = vrot.slane %v2712_v56, 1  ;;  %v2717_v48 = vmax.f32 %v2715_v19, %v2716_v35 }
 0x355   : > { %v2730_v50 = vrot.slane %v2729_v44, 4  ;;  %v2449_v25 = vrot.slane %v9078_v46, 6  ;;  %v3672_v22 = vsel %vm3671_vm6, %v2658_v33, %v3670_v11  ;;  %v2291_v31 = vadd.f32 %v2290_v60, %v8875_v36 }
 0x356   : > { %v2724_v57 = vmax.f32 %v2722_v45, %v2723_v24  ;;  %v12726_v28 = vmax.f32 %v8493_v58, 0.0  ;;  %v2693_v62 = vmax.f32 %v2691_v53, %v2692_v15  ;;  %v2700_v32 = vmax.f32 %v2698_v17, %v2699_v0 }
 0x357   : > { %v2718_v47 = vrot.slane %v2717_v48, 2  ;;  %v3674_v63 = vsel %vm3673_vm7, %v2665_v27, %v3672_v22  ;;  %v2378_v26 = vmax.f32 %v12727_v13, %v2291_v31  ;;  %v2731_v46 = vmax.f32 %v2729_v44, %v2730_v50  ;;  %v12729_v22 = vld [vmem:[#allocation10_spill] sm:$0xff] }
 0x358   : > { %6668 = vmatmul.msk.f32.gmra.mxu1 %vm1801_vm2, %v12726_v28  ;;  %v3676_v52 = vsel %vm3675_vm8, %v2672_v34, %v3674_v63  ;;  %v2725_v43 = vrot.slane %v2724_v57, 2  ;;  %v9098_v19 = vmax.f32 %v2705_v49, %v2706_v6  ;;  %v9101_v11 = vmax.f32 %v2712_v56, %v2713_v5  ;;  %v12728_v6 = vld [vmem:[#allocation19_spill] sm:$0xff] }
 0x359   : > { %v2719_v33 = vmax.f32 %v2717_v48, %v2718_v47  ;;  %v3678_v36 = vsel %vm3677_vm9, %v2679_v30, %v3676_v52  ;;  %v2450_v53 = vrot.slane %v2378_v26, 2  ;;  %v2451_v15 = vrot.slane %v2378_v26, 4  ;;  %v9110_v48 = vpop.f32.mrf.mxu0 }
 0x35a   : > { %v3680_v58 = vsel %vm3679_vm10, %v2686_v59, %v3678_v36  ;;  %v2452_v17 = vrot.slane %v2378_v26, 6  ;;  %v2743_v27 = vsel %vm2630_vm3, %v2378_v26, -inf  ;;  %v2293_v34 = vpop.f32.mrf.mxu1  ;;  %v2726_v45 = vmax.f32 %v2724_v57, %v2725_v43  ;;  %v12731_v26 = vld [vmem:[#allocation41_spill] sm:$0xff] }
 0x35b   : > { %6680 = vmatmul.msk.f32.vlgmr.msra.gmra.mxu2 %vm3786_vm11, %v3680_v58  ;;  %v2720_v35 = vrot.slane %v2719_v33, 1  ;;  %v2732_v60 = vrot.slane %v2731_v46, 2  ;;  %v2744_v49 = vrot.slane %v2743_v27, 4  ;;  %v2750_v0 = vsel %vm2630_vm3, %v2450_v53, -inf }
 0x35c   : > { %v2757_v30 = vsel %vm2630_vm3, %v2451_v15, -inf  ;;  %v2764_v56 = vsel %vm2630_vm3, %v2452_v17, -inf  ;;  %v2751_v24 = vrot.slane %v2750_v0, 4  ;;  %v2294_v5 = vadd.f32 %v2293_v34, %v12728_v6 }
 0x35d   : > { %v2758_v44 = vrot.slane %v2757_v30, 4  ;;  %v2765_v59 = vrot.slane %v2764_v56, 4  ;;  %v2745_v50 = vmax.f32 %v2743_v27, %v2744_v49  ;;  %v12730_v31 = vmax.f32 %v12729_v22, 0.0 }
 0x35e   : > { %v2733_v57 = vmax.f32 %v2731_v46, %v2732_v60  ;;  %v2736_v28 = vsel %vm2630_vm3, %v2449_v25, -inf  ;;  %v3681_v47 = vsel %vm3667_vm4, %v2700_v32, %v2693_v62  ;;  %v2752_v63 = vmax.f32 %v2750_v0, %v2751_v24 }
 0x35f   : > { %v2759_v52 = vmax.f32 %v2757_v30, %v2758_v44  ;;  %v2766_v13 = vmax.f32 %v2764_v56, %v2765_v59  ;;  %v2379_v43 = vmax.f32 %v12731_v26, %v2294_v5  ;;  %v2746_v36 = vrot.slane %v2745_v50, 2 }
 0x360   : > { %6669 = vmatmul.msk.f32.gmra.mxu1 %vm1801_vm2, %v12730_v31  ;;  %v2721_v58 = vmax.f32 %v2719_v33, %v2720_v35  ;;  %v2727_v53 = vrot.slane %v2726_v45, 1  ;;  %v2734_v15 = vrot.slane %v2733_v57, 1  ;;  %v2753_v17 = vrot.slane %v2752_v63, 2 }
 0x361   : > { %v2760_v27 = vrot.slane %v2759_v52, 2  ;;  %v2767_v34 = vrot.slane %v2766_v13, 2  ;;  %v2453_v49 = vrot.slane %v2379_v43, 2  ;;  %v2747_v6 = vmax.f32 %v2745_v50, %v2746_v36 }
 0x362   : > { %v2454_v22 = vrot.slane %v2379_v43, 4  ;;  %v2771_v46 = vsel %vm2630_vm3, %v2379_v43, -inf  ;;  %v2737_v25 = vrot.slane %v2736_v28, 4  ;;  %v2754_v60 = vmax.f32 %v2752_v63, %v2753_v17  ;;  %v2296_v30 = vpop.f32.mrf.mxu1 }
 0x363   : > { %v2761_v62 = vmax.f32 %v2759_v52, %v2760_v27  ;;  %v2768_v32 = vmax.f32 %v2766_v13, %v2767_v34  ;;  %v2772_v0 = vrot.slane %v2771_v46, 4  ;;  %v2748_v56 = vrot.slane %v2747_v6, 1 }
 0x364   : > { %v2778_v24 = vsel %vm2630_vm3, %v2453_v49, -inf  ;;  %v2785_v33 = vsel %vm2630_vm3, %v2454_v22, -inf  ;;  %v2728_v35 = vmax.f32 %v2726_v45, %v2727_v53  ;;  %v2755_v44 = vrot.slane %v2754_v60, 1  ;;  %v9128_v45 = vpop.f32.mrf.mxu0 }
 0x365   : > { %v2455_v59 = vrot.slane %v2379_v43, 6  ;;  %v2773_v5 = vmax.f32 %v2771_v46, %v2772_v0  ;;  %v2735_v31 = vmax.f32 %v2733_v57, %v2734_v15  ;;  %v2762_v50 = vrot.slane %v2761_v62, 1 }
 0x366   : > { %v2779_v26 = vrot.slane %v2778_v24, 4  ;;  %v2786_v36 = vrot.slane %v2785_v33, 4  ;;  %v2738_v54 = vmax.f32 %v2736_v28, %v2737_v25  ;;  %v12733_v63 = vmax.f32 %v12732_v29, 0.0 }
 0x367   : > { %v9124_v52 = vmax.f32 %v2747_v6, %v2748_v56  ;;  %v2769_v13 = vrot.slane %v2768_v32, 1  ;;  %v2774_v17 = vrot.slane %v2773_v5, 2  ;;  %v3682_v27 = vsel %vm3669_vm5, %v9098_v19, %v3681_v47  ;;  %v12734_v47 = vld [vmem:[#allocation42_spill] sm:$0xff] }
 0x368   : > { %6670 = vmatmul.msk.f32.gmra.mxu1 %vm1801_vm2, %v12733_v63  ;;  %v2780_v43 = vmax.f32 %v2778_v24, %v2779_v26  ;;  %v2739_v53 = vrot.slane %v2738_v54, 2  ;;  %v3683_v57 = vsel %vm3671_vm6, %v9101_v11, %v3682_v27  ;;  %v2297_v28 = vadd.f32 %v2296_v30, %v9067_v3 }
 0x369   : > { %v9133_v15 = vmax.f32 %v2754_v60, %v2755_v44  ;;  %v2775_v29 = vmax.f32 %v2773_v5, %v2774_v17  ;;  %v3684_v34 = vsel %vm3673_vm7, %v2721_v58, %v3683_v57  ;;  %v2787_v49 = vmax.f32 %v2785_v33, %v2786_v36  ;;  %v12737_v17 = vld [vmem:[#allocation45_spill] sm:$0xff] }
 0x36a   : > { %v9136_v6 = vmax.f32 %v2761_v62, %v2762_v50  ;;  %v2740_v22 = vmax.f32 %v2738_v54, %v2739_v53  ;;  %v3685_v19 = vsel %vm3675_vm8, %v2728_v35, %v3684_v34  ;;  %v2380_v46 = vmax.f32 %v12734_v47, %v2297_v28  ;;  %v2299_v0 = vpop.f32.mrf.mxu1  ;;  %v12735_v50 = vld [vmem:[#allocation12_spill] sm:$0xff] }
 0x36b   : > { %v3686_v25 = vsel %vm3677_vm9, %v2735_v31, %v3685_v19  ;;  %v9141_v56 = vmax.f32 %v2768_v32, %v2769_v13  ;;  %v2776_v11 = vrot.slane %v2775_v29, 1  ;;  %v2781_v3 = vrot.slane %v2780_v43, 2 }
 0x36c   : > { %v2741_v60 = vrot.slane %v2740_v22, 1  ;;  %v2456_v30 = vrot.slane %v2380_v46, 2  ;;  %v2457_v24 = vrot.slane %v2380_v46, 4  ;;  %v2458_v44 = vrot.slane %v2380_v46, 6  ;;  %v9159_v47 = vpop.f32.mrf.mxu0 }
 0x36d   : > { %v2799_v58 = vsel %vm2630_vm3, %v2380_v46, -inf  ;;  %v2300_v62 = vadd.f32 %v2299_v0, %v9086_v10  ;;  %v2788_v54 = vrot.slane %v2787_v49, 2  ;;  %v2792_v33 = vsel %vm2630_vm3, %v2455_v59, -inf }
 0x36e   : > { %v2742_v35 = vmax.f32 %v2740_v22, %v2741_v60  ;;  %v2800_v5 = vrot.slane %v2799_v58, 4  ;;  %v2806_v31 = vsel %vm2630_vm3, %v2456_v30, -inf  ;;  %v2813_v32 = vsel %vm2630_vm3, %v2457_v24, -inf }
 0x36f   : > { %v12736_v26 = vmax.f32 %v12735_v50, 0.0  ;;  %v2807_v36 = vrot.slane %v2806_v31, 4  ;;  %v2814_v63 = vrot.slane %v2813_v32, 4  ;;  %v2820_v13 = vsel %vm2630_vm3, %v2458_v44, -inf }
 0x370   : > { %v9153_v27 = vmax.f32 %v12737_v17, %v2300_v62  ;;  %v3687_v10 = vsel %vm3679_vm10, %v2742_v35, %v3686_v25  ;;  %v2801_v59 = vmax.f32 %v2799_v58, %v2800_v5  ;;  %v2821_v53 = vrot.slane %v2820_v13, 4 }
 0x371   : > { %6671 = vmatmul.msk.f32.gmra.mxu1 %vm1801_vm2, %v12736_v26  ;;  %v2782_v57 = vmax.f32 %v2780_v43, %v2781_v3  ;;  %6681 = vmatmul.msk.f32.gmra.mxu2 %vm3786_vm11, %v3687_v10  ;;  %v2808_v28 = vmax.f32 %v2806_v31, %v2807_v36  ;;  %v2815_v34 = vmax.f32 %v2813_v32, %v2814_v63 }
 0x372   : > { %v2459_v22 = vrot.slane %v9153_v27, 2  ;;  %v2460_v19 = vrot.slane %v9153_v27, 4  ;;  %v2802_v46 = vrot.slane %v2801_v59, 2  ;;  %v2822_v0 = vmax.f32 %v2820_v13, %v2821_v53  ;;  %v2302_v3 = vpop.f32.mrf.mxu1 }
 0x373   : > { %v2827_v60 = vsel %vm2630_vm3, %v9153_v27, -inf  ;;  %v2777_v30 = vmax.f32 %v2775_v29, %v2776_v11  ;;  %v2809_v25 = vrot.slane %v2808_v28, 2  ;;  %v2816_v24 = vrot.slane %v2815_v34, 2  ;;  %v12738_v11 = vld [vmem:[#allocation13_spill] sm:$0xff] }
 0x374   : > { %v2828_v44 = vrot.slane %v2827_v60, 4  ;;  %v2834_v43 = vsel %vm2630_vm3, %v2459_v22, -inf  ;;  %v2803_v58 = vmax.f32 %v2801_v59, %v2802_v46  ;;  %v2823_v62 = vrot.slane %v2822_v0, 2 }
 0x375   : > { %v2835_v35 = vrot.slane %v2834_v43, 4  ;;  %v2783_v5 = vrot.slane %v2782_v57, 1  ;;  %v2810_v31 = vmax.f32 %v2808_v28, %v2809_v25  ;;  %v2817_v32 = vmax.f32 %v2815_v34, %v2816_v24 }
 0x376   : > { %v2829_v50 = vmax.f32 %v2827_v60, %v2828_v44  ;;  %v2841_v26 = vsel %vm2630_vm3, %v2460_v19, -inf  ;;  %v2804_v36 = vrot.slane %v2803_v58, 1  ;;  %v2824_v63 = vmax.f32 %v2822_v0, %v2823_v62  ;;  %v9185_v62 = vpop.f32.mrf.mxu0 }
 0x377   : > { %v2461_v13 = vrot.slane %v9153_v27, 6  ;;  %v2836_v29 = vmax.f32 %v2834_v43, %v2835_v35  ;;  %v12739_v17 = vmax.f32 %v12738_v11, 0.0  ;;  %v2811_v10 = vrot.slane %v2810_v31, 1 }
 0x378   : > { %v2818_v53 = vrot.slane %v2817_v32, 1  ;;  %v2830_v59 = vrot.slane %v2829_v50, 2  ;;  %v2789_v22 = vmax.f32 %v2787_v49, %v2788_v54  ;;  %v2842_v46 = vrot.slane %v2841_v26, 4 }
 0x379   : > { %6672 = vmatmul.msk.f32.gmra.mxu1 %vm1801_vm2, %v12739_v17  ;;  %v2784_v8 = vmax.f32 %v2782_v57, %v2783_v5  ;;  %v2793_v28 = vrot.slane %v2792_v33, 4  ;;  %v3688_v34 = vsel %vm3667_vm4, %v9133_v15, %v9124_v52  ;;  %v9172_v19 = vmax.f32 %v2803_v58, %v2804_v36  ;;  %v12740_v17 = vld [vmem:[#allocation14_spill] sm:$0xff] }
 0x37a   : > { %v2825_v0 = vrot.slane %v2824_v63, 1  ;;  %v9174_v60 = vmax.f32 %v2829_v50, %v2830_v59  ;;  %v2790_v25 = vrot.slane %v2789_v22, 1  ;;  %v9176_v24 = vmax.f32 %v2810_v31, %v2811_v10  ;;  %v2305_v15 = vpop.f32.mrf.mxu1 }
 0x37b   : > { %v2794_v44 = vmax.f32 %v2792_v33, %v2793_v28  ;;  %v3689_v43 = vsel %vm3669_vm5, %v9136_v6, %v3688_v34  ;;  %v2303_v49 = vadd.f32 %v2302_v3, %v9110_v48  ;;  %v9181_v54 = vmax.f32 %v2817_v32, %v2818_v53 }
 0x37c   : > { %v2791_v57 = vmax.f32 %v2789_v22, %v2790_v25  ;;  %v3690_v52 = vsel %vm3671_vm6, %v9141_v56, %v3689_v43  ;;  %v2837_v58 = vrot.slane %v2836_v29, 2  ;;  %v2306_v31 = vadd.f32 %v2305_v15, %v9128_v45 }
 0x37d   : > { %v2795_v35 = vrot.slane %v2794_v44, 2  ;;  %v3691_v5 = vsel %vm3673_vm7, %v2777_v30, %v3690_v52  ;;  %v2382_v33 = vmax.f32 %v8953_v55, %v2303_v49  ;;  %v9191_v48 = vmax.f32 %v2824_v63, %v2825_v0 }
 0x37e   : > { %v3692_v6 = vsel %vm3675_vm8, %v2784_v8, %v3691_v5  ;;  %v2832_v3 = vrot.slane %v9174_v60, 1  ;;  %v2838_v32 = vmax.f32 %v2836_v29, %v2837_v58  ;;  %v12741_v10 = vmax.f32 %v12740_v17, 0.0 }
 0x37f   : > { %v2796_v50 = vmax.f32 %v2794_v44, %v2795_v35  ;;  %v3693_v56 = vsel %vm3677_vm9, %v2791_v57, %v3692_v6  ;;  %v2462_v36 = vrot.slane %v2382_v33, 2  ;;  %v2463_v11 = vrot.slane %v2382_v33, 4 }
 0x380   : > { %v2464_v30 = vrot.slane %v2382_v33, 6  ;;  %v2855_v55 = vsel %vm2630_vm3, %v2382_v33, -inf  ;;  %v9200_v45 = vmax.f32 %v8958_v21, %v2306_v31  ;;  %v2843_v8 = vmax.f32 %v2841_v26, %v2842_v46 }
 0x381   : > { %6673 = vmatmul.msk.f32.gmra.mxu1 %vm1801_vm2, %v12741_v10  ;;  %v2797_v63 = vrot.slane %v2796_v50, 1  ;;  %v2856_v53 = vrot.slane %v2855_v55, 4  ;;  %v2862_v29 = vsel %vm2630_vm3, %v2462_v36, -inf  ;;  %v2869_v59 = vsel %vm2630_vm3, %v2463_v11, -inf  ;;  %v9215_v36 = vpop.f32.mrf.mxu0 }
 0x382   : > { %v2863_v22 = vrot.slane %v2862_v29, 4  ;;  %v2870_v28 = vrot.slane %v2869_v59, 4  ;;  %v2876_v34 = vsel %vm2630_vm3, %v2464_v30, -inf  ;;  %v2465_v0 = vrot.slane %v9200_v45, 2  ;;  %v2308_v52 = vpop.f32.mrf.mxu1 }
 0x383   : > { %v2798_v25 = vmax.f32 %v2796_v50, %v2797_v63  ;;  %v2857_v44 = vmax.f32 %v2855_v55, %v2856_v53  ;;  %v2877_v43 = vrot.slane %v2876_v34, 4  ;;  %v2466_v49 = vrot.slane %v9200_v45, 4  ;;  %v12742_v55 = vld [vmem:[#allocation46_spill] sm:$0xff] }
 0x384   : > { %v2864_v21 = vmax.f32 %v2862_v29, %v2863_v22  ;;  %v2871_v57 = vmax.f32 %v2869_v59, %v2870_v28  ;;  %v2883_v26 = vsel %vm2630_vm3, %v9200_v45, -inf  ;;  %v2839_v46 = vrot.slane %v2838_v32, 1 }
 0x385   : > { %v3694_v15 = vsel %vm3679_vm10, %v2798_v25, %v3693_v56  ;;  %v2858_v58 = vrot.slane %v2857_v44, 2  ;;  %v2878_v35 = vmax.f32 %v2876_v34, %v2877_v43  ;;  %v2884_v5 = vrot.slane %v2883_v26, 4 }
 0x386   : > { %6682 = vmatmul.msk.f32.gmra.mxu2 %vm3786_vm11, %v3694_v15  ;;  %v2865_v33 = vrot.slane %v2864_v21, 2  ;;  %v2872_v31 = vrot.slane %v2871_v57, 2  ;;  %v2890_v6 = vsel %vm2630_vm3, %v2465_v0, -inf  ;;  %v9213_v50 = vsel %vm2630_vm3, %v2466_v49, -inf }
 0x387   : > { %v2859_v11 = vmax.f32 %v2857_v44, %v2858_v58  ;;  %v2879_v17 = vrot.slane %v2878_v35, 2  ;;  %v2885_v10 = vmax.f32 %v2883_v26, %v2884_v5  ;;  %v2891_v30 = vrot.slane %v2890_v6, 4 }
 0x388   : > { %v12743_v56 = vmax.f32 %v12742_v55, 0.0  ;;  %v2866_v63 = vmax.f32 %v2864_v21, %v2865_v33  ;;  %v2873_v53 = vmax.f32 %v2871_v57, %v2872_v31  ;;  %v2467_v29 = vrot.slane %v9200_v45, 6 }
 0x389   : > { %v2833_v59 = vmax.f32 %v9174_v60, %v2832_v3  ;;  %v2860_v22 = vrot.slane %v2859_v11, 1  ;;  %v2880_v28 = vmax.f32 %v2878_v35, %v2879_v17  ;;  %v2886_v34 = vrot.slane %v2885_v10, 2  ;;  %v9254_v55 = vpop.f32.mrf.mxu0 }
 0x38a   : > { %6674 = vmatmul.msk.f32.gmra.mxu1 %vm1801_vm2, %v12743_v56  ;;  %v2898_v0 = vrot.slane %v9213_v50, 4  ;;  %v2867_v25 = vrot.slane %v2866_v63, 1  ;;  %v2874_v44 = vrot.slane %v2873_v53, 1  ;;  %v2844_v43 = vrot.slane %v2843_v8, 2  ;;  %v2311_v5 = vpop.f32.mrf.mxu1 }
 0x38b   : > { %v2848_v49 = vsel %vm2630_vm3, %v2461_v13, -inf  ;;  %v9226_v26 = vmax.f32 %v2859_v11, %v2860_v22  ;;  %v9228_v21 = vmax.f32 %v2890_v6, %v2891_v30  ;;  %v2840_v57 = vmax.f32 %v2838_v32, %v2839_v46 }
 0x38c   : > { %v2849_v15 = vrot.slane %v2848_v49, 4  ;;  %v2881_v58 = vrot.slane %v2880_v28, 1  ;;  %v2887_v60 = vmax.f32 %v2885_v10, %v2886_v34  ;;  %v2845_v3 = vmax.f32 %v2843_v8, %v2844_v43 }
 0x38d   : > { %v3695_v35 = vsel %vm3667_vm4, %v9176_v24, %v9172_v19  ;;  %v2309_v13 = vadd.f32 %v2308_v52, %v9159_v47  ;;  %v2312_v31 = vadd.f32 %v2311_v5, %v9185_v62  ;;  %v9237_v6 = vmax.f32 %v2866_v63, %v2867_v25 }
 0x38e   : > { %v2850_v33 = vmax.f32 %v2848_v49, %v2849_v15  ;;  %v3696_v27 = vsel %vm3669_vm5, %v9181_v54, %v3695_v35  ;;  %v9239_v32 = vmax.f32 %v2873_v53, %v2874_v44  ;;  %v2846_v46 = vrot.slane %v2845_v3, 1  ;;  %v12744_v54 = vld [vmem:[#allocation15_spill] sm:$0xff] }
 0x38f   : > { %v3697_v8 = vsel %vm3671_vm6, %v9191_v48, %v3696_v27  ;;  %v2384_v24 = vmax.f32 %v8962_v37, %v2309_v13  ;;  %v9246_v17 = vmax.f32 %v8966_v38, %v2312_v31  ;;  %v12745_v47 = vmax.f32 %v12744_v54, 0.0  ;;  %v12746_v54 = vld [vmem:[#allocation16_spill] sm:$0xff] }
 0x390   : > { %v2851_v11 = vrot.slane %v2850_v33, 2  ;;  %v3698_v19 = vsel %vm3673_vm7, %v2833_v59, %v3697_v8  ;;  %v2847_v62 = vmax.f32 %v2845_v3, %v2846_v46  ;;  %v9252_v10 = vmax.f32 %v2880_v28, %v2881_v58 }
 0x391   : > { %v3699_v52 = vsel %vm3675_vm8, %v2840_v57, %v3698_v19  ;;  %v2888_v30 = vrot.slane %v2887_v60, 1  ;;  %v2468_v56 = vrot.slane %v2384_v24, 2  ;;  %v2469_v63 = vrot.slane %v2384_v24, 4 }
 0x392   : > { %6675 = vmatmul.msk.f32.gmra.mxu1 %vm1801_vm2, %v12745_v47  ;;  %v2852_v48 = vmax.f32 %v2850_v33, %v2851_v11  ;;  %v2470_v53 = vrot.slane %v2384_v24, 6  ;;  %v3700_v37 = vsel %vm3677_vm9, %v2847_v62, %v3699_v52  ;;  %v2911_v38 = vsel %vm2630_vm3, %v2384_v24, -inf  ;;  %v2314_v58 = vpop.f32.mrf.mxu1 }
 0x393   : > { %v2471_v59 = vrot.slane %v9246_v17, 2  ;;  %v2893_v22 = vrot.slane %v9228_v21, 2  ;;  %v2912_v25 = vrot.slane %v2911_v38, 4  ;;  %v2918_v28 = vsel %vm2630_vm3, %v2468_v56, -inf }
 0x394   : > { %v2853_v34 = vrot.slane %v2852_v48, 1  ;;  %v2925_v44 = vsel %vm2630_vm3, %v2469_v63, -inf  ;;  %v2919_v43 = vrot.slane %v2918_v28, 4  ;;  %v2932_v57 = vsel %vm2630_vm3, %v2470_v53, -inf }
 0x395   : > { %v2926_v49 = vrot.slane %v2925_v44, 4  ;;  %v2472_v15 = vrot.slane %v9246_v17, 4  ;;  %v2913_v35 = vmax.f32 %v2911_v38, %v2912_v25  ;;  %v2933_v5 = vrot.slane %v2932_v57, 4  ;;  %v9277_v25 = vpop.f32.mrf.mxu0 }
 0x396   : > { %v2854_v3 = vmax.f32 %v2852_v48, %v2853_v34  ;;  %v2939_v33 = vsel %vm2630_vm3, %v9246_v17, -inf  ;;  %v2920_v27 = vmax.f32 %v2918_v28, %v2919_v43  ;;  %v2946_v46 = vsel %vm2630_vm3, %v2471_v59, -inf }
 0x397   : > { %v2927_v13 = vmax.f32 %v2925_v44, %v2926_v49  ;;  %v2940_v31 = vrot.slane %v2939_v33, 4  ;;  %v2914_v11 = vrot.slane %v2913_v35, 2  ;;  %v2934_v19 = vmax.f32 %v2932_v57, %v2933_v5 }
 0x398   : > { %v3701_v8 = vsel %vm3679_vm10, %v2854_v3, %v3700_v37  ;;  %v2889_v24 = vmax.f32 %v2887_v60, %v2888_v30  ;;  %v12747_v47 = vmax.f32 %v12746_v54, 0.0  ;;  %v2921_v62 = vrot.slane %v2920_v27, 2 }
 0x399   : > { %6683 = vmatmul.msk.f32.gmra.mxu2 %vm3786_vm11, %v3701_v8  ;;  %v2928_v52 = vrot.slane %v2927_v13, 2  ;;  %v2941_v48 = vmax.f32 %v2939_v33, %v2940_v31  ;;  %v2947_v56 = vrot.slane %v2946_v46, 4  ;;  %v2915_v63 = vmax.f32 %v2913_v35, %v2914_v11  ;;  %v12748_v11 = vld [vmem:[#allocation49_spill] sm:$0xff] }
 0x39a   : > { %6676 = vmatmul.msk.f32.gmra.mxu1 %vm1801_vm2, %v12747_v47  ;;  %v2935_v53 = vrot.slane %v2934_v19, 2  ;;  %v2473_v38 = vrot.slane %v9246_v17, 6  ;;  %v9274_v59 = vsel %vm2630_vm3, %v2472_v15, -inf  ;;  %v2922_v37 = vmax.f32 %v2920_v27, %v2921_v62  ;;  %v2317_v5 = vpop.f32.mrf.mxu1 }
 0x39b   : > { %v2929_v34 = vmax.f32 %v2927_v13, %v2928_v52  ;;  %v2942_v60 = vrot.slane %v2941_v48, 2  ;;  %v2894_v30 = vmax.f32 %v9228_v21, %v2893_v22  ;;  %v2916_v28 = vrot.slane %v2915_v63, 1 }
 0x39c   : > { %v2936_v44 = vmax.f32 %v2934_v19, %v2935_v53  ;;  %v2899_v43 = vmax.f32 %v9213_v50, %v2898_v0  ;;  %v2904_v49 = vsel %vm2630_vm3, %v2467_v29, -inf  ;;  %v2923_v57 = vrot.slane %v2922_v37, 1 }
 0x39d   : > { %v2943_v15 = vmax.f32 %v2941_v48, %v2942_v60  ;;  %v9285_v3 = vmax.f32 %v2946_v46, %v2947_v56  ;;  %v2895_v35 = vrot.slane %v2894_v30, 1  ;;  %v2930_v33 = vrot.slane %v2929_v34, 1 }
 0x39e   : > { %v2954_v21 = vrot.slane %v9274_v59, 4  ;;  %v2900_v22 = vrot.slane %v2899_v43, 2  ;;  %v2905_v27 = vrot.slane %v2904_v49, 4  ;;  %v9288_v13 = vmax.f32 %v2915_v63, %v2916_v28 }
 0x39f   : > { %v2937_v31 = vrot.slane %v2936_v44, 1  ;;  %v2896_v8 = vmax.f32 %v2894_v30, %v2895_v35  ;;  %v3702_v45 = vsel %vm3667_vm4, %v9237_v6, %v9226_v26  ;;  %v2315_v46 = vadd.f32 %v2314_v58, %v9215_v36 }
 0x3a0   : > { %v2901_v50 = vmax.f32 %v2899_v43, %v2900_v22  ;;  %v2906_v29 = vmax.f32 %v2904_v49, %v2905_v27  ;;  %v3703_v0 = vsel %vm3669_vm5, %v9239_v32, %v3702_v45  ;;  %v12749_v19 = vmax.f32 %v12748_v11, 0.0 }
 0x3a1   : > { %v9299_v54 = vmax.f32 %v2922_v37, %v2923_v57  ;;  %v3704_v47 = vsel %vm3671_vm6, %v9252_v10, %v3703_v0  ;;  %v2318_v62 = vadd.f32 %v2317_v5, %v9254_v55  ;;  %v2944_v52 = vrot.slane %v2943_v15, 1 }
 0x3a2   : > { %6677 = vmatmul.msk.f32.gmra.mxu1 %vm1801_vm2, %v12749_v19  ;;  %v2902_v26 = vrot.slane %v2901_v50, 1  ;;  %v2907_v6 = vrot.slane %v2906_v29, 2  ;;  %v3705_v48 = vsel %vm3673_vm7, %v2889_v24, %v3704_v47  ;;  %v2386_v32 = vmax.f32 %v8970_v2, %v2315_v46  ;;  %v2320_v2 = vpop.f32.mrf.mxu1 }
 0x3a3   : > { %v9306_v56 = vmax.f32 %v2929_v34, %v2930_v33  ;;  %v3706_v36 = vsel %vm3675_vm8, %v2896_v8, %v3705_v48  ;;  %v9310_v58 = vmax.f32 %v8974_v9, %v2318_v62  ;;  %v9312_v63 = vmax.f32 %v2936_v44, %v2937_v31  ;;  %v2210_v34 = vpop.f32.mrf.mxu0  ;;  %v12750_v8 = vld [vmem:[#allocation17_spill] sm:$0xff] }
 0x3a4   : > { %v2903_v53 = vmax.f32 %v2901_v50, %v2902_v26  ;;  %v2908_v10 = vmax.f32 %v2906_v29, %v2907_v6  ;;  %v2474_v37 = vrot.slane %v2386_v32, 2  ;;  %v2475_v55 = vrot.slane %v2386_v32, 4 }
 0x3a5   : > { %v2476_v60 = vrot.slane %v2386_v32, 6  ;;  %v2967_v30 = vsel %vm2630_vm3, %v2386_v32, -inf  ;;  %v2477_v24 = vrot.slane %v9310_v58, 2  ;;  %v9316_v28 = vmax.f32 %v2943_v15, %v2944_v52 }
 0x3a6   : > { %v2909_v43 = vrot.slane %v2908_v10, 1  ;;  %v2968_v49 = vrot.slane %v2967_v30, 4  ;;  %v2974_v9 = vsel %vm2630_vm3, %v2474_v37, -inf  ;;  %v2949_v44 = vrot.slane %v9285_v3, 2 }
 0x3a7   : > { %v3707_v57 = vsel %vm3677_vm9, %v2903_v53, %v3706_v36  ;;  %v2975_v35 = vrot.slane %v2974_v9, 4  ;;  %v2981_v5 = vsel %vm2630_vm3, %v2475_v55, -inf  ;;  %v2988_v33 = vsel %vm2630_vm3, %v2476_v60, -inf }
 0x3a8   : > { %v2910_v22 = vmax.f32 %v2908_v10, %v2909_v43  ;;  %v2969_v27 = vmax.f32 %v2967_v30, %v2968_v49  ;;  %v2982_v31 = vrot.slane %v2981_v5, 4  ;;  %v2989_v15 = vrot.slane %v2988_v33, 4 }
 0x3a9   : > { %v12751_v45 = vmax.f32 %v12750_v8, 0.0  ;;  %v2976_v50 = vmax.f32 %v2974_v9, %v2975_v35  ;;  %v2478_v29 = vrot.slane %v9310_v58, 4  ;;  %v2995_v0 = vsel %vm2630_vm3, %v9310_v58, -inf }
 0x3aa   : > { %v3002_v46 = vsel %vm2630_vm3, %v2477_v24, -inf  ;;  %v3708_v11 = vsel %vm3679_vm10, %v2910_v22, %v3707_v57  ;;  %v2970_v19 = vrot.slane %v2969_v27, 2  ;;  %v2983_v47 = vmax.f32 %v2981_v5, %v2982_v31  ;;  %v2323_v24 = vpop.f32.mrf.mxu1 }
 0x3ab   : > { %6678 = vmatmul.msk.f32.gmra.mxu1 %vm1801_vm2, %v12751_v45  ;;  %v2990_v62 = vmax.f32 %v2988_v33, %v2989_v15  ;;  %6684 = vmatmul.msk.f32.gmra.mxu2 %vm3786_vm11, %v3708_v11  ;;  %v2977_v52 = vrot.slane %v2976_v50, 2  ;;  %v2479_v26 = vrot.slane %v9310_v58, 6  ;;  %v2996_v6 = vrot.slane %v2995_v0, 4 }
 0x3ac   : > { %v3003_v48 = vrot.slane %v3002_v46, 4  ;;  %v2971_v32 = vmax.f32 %v2969_v27, %v2970_v19  ;;  %v2984_v36 = vrot.slane %v2983_v47, 2  ;;  %v2950_v10 = vmax.f32 %v9285_v3, %v2949_v44  ;;  %v9345_v44 = vpop.f32.mrf.mxu0 }
 0x3ad   : > { %v2991_v53 = vrot.slane %v2990_v62, 2  ;;  %v2978_v37 = vmax.f32 %v2976_v50, %v2977_v52  ;;  %v2997_v55 = vmax.f32 %v2995_v0, %v2996_v6  ;;  %v9335_v60 = vsel %vm2630_vm3, %v2478_v29, -inf }
 0x3ae   : > { %v2955_v30 = vmax.f32 %v9274_v59, %v2954_v21  ;;  %v2972_v43 = vrot.slane %v2971_v32, 1  ;;  %v2985_v49 = vmax.f32 %v2983_v47, %v2984_v36  ;;  %v2951_v57 = vrot.slane %v2950_v10, 1  ;;  %v12752_v21 = vld [vmem:[#allocation18_spill] sm:$0xff] }
 0x3af   : > { %v9340_v9 = vmax.f32 %v2990_v62, %v2991_v53  ;;  %v2979_v35 = vrot.slane %v2978_v37, 1  ;;  %v2998_v5 = vrot.slane %v2997_v55, 2  ;;  %v2960_v3 = vsel %vm2630_vm3, %v2473_v38, -inf }
 0x3b0   : > { %v2956_v33 = vrot.slane %v2955_v30, 2  ;;  %v9347_v22 = vmax.f32 %v2971_v32, %v2972_v43  ;;  %v2986_v27 = vrot.slane %v2985_v49, 1  ;;  %v9349_v31 = vmax.f32 %v3002_v46, %v3003_v48 }
 0x3b1   : > { %v3010_v59 = vrot.slane %v9335_v60, 4  ;;  %v12753_v15 = vmax.f32 %v12752_v21, 0.0  ;;  %v2993_v8 = vrot.slane %v9340_v9, 1  ;;  %v9356_v45 = vmax.f32 %v2997_v55, %v2998_v5 }
 0x3b2   : > { %v2957_v17 = vmax.f32 %v2955_v30, %v2956_v33  ;;  %v2961_v50 = vrot.slane %v2960_v3, 4  ;;  %v2952_v38 = vmax.f32 %v2950_v10, %v2951_v57  ;;  %v3709_v29 = vsel %vm3667_vm4, %v9299_v54, %v9288_v13 }
 0x3b3   : > { %6679 = vmatmul.msk.f32.gmra.mxu1 %vm1801_vm2, %v12753_v15  ;;  %v2321_v0 = vadd.f32 %v2320_v2, %v9277_v25  ;;  %v2324_v46 = vadd.f32 %v2323_v24, %v2210_v34  ;;  %v9362_v11 = vmax.f32 %v2978_v37, %v2979_v35  ;;  %v3710_v62 = vsel %vm3669_vm5, %v9306_v56, %v3709_v29  ;;  %v9377_v34 = vpop.f32.mrf.mxu1 }
 0x3b4   : > { %v2958_v19 = vrot.slane %v2957_v17, 1  ;;  %v2962_v47 = vmax.f32 %v2960_v3, %v2961_v50  ;;  %v9366_v52 = vmax.f32 %v2985_v49, %v2986_v27  ;;  %v3711_v6 = vsel %vm3671_vm6, %v9312_v63, %v3710_v62  ;;  %v2216_v5 = vpop.f32.mrf.mxu0 }
 0x3b5   : > { %v2388_v48 = vmax.f32 %v8978_v51, %v2321_v0  ;;  %v9372_v32 = vmax.f32 %v8986_v23, %v2324_v46  ;;  %v3712_v54 = vsel %vm3673_vm7, %v9316_v28, %v3711_v6  ;;  %v3000_v2 = vrot.slane %v9356_v45, 1 }
 0x3b6   : > { %v2959_v13 = vmax.f32 %v2957_v17, %v2958_v19  ;;  %v2963_v25 = vrot.slane %v2962_v47, 2  ;;  %v3005_v10 = vrot.slane %v9349_v31, 2  ;;  %v3713_v51 = vsel %vm3675_vm8, %v2952_v38, %v3712_v54 }
 0x3b7   : > { %v2480_v56 = vrot.slane %v2388_v48, 2  ;;  %v2481_v36 = vrot.slane %v2388_v48, 4  ;;  %v2482_v53 = vrot.slane %v2388_v48, 6  ;;  %v3023_v23 = vsel %vm2630_vm3, %v2388_v48, -inf }
 0x3b8   : > { %v2964_v63 = vmax.f32 %v2962_v47, %v2963_v25  ;;  %v2483_v37 = vrot.slane %v9372_v32, 2  ;;  %v3024_v55 = vrot.slane %v3023_v23, 4  ;;  %v3714_v33 = vsel %vm3677_vm9, %v2959_v13, %v3713_v51 }
 0x3b9   : > { %v3030_v30 = vsel %vm2630_vm3, %v2480_v56, -inf  ;;  %v3037_v28 = vsel %vm2630_vm3, %v2481_v36, -inf  ;;  %v3044_v24 = vsel %vm2630_vm3, %v2482_v53, -inf  ;;  %v2484_v27 = vrot.slane %v9372_v32, 4 }
 0x3ba   : > { %v2965_v43 = vrot.slane %v2964_v63, 1  ;;  %v3031_v49 = vrot.slane %v3030_v30, 4  ;;  %v3038_v57 = vrot.slane %v3037_v28, 4  ;;  %v3045_v35 = vrot.slane %v3044_v24, 4 }
 0x3bb   : > { %v3025_v3 = vmax.f32 %v3023_v23, %v3024_v55  ;;  %v3051_v21 = vsel %vm2630_vm3, %v9372_v32, -inf  ;;  %v3058_v46 = vsel %vm2630_vm3, %v2483_v37, -inf  ;;  %v9392_v19 = vsel %vm2630_vm3, %v2484_v27, -inf  ;;  %v2329_v13 = vpop.f32.mrf.mxu1 }
 0x3bc   : > { %v2966_v15 = vmax.f32 %v2964_v63, %v2965_v43  ;;  %v3032_v17 = vmax.f32 %v3030_v30, %v3031_v49  ;;  %v3039_v50 = vmax.f32 %v3037_v28, %v3038_v57  ;;  %v3046_v38 = vmax.f32 %v3044_v24, %v3045_v35 }
 0x3bd   : > { %v3026_v29 = vrot.slane %v3025_v3, 2  ;;  %v3052_v0 = vrot.slane %v3051_v21, 4  ;;  %v3059_v56 = vrot.slane %v3058_v46, 4  ;;  %v2994_v36 = vmax.f32 %v9340_v9, %v2993_v8 }
 0x3be   : > { %v3715_v47 = vsel %vm3679_vm10, %v2966_v15, %v3714_v33  ;;  %v3033_v62 = vrot.slane %v3032_v17, 2  ;;  %v3040_v6 = vrot.slane %v3039_v50, 2  ;;  %v3047_v48 = vrot.slane %v3046_v38, 2 }
 0x3bf   : > { %6685 = vmatmul.msk.f32.gmra.mxu2 %vm3786_vm11, %v3715_v47  ;;  %v3027_v25 = vmax.f32 %v3025_v3, %v3026_v29  ;;  %v3053_v54 = vmax.f32 %v3051_v21, %v3052_v0  ;;  %v2485_v23 = vrot.slane %v9372_v32, 6  ;;  %v3066_v30 = vrot.slane %v9392_v19, 4  ;;  %v9416_v21 = vpop.f32.mrf.mxu0 }
 0x3c0   : > { %v3034_v53 = vmax.f32 %v3032_v17, %v3033_v62  ;;  %v3041_v63 = vmax.f32 %v3039_v50, %v3040_v6  ;;  %v9397_v51 = vmax.f32 %v3046_v38, %v3047_v48  ;;  %v3006_v28 = vmax.f32 %v9349_v31, %v3005_v10 }
 0x3c1   : > { %v3028_v37 = vrot.slane %v3027_v25, 1  ;;  %v3054_v55 = vrot.slane %v3053_v54, 2  ;;  %v9402_v43 = vmax.f32 %v3058_v46, %v3059_v56  ;;  %v3001_v49 = vmax.f32 %v9356_v45, %v3000_v2 }
 0x3c2   : > { %v3035_v24 = vrot.slane %v3034_v53, 1  ;;  %v3011_v9 = vmax.f32 %v9335_v60, %v3010_v59  ;;  %v3042_v8 = vrot.slane %v3041_v63, 1  ;;  %v3049_v57 = vrot.slane %v9397_v51, 1 }
 0x3c3   : > { %v3007_v35 = vrot.slane %v3006_v28, 1  ;;  %v3016_v33 = vsel %vm2630_vm3, %v2479_v26, -inf  ;;  %v9412_v3 = vmax.f32 %v3027_v25, %v3028_v37  ;;  %v9414_v31 = vmax.f32 %v3053_v54, %v3054_v55  ;;  %v9427_v50 = vpop.f32.mrf.mxu1 }
 0x3c4   : > { %v3012_v10 = vrot.slane %v3011_v9, 2  ;;  %v3017_v27 = vrot.slane %v3016_v33, 4  ;;  %v3716_v60 = vsel %vm3667_vm4, %v9362_v11, %v9347_v22  ;;  %v2327_v59 = vadd.f32 %v9377_v34, %v9345_v44 }
 0x3c5   : > { %v3008_v45 = vmax.f32 %v3006_v28, %v3007_v35  ;;  %v2330_v2 = vadd.f32 %v2329_v13, %v2216_v5  ;;  %v9423_v58 = vmax.f32 %v3034_v53, %v3035_v24  ;;  %v3717_v17 = vsel %vm3669_vm5, %v9366_v52, %v3716_v60 }
 0x3c6   : > { %v3013_v26 = vmax.f32 %v3011_v9, %v3012_v10  ;;  %v3018_v15 = vmax.f32 %v3016_v33, %v3017_v27  ;;  %v9429_v38 = vmax.f32 %v3041_v63, %v3042_v8  ;;  %v3718_v29 = vsel %vm3671_vm6, %v2994_v36, %v3717_v17 }
 0x3c7   : > { %v2390_v0 = vmax.f32 %v8990_v40, %v2327_v59  ;;  %v9434_v22 = vmax.f32 %v8994_v16, %v2330_v2  ;;  %v3719_v34 = vsel %vm3673_vm7, %v3001_v49, %v3718_v29  ;;  %v3056_v5 = vrot.slane %v9414_v31, 1  ;;  %v2222_v27 = vpop.f32.mrf.mxu0 }
 0x3c8   : > { %v3014_v44 = vrot.slane %v3013_v26, 1  ;;  %v3019_v11 = vrot.slane %v3018_v15, 2  ;;  %v3720_v46 = vsel %vm3675_vm8, %v3008_v45, %v3719_v34  ;;  %v3061_v37 = vrot.slane %v9402_v43, 2 }
 0x3c9   : > { %v2486_v52 = vrot.slane %v2390_v0, 2  ;;  %v2487_v47 = vrot.slane %v2390_v0, 4  ;;  %v2488_v62 = vrot.slane %v2390_v0, 6  ;;  %v3079_v13 = vsel %vm2630_vm3, %v2390_v0, -inf }
 0x3ca   : > { %v3015_v6 = vmax.f32 %v3013_v26, %v3014_v44  ;;  %v3020_v48 = vmax.f32 %v3018_v15, %v3019_v11  ;;  %v2489_v40 = vrot.slane %v9434_v22, 2  ;;  %v3080_v25 = vrot.slane %v3079_v13, 4 }
 0x3cb   : > { %v3086_v16 = vsel %vm2630_vm3, %v2486_v52, -inf  ;;  %v3093_v54 = vsel %vm2630_vm3, %v2487_v47, -inf  ;;  %v3100_v56 = vsel %vm2630_vm3, %v2488_v62, -inf  ;;  %v2490_v49 = vrot.slane %v9434_v22, 4 }
 0x3cc   : > { %v3021_v36 = vrot.slane %v3020_v48, 1  ;;  %v3087_v53 = vrot.slane %v3086_v16, 4  ;;  %v3094_v63 = vrot.slane %v3093_v54, 4  ;;  %v3721_v55 = vsel %vm3677_vm9, %v3015_v6, %v3720_v46 }
 0x3cd   : > { %v3081_v28 = vmax.f32 %v3079_v13, %v3080_v25  ;;  %v3101_v24 = vrot.slane %v3100_v56, 4  ;;  %v3107_v33 = vsel %vm2630_vm3, %v9434_v22, -inf  ;;  %v2335_v10 = vpop.f32.mrf.mxu1  ;;  %v3114_v2 = vsel %vm2630_vm3, %v2489_v40, -inf }
 0x3ce   : > { %v3022_v9 = vmax.f32 %v3020_v48, %v3021_v36  ;;  %v3088_v8 = vmax.f32 %v3086_v16, %v3087_v53  ;;  %v3095_v35 = vmax.f32 %v3093_v54, %v3094_v63  ;;  %v3108_v59 = vrot.slane %v3107_v33, 4  ;;  %v6722_v63 = vld [vmem:[%s12439_s6 + $0x1b0] sm:$0xf] }
 0x3cf   : > { %v3082_v45 = vrot.slane %v3081_v28, 2  ;;  %v3102_v60 = vmax.f32 %v3100_v56, %v3101_v24  ;;  %v3115_v29 = vrot.slane %v3114_v2, 4  ;;  %v9453_v34 = vsel %vm2630_vm3, %v2490_v49, -inf  ;;  %6724 = vmatpush.msk.msra.mxu3 %vm4071_vm12, %v6722_v63 }
 0x3d0   : > { %v3722_v26 = vsel %vm3679_vm10, %v3022_v9, %v3721_v55  ;;  %v3089_v15 = vrot.slane %v3088_v8, 2  ;;  %v3096_v17 = vrot.slane %v3095_v35, 2  ;;  %v3109_v11 = vmax.f32 %v3107_v33, %v3108_v59 }
 0x3d1   : > { %6686 = vmatmul.msk.f32.gmra.mxu2 %vm3786_vm11, %v3722_v26  ;;  %v3083_v0 = vmax.f32 %v3081_v28, %v3082_v45  ;;  %v3103_v44 = vrot.slane %v3102_v60, 2  ;;  %v2491_v47 = vrot.slane %v9434_v22, 6  ;;  %v3050_v62 = vmax.f32 %v9397_v51, %v3049_v57  ;;  %v6720_v28 = vld [vmem:[%s12439_s6 + $0x1a0] sm:$0xff]  ;;  %v3959_v22 = vld [vmem:[%s12439_s6 + $0x48] sm:$0xff] }
 0x3d2   : > { %v3090_v46 = vmax.f32 %v3088_v8, %v3089_v15  ;;  %v3097_v52 = vmax.f32 %v3095_v35, %v3096_v17  ;;  %v3110_v13 = vrot.slane %v3109_v11, 2  ;;  %v9461_v40 = vmax.f32 %v3114_v2, %v3115_v29  ;;  %4081 = vmatpush.msra.mxu3 %v6720_v28  ;;  %v3973_v2 = vld [vmem:[%s12439_s6 + $0xb8] sm:$0xff]  ;;  %v6716_v29 = vld [vmem:[%s12439_s6 + $0x180] sm:$0xff] }
 0x3d3   : > { %v3084_v6 = vrot.slane %v3083_v0, 1  ;;  %v9459_v48 = vmax.f32 %v3102_v60, %v3103_v44  ;;  %v3122_v25 = vrot.slane %v9453_v34, 4  ;;  %v3057_v16 = vmax.f32 %v9414_v31, %v3056_v5  ;;  %v6712_v28 = vld [vmem:[%s12439_s6 + $0x160] sm:$0xff] }
 0x3d4   : > { %v3062_v54 = vmax.f32 %v9402_v43, %v3061_v37  ;;  %v3067_v56 = vmax.f32 %v9392_v19, %v3066_v30  ;;  %v3091_v53 = vrot.slane %v3090_v46, 1  ;;  %v3098_v51 = vrot.slane %v3097_v52, 1  ;;  %v3977_v19 = vld [vmem:[%s12439_s6 + $0xd8] sm:$0xf] }
 0x3d5   : > { %v9469_v36 = vmax.f32 %v3083_v0, %v3084_v6  ;;  %v3072_v57 = vsel %vm2630_vm3, %v2485_v23, -inf  ;;  %v3105_v31 = vrot.slane %v9459_v48, 1  ;;  %v9478_v5 = vmax.f32 %v3109_v11, %v3110_v13  ;;  %v9483_v30 = vpop.f32.mrf.mxu1  ;;  %6775 = vmatpush.msk.msrb.mxu0 %vm4071_vm12, %v3977_v19  ;;  %v6814_v0 = vld [vmem:[%s12439_s6 + $0x270] sm:$0xff] }
 0x3d6   : > { %v3063_v43 = vrot.slane %v3062_v54, 1  ;;  %v3068_v37 = vrot.slane %v3067_v56, 2  ;;  %v3073_v55 = vrot.slane %v3072_v57, 4  ;;  %v3723_v32 = vsel %vm3667_vm4, %v9423_v58, %v9412_v3  ;;  %v3975_v3 = vld [vmem:[%s12439_s6 + $0xc8] sm:$0xff]  ;;  %v9502_v58 = vpop.f32.mrf.mxu0 }
 0x3d7   : > { %v2333_v23 = vadd.f32 %v9427_v50, %v9416_v21  ;;  %v3724_v9 = vsel %vm3669_vm5, %v9429_v38, %v3723_v32  ;;  %v2336_v8 = vadd.f32 %v2335_v10, %v2222_v27  ;;  %v6818_v21 = vld [vmem:[%s12439_s6 + $0x290] sm:$0xf]  ;;  %v9504_v50 = vmax.f32 %v3090_v46, %v3091_v53  ;;  %4330 = vmatpush.msrb.mxu0 %v3975_v3  ;;  %v6812_v53 = vld [vmem:[%s12439_s6 + $0x260] sm:$0xff] }
 0x3d8   : > { %v3064_v24 = vmax.f32 %v3062_v54, %v3063_v43  ;;  %v3069_v49 = vmax.f32 %v3067_v56, %v3068_v37  ;;  %v3074_v35 = vmax.f32 %v3072_v57, %v3073_v55  ;;  %v3725_v33 = vsel %vm3671_vm6, %v3050_v62, %v3724_v9  ;;  %v6718_v10 = vld [vmem:[%s12439_s6 + $0x190] sm:$0xff]  ;;  %6820 = vmatpush.msk.msra.mxu1 %vm4071_vm12, %v6818_v21  ;;  %v3971_v62 = vld [vmem:[%s12439_s6 + $0xa8] sm:$0xff]  ;;  %v3969_v37 = vld [vmem:[%s12439_s6 + $0x98] sm:$0xff] }
 0x3d9   : > { %v2392_v38 = vmax.f32 %v8998_v39, %v2333_v23  ;;  %v9512_v27 = vmax.f32 %v3097_v52, %v3098_v51  ;;  %v3726_v60 = vsel %vm3673_vm7, %v3057_v16, %v3725_v33  ;;  %v9516_v59 = vmax.f32 %v9003_v4, %v2336_v8  ;;  %v6816_v39 = vld [vmem:[%s12439_s6 + $0x280] sm:$0xff]  ;;  %4082 = vmatpush.msra.mxu3 %v6718_v10  ;;  %v6714_v56 = vld [vmem:[%s12439_s6 + $0x170] sm:$0xff] }
 0x3da   : > { %v3070_v45 = vrot.slane %v3069_v49, 1  ;;  %v3075_v26 = vrot.slane %v3074_v35, 2  ;;  %v3112_v4 = vrot.slane %v9478_v5, 1  ;;  %v3727_v11 = vsel %vm3675_vm8, %v3064_v24, %v3726_v60  ;;  %4494 = vmatpush.msra.mxu1 %v6816_v39  ;;  %4331 = vmatpush.msrb.mxu0 %v3973_v2  ;;  %v6710_v60 = vld [vmem:[%s12439_s6 + $0x150] sm:$0xff] }
 0x3db   : > { %v2492_v15 = vrot.slane %v2392_v38, 2  ;;  %v2493_v17 = vrot.slane %v2392_v38, 4  ;;  %v2494_v46 = vrot.slane %v2392_v38, 6  ;;  %v3135_v52 = vsel %vm2630_vm3, %v2392_v38, -inf  ;;  %4083 = vmatpush.msra.mxu3 %v6716_v29  ;;  %v6808_v29 = vld [vmem:[%s12439_s6 + $0x240] sm:$0xff] }
 0x3dc   : > { %v3071_v44 = vmax.f32 %v3069_v49, %v3070_v45  ;;  %v3076_v6 = vmax.f32 %v3074_v35, %v3075_v26  ;;  %v3136_v13 = vrot.slane %v3135_v52, 4  ;;  %v2495_v43 = vrot.slane %v9516_v59, 2  ;;  %4495 = vmatpush.msra.mxu1 %v6814_v0  ;;  %4332 = vmatpush.msrb.mxu0 %v3971_v62  ;;  %v6810_v49 = vld [vmem:[%s12439_s6 + $0x250] sm:$0xff]  ;;  %v3967_v35 = vld [vmem:[%s12439_s6 + $0x88] sm:$0xff]  ;;  %v6708_v62 = vld [vmem:[%s12439_s6 + $0x140] sm:$0xff] }
 0x3dd   : > { %v3142_v16 = vsel %vm2630_vm3, %v2492_v15, -inf  ;;  %v3149_v54 = vsel %vm2630_vm3, %v2493_v17, -inf  ;;  %v3156_v63 = vsel %vm2630_vm3, %v2494_v46, -inf  ;;  %v2496_v23 = vrot.slane %v9516_v59, 4  ;;  %v9554_v24 = vpop.f32.mrf.mxu1  ;;  %4084 = vmatpush.msra.mxu3 %v6714_v56  ;;  %v3965_v17 = vld [vmem:[%s12439_s6 + $0x78] sm:$0xff]  ;;  %v3963_v56 = vld [vmem:[%s12439_s6 + $0x68] sm:$0xff] }
 0x3de   : > { %v3143_v51 = vrot.slane %v3142_v16, 4  ;;  %v3150_v57 = vrot.slane %v3149_v54, 4  ;;  %v3077_v19 = vrot.slane %v3076_v6, 1  ;;  %v3137_v55 = vmax.f32 %v3135_v52, %v3136_v13  ;;  %4496 = vmatpush.msra.mxu1 %v6812_v53  ;;  %4333 = vmatpush.msrb.mxu0 %v3969_v37  ;;  %v9578_v0 = vpop.f32.mrf.mxu0  ;;  %v6806_v53 = vld [vmem:[%s12439_s6 + $0x230] sm:$0xff] }
 0x3df   : > { %v3157_v32 = vrot.slane %v3156_v63, 4  ;;  %v3728_v9 = vsel %vm3677_vm9, %v3071_v44, %v3727_v11  ;;  %v3163_v21 = vsel %vm2630_vm3, %v9516_v59, -inf  ;;  %v3170_v26 = vsel %vm2630_vm3, %v2495_v43, -inf  ;;  %4085 = vmatpush.msra.mxu3 %v6712_v28  ;;  %v6706_v37 = vld [vmem:[%s12439_s6 + $0x130] sm:$0xff] }
 0x3e0   : > { %v3144_v8 = vmax.f32 %v3142_v16, %v3143_v51  ;;  %v3151_v3 = vmax.f32 %v3149_v54, %v3150_v57  ;;  %v3078_v33 = vmax.f32 %v3076_v6, %v3077_v19  ;;  %v3138_v38 = vrot.slane %v3137_v55, 2  ;;  %4497 = vmatpush.msra.mxu1 %v6810_v49  ;;  %4334 = vmatpush.msrb.mxu0 %v3967_v35 }
 0x3e1   : > { %v3158_v10 = vmax.f32 %v3156_v63, %v3157_v32  ;;  %v3164_v45 = vrot.slane %v3163_v21, 4  ;;  %v9570_v15 = vsel %vm2630_vm3, %v2496_v23, -inf  ;;  %v3171_v16 = vrot.slane %v3170_v26, 4  ;;  %4086 = vmatpush.msra.mxu3 %v6710_v60  ;;  %v3961_v32 = vld [vmem:[%s12439_s6 + $0x58] sm:$0xff]  ;;  %v6804_v23 = vld [vmem:[%s12439_s6 + $0x220] sm:$0xff] }
 0x3e2   : > { %v3145_v2 = vrot.slane %v3144_v8, 2  ;;  %v3152_v39 = vrot.slane %v3151_v3, 2  ;;  %v3729_v44 = vsel %vm3679_vm10, %v3078_v33, %v3728_v9  ;;  %v3139_v11 = vmax.f32 %v3137_v55, %v3138_v38  ;;  %4335 = vmatpush.msrb.mxu0 %v3965_v17  ;;  %4498 = vmatpush.msra.mxu1 %v6808_v29  ;;  %v3836_v33 = vpop.f32.mrf.mxu2 }
 0x3e3   : > { %v3159_v46 = vrot.slane %v3158_v10, 2  ;;  %v3165_v52 = vmax.f32 %v3163_v21, %v3164_v45  ;;  %6687 = vmatmul.msk.f32.gmra.mxu2 %vm3786_vm11, %v3729_v44  ;;  %v3106_v54 = vmax.f32 %v9459_v48, %v3105_v31  ;;  %v2497_v63 = vrot.slane %v9516_v59, 6  ;;  %4087 = vmatpush.msra.mxu3 %v6708_v62  ;;  %v6702_v45 = vld [vmem:[%s12439_s6 + $0x110] sm:$0xff]  ;;  %3885 = vst.msk [vmem:[#allocation2 + $0x1] sm:$0xff] %vm3884_vm13, %v3836_v33 }
 0x3e4   : > { %v3146_v6 = vmax.f32 %v3144_v8, %v3145_v2  ;;  %v9585_v13 = vmax.f32 %v3151_v3, %v3152_v39  ;;  %v3140_v51 = vrot.slane %v3139_v11, 1  ;;  %v3178_v31 = vrot.slane %v9570_v15, 4  ;;  %4336 = vmatpush.msrb.mxu0 %v3963_v56  ;;  %4499 = vmatpush.msra.mxu1 %v6806_v53  ;;  %v6700_v39 = vld [vmem:[%s12439_s6 + $0x100] sm:$0xff]  ;;  %v6698_v44 = vld [vmem:[%s12439_s6 + $0xf0] sm:$0xff] }
 0x3e5   : > { %v9596_v57 = vmax.f32 %v3158_v10, %v3159_v46  ;;  %v3166_v43 = vrot.slane %v3165_v52, 2  ;;  %v3113_v19 = vmax.f32 %v9478_v5, %v3112_v4  ;;  %v3117_v55 = vrot.slane %v9461_v40, 2  ;;  %v6704_v4 = vld [vmem:[%s12439_s6 + $0x120] sm:$0xff]  ;;  %4088 = vmatpush.msra.mxu3 %v6706_v37 }
 0x3e6   : > { %v3147_v48 = vrot.slane %v3146_v6, 1  ;;  %v9613_v28 = vmax.f32 %v3139_v11, %v3140_v51  ;;  %v3154_v49 = vrot.slane %v9585_v13, 1  ;;  %v9616_v9 = vmax.f32 %v3170_v26, %v3171_v16  ;;  %4337 = vmatpush.msrb.mxu0 %v3961_v32  ;;  %4500 = vmatpush.msra.mxu1 %v6804_v23  ;;  %v3957_v26 = vld [vmem:[%s12439_s6 + $0x38] sm:$0xff]  ;;  %v9666_v11 = vpop.f32.mrf.mxu0  ;;  %v3955_v16 = vld [vmem:[%s12439_s6 + $0x28] sm:$0xff]  ;;  %v6798_v51 = vld [vmem:[%s12439_s6 + $0x1f0] sm:$0xff] }
 0x3e7   : > { %v3123_v5 = vmax.f32 %v9453_v34, %v3122_v25  ;;  %v3161_v8 = vrot.slane %v9596_v57, 1  ;;  %v9625_v3 = vmax.f32 %v3165_v52, %v3166_v43  ;;  %v3118_v21 = vmax.f32 %v9461_v40, %v3117_v55  ;;  %4089 = vmatpush.msra.mxu3 %v6704_v4  ;;  %v6696_v55 = vld [vmem:[%s12439_s6 + $0xe0] sm:$0xff]  ;;  %v3953_v32 = vld [vmem:[%s12439_s6 + $0x18] sm:$0xff] }
 0x3e8   : > { %v3128_v35 = vsel %vm2630_vm3, %v2491_v47, -inf  ;;  %v3730_v25 = vsel %vm3667_vm4, %v9504_v50, %v9469_v36  ;;  %v2339_v10 = vadd.f32 %v9483_v30, %v9502_v58  ;;  %v9642_v47 = vpop.f32.mrf.mxu1  ;;  %v9644_v40 = vmax.f32 %v3146_v6, %v3147_v48  ;;  %4338 = vmatpush.msrb.mxu0 %v3959_v22 }
 0x3e9   : > { %v3124_v38 = vrot.slane %v3123_v5, 2  ;;  %v3129_v34 = vrot.slane %v3128_v35, 4  ;;  %v3119_v60 = vrot.slane %v3118_v21, 1  ;;  %v3731_v36 = vsel %vm3669_vm5, %v9512_v27, %v3730_v25  ;;  %v6802_v27 = vld [vmem:[%s12439_s6 + $0x210] sm:$0xff]  ;;  %4090 = vmatpush.msra.mxu3 %v6702_v45  ;;  %v3951_v25 = vld [vmem:[%s12439_s6 + $0x8] sm:$0xff] }
 0x3ea   : > { %v3732_v50 = vsel %vm3671_vm6, %v3106_v54, %v3731_v36  ;;  %v2394_v2 = vmax.f32 %v9007_v61, %v2339_v10  ;;  %v2342_v61 = vadd.f32 %v9554_v24, %v9578_v0  ;;  %4501 = vmatpush.msra.mxu1 %v6802_v27  ;;  %v6800_v24 = vld [vmem:[%s12439_s6 + $0x200] sm:$0xff]  ;;  %4339 = vmatpush.msrb.mxu0 %v3957_v26 }
 0x3eb   : > { %v3125_v30 = vmax.f32 %v3123_v5, %v3124_v38  ;;  %v3130_v58 = vmax.f32 %v3128_v35, %v3129_v34  ;;  %v3120_v17 = vmax.f32 %v3118_v21, %v3119_v60  ;;  %v3733_v29 = vsel %vm3673_vm7, %v3113_v19, %v3732_v50  ;;  %4091 = vmatpush.msra.mxu3 %v6700_v39  ;;  %v6796_v21 = vld [vmem:[%s12439_s6 + $0x1e0] sm:$0xff]  ;;  %v3901_v60 = vld [vmem:[#allocation2 + $0x2] sm:$0x1]  ;;  %v6794_v50 = vld [vmem:[%s12439_s6 + $0x1d0] sm:$0xff] }
 0x3ec   : > { %v2498_v62 = vrot.slane %v2394_v2, 2  ;;  %v2499_v6 = vrot.slane %v2394_v2, 4  ;;  %v2500_v54 = vrot.slane %v2394_v2, 6  ;;  %v3191_v56 = vsel %vm2630_vm3, %v2394_v2, -inf  ;;  %4502 = vmatpush.msra.mxu1 %v6800_v24  ;;  %4340 = vmatpush.msrb.mxu0 %v3955_v16  ;;  %3910 = vst.msk [vmem:[#allocation2] sm:$0x1] %vm3909_vm14, %v3901_v60 }
 0x3ed   : > { %v3126_v46 = vrot.slane %v3125_v30, 1  ;;  %v3131_v52 = vrot.slane %v3130_v58, 2  ;;  %v3734_v0 = vsel %vm3675_vm8, %v3120_v17, %v3733_v29  ;;  %v9677_v53 = vmax.f32 %v9011_v42, %v2342_v61  ;;  %4092 = vmatpush.msra.mxu3 %v6698_v44 }
 0x3ee   : > { %v3192_v48 = vrot.slane %v3191_v56, 4  ;;  %v3198_v19 = vsel %vm2630_vm3, %v2498_v62, -inf  ;;  %v3205_v23 = vsel %vm2630_vm3, %v2499_v6, -inf  ;;  %v3212_v5 = vsel %vm2630_vm3, %v2500_v54, -inf  ;;  %4503 = vmatpush.msra.mxu1 %v6798_v51  ;;  %4341 = vmatpush.msrb.mxu0 %v3953_v32  ;;  %v2234_v51 = vpop.f32.mrf.mxu0 }
 0x3ef   : > { %v3127_v43 = vmax.f32 %v3125_v30, %v3126_v46  ;;  %v3132_v37 = vmax.f32 %v3130_v58, %v3131_v52  ;;  %v3199_v42 = vrot.slane %v3198_v19, 4  ;;  %v2501_v4 = vrot.slane %v9677_v53, 2  ;;  %4093 = vmatpush.msra.mxu3 %v6696_v55  ;;  %v3978_v30 = vld [vmem:[#allocation2 + $0x1] sm:$0xff]  ;;  %v6792_v46 = vld [vmem:[%s12439_s6 + $0x1c0] sm:$0xff] }
 0x3f0   : > { %v3193_v33 = vmax.f32 %v3191_v56, %v3192_v48  ;;  %v3206_v38 = vrot.slane %v3205_v23, 4  ;;  %v3168_v34 = vrot.slane %v9625_v3, 1  ;;  %v3213_v22 = vrot.slane %v3212_v5, 4  ;;  %v2347_v58 = vpop.f32.mrf.mxu1  ;;  %6725 = vmatmul.msk.f32.vlgmr.msra.gmra.mxu3 %vm3884_vm13, %v3978_v30  ;;  %4504 = vmatpush.msra.mxu1 %v6796_v21 }
 0x3f1   : > { %v3133_v35 = vrot.slane %v3132_v37, 1  ;;  %v3735_v10 = vsel %vm3677_vm9, %v3127_v43, %v3734_v0  ;;  %v3200_v45 = vmax.f32 %v3198_v19, %v3199_v42  ;;  %v2502_v36 = vrot.slane %v9677_v53, 4  ;;  %4342 = vmatpush.msrb.mxu0 %v3951_v25 }
 0x3f2   : > { %v3194_v39 = vrot.slane %v3193_v33, 2  ;;  %v3207_v26 = vmax.f32 %v3205_v23, %v3206_v38  ;;  %v3219_v27 = vsel %vm2630_vm3, %v9677_v53, -inf  ;;  %v3214_v29 = vmax.f32 %v3212_v5, %v3213_v22  ;;  %4505 = vmatpush.msra.mxu1 %v6794_v50 }
 0x3f3   : > { %v3134_v2 = vmax.f32 %v3132_v37, %v3133_v35  ;;  %v3201_v17 = vrot.slane %v3200_v45, 2  ;;  %v3220_v61 = vrot.slane %v3219_v27, 4  ;;  %v3226_v44 = vsel %vm2630_vm3, %v2501_v4, -inf }
 0x3f4   : > { %v3195_v62 = vmax.f32 %v3193_v33, %v3194_v39  ;;  %v3208_v6 = vrot.slane %v3207_v26, 2  ;;  %v3227_v16 = vrot.slane %v3226_v44, 4  ;;  %v3215_v0 = vrot.slane %v3214_v29, 2  ;;  %v3839_v55 = vpop.f32.mrf.mxu2  ;;  %4506 = vmatpush.msra.mxu1 %v6792_v46 }
 0x3f5   : > { %v3736_v52 = vsel %vm3679_vm10, %v3134_v2, %v3735_v10  ;;  %v3202_v24 = vmax.f32 %v3200_v45, %v3201_v17  ;;  %v3221_v54 = vmax.f32 %v3219_v27, %v3220_v61  ;;  %v9715_v56 = vsel %vm2630_vm3, %v2502_v36, -inf  ;;  %3886 = vst.msk [vmem:[#allocation2 + $0x9] sm:$0xff] %vm3884_vm13, %v3839_v55  ;;  %v3934_v10 = vld [vmem:[#allocation2] sm:$0xff] }
 0x3f6   : > { %6688 = vmatmul.msk.f32.gmra.mxu2 %vm3786_vm11, %v3736_v52  ;;  %v3155_v43 = vmax.f32 %v9585_v13, %v3154_v49  ;;  %v3196_v37 = vrot.slane %v3195_v62, 1  ;;  %v3209_v48 = vmax.f32 %v3207_v26, %v3208_v6  ;;  %v2503_v19 = vrot.slane %v9677_v53, 6  ;;  %6776 = vmatmul.msk.f32.vlgmr.msrb.gmra.mxu0 %vm3884_vm13, %v3934_v10 }
 0x3f7   : > { %v3203_v32 = vrot.slane %v3202_v24, 1  ;;  %v3222_v42 = vrot.slane %v3221_v54, 2  ;;  %v9721_v23 = vmax.f32 %v3226_v44, %v3227_v16  ;;  %v3234_v5 = vrot.slane %v9715_v56, 4 }
 0x3f8   : > { %v9725_v4 = vmax.f32 %v3195_v62, %v3196_v37  ;;  %v9727_v21 = vmax.f32 %v3214_v29, %v3215_v0  ;;  %v3162_v13 = vmax.f32 %v9596_v57, %v3161_v8  ;;  %v3173_v49 = vrot.slane %v9616_v9, 2 }
 0x3f9   : > { %v9733_v35 = vmax.f32 %v3202_v24, %v3203_v32  ;;  %v3210_v33 = vrot.slane %v3209_v48, 1  ;;  %v3169_v38 = vmax.f32 %v9625_v3, %v3168_v34  ;;  %v3179_v25 = vmax.f32 %v9570_v15, %v3178_v31  ;;  %v9752_v31 = vpop.f32.mrf.mxu1 }
 0x3fa   : > { %v9739_v45 = vmax.f32 %v3221_v54, %v3222_v42  ;;  %v3174_v22 = vmax.f32 %v9616_v9, %v3173_v49  ;;  %v3184_v57 = vsel %vm2630_vm3, %v2497_v63, -inf  ;;  %v3737_v8 = vsel %vm3667_vm4, %v9644_v40, %v9613_v28 }
 0x3fb   : > { %v3180_v3 = vrot.slane %v3179_v25, 2  ;;  %v3185_v34 = vrot.slane %v3184_v57, 4  ;;  %v3738_v60 = vsel %vm3669_vm5, %v3155_v43, %v3737_v8  ;;  %v2345_v15 = vadd.f32 %v9642_v47, %v9666_v11 }
 0x3fc   : > { %v3217_v9 = vrot.slane %v9727_v21, 1  ;;  %v3175_v59 = vrot.slane %v3174_v22, 1  ;;  %v3739_v63 = vsel %vm3671_vm6, %v3162_v13, %v3738_v60  ;;  %v2348_v36 = vadd.f32 %v2347_v58, %v2234_v51  ;;  %v3918_v26 = vld [vmem:[#allocation2 + $0xf] sm:$0x1]  ;;  %v4392_v6 = vld [vmem:[#allocation2 + $0x2] sm:$0xff] }
 0x3fd   : > { %v3181_v30 = vmax.f32 %v3179_v25, %v3180_v3  ;;  %v3186_v50 = vmax.f32 %v3184_v57, %v3185_v34  ;;  %v3740_v28 = vsel %vm3673_vm7, %v3169_v38, %v3739_v63  ;;  %v2396_v40 = vmax.f32 %v9015_v14, %v2345_v15  ;;  %v3979_v11 = vld [vmem:[#allocation2 + $0x9] sm:$0xff]  ;;  %3926 = vst.msk [vmem:[#allocation2 + $0x11] sm:$0x1] %vm3909_vm14, %v3918_v26  ;;  %v9766_v14 = vpop.f32.mrf.mxu0 }
 0x3fe   : > { %v9758_v2 = vmax.f32 %v3209_v48, %v3210_v33  ;;  %v3176_v39 = vmax.f32 %v3174_v22, %v3175_v59  ;;  %v9761_v47 = vmax.f32 %v9022_v1, %v2348_v36  ;;  %v3935_v27 = vld [vmem:[#allocation2 + $0x8] sm:$0xff]  ;;  %v3224_v17 = vrot.slane %v9739_v45, 1  ;;  %6726 = vmatmul.msk.f32.gmra.mxu3 %vm3884_vm13, %v3979_v11  ;;  %6821 = vmatmul.msk.f32.vlgmr.msra.gmra.mxu1 %vm3884_vm13, %v4392_v6 }
 0x3ff   : > { %v3182_v29 = vrot.slane %v3181_v30, 1  ;;  %v3187_v61 = vrot.slane %v3186_v50, 2  ;;  %v2504_v58 = vrot.slane %v2396_v40, 2  ;;  %v2505_v44 = vrot.slane %v2396_v40, 4  ;;  %6777 = vmatmul.msk.f32.gmra.mxu0 %vm3884_vm13, %v3935_v27 }
 0x400   : > { %v3741_v46 = vsel %vm3675_vm8, %v3176_v39, %v3740_v28  ;;  %v2506_v52 = vrot.slane %v2396_v40, 6  ;;  %v3247_v1 = vsel %vm2630_vm3, %v2396_v40, -inf  ;;  %v2507_v62 = vrot.slane %v9761_v47, 2 }
 0x401   : > { %v3183_v16 = vmax.f32 %v3181_v30, %v3182_v29  ;;  %v3188_v24 = vmax.f32 %v3186_v50, %v3187_v61  ;;  %v3248_v0 = vrot.slane %v3247_v1, 4  ;;  %v3254_v54 = vsel %vm2630_vm3, %v2504_v58, -inf  ;;  %v2353_v3 = vpop.f32.mrf.mxu1 }
 0x402   : > { %v3255_v51 = vrot.slane %v3254_v54, 4  ;;  %v3261_v43 = vsel %vm2630_vm3, %v2505_v44, -inf  ;;  %v3268_v37 = vsel %vm2630_vm3, %v2506_v52, -inf  ;;  %v2508_v48 = vrot.slane %v9761_v47, 4 }
 0x403   : > { %v3189_v55 = vrot.slane %v3188_v24, 1  ;;  %v3249_v32 = vmax.f32 %v3247_v1, %v3248_v0  ;;  %v3262_v42 = vrot.slane %v3261_v43, 4  ;;  %v3229_v13 = vrot.slane %v9721_v23, 2 }
 0x404   : > { %v3742_v49 = vsel %vm3677_vm9, %v3183_v16, %v3741_v46  ;;  %v3256_v33 = vmax.f32 %v3254_v54, %v3255_v51  ;;  %v3269_v38 = vrot.slane %v3268_v37, 4  ;;  %v3275_v25 = vsel %vm2630_vm3, %v9761_v47, -inf  ;;  %v4393_v63 = vld [vmem:[#allocation2 + $0xa] sm:$0xff] }
 0x405   : > { %v3190_v10 = vmax.f32 %v3188_v24, %v3189_v55  ;;  %v3250_v22 = vrot.slane %v3249_v32, 2  ;;  %v3263_v57 = vmax.f32 %v3261_v43, %v3262_v42  ;;  %v3276_v8 = vrot.slane %v3275_v25, 4  ;;  %v2240_v44 = vpop.f32.mrf.mxu0 }
 0x406   : > { %v3257_v34 = vrot.slane %v3256_v33, 2  ;;  %v3270_v60 = vmax.f32 %v3268_v37, %v3269_v38  ;;  %v3282_v15 = vsel %vm2630_vm3, %v2507_v62, -inf  ;;  %v9783_v59 = vsel %vm2630_vm3, %v2508_v48, -inf  ;;  %6822 = vmatmul.msk.f32.gmra.mxu1 %vm3884_vm13, %v4393_v63 }
 0x407   : > { %v3743_v36 = vsel %vm3679_vm10, %v3190_v10, %v3742_v49  ;;  %v3251_v30 = vmax.f32 %v3249_v32, %v3250_v22  ;;  %v3264_v50 = vrot.slane %v3263_v57, 2  ;;  %v3277_v28 = vmax.f32 %v3275_v25, %v3276_v8 }
 0x408   : > { %6689 = vmatmul.msk.f32.gmra.mxu2 %vm3786_vm11, %v3743_v36  ;;  %v3258_v40 = vmax.f32 %v3256_v33, %v3257_v34  ;;  %v3271_v39 = vrot.slane %v3270_v60, 2  ;;  %v3283_v26 = vrot.slane %v3282_v15, 4  ;;  %v3218_v11 = vmax.f32 %v9727_v21, %v3217_v9 }
 0x409   : > { %v3252_v27 = vrot.slane %v3251_v30, 1  ;;  %v3265_v29 = vmax.f32 %v3263_v57, %v3264_v50  ;;  %v2509_v61 = vrot.slane %v9761_v47, 6  ;;  %v3278_v58 = vrot.slane %v3277_v28, 2  ;;  %v3842_v6 = vpop.f32.mrf.mxu2 }
 0x40a   : > { %v3259_v46 = vrot.slane %v3258_v40, 1  ;;  %v3290_v52 = vrot.slane %v9783_v59, 4  ;;  %v3225_v1 = vmax.f32 %v9739_v45, %v3224_v17  ;;  %v3230_v62 = vmax.f32 %v9721_v23, %v3229_v13  ;;  %3887 = vst.msk [vmem:[#allocation2 + $0x19] sm:$0xff] %vm3884_vm13, %v3842_v6  ;;  %v9821_v13 = vpop.f32.mrf.mxu1 }
 0x40b   : > { %v9795_v16 = vmax.f32 %v3251_v30, %v3252_v27  ;;  %v9797_v24 = vmax.f32 %v3270_v60, %v3271_v39  ;;  %v9799_v21 = vmax.f32 %v3282_v15, %v3283_v26  ;;  %v3235_v9 = vmax.f32 %v9715_v56, %v3234_v5 }
 0x40c   : > { %v3266_v0 = vrot.slane %v3265_v29, 1  ;;  %v9805_v54 = vmax.f32 %v3277_v28, %v3278_v58  ;;  %v3231_v51 = vrot.slane %v3230_v62, 1  ;;  %v3240_v23 = vsel %vm2630_vm3, %v2503_v19, -inf }
 0x40d   : > { %v9810_v45 = vmax.f32 %v3258_v40, %v3259_v46  ;;  %v3236_v17 = vrot.slane %v3235_v9, 2  ;;  %v3241_v43 = vrot.slane %v3240_v23, 4  ;;  %v3744_v37 = vsel %vm3667_vm4, %v9733_v35, %v9725_v4  ;;  %v2243_v15 = vpop.f32.mrf.mxu0 }
 0x40e   : > { %v3232_v48 = vmax.f32 %v3230_v62, %v3231_v51  ;;  %v3745_v56 = vsel %vm3669_vm5, %v9758_v2, %v3744_v37  ;;  %v2351_v5 = vadd.f32 %v9752_v31, %v9766_v14  ;;  %v2354_v55 = vadd.f32 %v2353_v3, %v2240_v44 }
 0x40f   : > { %v3273_v53 = vrot.slane %v9797_v24, 1  ;;  %v3237_v32 = vmax.f32 %v3235_v9, %v3236_v17  ;;  %v3242_v19 = vmax.f32 %v3240_v23, %v3241_v43  ;;  %v3746_v42 = vsel %vm3671_vm6, %v3218_v11, %v3745_v56 }
 0x410   : > { %v9823_v49 = vmax.f32 %v3265_v29, %v3266_v0  ;;  %v3747_v4 = vsel %vm3673_vm7, %v3225_v1, %v3746_v42  ;;  %v2398_v35 = vmax.f32 %v9026_v18, %v2351_v5  ;;  %v9828_v2 = vmax.f32 %v9030_v7, %v2354_v55 }
 0x411   : > { %v3238_v33 = vrot.slane %v3237_v32, 1  ;;  %v3243_v31 = vrot.slane %v3242_v19, 2  ;;  %v3748_v14 = vsel %vm3675_vm8, %v3232_v48, %v3747_v4  ;;  %v3280_v38 = vrot.slane %v9805_v54, 1  ;;  %v3902_v8 = vld [vmem:[#allocation2 + $0x1a] sm:$0x1] }
 0x412   : > { %v2510_v25 = vrot.slane %v2398_v35, 2  ;;  %v2511_v10 = vrot.slane %v2398_v35, 4  ;;  %v2512_v22 = vrot.slane %v2398_v35, 6  ;;  %v3303_v57 = vsel %vm2630_vm3, %v2398_v35, -inf  ;;  %3911 = vst.msk [vmem:[#allocation2 + $0x18] sm:$0x1] %vm3909_vm14, %v3902_v8  ;;  %v2359_v48 = vpop.f32.mrf.mxu1 }
 0x413   : > { %v3239_v3 = vmax.f32 %v3237_v32, %v3238_v33  ;;  %v3244_v34 = vmax.f32 %v3242_v19, %v3243_v31  ;;  %v3304_v60 = vrot.slane %v3303_v57, 4  ;;  %v2513_v18 = vrot.slane %v9828_v2, 2  ;;  %v9835_v7 = vld [vmem:[#allocation2 + $0x19] sm:$0xff] }
 0x414   : > { %v3310_v63 = vsel %vm2630_vm3, %v2510_v25, -inf  ;;  %v3317_v36 = vsel %vm2630_vm3, %v2511_v10, -inf  ;;  %v3324_v30 = vsel %vm2630_vm3, %v2512_v22, -inf  ;;  %v2514_v50 = vrot.slane %v9828_v2, 4  ;;  %6727 = vmatmul.msk.f32.gmra.mxu3 %vm3884_vm13, %v9835_v7 }
 0x415   : > { %v3245_v28 = vrot.slane %v3244_v34, 1  ;;  %v3305_v40 = vmax.f32 %v3303_v57, %v3304_v60  ;;  %v3311_v39 = vrot.slane %v3310_v63, 4  ;;  %v3285_v26 = vrot.slane %v9799_v21, 2 }
 0x416   : > { %v3749_v11 = vsel %vm3677_vm9, %v3239_v3, %v3748_v14  ;;  %v3318_v27 = vrot.slane %v3317_v36, 4  ;;  %v3325_v29 = vrot.slane %v3324_v30, 4  ;;  %v3331_v58 = vsel %vm2630_vm3, %v9828_v2, -inf  ;;  %v2246_v3 = vpop.f32.mrf.mxu0 }
 0x417   : > { %v3246_v44 = vmax.f32 %v3244_v34, %v3245_v28  ;;  %v3306_v46 = vrot.slane %v3305_v40, 2  ;;  %v3312_v1 = vmax.f32 %v3310_v63, %v3311_v39  ;;  %v3332_v62 = vrot.slane %v3331_v58, 4 }
 0x418   : > { %v3319_v6 = vmax.f32 %v3317_v36, %v3318_v27  ;;  %v3326_v9 = vmax.f32 %v3324_v30, %v3325_v29  ;;  %v3338_v0 = vsel %vm2630_vm3, %v2513_v18, -inf  ;;  %v9849_v51 = vsel %vm2630_vm3, %v2514_v50, -inf }
 0x419   : > { %v3750_v23 = vsel %vm3679_vm10, %v3246_v44, %v3749_v11  ;;  %v3307_v17 = vmax.f32 %v3305_v40, %v3306_v46  ;;  %v3313_v43 = vrot.slane %v3312_v1, 2  ;;  %v3333_v37 = vmax.f32 %v3331_v58, %v3332_v62  ;;  %v3936_v19 = vld [vmem:[#allocation2 + $0x18] sm:$0xff] }
 0x41a   : > { %6690 = vmatmul.msk.f32.gmra.mxu2 %vm3786_vm11, %v3750_v23  ;;  %v3320_v56 = vrot.slane %v3319_v6, 2  ;;  %v3327_v5 = vrot.slane %v3326_v9, 2  ;;  %v3339_v55 = vrot.slane %v3338_v0, 4  ;;  %v3274_v32 = vmax.f32 %v9797_v24, %v3273_v53  ;;  %6778 = vmatmul.msk.f32.gmra.mxu0 %vm3884_vm13, %v3936_v19 }
 0x41b   : > { %v3308_v42 = vrot.slane %v3307_v17, 1  ;;  %v3314_v4 = vmax.f32 %v3312_v1, %v3313_v43  ;;  %v2515_v35 = vrot.slane %v9828_v2, 6  ;;  %v3346_v33 = vrot.slane %v9849_v51, 4 }
 0x41c   : > { %v3321_v31 = vmax.f32 %v3319_v6, %v3320_v56  ;;  %v3328_v14 = vmax.f32 %v3326_v9, %v3327_v5  ;;  %v3334_v25 = vrot.slane %v3333_v37, 2  ;;  %v3286_v10 = vmax.f32 %v9799_v21, %v3285_v26  ;;  %v3845_v22 = vpop.f32.mrf.mxu2 }
 0x41d   : > { %v9858_v57 = vmax.f32 %v3307_v17, %v3308_v42  ;;  %v9860_v8 = vmax.f32 %v3338_v0, %v3339_v55  ;;  %v3281_v24 = vmax.f32 %v9805_v54, %v3280_v38  ;;  %v3291_v53 = vmax.f32 %v9783_v59, %v3290_v52  ;;  %3888 = vst.msk [vmem:[#allocation2 + $0x21] sm:$0xff] %vm3884_vm13, %v3845_v22 }
 0x41e   : > { %v3315_v34 = vrot.slane %v3314_v4, 1  ;;  %v3322_v60 = vrot.slane %v3321_v31, 1  ;;  %v3287_v18 = vrot.slane %v3286_v10, 1  ;;  %v3296_v21 = vsel %vm2630_vm3, %v2509_v61, -inf  ;;  %v2249_v19 = vpop.f32.mrf.mxu0 }
 0x41f   : > { %v3329_v63 = vrot.slane %v3328_v14, 1  ;;  %v3292_v36 = vrot.slane %v3291_v53, 2  ;;  %v3297_v30 = vrot.slane %v3296_v21, 4  ;;  %v3751_v54 = vsel %vm3667_vm4, %v9810_v45, %v9795_v16 }
 0x420   : > { %v9873_v38 = vmax.f32 %v3333_v37, %v3334_v25  ;;  %v3288_v59 = vmax.f32 %v3286_v10, %v3287_v18  ;;  %v3752_v52 = vsel %vm3669_vm5, %v9823_v49, %v3751_v54  ;;  %v2357_v50 = vadd.f32 %v9821_v13, %v2243_v15  ;;  %v9890_v13 = vpop.f32.mrf.mxu1 }
 0x421   : > { %v3293_v28 = vmax.f32 %v3291_v53, %v3292_v36  ;;  %v3298_v40 = vmax.f32 %v3296_v21, %v3297_v30  ;;  %v3753_v47 = vsel %vm3671_vm6, %v3274_v32, %v3752_v52  ;;  %v2360_v61 = vadd.f32 %v2359_v48, %v2246_v3 }
 0x422   : > { %v9879_v39 = vmax.f32 %v3314_v4, %v3315_v34  ;;  %v9881_v26 = vmax.f32 %v3321_v31, %v3322_v60  ;;  %v3754_v11 = vsel %vm3673_vm7, %v3281_v24, %v3753_v47  ;;  %v2400_v16 = vmax.f32 %v9035_v12, %v2357_v50 }
 0x423   : > { %v3294_v45 = vrot.slane %v3293_v28, 1  ;;  %v3299_v27 = vrot.slane %v3298_v40, 2  ;;  %v9886_v29 = vmax.f32 %v9039_v20, %v2360_v61  ;;  %v9888_v49 = vmax.f32 %v3328_v14, %v3329_v63 }
 0x424   : > { %v2516_v15 = vrot.slane %v2400_v16, 2  ;;  %v2517_v58 = vrot.slane %v2400_v16, 4  ;;  %v2518_v44 = vrot.slane %v2400_v16, 6  ;;  %v3359_v46 = vsel %vm2630_vm3, %v2400_v16, -inf  ;;  %v3919_v1 = vld [vmem:[#allocation2 + $0x27] sm:$0x1] }
 0x425   : > { %v3295_v62 = vmax.f32 %v3293_v28, %v3294_v45  ;;  %v3300_v6 = vmax.f32 %v3298_v40, %v3299_v27  ;;  %v3755_v9 = vsel %vm3675_vm8, %v3288_v59, %v3754_v11  ;;  %v3360_v12 = vrot.slane %v3359_v46, 4  ;;  %3927 = vst.msk [vmem:[#allocation2 + $0x29] sm:$0x1] %vm3909_vm14, %v3919_v1  ;;  %v9895_v0 = vld [vmem:[#allocation2 + $0x21] sm:$0xff] }
 0x426   : > { %v9897_v20 = vld [vmem:[#allocation2 + $0x20] sm:$0xff]  ;;  %v3366_v23 = vsel %vm2630_vm3, %v2516_v15, -inf  ;;  %v3373_v17 = vsel %vm2630_vm3, %v2517_v58, -inf  ;;  %v3380_v43 = vsel %vm2630_vm3, %v2518_v44, -inf  ;;  %v2519_v37 = vrot.slane %v9886_v29, 2  ;;  %6728 = vmatmul.msk.f32.gmra.mxu3 %vm3884_vm13, %v9895_v0 }
 0x427   : > { %6779 = vmatmul.msk.f32.gmra.mxu0 %vm3884_vm13, %v9897_v20  ;;  %v9907_v48 = vld [vmem:[#allocation2 + $0x1a] sm:$0xff]  ;;  %v3301_v56 = vrot.slane %v3300_v6, 1  ;;  %v3361_v5 = vmax.f32 %v3359_v46, %v3360_v12  ;;  %v3367_v55 = vrot.slane %v3366_v23, 4  ;;  %v2520_v32 = vrot.slane %v9886_v29, 4 }
 0x428   : > { %6823 = vmatmul.msk.f32.gmra.mxu1 %vm3884_vm13, %v9907_v48  ;;  %v3756_v42 = vsel %vm3677_vm9, %v3295_v62, %v3755_v9  ;;  %v3374_v4 = vrot.slane %v3373_v17, 4  ;;  %v3381_v31 = vrot.slane %v3380_v43, 4  ;;  %v3387_v14 = vsel %vm2630_vm3, %v9886_v29, -inf  ;;  %v2365_v11 = vpop.f32.mrf.mxu1 }
 0x429   : > { %v3302_v25 = vmax.f32 %v3300_v6, %v3301_v56  ;;  %v3362_v10 = vrot.slane %v3361_v5, 2  ;;  %v3368_v22 = vmax.f32 %v3366_v23, %v3367_v55  ;;  %v3388_v24 = vrot.slane %v3387_v14, 4 }
 0x42a   : > { %v3375_v53 = vmax.f32 %v3373_v17, %v3374_v4  ;;  %v3382_v3 = vmax.f32 %v3380_v43, %v3381_v31  ;;  %v3394_v34 = vsel %vm2630_vm3, %v2519_v37, -inf  ;;  %v3336_v60 = vrot.slane %v9873_v38, 1 }
 0x42b   : > { %v3757_v18 = vsel %vm3679_vm10, %v3302_v25, %v3756_v42  ;;  %v3363_v21 = vmax.f32 %v3361_v5, %v3362_v10  ;;  %v3369_v63 = vrot.slane %v3368_v22, 2  ;;  %v3389_v36 = vmax.f32 %v3387_v14, %v3388_v24 }
 0x42c   : > { %6691 = vmatmul.msk.f32.gmra.mxu2 %vm3786_vm11, %v3757_v18  ;;  %v3376_v30 = vrot.slane %v3375_v53, 2  ;;  %v3383_v54 = vrot.slane %v3382_v3, 2  ;;  %v3395_v59 = vrot.slane %v3394_v34, 4  ;;  %v9920_v52 = vsel %vm2630_vm3, %v2520_v32, -inf  ;;  %v9922_v50 = vld [vmem:[#allocation2 + $0x22] sm:$0xff] }
 0x42d   : > { %v3364_v28 = vrot.slane %v3363_v21, 1  ;;  %v3370_v40 = vmax.f32 %v3368_v22, %v3369_v63  ;;  %v2521_v47 = vrot.slane %v9886_v29, 6  ;;  %v3390_v61 = vrot.slane %v3389_v36, 2 }
 0x42e   : > { %v3377_v16 = vmax.f32 %v3375_v53, %v3376_v30  ;;  %v9925_v45 = vmax.f32 %v3382_v3, %v3383_v54  ;;  %v3337_v27 = vmax.f32 %v9873_v38, %v3336_v60  ;;  %v3341_v15 = vrot.slane %v9860_v8, 2  ;;  %v3848_v58 = vpop.f32.mrf.mxu2 }
 0x42f   : > { %v9929_v44 = vmax.f32 %v3363_v21, %v3364_v28  ;;  %v9931_v46 = vmax.f32 %v3394_v34, %v3395_v59  ;;  %v3402_v1 = vrot.slane %v9920_v52, 4  ;;  %v3347_v62 = vmax.f32 %v9849_v51, %v3346_v33  ;;  %3889 = vst.msk [vmem:[#allocation2 + $0x31] sm:$0xff] %vm3884_vm13, %v3848_v58  ;;  %v2252_v33 = vpop.f32.mrf.mxu0  ;;  %v6723_v21 = vld [vmem:[%s12439_s6 + $0x1b8] sm:$0xf]  ;;  %v6721_v59 = vld [vmem:[%s12439_s6 + $0x1a8] sm:$0xff] }
 0x430   : > { %6824 = vmatmul.msk.f32.gmra.mxu1 %vm3884_vm13, %v9922_v50  ;;  %v3371_v6 = vrot.slane %v3370_v40, 1  ;;  %v9940_v38 = vmax.f32 %v3389_v36, %v3390_v61  ;;  %v3342_v9 = vmax.f32 %v9860_v8, %v3341_v15  ;;  %v3352_v12 = vsel %vm2630_vm3, %v2515_v35, -inf  ;;  %v2368_v18 = vpop.f32.mrf.mxu1  ;;  %6741 = vmatpush.msk.msrb.mxu2 %vm4071_vm12, %v6723_v21 }
 0x431   : > { %v3378_v23 = vrot.slane %v3377_v16, 1  ;;  %v3348_v17 = vrot.slane %v3347_v62, 2  ;;  %v3353_v43 = vrot.slane %v3352_v12, 4  ;;  %v3758_v51 = vsel %vm3667_vm4, %v9879_v39, %v9858_v57 }
 0x432   : > { %v3385_v37 = vrot.slane %v9925_v45, 1  ;;  %v3343_v56 = vrot.slane %v3342_v9, 1  ;;  %v3759_v5 = vsel %vm3669_vm5, %v9881_v26, %v3758_v51  ;;  %v2363_v8 = vadd.f32 %v9890_v13, %v2249_v19  ;;  %v12754_v26 = vld [vmem:[#allocation22_spill] sm:$0xff]  ;;  %4146 = vmatpush.msrb.mxu2 %v6721_v59 }
 0x433   : > { %v3349_v55 = vmax.f32 %v3347_v62, %v3348_v17  ;;  %v3354_v2 = vmax.f32 %v3352_v12, %v3353_v43  ;;  %v3760_v35 = vsel %vm3671_vm6, %v9888_v49, %v3759_v5  ;;  %v2366_v32 = vadd.f32 %v2365_v11, %v2252_v33 }
 0x434   : > { %v9955_v42 = vmax.f32 %v3370_v40, %v3371_v6  ;;  %v3344_v4 = vmax.f32 %v3342_v9, %v3343_v56  ;;  %v3761_v57 = vsel %vm3673_vm7, %v3337_v27, %v3760_v35  ;;  %v2402_v39 = vmax.f32 %v9043_v41, %v2363_v8 }
 0x435   : > { %v9959_v31 = vmax.f32 %v3377_v16, %v3378_v23  ;;  %v3350_v14 = vrot.slane %v3349_v55, 1  ;;  %v3355_v25 = vrot.slane %v3354_v2, 2  ;;  %v9962_v10 = vmax.f32 %v12754_v26, %v2366_v32 }
 0x436   : > { %v3762_v13 = vsel %vm3675_vm8, %v3344_v4, %v3761_v57  ;;  %v2522_v19 = vrot.slane %v2402_v39, 2  ;;  %v2523_v22 = vrot.slane %v2402_v39, 4  ;;  %v2524_v49 = vrot.slane %v2402_v39, 6  ;;  %v3903_v24 = vld [vmem:[#allocation2 + $0x32] sm:$0x1] }
 0x437   : > { %v9965_v53 = vld [vmem:[#allocation2 + $0x31] sm:$0xff]  ;;  %v3351_v3 = vmax.f32 %v3349_v55, %v3350_v14  ;;  %v3356_v34 = vmax.f32 %v3354_v2, %v3355_v25  ;;  %v3415_v60 = vsel %vm2630_vm3, %v2402_v39, -inf  ;;  %3912 = vst.msk [vmem:[#allocation2 + $0x30] sm:$0x1] %vm3909_vm14, %v3903_v24  ;;  %v2525_v41 = vrot.slane %v9962_v10, 2 }
 0x438   : > { %6729 = vmatmul.msk.f32.gmra.mxu3 %vm3884_vm13, %v9965_v53  ;;  %v3416_v63 = vrot.slane %v3415_v60, 4  ;;  %v3422_v36 = vsel %vm2630_vm3, %v2522_v19, -inf  ;;  %v3429_v30 = vsel %vm2630_vm3, %v2523_v22, -inf  ;;  %v3436_v54 = vsel %vm2630_vm3, %v2524_v49, -inf }
 0x439   : > { %v3357_v28 = vrot.slane %v3356_v34, 1  ;;  %v3423_v40 = vrot.slane %v3422_v36, 4  ;;  %v3430_v61 = vrot.slane %v3429_v30, 4  ;;  %v3392_v11 = vrot.slane %v9940_v38, 1 }
 0x43a   : > { %v3763_v16 = vsel %vm3677_vm9, %v3351_v3, %v3762_v13  ;;  %v3417_v27 = vmax.f32 %v3415_v60, %v3416_v63  ;;  %v3437_v15 = vrot.slane %v3436_v54, 4  ;;  %v2526_v58 = vrot.slane %v9962_v10, 4 }
 0x43b   : > { %v3358_v62 = vmax.f32 %v3356_v34, %v3357_v28  ;;  %v3424_v6 = vmax.f32 %v3422_v36, %v3423_v40  ;;  %v3431_v9 = vmax.f32 %v3429_v30, %v3430_v61  ;;  %v3443_v12 = vsel %vm2630_vm3, %v9962_v10, -inf  ;;  %v12755_v28 = vld [vmem:[#allocation20_spill] sm:$0xff]  ;;  %v12756_v40 = vld [vmem:[#allocation21_spill] sm:$0xff]  ;;  %v6717_v61 = vld [vmem:[%s12439_s6 + $0x188] sm:$0xff] }
 0x43c   : > { %v3418_v23 = vrot.slane %v3417_v27, 2  ;;  %v3438_v17 = vmax.f32 %v3436_v54, %v3437_v15  ;;  %v3444_v43 = vrot.slane %v3443_v12, 4  ;;  %v3450_v51 = vsel %vm2630_vm3, %v2525_v41, -inf }
 0x43d   : > { %v3764_v33 = vsel %vm3679_vm10, %v3358_v62, %v3763_v16  ;;  %v3425_v56 = vrot.slane %v3424_v6, 2  ;;  %v3432_v5 = vrot.slane %v3431_v9, 2  ;;  %v3451_v8 = vrot.slane %v3450_v51, 4 }
 0x43e   : > { %6692 = vmatmul.msk.f32.gmra.mxu2 %vm3786_vm11, %v3764_v33  ;;  %v3419_v55 = vmax.f32 %v3417_v27, %v3418_v23  ;;  %v3439_v2 = vrot.slane %v3438_v17, 2  ;;  %v3445_v35 = vmax.f32 %v3443_v12, %v3444_v43  ;;  %v9991_v32 = vsel %vm2630_vm3, %v2526_v58, -inf  ;;  %v9993_v4 = vld [vmem:[#allocation2 + $0x30] sm:$0xff]  ;;  %v12758_v58 = vld [vmem:[#allocation24_spill] sm:$0xff] }
 0x43f   : > { %v3426_v57 = vmax.f32 %v3424_v6, %v3425_v56  ;;  %v3433_v39 = vmax.f32 %v3431_v9, %v3432_v5  ;;  %v2527_v14 = vrot.slane %v9962_v10, 6  ;;  %v3386_v25 = vmax.f32 %v9925_v45, %v3385_v37  ;;  %6780 = vmatmul.msk.f32.gmra.mxu0 %vm3884_vm13, %v9993_v4  ;;  %v2371_v45 = vpop.f32.mrf.mxu1  ;;  %v6715_v6 = vld [vmem:[%s12439_s6 + $0x178] sm:$0xff]  ;;  %v6713_v56 = vld [vmem:[%s12439_s6 + $0x168] sm:$0xff] }
 0x440   : > { %v3420_v26 = vrot.slane %v3419_v55, 1  ;;  %v10001_v13 = vmax.f32 %v3438_v17, %v3439_v2  ;;  %v3446_v19 = vrot.slane %v3445_v35, 2  ;;  %v10003_v22 = vmax.f32 %v3450_v51, %v3451_v8  ;;  %v6711_v5 = vld [vmem:[%s12439_s6 + $0x158] sm:$0xff] }
 0x441   : > { %v3427_v49 = vrot.slane %v3426_v57, 1  ;;  %v3458_v24 = vrot.slane %v9991_v32, 4  ;;  %v3397_v3 = vrot.slane %v9931_v46, 2  ;;  %v3403_v34 = vmax.f32 %v9920_v52, %v3402_v1 }
 0x442   : > { %v3851_v60 = vpop.f32.mrf.mxu2  ;;  %v10010_v37 = vmax.f32 %v3419_v55, %v3420_v26  ;;  %v3434_v41 = vrot.slane %v3433_v39, 1  ;;  %v3393_v21 = vmax.f32 %v9940_v38, %v3392_v11  ;;  %v3408_v63 = vsel %vm2630_vm3, %v2521_v47, -inf  ;;  %v6719_v47 = vld [vmem:[%s12439_s6 + $0x198] sm:$0xff] }
 0x443   : > { %3890 = vst.msk [vmem:[#allocation2 + $0x39] sm:$0xff] %vm3884_vm13, %v3851_v60  ;;  %v3441_v36 = vrot.slane %v10001_v13, 1  ;;  %v10018_v30 = vmax.f32 %v3445_v35, %v3446_v19  ;;  %v3398_v54 = vmax.f32 %v9931_v46, %v3397_v3  ;;  %v3404_v52 = vrot.slane %v3403_v34, 2  ;;  %4147 = vmatpush.msrb.mxu2 %v6719_v47 }
 0x444   : > { %v3409_v1 = vrot.slane %v3408_v63, 4  ;;  %v3765_v59 = vsel %vm3667_vm4, %v9955_v42, %v9929_v44  ;;  %v2369_v38 = vadd.f32 %v2368_v18, %v12755_v28  ;;  %v2372_v29 = vadd.f32 %v2371_v45, %v12756_v40  ;;  %v12757_v18 = vld [vmem:[#allocation23_spill] sm:$0xff] }
 0x445   : > { %v10032_v11 = vmax.f32 %v3426_v57, %v3427_v49  ;;  %v3399_v46 = vrot.slane %v3398_v54, 1  ;;  %v3405_v16 = vmax.f32 %v3403_v34, %v3404_v52  ;;  %v3766_v27 = vsel %vm3669_vm5, %v9959_v31, %v3765_v59  ;;  %4148 = vmatpush.msrb.mxu2 %v6717_v61  ;;  %v6709_v59 = vld [vmem:[%s12439_s6 + $0x148] sm:$0xff] }
 0x446   : > { %v3410_v44 = vmax.f32 %v3408_v63, %v3409_v1  ;;  %v3767_v42 = vsel %vm3671_vm6, %v3386_v25, %v3766_v27  ;;  %v2404_v15 = vmax.f32 %v12757_v18, %v2369_v38  ;;  %v10039_v62 = vmax.f32 %v12758_v58, %v2372_v29 }
 0x447   : > { %v10044_v9 = vmax.f32 %v3433_v39, %v3434_v41  ;;  %v3400_v12 = vmax.f32 %v3398_v54, %v3399_v46  ;;  %v3406_v23 = vrot.slane %v3405_v16, 1  ;;  %v3768_v17 = vsel %vm3673_vm7, %v3393_v21, %v3767_v42  ;;  %4149 = vmatpush.msrb.mxu2 %v6715_v6 }
 0x448   : > { %v3411_v31 = vrot.slane %v3410_v44, 2  ;;  %v2528_v43 = vrot.slane %v2404_v15, 2  ;;  %v2529_v51 = vrot.slane %v2404_v15, 4  ;;  %v2530_v33 = vrot.slane %v2404_v15, 6 }
 0x449   : > { %v3407_v8 = vmax.f32 %v3405_v16, %v3406_v23  ;;  %v3769_v55 = vsel %vm3675_vm8, %v3400_v12, %v3768_v17  ;;  %v3471_v2 = vsel %vm2630_vm3, %v2404_v15, -inf  ;;  %v2531_v57 = vrot.slane %v10039_v62, 2  ;;  %4150 = vmatpush.msrb.mxu2 %v6713_v56  ;;  %v6707_v15 = vld [vmem:[%s12439_s6 + $0x138] sm:$0xff] }
 0x44a   : > { %v3920_v35 = vld [vmem:[#allocation2 + $0x3f] sm:$0x1]  ;;  %v3412_v26 = vmax.f32 %v3410_v44, %v3411_v31  ;;  %v3472_v19 = vrot.slane %v3471_v2, 4  ;;  %v3478_v49 = vsel %vm2630_vm3, %v2528_v43, -inf  ;;  %v3485_v3 = vsel %vm2630_vm3, %v2529_v51, -inf  ;;  %v10067_v34 = vld [vmem:[#allocation2 + $0x32] sm:$0xff] }
 0x44b   : > { %v10056_v39 = vld [vmem:[#allocation2 + $0x39] sm:$0xff]  ;;  %3928 = vst.msk [vmem:[#allocation2 + $0x41] sm:$0x1] %vm3909_vm14, %v3920_v35  ;;  %v3770_v60 = vsel %vm3677_vm9, %v3407_v8, %v3769_v55  ;;  %v3479_v45 = vrot.slane %v3478_v49, 4  ;;  %v3486_v41 = vrot.slane %v3485_v3, 4  ;;  %v3492_v21 = vsel %vm2630_vm3, %v2530_v33, -inf  ;;  %6825 = vmatmul.msk.f32.gmra.mxu1 %vm3884_vm13, %v10067_v34  ;;  %4151 = vmatpush.msrb.mxu2 %v6711_v5 }
 0x44c   : > { %v10058_v25 = vld [vmem:[#allocation2 + $0x38] sm:$0xff]  ;;  %6730 = vmatmul.msk.f32.gmra.mxu3 %vm3884_vm13, %v10056_v39  ;;  %v3413_v63 = vrot.slane %v3412_v26, 1  ;;  %v3473_v54 = vmax.f32 %v3471_v2, %v3472_v19  ;;  %v3493_v52 = vrot.slane %v3492_v21, 4  ;;  %v2532_v1 = vrot.slane %v10039_v62, 4  ;;  %v6705_v33 = vld [vmem:[%s12439_s6 + $0x128] sm:$0xff] }
 0x44d   : > { %6781 = vmatmul.msk.f32.gmra.mxu0 %vm3884_vm13, %v10058_v25  ;;  %v3480_v28 = vmax.f32 %v3478_v49, %v3479_v45  ;;  %v3487_v38 = vmax.f32 %v3485_v3, %v3486_v41  ;;  %v2533_v40 = vrot.slane %v10039_v62, 6  ;;  %v3499_v29 = vsel %vm2630_vm3, %v10039_v62, -inf  ;;  %4152 = vmatpush.msrb.mxu2 %v6709_v59  ;;  %v6703_v49 = vld [vmem:[%s12439_s6 + $0x118] sm:$0xff] }
 0x44e   : > { %v3414_v47 = vmax.f32 %v3412_v26, %v3413_v63  ;;  %v3474_v61 = vrot.slane %v3473_v54, 2  ;;  %v3494_v46 = vmax.f32 %v3492_v21, %v3493_v52  ;;  %v3500_v16 = vrot.slane %v3499_v29, 4 }
 0x44f   : > { %v3481_v27 = vrot.slane %v3480_v28, 2  ;;  %v3488_v44 = vrot.slane %v3487_v38, 2  ;;  %v3506_v42 = vsel %vm2630_vm3, %v2531_v57, -inf  ;;  %v3513_v18 = vsel %vm2630_vm3, %v2532_v1, -inf  ;;  %4153 = vmatpush.msrb.mxu2 %v6707_v15 }
 0x450   : > { %v3771_v58 = vsel %vm3679_vm10, %v3414_v47, %v3770_v60  ;;  %v3475_v6 = vmax.f32 %v3473_v54, %v3474_v61  ;;  %v3495_v62 = vrot.slane %v3494_v46, 2  ;;  %v3501_v12 = vmax.f32 %v3499_v29, %v3500_v16  ;;  %v6701_v54 = vld [vmem:[%s12439_s6 + $0x108] sm:$0xff]  ;;  %v6699_v61 = vld [vmem:[%s12439_s6 + $0xf8] sm:$0xff] }
 0x451   : > { %6693 = vmatmul.msk.f32.gmra.mxu2 %vm3786_vm11, %v3771_v58  ;;  %v3482_v23 = vmax.f32 %v3480_v28, %v3481_v27  ;;  %v3489_v17 = vmax.f32 %v3487_v38, %v3488_v44  ;;  %v3507_v31 = vrot.slane %v3506_v42, 4  ;;  %v3514_v43 = vrot.slane %v3513_v18, 4 }
 0x452   : > { %v10087_v51 = vld [vmem:[#allocation2 + $0x3a] sm:$0xff]  ;;  %v3476_v56 = vrot.slane %v3475_v6, 1  ;;  %v3496_v5 = vmax.f32 %v3494_v46, %v3495_v62  ;;  %v3502_v8 = vrot.slane %v3501_v12, 2  ;;  %v3520_v55 = vsel %vm2630_vm3, %v2533_v40, -inf  ;;  %4154 = vmatpush.msrb.mxu2 %v6705_v33 }
 0x453   : > { %v3483_v2 = vrot.slane %v3482_v23, 1  ;;  %v3508_v35 = vmax.f32 %v3506_v42, %v3507_v31  ;;  %v3442_v57 = vmax.f32 %v10001_v13, %v3441_v36  ;;  %v3448_v26 = vrot.slane %v10018_v30, 1  ;;  %6826 = vmatmul.msk.f32.gmra.mxu1 %vm3884_vm13, %v10087_v51 }
 0x454   : > { %v3854_v19 = vpop.f32.mrf.mxu2  ;;  %v3477_v3 = vmax.f32 %v3475_v6, %v3476_v56  ;;  %v3490_v60 = vrot.slane %v3489_v17, 1  ;;  %v3503_v45 = vmax.f32 %v3501_v12, %v3502_v8  ;;  %v3515_v41 = vmax.f32 %v3513_v18, %v3514_v43  ;;  %4155 = vmatpush.msrb.mxu2 %v6703_v49 }
 0x455   : > { %3891 = vst.msk [vmem:[#allocation2 + $0x49] sm:$0xff] %vm3884_vm13, %v3854_v19  ;;  %v3484_v21 = vmax.f32 %v3482_v23, %v3483_v2  ;;  %v3497_v63 = vrot.slane %v3496_v5, 1  ;;  %v3509_v13 = vrot.slane %v3508_v35, 2  ;;  %v3521_v36 = vrot.slane %v3520_v55, 4 }
 0x456   : > { %v3504_v52 = vrot.slane %v3503_v45, 1  ;;  %v3453_v1 = vrot.slane %v10003_v22, 2  ;;  %v3459_v59 = vmax.f32 %v9991_v32, %v3458_v24  ;;  %v3464_v28 = vsel %vm2630_vm3, %v2527_v14, -inf  ;;  %4156 = vmatpush.msrb.mxu2 %v6701_v54 }
 0x457   : > { %v3449_v38 = vmax.f32 %v10018_v30, %v3448_v26  ;;  %v3465_v40 = vrot.slane %v3464_v28, 4  ;;  %v3772_v29 = vsel %vm3667_vm4, %v10032_v11, %v10010_v37  ;;  %v3510_v47 = vmax.f32 %v3508_v35, %v3509_v13  ;;  %v6697_v37 = vld [vmem:[%s12439_s6 + $0xe8] sm:$0xff] }
 0x458   : > { %v3491_v46 = vmax.f32 %v3489_v17, %v3490_v60  ;;  %v3454_v32 = vmax.f32 %v10003_v22, %v3453_v1  ;;  %v3460_v24 = vrot.slane %v3459_v59, 2  ;;  %v3773_v10 = vsel %vm3669_vm5, %v10044_v9, %v3772_v29  ;;  %4157 = vmatpush.msrb.mxu2 %v6699_v61 }
 0x459   : > { %v3466_v14 = vmax.f32 %v3464_v28, %v3465_v40  ;;  %v3774_v30 = vsel %vm3671_vm6, %v3442_v57, %v3773_v10  ;;  %v3505_v16 = vmax.f32 %v3503_v45, %v3504_v52  ;;  %v3516_v27 = vrot.slane %v3515_v41, 2 }
 0x45a   : > { %v3455_v11 = vrot.slane %v3454_v32, 1  ;;  %v3461_v44 = vmax.f32 %v3459_v59, %v3460_v24  ;;  %v3511_v42 = vrot.slane %v3510_v47, 1  ;;  %v3522_v18 = vmax.f32 %v3520_v55, %v3521_v36  ;;  %4158 = vmatpush.msrb.mxu2 %v6697_v37 }
 0x45b   : > { %v3467_v22 = vrot.slane %v3466_v14, 2  ;;  %v3775_v15 = vsel %vm3673_vm7, %v3449_v38, %v3774_v30  ;;  %v3517_v6 = vmax.f32 %v3515_v41, %v3516_v27  ;;  %v3779_v62 = vsel %vm3667_vm4, %v3484_v21, %v3477_v3  ;;  %v6919_v38 = vld [vmem:[#allocation2 + $0x1] sm:$0xff] }
 0x45c   : > { %v3904_v58 = vld [vmem:[#allocation2 + $0x4a] sm:$0x1]  ;;  %v3456_v12 = vmax.f32 %v3454_v32, %v3455_v11  ;;  %v3462_v23 = vrot.slane %v3461_v44, 1  ;;  %v3523_v17 = vrot.slane %v3522_v18, 2  ;;  %v3780_v31 = vsel %vm3669_vm5, %v3491_v46, %v3779_v62  ;;  %v6819_v62 = vld [vmem:[%s12439_s6 + $0x298] sm:$0xf] }
 0x45d   : > { %v10128_v9 = vld [vmem:[#allocation2 + $0x49] sm:$0xff]  ;;  %3913 = vst.msk [vmem:[#allocation2 + $0x48] sm:$0x1] %vm3909_vm14, %v3904_v58  ;;  %v3468_v43 = vmax.f32 %v3466_v14, %v3467_v22  ;;  %v3498_v33 = vmax.f32 %v3496_v5, %v3497_v63  ;;  %v3518_v55 = vrot.slane %v3517_v6, 1  ;;  %v3512_v35 = vmax.f32 %v3510_v47, %v3511_v42  ;;  %6837 = vmatpush.msk.msra.mxu2 %vm4071_vm12, %v6819_v62 }
 0x45e   : > { %6731 = vmatmul.msk.f32.gmra.mxu3 %vm3884_vm13, %v10128_v9  ;;  %v3463_v56 = vmax.f32 %v3461_v44, %v3462_v23  ;;  %v3776_v8 = vsel %vm3675_vm8, %v3456_v12, %v3775_v15  ;;  %v3524_v57 = vmax.f32 %v3522_v18, %v3523_v17  ;;  %v6920_v47 = vld [vmem:[#allocation2 + $0x9] sm:$0xff]  ;;  %v3974_v12 = vld [vmem:[%s12439_s6 + $0xc0] sm:$0xff]  ;;  %v6817_v23 = vld [vmem:[%s12439_s6 + $0x288] sm:$0xff] }
 0x45f   : > { %v3469_v2 = vrot.slane %v3468_v43, 1  ;;  %v3781_v26 = vsel %vm3671_vm6, %v3498_v33, %v3780_v31  ;;  %v3519_v60 = vmax.f32 %v3517_v6, %v3518_v55  ;;  %v3976_v6 = vld [vmem:[%s12439_s6 + $0xd0] sm:$0xf]  ;;  %4559 = vmatpush.msra.mxu2 %v6817_v23  ;;  %v3970_v33 = vld [vmem:[%s12439_s6 + $0xa0] sm:$0xff] }
 0x460   : > { %v3777_v19 = vsel %vm3677_vm9, %v3463_v56, %v3776_v8  ;;  %v3782_v49 = vsel %vm3673_vm7, %v3505_v16, %v3781_v26  ;;  %v3525_v41 = vrot.slane %v3524_v57, 1  ;;  %6758 = vmatpush.msk.msrb.mxu3 %vm4071_vm12, %v3976_v6  ;;  %v3972_v17 = vld [vmem:[%s12439_s6 + $0xb0] sm:$0xff]  ;;  %v6813_v56 = vld [vmem:[%s12439_s6 + $0x268] sm:$0xff] }
 0x461   : > { %v3470_v3 = vmax.f32 %v3468_v43, %v3469_v2  ;;  %v3783_v5 = vsel %vm3675_vm8, %v3512_v35, %v3782_v49  ;;  %v6815_v43 = vld [vmem:[%s12439_s6 + $0x278] sm:$0xff]  ;;  %v3968_v55 = vld [vmem:[%s12439_s6 + $0x90] sm:$0xff]  ;;  %v3966_v35 = vld [vmem:[%s12439_s6 + $0x80] sm:$0xff] }
 0x462   : > { %v3784_v63 = vsel %vm3677_vm9, %v3519_v60, %v3783_v5  ;;  %v3526_v36 = vmax.f32 %v3524_v57, %v3525_v41  ;;  %4265 = vmatpush.msrb.mxu3 %v3974_v12  ;;  %4560 = vmatpush.msra.mxu2 %v6815_v43  ;;  %v6811_v2 = vld [vmem:[%s12439_s6 + $0x258] sm:$0xff]  ;;  %v6809_v57 = vld [vmem:[%s12439_s6 + $0x248] sm:$0xff]  ;;  %v3964_v26 = vld [vmem:[%s12439_s6 + $0x70] sm:$0xff] }
 0x463   : > { %v3778_v45 = vsel %vm3679_vm10, %v3470_v3, %v3777_v19  ;;  %v6807_v19 = vld [vmem:[%s12439_s6 + $0x238] sm:$0xff]  ;;  %v3962_v49 = vld [vmem:[%s12439_s6 + $0x60] sm:$0xff]  ;;  %v6805_v3 = vld [vmem:[%s12439_s6 + $0x228] sm:$0xff] }
 0x464   : > { %v10141_v21 = vld [vmem:[#allocation2 + $0x48] sm:$0xff]  ;;  %6694 = vmatmul.msk.f32.gmra.mxu2 %vm3786_vm11, %v3778_v45  ;;  %v3785_v54 = vsel %vm3679_vm10, %v3526_v36, %v3784_v63  ;;  %4266 = vmatpush.msrb.mxu3 %v3972_v17  ;;  %v3958_v36 = vld [vmem:[%s12439_s6 + $0x40] sm:$0xff]  ;;  %v6921_v12 = vld [vmem:[#allocation2] sm:$0xff] }
 0x465   : > { %6782 = vmatmul.msk.f32.gmra.mxu0 %vm3884_vm13, %v10141_v21  ;;  %4561 = vmatpush.msra.mxu2 %v6813_v56  ;;  %v3960_v63 = vld [vmem:[%s12439_s6 + $0x50] sm:$0xff] }
 0x466   : > { %v3857_v13 = vpop.f32.mrf.mxu2  ;;  %4267 = vmatpush.msrb.mxu3 %v3970_v33  ;;  %v6922_v23 = vld [vmem:[#allocation2 + $0x2] sm:$0xff]  ;;  %v6924_v56 = vld [vmem:[#allocation2 + $0xa] sm:$0xff] }
 0x467   : > { %3892 = vst.msk [vmem:[#allocation2 + $0x51] sm:$0xff] %vm3884_vm13, %v3857_v13  ;;  %4562 = vmatpush.msra.mxu2 %v6811_v2  ;;  %v6803_v13 = vld [vmem:[%s12439_s6 + $0x218] sm:$0xff]  ;;  %v6923_v33 = vld [vmem:[#allocation2 + $0x8] sm:$0xff]  ;;  %v6925_v2 = vld [vmem:[#allocation2 + $0x18] sm:$0xff] }
 0x468   : > { %4268 = vmatpush.msrb.mxu3 %v3968_v55 }
 0x469   : > { %4563 = vmatpush.msra.mxu2 %v6809_v57 }
 0x46a   : > { %4269 = vmatpush.msrb.mxu3 %v3966_v35 }
 0x46b   : > { %4564 = vmatpush.msra.mxu2 %v6807_v19 }
 0x46c   : > { %6695 = vmatmul.msk.f32.gmra.mxu2 %vm3786_vm11, %v3785_v54  ;;  %4270 = vmatpush.msrb.mxu3 %v3964_v26  ;;  %v6801_v54 = vld [vmem:[%s12439_s6 + $0x208] sm:$0xff] }
 0x46d   : > { %4565 = vmatpush.msra.mxu2 %v6805_v3 }
 0x46e   : > { %v3921_v52 = vld [vmem:[#allocation2 + $0x57] sm:$0x1]  ;;  %v10156_v28 = vld [vmem:[#allocation2 + $0x4a] sm:$0xff]  ;;  %4271 = vmatpush.msrb.mxu3 %v3962_v49 }
 0x46f   : > { %v3985_v1 = vld [vmem:[#allocation2 + $0x51] sm:$0xff]  ;;  %3929 = vst.msk [vmem:[#allocation2 + $0x59] sm:$0x1] %vm3909_vm14, %v3921_v52  ;;  %6827 = vmatmul.msk.f32.gmra.mxu1 %vm3884_vm13, %v10156_v28  ;;  %4566 = vmatpush.msra.mxu2 %v6803_v13  ;;  %v3956_v52 = vld [vmem:[%s12439_s6 + $0x30] sm:$0xff] }
 0x470   : > { %v10150_v59 = vld [vmem:[#allocation2 + $0x50] sm:$0xff]  ;;  %6732 = vmatmul.msk.f32.gmra.mxu3 %vm3884_vm13, %v3985_v1 }
 0x471   : > { %6783 = vmatmul.msk.f32.gmra.mxu0 %vm3884_vm13, %v10150_v59  ;;  %4272 = vmatpush.msrb.mxu3 %v3960_v63 }
 0x472   : > { %4567 = vmatpush.msra.mxu2 %v6801_v54 }
 0x473   : > { %4273 = vmatpush.msrb.mxu3 %v3958_v36  ;;  %v10365_v17 = vpop.f32.mrf.mxu3 }
 0x474   : > { %6742 = vmatmul.msk.f32.vlgmr.msrb.gmra.mxu2 %vm3884_vm13, %v6919_v38 }
 0x475   : > { %4274 = vmatpush.msrb.mxu3 %v3956_v52 }
 0x476   : > { %v10161_v40 = vld [vmem:[#allocation2 + $0x52] sm:$0xff] }
 0x477   : > { %6828 = vmatmul.msk.f32.gmra.mxu1 %vm3884_vm13, %v10161_v40 }
 0x479   : > { %v3860_v29 = vpop.f32.mrf.mxu2 }
 0x47a   : > { %3893 = vst.msk [vmem:[#allocation2 + $0x61] sm:$0xff] %vm3884_vm13, %v3860_v29  ;;  %v3954_v29 = vld [vmem:[%s12439_s6 + $0x20] sm:$0xff] }
 0x47b   : > { %4275 = vmatpush.msrb.mxu3 %v3954_v29  ;;  %v4508_v3 = vpop.f32.mrf.mxu1 }
 0x47c   : > { %6743 = vmatmul.msk.f32.gmra.mxu2 %vm3884_vm13, %v6920_v47  ;;  %v6797_v47 = vld [vmem:[%s12439_s6 + $0x1e8] sm:$0xff] }
 0x481   : > { %v3905_v61 = vld [vmem:[#allocation2 + $0x62] sm:$0x1] }
 0x482   : > { %v3986_v46 = vld [vmem:[#allocation2 + $0x61] sm:$0xff]  ;;  %3914 = vst.msk [vmem:[#allocation2 + $0x60] sm:$0x1] %vm3909_vm14, %v3905_v61 }
 0x483   : > { %6733 = vmatmul.msk.f32.gmra.mxu3 %vm3884_vm13, %v3986_v46  ;;  %v3952_v61 = vld [vmem:[%s12439_s6 + $0x10] sm:$0xff]  ;;  %v10487_v63 = vpop.f32.mrf.mxu1 }
 0x484   : > { %6744 = vmatmul.msk.f32.gmra.mxu2 %vm3884_vm13, %v9835_v7  ;;  %4276 = vmatpush.msrb.mxu3 %v3952_v61 }
 0x489   : > { %v10171_v32 = vld [vmem:[#allocation2 + $0x60] sm:$0xff] }
 0x48a   : > { %6784 = vmatmul.msk.f32.gmra.mxu0 %vm3884_vm13, %v10171_v32 }
 0x48b   : > { %v3863_v24 = vpop.f32.mrf.mxu2 }
 0x48c   : > { %6745 = vmatmul.msk.f32.gmra.mxu2 %vm3884_vm13, %v9895_v0  ;;  %3894 = vst.msk [vmem:[#allocation2 + $0x69] sm:$0xff] %vm3884_vm13, %v3863_v24 }
 0x493   : > { %v3922_v10 = vld [vmem:[#allocation2 + $0x6f] sm:$0x1]  ;;  %v10184_v7 = vld [vmem:[#allocation2 + $0x62] sm:$0xff] }
 0x494   : > { %v3987_v14 = vld [vmem:[#allocation2 + $0x69] sm:$0xff]  ;;  %3930 = vst.msk [vmem:[#allocation2 + $0x71] sm:$0x1] %vm3909_vm14, %v3922_v10  ;;  %6746 = vmatmul.msk.f32.gmra.mxu2 %vm3884_vm13, %v9965_v53  ;;  %6829 = vmatmul.msk.f32.gmra.mxu1 %vm3884_vm13, %v10184_v7  ;;  %v3950_v10 = vld [vmem:[%s12439_s6] sm:$0xff] }
 0x495   : > { %v10178_v30 = vld [vmem:[#allocation2 + $0x68] sm:$0xff]  ;;  %6734 = vmatmul.msk.f32.gmra.mxu3 %vm3884_vm13, %v3987_v14 }
 0x496   : > { %6785 = vmatmul.msk.f32.gmra.mxu0 %vm3884_vm13, %v10178_v30  ;;  %4277 = vmatpush.msrb.mxu3 %v3950_v10 }
 0x49b   : > { %v10190_v0 = vld [vmem:[#allocation2 + $0x6a] sm:$0xff] }
 0x49c   : > { %6747 = vmatmul.msk.f32.gmra.mxu2 %vm3884_vm13, %v10056_v39  ;;  %6830 = vmatmul.msk.f32.gmra.mxu1 %vm3884_vm13, %v10190_v0 }
 0x49d   : > { %v3866_v16 = vpop.f32.mrf.mxu2 }
 0x49e   : > { %3895 = vst.msk [vmem:[#allocation2 + $0x79] sm:$0xff] %vm3884_vm13, %v3866_v16 }
 0x4a4   : > { %6748 = vmatmul.msk.f32.gmra.mxu2 %vm3884_vm13, %v10128_v9 }
 0x4a5   : > { %v3906_v53 = vld [vmem:[#allocation2 + $0x7a] sm:$0x1] }
 0x4a6   : > { %v3988_v27 = vld [vmem:[#allocation2 + $0x79] sm:$0xff]  ;;  %3915 = vst.msk [vmem:[#allocation2 + $0x78] sm:$0x1] %vm3909_vm14, %v3906_v53 }
 0x4a7   : > { %6735 = vmatmul.msk.f32.gmra.mxu3 %vm3884_vm13, %v3988_v27 }
 0x4ac   : > { %6749 = vmatmul.msk.f32.gmra.mxu2 %vm3884_vm13, %v3985_v1  ;;  %v6799_v1 = vld [vmem:[%s12439_s6 + $0x1f8] sm:$0xff] }
 0x4ad   : > { %v10202_v37 = vld [vmem:[#allocation2 + $0x78] sm:$0xff]  ;;  %4568 = vmatpush.msra.mxu2 %v6799_v1 }
 0x4ae   : > { %6786 = vmatmul.msk.f32.gmra.mxu0 %vm3884_vm13, %v10202_v37 }
 0x4af   : > { %v3869_v39 = vpop.f32.mrf.mxu2  ;;  %4569 = vmatpush.msra.mxu2 %v6797_v47 }
 0x4b0   : > { %3896 = vst.msk [vmem:[#allocation2 + $0x81] sm:$0xff] %vm3884_vm13, %v3869_v39 }
 0x4b4   : > { %6750 = vmatmul.msk.f32.gmra.mxu2 %vm3884_vm13, %v3986_v46  ;;  %v6795_v46 = vld [vmem:[%s12439_s6 + $0x1d8] sm:$0xff] }
 0x4b5   : > { %4570 = vmatpush.msra.mxu2 %v6795_v46 }
 0x4b7   : > { %v3923_v11 = vld [vmem:[#allocation2 + $0x87] sm:$0x1]  ;;  %v10214_v18 = vld [vmem:[#allocation2 + $0x7a] sm:$0xff] }
 0x4b8   : > { %v3989_v44 = vld [vmem:[#allocation2 + $0x81] sm:$0xff]  ;;  %3931 = vst.msk [vmem:[#allocation2 + $0x89] sm:$0x1] %vm3909_vm14, %v3923_v11  ;;  %6831 = vmatmul.msk.f32.gmra.mxu1 %vm3884_vm13, %v10214_v18 }
 0x4b9   : > { %v10208_v42 = vld [vmem:[#allocation2 + $0x80] sm:$0xff]  ;;  %6736 = vmatmul.msk.f32.gmra.mxu3 %vm3884_vm13, %v3989_v44 }
 0x4ba   : > { %6787 = vmatmul.msk.f32.gmra.mxu0 %vm3884_vm13, %v10208_v42 }
 0x4bc   : > { %6751 = vmatmul.msk.f32.gmra.mxu2 %vm3884_vm13, %v3987_v14  ;;  %v6793_v14 = vld [vmem:[%s12439_s6 + $0x1c8] sm:$0xff] }
 0x4bd   : > { %4571 = vmatpush.msra.mxu2 %v6793_v14 }
 0x4bf   : > { %v10219_v22 = vld [vmem:[#allocation2 + $0x82] sm:$0xff] }
 0x4c0   : > { %6832 = vmatmul.msk.f32.gmra.mxu1 %vm3884_vm13, %v10219_v22 }
 0x4c1   : > { %v3872_v15 = vpop.f32.mrf.mxu2 }
 0x4c2   : > { %3897 = vst.msk [vmem:[#allocation2 + $0x91] sm:$0xff] %vm3884_vm13, %v3872_v15 }
 0x4c4   : > { %6752 = vmatmul.msk.f32.gmra.mxu2 %vm3884_vm13, %v3988_v27 }
 0x4c9   : > { %v3907_v58 = vld [vmem:[#allocation2 + $0x92] sm:$0x1] }
 0x4ca   : > { %v3990_v9 = vld [vmem:[#allocation2 + $0x91] sm:$0xff]  ;;  %3916 = vst.msk [vmem:[#allocation2 + $0x90] sm:$0x1] %vm3909_vm14, %v3907_v58 }
 0x4cb   : > { %6737 = vmatmul.msk.f32.gmra.mxu3 %vm3884_vm13, %v3990_v9 }
 0x4cc   : > { %6753 = vmatmul.msk.f32.gmra.mxu2 %vm3884_vm13, %v3989_v44 }
 0x4d1   : > { %v10245_v31 = vld [vmem:[#allocation2 + $0x90] sm:$0xff] }
 0x4d2   : > { %6788 = vmatmul.msk.f32.gmra.mxu0 %vm3884_vm13, %v10245_v31 }
 0x4d4   : > { %v3875_v8 = vpop.f32.mrf.mxu2  ;;  %6754 = vmatmul.msk.f32.gmra.mxu2 %vm3884_vm13, %v3990_v9 }
 0x4d5   : > { %3898 = vst.msk [vmem:[#allocation2 + $0x99] sm:$0xff] %vm3884_vm13, %v3875_v8  ;;  %v10371_v8 = vpop.f32.mrf.mxu3 }
 0x4dc   : > { %v3924_v60 = vld [vmem:[#allocation2 + $0x9f] sm:$0x1]  ;;  %v10290_v5 = vld [vmem:[#allocation2 + $0x92] sm:$0xff] }
 0x4dd   : > { %v3991_v45 = vld [vmem:[#allocation2 + $0x99] sm:$0xff]  ;;  %3932 = vst.msk [vmem:[#allocation2 + $0xa1] sm:$0x1] %vm3909_vm14, %v3924_v60  ;;  %6833 = vmatmul.msk.f32.gmra.mxu1 %vm3884_vm13, %v10290_v5  ;;  %v10378_v35 = vpop.f32.mrf.mxu3 }
 0x4de   : > { %v10284_v41 = vld [vmem:[#allocation2 + $0x98] sm:$0xff]  ;;  %6738 = vmatmul.msk.f32.gmra.mxu3 %vm3884_vm13, %v3991_v45  ;;  %6755 = vmatmul.msk.f32.gmra.mxu2 %vm3884_vm13, %v3991_v45 }
 0x4df   : > { %6789 = vmatmul.msk.f32.gmra.mxu0 %vm3884_vm13, %v10284_v41 }
 0x4e4   : > { %v10313_v38 = vld [vmem:[#allocation2 + $0x9a] sm:$0xff] }
 0x4e5   : > { %6834 = vmatmul.msk.f32.gmra.mxu1 %vm3884_vm13, %v10313_v38  ;;  %v10386_v26 = vpop.f32.mrf.mxu3 }
 0x4e7   : > { %v3878_v24 = vpop.f32.mrf.mxu2 }
 0x4e8   : > { %3899 = vst.msk [vmem:[#allocation2 + $0xa9] sm:$0xff] %vm3884_vm13, %v3878_v24 }
 0x4ef   : > { %v3908_v16 = vld [vmem:[#allocation2 + $0xaa] sm:$0x1]  ;;  %v3881_v27 = vpop.f32.mrf.mxu2 }
 0x4f0   : > { %v3992_v53 = vld [vmem:[#allocation2 + $0xa9] sm:$0xff]  ;;  %3917 = vst.msk [vmem:[#allocation2 + $0xa8] sm:$0x1] %vm3909_vm14, %v3908_v16  ;;  %v4514_v16 = vpop.f32.mrf.mxu1 }
 0x4f1   : > { %6739 = vmatmul.msk.f32.gmra.mxu3 %vm3884_vm13, %v3992_v53  ;;  %6756 = vmatmul.msk.f32.gmra.mxu2 %vm3884_vm13, %v3992_v53  ;;  %3900 = vst.msk [vmem:[#allocation2 + $0xb1] sm:$0xff] %vm3884_vm13, %v3881_v27 }
 0x4f7   : > { %v10340_v39 = vld [vmem:[#allocation2 + $0xa8] sm:$0xff]  ;;  %v10342_v11 = vpop.f32.mrf.mxu2 }
 0x4f8   : > { %v3925_v44 = vld [vmem:[#allocation2 + $0xb7] sm:$0x1]  ;;  %6790 = vmatmul.msk.f32.gmra.mxu0 %vm3884_vm13, %v10340_v39  ;;  %v10349_v58 = vld [vmem:[#allocation2 + $0xaa] sm:$0xff] }
 0x4f9   : > { %v3993_v15 = vld [vmem:[#allocation2 + $0xb1] sm:$0xff]  ;;  %3933 = vst.msk [vmem:[#allocation2 + $0xb9] sm:$0x1] %vm3909_vm14, %v3925_v44  ;;  %6835 = vmatmul.msk.f32.gmra.mxu1 %vm3884_vm13, %v10349_v58 }
 0x4fa   : > { %6740 = vmatmul.msk.f32.gmra.mxu3 %vm3884_vm13, %v3993_v15  ;;  %6757 = vmatmul.msk.f32.gmra.mxu2 %vm3884_vm13, %v3993_v15  ;;  %v10353_v9 = vld [vmem:[#allocation2 + $0xb0] sm:$0xff] }
 0x4ff   : > { %v10355_v6 = vpop.f32.mrf.mxu2 }
 0x500   : > { %6791 = vmatmul.msk.f32.gmra.mxu0 %vm3884_vm13, %v10353_v9  ;;  %v10359_v62 = vld [vmem:[#allocation2 + $0xb2] sm:$0xff] }
 0x501   : > { %6836 = vmatmul.msk.f32.gmra.mxu1 %vm3884_vm13, %v10359_v62 }
 0x502   : > { %6759 = vmatmul.msk.f32.vlgmr.msrb.gmra.mxu3 %vm3884_vm13, %v6921_v12  ;;  %6838 = vmatmul.msk.f32.vlgmr.msra.gmra.mxu2 %vm3884_vm13, %v6922_v23 }
 0x507   : > { %v10367_v43 = vpop.f32.mrf.mxu2 }
 0x50a   : > { %6760 = vmatmul.msk.f32.gmra.mxu3 %vm3884_vm13, %v6923_v33  ;;  %6839 = vmatmul.msk.f32.gmra.mxu2 %vm3884_vm13, %v6924_v56 }
 0x50f   : > { %v10373_v55 = vpop.f32.mrf.mxu2 }
 0x512   : > { %6761 = vmatmul.msk.f32.gmra.mxu3 %vm3884_vm13, %v6925_v2  ;;  %6840 = vmatmul.msk.f32.gmra.mxu2 %vm3884_vm13, %v9907_v48  ;;  %v10394_v48 = vpop.f32.mrf.mxu3 }
 0x517   : > { %v10380_v57 = vpop.f32.mrf.mxu2 }
 0x51a   : > { %6762 = vmatmul.msk.f32.gmra.mxu3 %vm3884_vm13, %v9897_v20  ;;  %6841 = vmatmul.msk.f32.gmra.mxu2 %vm3884_vm13, %v9922_v50  ;;  %v10402_v20 = vpop.f32.mrf.mxu3 }
 0x51f   : > { %v10388_v19 = vpop.f32.mrf.mxu2 }
 0x522   : > { %6763 = vmatmul.msk.f32.gmra.mxu3 %vm3884_vm13, %v9993_v4  ;;  %6842 = vmatmul.msk.f32.gmra.mxu2 %vm3884_vm13, %v10067_v34  ;;  %v10410_v4 = vpop.f32.mrf.mxu3 }
 0x527   : > { %v10396_v49 = vpop.f32.mrf.mxu2 }
 0x52a   : > { %6764 = vmatmul.msk.f32.gmra.mxu3 %vm3884_vm13, %v10058_v25  ;;  %6843 = vmatmul.msk.f32.gmra.mxu2 %vm3884_vm13, %v10087_v51  ;;  %v10418_v34 = vpop.f32.mrf.mxu3 }
 0x52f   : > { %v10404_v50 = vpop.f32.mrf.mxu2 }
 0x532   : > { %6765 = vmatmul.msk.f32.gmra.mxu3 %vm3884_vm13, %v10141_v21  ;;  %6844 = vmatmul.msk.f32.gmra.mxu2 %vm3884_vm13, %v10156_v28  ;;  %v10424_v51 = vpop.f32.mrf.mxu3 }
 0x537   : > { %v10416_v25 = vpop.f32.mrf.mxu2 }
 0x53a   : > { %6766 = vmatmul.msk.f32.gmra.mxu3 %vm3884_vm13, %v10150_v59  ;;  %6845 = vmatmul.msk.f32.gmra.mxu2 %vm3884_vm13, %v10161_v40  ;;  %v10432_v59 = vpop.f32.mrf.mxu3 }
 0x53f   : > { %v10426_v21 = vpop.f32.mrf.mxu2 }
 0x542   : > { %6767 = vmatmul.msk.f32.gmra.mxu3 %vm3884_vm13, %v10171_v32  ;;  %6846 = vmatmul.msk.f32.gmra.mxu2 %vm3884_vm13, %v10184_v7  ;;  %v10440_v40 = vpop.f32.mrf.mxu3 }
 0x547   : > { %v10434_v28 = vpop.f32.mrf.mxu2 }
 0x54a   : > { %6768 = vmatmul.msk.f32.gmra.mxu3 %vm3884_vm13, %v10178_v30  ;;  %6847 = vmatmul.msk.f32.gmra.mxu2 %vm3884_vm13, %v10190_v0  ;;  %v10448_v30 = vpop.f32.mrf.mxu3 }
 0x54f   : > { %v10442_v32 = vpop.f32.mrf.mxu2 }
 0x552   : > { %6769 = vmatmul.msk.f32.gmra.mxu3 %vm3884_vm13, %v10202_v37  ;;  %6848 = vmatmul.msk.f32.gmra.mxu2 %vm3884_vm13, %v10214_v18  ;;  %v10456_v0 = vpop.f32.mrf.mxu3  ;;  %v4344_v18 = vpop.f32.mrf.mxu0 }
 0x553   : > { %v4345_v36 = vadd.f32 %v4344_v18, %v10342_v11 }
 0x557   : > { %v10454_v7 = vpop.f32.mrf.mxu2 }
 0x55a   : > { %6770 = vmatmul.msk.f32.gmra.mxu3 %vm3884_vm13, %v10208_v42  ;;  %6849 = vmatmul.msk.f32.gmra.mxu2 %vm3884_vm13, %v10219_v22  ;;  %v10478_v60 = vpop.f32.mrf.mxu0 }
 0x561   : > { %v10462_v37 = vpop.f32.mrf.mxu3  ;;  %v10464_v42 = vpop.f32.mrf.mxu2 }
 0x562   : > { %6771 = vmatmul.msk.f32.gmra.mxu3 %vm3884_vm13, %v10245_v31  ;;  %6850 = vmatmul.msk.f32.gmra.mxu2 %vm3884_vm13, %v10290_v5  ;;  %v4653_v5 = vld [vmem:[%s12440_s7] sm:$0x3]  ;;  %v4350_v13 = vpop.f32.mrf.mxu0 }
 0x563   : > { %v10490_v54 = vperm.slane %v4653_v5, 1  ;;  %v10493_v61 = vperm.slane %v4653_v5, 0  ;;  %v4351_v12 = vadd.f32 %v4350_v13, %v10367_v43 }
 0x56a   : > { %6772 = vmatmul.msk.f32.gmra.mxu3 %vm3884_vm13, %v10284_v41  ;;  %6851 = vmatmul.msk.f32.gmra.mxu2 %vm3884_vm13, %v10313_v38  ;;  %v6990_v38 = vmov 1935823168  }
 0x56b   : > { %v4820_v29 = vunpack.c.l.s4 %v6990_v38 }
 0x56d   : > { %v10496_v14 = vunpack.c.0.s8 %v4820_v29 }
 0x572   : > { %6773 = vmatmul.msk.f32.gmra.mxu3 %vm3884_vm13, %v10340_v39  ;;  %6852 = vmatmul.msk.f32.gmra.mxu2 %vm3884_vm13, %v10349_v58 }
 0x574   : > { %v10470_v22 = vpop.f32.mrf.mxu3  ;;  %v10472_v31 = vpop.f32.mrf.mxu2 }
 0x57a   : > { %6774 = vmatmul.msk.f32.gmra.mxu3 %vm3884_vm13, %v10353_v9  ;;  %6853 = vmatmul.msk.f32.gmra.mxu2 %vm3884_vm13, %v10359_v62  ;;  %v4353_v9 = vpop.f32.mrf.mxu0  ;;  %v4517_v62 = vpop.f32.mrf.mxu1 }
 0x57d   : > { %v10480_v45 = vpop.f32.mrf.mxu3  ;;  %v10482_v41 = vpop.f32.mrf.mxu2 }
 0x582   : > { %v4356_v33 = vpop.f32.mrf.mxu0 }
 0x585   : > { %v4279_v52 = vpop.f32.mrf.mxu3  ;;  %v4573_v1 = vpop.f32.mrf.mxu2 }
 0x586   : > { %v4280_v47 = vadd.f32 %v4279_v52, %v10365_v17  ;;  %v4622_v46 = vadd.f32 %v4573_v1, %v4345_v36  ;;  %v4520_v52 = vpop.f32.mrf.mxu1  ;;  %v4354_v1 = vadd.f32 %v4353_v9, %v10373_v55 }
 0x588   : > { %v4621_v24 = vadd.f32 %v4508_v3, %v4280_v47  ;;  %v4660_v10 = vadd.f32 %v10490_v54, %v4622_v46 }
 0x58a   : > { %v4659_v53 = vadd.f32 %v10493_v61, %v4621_v24  ;;  %v4723_v27 = vrot.slane %v4660_v10, 4  ;;  %v4359_v24 = vpop.f32.mrf.mxu0 }
 0x58c   : > { %v4739_v39 = vsel %vm4071_vm12, %v4659_v53, %v4723_v27  ;;  %v10501_v11 = vsel %vm4071_vm12, %v4723_v27, %v4659_v53  ;;  %v4357_v27 = vadd.f32 %v4356_v33, %v10380_v57  ;;  %v4360_v57 = vadd.f32 %v4359_v24, %v10388_v19  ;;  %v5026_v19 = vld [vmem:[%s12441_s8 + $0x278] sm:$0xff]  ;;  %v4961_v24 = vld [vmem:[%s12441_s8 + $0x70] sm:$0xff] }
 0x58d   : > { %v4822_v44 = vperm.slane %v4739_v39, %v10496_v14  ;;  %v10504_v15 = vpop.f32.mrf.mxu3  ;;  %v10506_v58 = vpop.f32.mrf.mxu2  ;;  %5678 = vmatpush.msra.mxu0 %v5026_v19  ;;  %v5022_v19 = vld [vmem:[%s12441_s8 + $0x258] sm:$0xff] }
 0x58f   : > { %5495 = vst [vmem:[#allocation1] ss:$9 sm:$0xff] %v4822_v44 }
 0x595   : > { %v4285_v23 = vpop.f32.mrf.mxu3  ;;  %v4579_v17 = vpop.f32.mrf.mxu2 }
 0x596   : > { %v4286_v56 = vadd.f32 %v4285_v23, %v10378_v35  ;;  %v4626_v2 = vadd.f32 %v4579_v17, %v4351_v12 }
 0x598   : > { %v4625_v18 = vadd.f32 %v4514_v16, %v4286_v56  ;;  %v4664_v3 = vadd.f32 %v10490_v54, %v4626_v2 }
 0x59a   : > { %v4663_v5 = vadd.f32 %v10493_v61, %v4625_v18  ;;  %v4725_v36 = vrot.slane %v4664_v3, 4 }
 0x59c   : > { %v4745_v38 = vsel %vm4071_vm12, %v4663_v5, %v4725_v36  ;;  %v10515_v29 = vsel %vm4071_vm12, %v4725_v36, %v4663_v5 }
 0x59d   : > { %v4838_v43 = vperm.slane %v4745_v38, %v10496_v14  ;;  %v4288_v13 = vpop.f32.mrf.mxu3  ;;  %v4582_v47 = vpop.f32.mrf.mxu2 }
 0x59e   : > { %v4289_v35 = vadd.f32 %v4288_v13, %v10386_v26  ;;  %v4628_v46 = vadd.f32 %v4582_v47, %v4354_v1  ;;  %v4523_v26 = vpop.f32.mrf.mxu1  ;;  %v4962_v13 = vld [vmem:[%s12441_s8 + $0x78] sm:$0xff] }
 0x59f   : > { %5497 = vst [vmem:[#allocation1 + $0x1] ss:$9 sm:$0xff] %v4838_v43  ;;  %v5042_v47 = vld [vmem:[%s12441_s8 + $0x2f8] sm:$0xff]  ;;  %5598 = vmatpush.msra.mxu3 %v4962_v13 }
 0x5a0   : > { %v4627_v10 = vadd.f32 %v4517_v62, %v4289_v35  ;;  %v4666_v16 = vadd.f32 %v10490_v54, %v4628_v46  ;;  %v4362_v62 = vpop.f32.mrf.mxu0  ;;  %5698 = vmatpush.msrb.mxu1 %v5042_v47  ;;  %v4958_v13 = vld [vmem:[%s12441_s8 + $0x58] sm:$0xff] }
 0x5a1   : > { %5599 = vmatpush.msra.mxu3 %v4961_v24  ;;  %v5054_v47 = vld [vmem:[%s12441_s8 + $0x358] sm:$0xff] }
 0x5a2   : > { %v4665_v53 = vadd.f32 %v10493_v61, %v4627_v10  ;;  %v4726_v55 = vrot.slane %v4666_v16, 4  ;;  %v5025_v10 = vld [vmem:[%s12441_s8 + $0x270] sm:$0xff] }
 0x5a3   : > { %v5041_v16 = vld [vmem:[%s12441_s8 + $0x2f0] sm:$0xff]  ;;  %5679 = vmatpush.msra.mxu0 %v5025_v10 }
 0x5a4   : > { %v10523_v39 = vsel %vm4071_vm12, %v4665_v53, %v4726_v55  ;;  %v10526_v44 = vsel %vm4071_vm12, %v4726_v55, %v4665_v53  ;;  %v5057_v53 = vld [vmem:[%s12441_s8 + $0x370] sm:$0xff]  ;;  %5699 = vmatpush.msrb.mxu1 %v5041_v16 }
 0x5a5   : > { %v4291_v9 = vpop.f32.mrf.mxu3  ;;  %v4585_v12 = vpop.f32.mrf.mxu2  ;;  %v5021_v10 = vld [vmem:[%s12441_s8 + $0x250] sm:$0xff] }
 0x5a6   : > { %v4292_v23 = vadd.f32 %v4291_v9, %v10394_v48  ;;  %v4630_v17 = vadd.f32 %v4585_v12, %v4357_v27  ;;  %v4526_v48 = vpop.f32.mrf.mxu1  ;;  %v4363_v12 = vadd.f32 %v4362_v62, %v10396_v49  ;;  %v5040_v49 = vld [vmem:[%s12441_s8 + $0x2e8] sm:$0xff]  ;;  %v5037_v16 = vld [vmem:[%s12441_s8 + $0x2d0] sm:$0xff] }
 0x5a7   : > { %5700 = vmatpush.msrb.mxu1 %v5040_v49 }
 0x5a8   : > { %v4629_v56 = vadd.f32 %v4520_v52, %v4292_v23  ;;  %v4668_v2 = vadd.f32 %v10490_v54, %v4630_v17  ;;  %v4365_v55 = vpop.f32.mrf.mxu0 }
 0x5aa   : > { %v4667_v18 = vadd.f32 %v10493_v61, %v4629_v56  ;;  %v4727_v3 = vrot.slane %v4668_v2, 4  ;;  %v4960_v2 = vld [vmem:[%s12441_s8 + $0x68] sm:$0xff] }
 0x5ab   : > { %5600 = vmatpush.msra.mxu3 %v4960_v2 }
 0x5ac   : > { %v4751_v33 = vsel %vm4071_vm12, %v4667_v18, %v4727_v3  ;;  %v10534_v5 = vsel %vm4071_vm12, %v4727_v3, %v4667_v18  ;;  %v5024_v18 = vld [vmem:[%s12441_s8 + $0x268] sm:$0xff] }
 0x5ad   : > { %v4854_v36 = vperm.slane %v4751_v33, %v10496_v14  ;;  %v4294_v1 = vpop.f32.mrf.mxu3  ;;  %v4588_v38 = vpop.f32.mrf.mxu2  ;;  %5680 = vmatpush.msra.mxu0 %v5024_v18  ;;  %v4959_v33 = vld [vmem:[%s12441_s8 + $0x60] sm:$0xff]  ;;  %v4956_v18 = vld [vmem:[%s12441_s8 + $0x48] sm:$0xff] }
 0x5ae   : > { %v4295_v43 = vadd.f32 %v4294_v1, %v10402_v20  ;;  %v4632_v52 = vadd.f32 %v4588_v38, %v4360_v57  ;;  %v5058_v20 = vld [vmem:[%s12441_s8 + $0x378] sm:$0xff]  ;;  %v5056_v57 = vld [vmem:[%s12441_s8 + $0x368] sm:$0xff]  ;;  %v4529_v1 = vpop.f32.mrf.mxu1  ;;  %5601 = vmatpush.msra.mxu3 %v4959_v33  ;;  %v5019_v33 = vld [vmem:[%s12441_s8 + $0x240] sm:$0xff] }
 0x5af   : > { %5499 = vst [vmem:[#allocation1 + $0x2] ss:$9 sm:$0xff] %v4854_v36  ;;  %5718 = vmatpush.msrb.mxu2 %v5058_v20  ;;  %v5023_v36 = vld [vmem:[%s12441_s8 + $0x260] sm:$0xff] }
 0x5b0   : > { %v4631_v35 = vadd.f32 %v4523_v26, %v4295_v43  ;;  %v4670_v46 = vadd.f32 %v10490_v54, %v4632_v52  ;;  %5681 = vmatpush.msra.mxu0 %v5023_v36  ;;  %v5055_v52 = vld [vmem:[%s12441_s8 + $0x360] sm:$0xff]  ;;  %5602 = vmatpush.msra.mxu3 %v4958_v13  ;;  %v5018_v13 = vld [vmem:[%s12441_s8 + $0x238] sm:$0xff] }
 0x5b1   : > { %5719 = vmatpush.msrb.mxu2 %v5057_v53  ;;  %v5053_v53 = vld [vmem:[%s12441_s8 + $0x350] sm:$0xff] }
 0x5b2   : > { %v4669_v27 = vadd.f32 %v10493_v61, %v4631_v35  ;;  %v4728_v9 = vrot.slane %v4670_v46, 4  ;;  %v4957_v35 = vld [vmem:[%s12441_s8 + $0x50] sm:$0xff]  ;;  %v4368_v46 = vpop.f32.mrf.mxu0  ;;  %5682 = vmatpush.msra.mxu0 %v5022_v19  ;;  %v5050_v19 = vld [vmem:[%s12441_s8 + $0x338] sm:$0xff] }
 0x5b3   : > { %5720 = vmatpush.msrb.mxu2 %v5056_v57  ;;  %5603 = vmatpush.msra.mxu3 %v4957_v35  ;;  %v4955_v57 = vld [vmem:[%s12441_s8 + $0x40] sm:$0xff] }
 0x5b4   : > { %v10566_v26 = vsel %vm4071_vm12, %v4669_v27, %v4728_v9  ;;  %v10569_v23 = vsel %vm4071_vm12, %v4728_v9, %v4669_v27  ;;  %v4366_v27 = vadd.f32 %v4365_v55, %v10404_v50  ;;  %5683 = vmatpush.msra.mxu0 %v5021_v10  ;;  %v5020_v50 = vld [vmem:[%s12441_s8 + $0x248] sm:$0xff]  ;;  %v5049_v10 = vld [vmem:[%s12441_s8 + $0x330] sm:$0xff] }
 0x5b5   : > { %v4297_v17 = vpop.f32.mrf.mxu3  ;;  %v4591_v56 = vpop.f32.mrf.mxu2  ;;  %5721 = vmatpush.msrb.mxu2 %v5055_v52  ;;  %v5036_v55 = vld [vmem:[%s12441_s8 + $0x2c8] sm:$0xff]  ;;  %5604 = vmatpush.msra.mxu3 %v4956_v18  ;;  %v4954_v52 = vld [vmem:[%s12441_s8 + $0x38] sm:$0xff] }
 0x5b6   : > { %v4298_v62 = vadd.f32 %v4297_v17, %v10410_v4  ;;  %v4634_v3 = vadd.f32 %v4591_v56, %v4363_v12  ;;  %v5039_v4 = vld [vmem:[%s12441_s8 + $0x2e0] sm:$0xff]  ;;  %5684 = vmatpush.msra.mxu0 %v5020_v50  ;;  %v4532_v36 = vpop.f32.mrf.mxu1 }
 0x5b7   : > { %5701 = vmatpush.msrb.mxu1 %v5039_v4  ;;  %5722 = vmatpush.msrb.mxu2 %v5054_v47 }
 0x5b8   : > { %v4633_v38 = vadd.f32 %v4526_v48, %v4298_v62  ;;  %v4672_v43 = vadd.f32 %v10490_v54, %v4634_v3  ;;  %v5038_v48 = vld [vmem:[%s12441_s8 + $0x2d8] sm:$0xff]  ;;  %v5052_v3 = vld [vmem:[%s12441_s8 + $0x348] sm:$0xff]  ;;  %5605 = vmatpush.msra.mxu3 %v4955_v57  ;;  %5685 = vmatpush.msra.mxu0 %v5019_v33  ;;  %v5047_v33 = vld [vmem:[%s12441_s8 + $0x320] sm:$0xff] }
 0x5b9   : > { %5702 = vmatpush.msrb.mxu1 %v5038_v48  ;;  %5723 = vmatpush.msrb.mxu2 %v5053_v53  ;;  %v4953_v48 = vld [vmem:[%s12441_s8 + $0x30] sm:$0xff]  ;;  %v4369_v53 = vadd.f32 %v4368_v46, %v10416_v25  ;;  %v5016_v25 = vld [vmem:[%s12441_s8 + $0x228] sm:$0xff] }
 0x5ba   : > { %v4671_v20 = vadd.f32 %v10493_v61, %v4633_v38  ;;  %v4729_v24 = vrot.slane %v4672_v43, 4  ;;  %v5051_v43 = vld [vmem:[%s12441_s8 + $0x340] sm:$0xff]  ;;  %5606 = vmatpush.msra.mxu3 %v4954_v52  ;;  %5686 = vmatpush.msra.mxu0 %v5018_v13  ;;  %v5032_v46 = vld [vmem:[%s12441_s8 + $0x2a8] sm:$0xff] }
 0x5bb   : > { %5703 = vmatpush.msrb.mxu1 %v5037_v16  ;;  %5724 = vmatpush.msrb.mxu2 %v5052_v3  ;;  %v4371_v16 = vpop.f32.mrf.mxu0 }
 0x5bc   : > { %v4757_v9 = vsel %vm4071_vm12, %v4671_v20, %v4729_v24  ;;  %v10625_v12 = vsel %vm4071_vm12, %v4729_v24, %v4671_v20  ;;  %v5017_v20 = vld [vmem:[%s12441_s8 + $0x230] sm:$0xff]  ;;  %5607 = vmatpush.msra.mxu3 %v4953_v48 }
 0x5bd   : > { %v4870_v17 = vperm.slane %v4757_v9, %v10496_v14  ;;  %v4300_v56 = vpop.f32.mrf.mxu3  ;;  %v4594_v2 = vpop.f32.mrf.mxu2  ;;  %5704 = vmatpush.msrb.mxu1 %v5036_v55  ;;  %5725 = vmatpush.msrb.mxu2 %v5051_v43  ;;  %v5033_v24 = vld [vmem:[%s12441_s8 + $0x2b0] sm:$0xff]  ;;  %v5048_v55 = vld [vmem:[%s12441_s8 + $0x328] sm:$0xff] }
 0x5be   : > { %v4301_v49 = vadd.f32 %v4300_v56, %v10418_v34  ;;  %v4636_v62 = vadd.f32 %v4594_v2, %v4366_v27  ;;  %v5035_v34 = vld [vmem:[%s12441_s8 + $0x2c0] sm:$0xff]  ;;  %5687 = vmatpush.msra.mxu0 %v5017_v20  ;;  %v4952_v2 = vld [vmem:[%s12441_s8 + $0x28] sm:$0xff]  ;;  %v4949_v43 = vld [vmem:[%s12441_s8 + $0x10] sm:$0xff]  ;;  %v4535_v52 = vpop.f32.mrf.mxu1  ;;  %v4372_v20 = vadd.f32 %v4371_v16, %v10426_v21 }
 0x5bf   : > { %5501 = vst [vmem:[#allocation1 + $0x3] ss:$9 sm:$0xff] %v4870_v17  ;;  %5705 = vmatpush.msrb.mxu1 %v5035_v34  ;;  %5726 = vmatpush.msrb.mxu2 %v5050_v19  ;;  %v4950_v34 = vld [vmem:[%s12441_s8 + $0x18] sm:$0xff]  ;;  %v5013_v19 = vld [vmem:[%s12441_s8 + $0x210] sm:$0xff]  ;;  %v5012_v21 = vld [vmem:[%s12441_s8 + $0x208] sm:$0xff] }
 0x5c0   : > { %v4635_v4 = vadd.f32 %v4529_v1, %v4301_v49  ;;  %v4674_v38 = vadd.f32 %v10490_v54, %v4636_v62  ;;  %v5034_v1 = vld [vmem:[%s12441_s8 + $0x2b8] sm:$0xff]  ;;  %5608 = vmatpush.msra.mxu3 %v4952_v2  ;;  %5688 = vmatpush.msra.mxu0 %v5016_v25  ;;  %v4951_v49 = vld [vmem:[%s12441_s8 + $0x20] sm:$0xff]  ;;  %v5029_v48 = vld [vmem:[%s12441_s8 + $0x290] sm:$0xff] }
 0x5c1   : > { %5706 = vmatpush.msrb.mxu1 %v5034_v1  ;;  %5727 = vmatpush.msrb.mxu2 %v5049_v10  ;;  %v5015_v62 = vld [vmem:[%s12441_s8 + $0x220] sm:$0xff]  ;;  %v5028_v16 = vld [vmem:[%s12441_s8 + $0x288] sm:$0xff] }
 0x5c2   : > { %v4673_v47 = vadd.f32 %v10493_v61, %v4635_v4  ;;  %v4730_v35 = vrot.slane %v4674_v38, 4  ;;  %5609 = vmatpush.msra.mxu3 %v4951_v49  ;;  %5689 = vmatpush.msra.mxu0 %v5015_v62  ;;  %v5014_v4 = vld [vmem:[%s12441_s8 + $0x218] sm:$0xff]  ;;  %v5043_v62 = vld [vmem:[%s12441_s8 + $0x300] sm:$0xff] }
 0x5c3   : > { %5707 = vmatpush.msrb.mxu1 %v5033_v24  ;;  %5728 = vmatpush.msrb.mxu2 %v5048_v55  ;;  %v5046_v38 = vld [vmem:[%s12441_s8 + $0x318] sm:$0xff] }
 0x5c4   : > { %v10681_v27 = vsel %vm4071_vm12, %v4673_v47, %v4730_v35  ;;  %v10684_v9 = vsel %vm4071_vm12, %v4730_v35, %v4673_v47  ;;  %5610 = vmatpush.msra.mxu3 %v4950_v34  ;;  %5690 = vmatpush.msra.mxu0 %v5014_v4  ;;  %v5045_v47 = vld [vmem:[%s12441_s8 + $0x310] sm:$0xff]  ;;  %v4374_v35 = vpop.f32.mrf.mxu0  ;;  %v5122_v34 = vld [vmem:[%s12441_s8 + $0x578] sm:$0xff] }
 0x5c5   : > { %v4303_v17 = vpop.f32.mrf.mxu3  ;;  %v4597_v56 = vpop.f32.mrf.mxu2  ;;  %5708 = vmatpush.msrb.mxu1 %v5032_v46  ;;  %5729 = vmatpush.msrb.mxu2 %v5047_v33  ;;  %v5044_v46 = vld [vmem:[%s12441_s8 + $0x308] sm:$0xff]  ;;  %v5106_v33 = vld [vmem:[%s12441_s8 + $0x4f8] sm:$0xff]  ;;  %v4977_v4 = vld [vmem:[%s12441_s8 + $0xf0] sm:$0xff] }
 0x5c6   : > { %v4304_v18 = vadd.f32 %v4303_v17, %v10424_v51  ;;  %v4638_v50 = vadd.f32 %v4597_v56, %v4369_v53  ;;  %v5031_v51 = vld [vmem:[%s12441_s8 + $0x2a0] sm:$0xff]  ;;  %5611 = vmatpush.msra.mxu3 %v4949_v43  ;;  %5691 = vmatpush.msra.mxu0 %v5013_v19  ;;  %v4948_v56 = vld [vmem:[%s12441_s8 + $0x8] sm:$0xff]  ;;  %v5105_v19 = vld [vmem:[%s12441_s8 + $0x4f0] sm:$0xff] }
 0x5c7   : > { %5709 = vmatpush.msrb.mxu1 %v5031_v51  ;;  %5730 = vmatpush.msrb.mxu2 %v5046_v38  ;;  %v4978_v51 = vld [vmem:[%s12441_s8 + $0xf8] sm:$0xff] }
 0x5c8   : > { %v4637_v3 = vadd.f32 %v4532_v36, %v4304_v18  ;;  %v10709_v57 = vadd.f32 %v10490_v54, %v4638_v50  ;;  %v5030_v36 = vld [vmem:[%s12441_s8 + $0x298] sm:$0xff]  ;;  %5612 = vmatpush.msra.mxu3 %v4948_v56  ;;  %5692 = vmatpush.msra.mxu0 %v5012_v21  ;;  %v4947_v18 = vld [vmem:[%s12441_s8] sm:$0xff]  ;;  %v5120_v56 = vld [vmem:[%s12441_s8 + $0x568] sm:$0xff] }
 0x5c9   : > { %5710 = vmatpush.msrb.mxu1 %v5030_v36  ;;  %5731 = vmatpush.msrb.mxu2 %v5045_v47  ;;  %v5011_v50 = vld [vmem:[%s12441_s8 + $0x200] sm:$0xff]  ;;  %v4538_v36 = vpop.f32.mrf.mxu1  ;;  %v4976_v47 = vld [vmem:[%s12441_s8 + $0xe8] sm:$0xff] }
 0x5ca   : > { %v10730_v13 = vadd.f32 %v10493_v61, %v4637_v3  ;;  %v4731_v1 = vrot.slane %v10709_v57, 4  ;;  %5613 = vmatpush.msra.mxu3 %v4947_v18  ;;  %5693 = vmatpush.msra.mxu0 %v5011_v50  ;;  %v5090_v3 = vld [vmem:[%s12441_s8 + $0x478] sm:$0xff]  ;;  %v4759_v57 = vrot.slane %v10625_v12, 4 }
 0x5cb   : > { %5711 = vmatpush.msrb.mxu1 %v5029_v48  ;;  %5732 = vmatpush.msrb.mxu2 %v5044_v46  ;;  %v5121_v48 = vld [vmem:[%s12441_s8 + $0x570] sm:$0xff]  ;;  %v5103_v46 = vld [vmem:[%s12441_s8 + $0x4e0] sm:$0xff]  ;;  %v4974_v50 = vld [vmem:[%s12441_s8 + $0xd8] sm:$0xff] }
 0x5cc   : > { %v4763_v24 = vsel %vm4071_vm12, %v10730_v13, %v4731_v1  ;;  %5618 = vmatpush.msrb.mxu3 %v4978_v51  ;;  %5758 = vmatpush.msrb.mxu0 %v5090_v3  ;;  %v10828_v18 = vpop.f32.mrf.mxu0  ;;  %v5118_v51 = vld [vmem:[%s12441_s8 + $0x558] sm:$0xff]  ;;  %v4973_v3 = vld [vmem:[%s12441_s8 + $0xd0] sm:$0xff] }
 0x5cd   : > { %v4886_v10 = vperm.slane %v4763_v24, %v10496_v14  ;;  %v4306_v53 = vpop.f32.mrf.mxu3  ;;  %v4600_v17 = vpop.f32.mrf.mxu2  ;;  %5712 = vmatpush.msrb.mxu1 %v5028_v16  ;;  %5733 = vmatpush.msrb.mxu2 %v5043_v62  ;;  %v4375_v24 = vadd.f32 %v4374_v35, %v10434_v28  ;;  %v5102_v62 = vld [vmem:[%s12441_s8 + $0x4d8] sm:$0xff] }
 0x5ce   : > { %v4307_v2 = vadd.f32 %v4306_v53, %v10432_v59  ;;  %v4640_v25 = vadd.f32 %v4600_v17, %v4372_v20  ;;  %v5027_v59 = vld [vmem:[%s12441_s8 + $0x280] sm:$0xff]  ;;  %v5088_v20 = vld [vmem:[%s12441_s8 + $0x468] sm:$0xff]  ;;  %5619 = vmatpush.msrb.mxu3 %v4977_v4 }
 0x5cf   : > { %5503 = vst [vmem:[#allocation1 + $0x4] ss:$9 sm:$0xff] %v4886_v10  ;;  %5713 = vmatpush.msrb.mxu1 %v5027_v59  ;;  %5798 = vmatpush.msra.mxu2 %v5122_v34  ;;  %v5104_v17 = vld [vmem:[%s12441_s8 + $0x4e8] sm:$0xff]  ;;  %v5086_v59 = vld [vmem:[%s12441_s8 + $0x458] sm:$0xff] }
 0x5d0   : > { %v4639_v55 = vadd.f32 %v4535_v52, %v4307_v2  ;;  %v4678_v49 = vadd.f32 %v10490_v54, %v4640_v25  ;;  %v5089_v52 = vld [vmem:[%s12441_s8 + $0x470] sm:$0xff]  ;;  %5620 = vmatpush.msrb.mxu3 %v4976_v47  ;;  %v4975_v2 = vld [vmem:[%s12441_s8 + $0xe0] sm:$0xff]  ;;  %v5100_v47 = vld [vmem:[%s12441_s8 + $0x4c8] sm:$0xff] }
 0x5d1   : > { %5778 = vmatpush.msra.mxu1 %v5106_v33  ;;  %5759 = vmatpush.msrb.mxu0 %v5089_v52  ;;  %v5087_v25 = vld [vmem:[%s12441_s8 + $0x460] sm:$0xff]  ;;  %v5085_v33 = vld [vmem:[%s12441_s8 + $0x450] sm:$0xff]  ;;  %v5084_v52 = vld [vmem:[%s12441_s8 + $0x448] sm:$0xff] }
 0x5d2   : > { %v4677_v38 = vadd.f32 %v10493_v61, %v4639_v55  ;;  %v4732_v43 = vrot.slane %v4678_v49, 4  ;;  %5799 = vmatpush.msra.mxu2 %v5121_v48  ;;  %5621 = vmatpush.msrb.mxu3 %v4975_v2 }
 0x5d3   : > { %5779 = vmatpush.msra.mxu1 %v5105_v19  ;;  %5760 = vmatpush.msrb.mxu0 %v5088_v20  ;;  %v10870_v19 = vpop.f32.mrf.mxu1  ;;  %v5116_v20 = vld [vmem:[%s12441_s8 + $0x548] sm:$0xff] }
 0x5d4   : > { %v10807_v10 = vsel %vm4071_vm12, %v4677_v38, %v4732_v43  ;;  %v10810_v53 = vsel %vm4071_vm12, %v4732_v43, %v4677_v38  ;;  %5800 = vmatpush.msra.mxu2 %v5120_v56  ;;  %5622 = vmatpush.msrb.mxu3 %v4974_v50  ;;  %v5117_v38 = vld [vmem:[%s12441_s8 + $0x550] sm:$0xff]  ;;  %v4972_v43 = vld [vmem:[%s12441_s8 + $0xc8] sm:$0xff]  ;;  %v5083_v50 = vld [vmem:[%s12441_s8 + $0x440] sm:$0xff] }
 0x5d5   : > { %v4309_v21 = vpop.f32.mrf.mxu3  ;;  %v4603_v16 = vpop.f32.mrf.mxu2  ;;  %5780 = vmatpush.msra.mxu1 %v5104_v17  ;;  %5761 = vmatpush.msrb.mxu0 %v5087_v25 }
 0x5d6   : > { %v4310_v28 = vadd.f32 %v4309_v21, %v10440_v40  ;;  %v4642_v35 = vadd.f32 %v4603_v16, %v4375_v24  ;;  %v5119_v40 = vld [vmem:[%s12441_s8 + $0x560] sm:$0xff]  ;;  %5623 = vmatpush.msrb.mxu3 %v4973_v3  ;;  %v4380_v21 = vpop.f32.mrf.mxu0  ;;  %v5098_v3 = vld [vmem:[%s12441_s8 + $0x4b8] sm:$0xff] }
 0x5d7   : > { %5781 = vmatpush.msra.mxu1 %v5103_v46  ;;  %5801 = vmatpush.msra.mxu2 %v5119_v40  ;;  %v4971_v40 = vld [vmem:[%s12441_s8 + $0xc0] sm:$0xff] }
 0x5d8   : > { %v4641_v55 = vadd.f32 %v4538_v36, %v4310_v28  ;;  %v10840_v49 = vadd.f32 %v10490_v54, %v4642_v35  ;;  %5762 = vmatpush.msrb.mxu0 %v5086_v59  ;;  %v5101_v36 = vld [vmem:[%s12441_s8 + $0x4d0] sm:$0xff]  ;;  %5624 = vmatpush.msrb.mxu3 %v4972_v43  ;;  %v4381_v28 = vadd.f32 %v4380_v21, %v10454_v7  ;;  %v5099_v59 = vld [vmem:[%s12441_s8 + $0x4c0] sm:$0xff]  ;;  %v4968_v21 = vld [vmem:[%s12441_s8 + $0xa8] sm:$0xff] }
 0x5d9   : > { %5782 = vmatpush.msra.mxu1 %v5102_v62  ;;  %5802 = vmatpush.msra.mxu2 %v5118_v51  ;;  %v5115_v7 = vld [vmem:[%s12441_s8 + $0x540] sm:$0xff]  ;;  %v4970_v62 = vld [vmem:[%s12441_s8 + $0xb8] sm:$0xff] }
 0x5da   : > { %v10855_v34 = vadd.f32 %v10493_v61, %v4641_v55  ;;  %v4733_v4 = vrot.slane %v10840_v49, 4  ;;  %5763 = vmatpush.msrb.mxu0 %v5085_v33  ;;  %5625 = vmatpush.msrb.mxu3 %v4971_v40  ;;  %v5082_v51 = vld [vmem:[%s12441_s8 + $0x438] sm:$0xff] }
 0x5db   : > { %5783 = vmatpush.msra.mxu1 %v5101_v36  ;;  %5803 = vmatpush.msra.mxu2 %v5117_v38  ;;  %v4544_v16 = vpop.f32.mrf.mxu1  ;;  %v5114_v36 = vld [vmem:[%s12441_s8 + $0x538] sm:$0xff] }
 0x5dc   : > { %v4769_v48 = vsel %vm4071_vm12, %v10855_v34, %v4733_v4  ;;  %5764 = vmatpush.msrb.mxu0 %v5084_v52  ;;  %5626 = vmatpush.msrb.mxu3 %v4970_v62  ;;  %v4969_v52 = vld [vmem:[%s12441_s8 + $0xb0] sm:$0xff] }
 0x5dd   : > { %v4902_v24 = vperm.slane %v4769_v48, %v10496_v14  ;;  %v10883_v17 = vpop.f32.mrf.mxu3  ;;  %v10885_v56 = vpop.f32.mrf.mxu2  ;;  %5784 = vmatpush.msra.mxu1 %v5100_v47  ;;  %5804 = vmatpush.msra.mxu2 %v5116_v20  ;;  %v5081_v48 = vld [vmem:[%s12441_s8 + $0x430] sm:$0xff] }
 0x5de   : > { %5765 = vmatpush.msrb.mxu0 %v5083_v50  ;;  %v10913_v33 = vpop.f32.mrf.mxu0  ;;  %v5097_v47 = vld [vmem:[%s12441_s8 + $0x4b0] sm:$0xff]  ;;  %5627 = vmatpush.msrb.mxu3 %v4969_v52  ;;  %v4967_v50 = vld [vmem:[%s12441_s8 + $0xa0] sm:$0xff]  ;;  %v5110_v52 = vld [vmem:[%s12441_s8 + $0x518] sm:$0xff] }
 0x5df   : > { %5505 = vst [vmem:[#allocation1 + $0x5] ss:$9 sm:$0xff] %v4902_v24  ;;  %5785 = vmatpush.msra.mxu1 %v5099_v59  ;;  %5805 = vmatpush.msra.mxu2 %v5115_v7  ;;  %v5113_v20 = vld [vmem:[%s12441_s8 + $0x530] sm:$0xff]  ;;  %v5079_v59 = vld [vmem:[%s12441_s8 + $0x420] sm:$0xff] }
 0x5e0   : > { %5766 = vmatpush.msrb.mxu0 %v5082_v51  ;;  %5628 = vmatpush.msrb.mxu3 %v4968_v21  ;;  %v5095_v7 = vld [vmem:[%s12441_s8 + $0x4a0] sm:$0xff]  ;;  %v4966_v51 = vld [vmem:[%s12441_s8 + $0x98] sm:$0xff]  ;;  %v5109_v21 = vld [vmem:[%s12441_s8 + $0x510] sm:$0xff] }
 0x5e1   : > { %5786 = vmatpush.msra.mxu1 %v5098_v3  ;;  %5806 = vmatpush.msra.mxu2 %v5114_v36  ;;  %v5078_v3 = vld [vmem:[%s12441_s8 + $0x418] sm:$0xff] }
 0x5e2   : > { %5767 = vmatpush.msrb.mxu0 %v5081_v48  ;;  %5629 = vmatpush.msrb.mxu3 %v4967_v50  ;;  %v5094_v36 = vld [vmem:[%s12441_s8 + $0x498] sm:$0xff]  ;;  %v4965_v48 = vld [vmem:[%s12441_s8 + $0x90] sm:$0xff] }
 0x5e3   : > { %5787 = vmatpush.msra.mxu1 %v5097_v47  ;;  %5807 = vmatpush.msra.mxu2 %v5113_v20  ;;  %v10955_v40 = vpop.f32.mrf.mxu1  ;;  %v5077_v47 = vld [vmem:[%s12441_s8 + $0x410] sm:$0xff] }
 0x5e4   : > { %5630 = vmatpush.msrb.mxu3 %v4966_v51  ;;  %v5093_v20 = vld [vmem:[%s12441_s8 + $0x490] sm:$0xff]  ;;  %v5075_v51 = vld [vmem:[%s12441_s8 + $0x400] sm:$0xff] }
 0x5e5   : > { %v4315_v35 = vpop.f32.mrf.mxu3  ;;  %v4609_v2 = vpop.f32.mrf.mxu2 }
 0x5e6   : > { %v4316_v25 = vadd.f32 %v4315_v35, %v10456_v0  ;;  %v4646_v46 = vadd.f32 %v4609_v2, %v4381_v28  ;;  %v5096_v28 = vld [vmem:[%s12441_s8 + $0x4a8] sm:$0xff]  ;;  %v4386_v62 = vpop.f32.mrf.mxu0  ;;  %5631 = vmatpush.msrb.mxu3 %v4965_v48 }
 0x5e7   : > { %5788 = vmatpush.msra.mxu1 %v5096_v28 }
 0x5e8   : > { %v4645_v0 = vadd.f32 %v4544_v16, %v4316_v25  ;;  %v10902_v55 = vadd.f32 %v10490_v54, %v4646_v46  ;;  %v5080_v16 = vld [vmem:[%s12441_s8 + $0x428] sm:$0xff] }
 0x5e9   : > { %5768 = vmatpush.msrb.mxu0 %v5080_v16  ;;  %v5112_v46 = vld [vmem:[%s12441_s8 + $0x528] sm:$0xff]  ;;  %5789 = vmatpush.msra.mxu1 %v5095_v7 }
 0x5ea   : > { %v10919_v38 = vadd.f32 %v10493_v61, %v4645_v0  ;;  %v4735_v43 = vrot.slane %v10902_v55, 4  ;;  %5808 = vmatpush.msra.mxu2 %v5112_v46  ;;  %v5111_v0 = vld [vmem:[%s12441_s8 + $0x520] sm:$0xff]  ;;  %v5076_v46 = vld [vmem:[%s12441_s8 + $0x408] sm:$0xff] }
 0x5eb   : > { %5769 = vmatpush.msrb.mxu0 %v5079_v59  ;;  %5790 = vmatpush.msra.mxu1 %v5094_v36  ;;  %v5108_v7 = vld [vmem:[%s12441_s8 + $0x508] sm:$0xff] }
 0x5ec   : > { %v4775_v24 = vsel %vm4071_vm12, %v10919_v38, %v4735_v43  ;;  %5809 = vmatpush.msra.mxu2 %v5111_v0  ;;  %v4550_v0 = vpop.f32.mrf.mxu1 }
 0x5ed   : > { %v4918_v35 = vperm.slane %v4775_v24, %v10496_v14  ;;  %v10948_v2 = vpop.f32.mrf.mxu3  ;;  %v10950_v25 = vpop.f32.mrf.mxu2  ;;  %5770 = vmatpush.msrb.mxu0 %v5078_v3  ;;  %v4387_v24 = vadd.f32 %v4386_v62, %v10472_v31  ;;  %5791 = vmatpush.msra.mxu1 %v5093_v20  ;;  %v5092_v31 = vld [vmem:[%s12441_s8 + $0x488] sm:$0xff]  ;;  %v4963_v62 = vld [vmem:[%s12441_s8 + $0x80] sm:$0xff] }
 0x5ee   : > { %5810 = vmatpush.msra.mxu2 %v5110_v52  ;;  %v5107_v52 = vld [vmem:[%s12441_s8 + $0x500] sm:$0xff] }
 0x5ef   : > { %5507 = vst [vmem:[#allocation1 + $0x6] ss:$9 sm:$0xff] %v4918_v35  ;;  %5771 = vmatpush.msrb.mxu0 %v5077_v47  ;;  %v4964_v35 = vld [vmem:[%s12441_s8 + $0x88] sm:$0xff]  ;;  %5792 = vmatpush.msra.mxu1 %v5092_v31  ;;  %v4994_v31 = vld [vmem:[%s12441_s8 + $0x178] sm:$0xff] }
 0x5f0   : > { %5811 = vmatpush.msra.mxu2 %v5109_v21  ;;  %5632 = vmatpush.msrb.mxu3 %v4964_v35  ;;  %v4741_v21 = vrot.slane %v10501_v11, 4  ;;  %v4753_v35 = vrot.slane %v10534_v5, 4  ;;  %v5154_v11 = vld [vmem:[%s12441_s8 + $0x678] sm:$0xff]  ;;  %v4776_v5 = vsel %vm4071_vm12, %v4735_v43, %v10919_v38 }
 0x5f1   : > { %5772 = vmatpush.msrb.mxu0 %v5076_v46  ;;  %v4770_v46 = vsel %vm4071_vm12, %v4733_v4, %v10855_v34  ;;  %v5186_v34 = vld [vmem:[%s12441_s8 + $0x778] sm:$0xff]  ;;  %v4348_v4 = vadd.f32 %v10478_v60, %v10355_v6  ;;  %v4993_v6 = vld [vmem:[%s12441_s8 + $0x170] sm:$0xff] }
 0x5f2   : > { %5812 = vmatpush.msra.mxu2 %v5108_v7  ;;  %5633 = vmatpush.msrb.mxu3 %v4963_v62  ;;  %v4283_v7 = vadd.f32 %v10504_v15, %v10371_v8  ;;  %v4771_v62 = vrot.slane %v4770_v46, 4  ;;  %v5153_v8 = vld [vmem:[%s12441_s8 + $0x670] sm:$0xff] }
 0x5f3   : > { %5773 = vmatpush.msrb.mxu0 %v5075_v51  ;;  %v4624_v60 = vadd.f32 %v10506_v58, %v4348_v4  ;;  %v5169_v15 = vld [vmem:[%s12441_s8 + $0x6f0] sm:$0xff]  ;;  %v5183_v4 = vld [vmem:[%s12441_s8 + $0x760] sm:$0xff] }
 0x5f4   : > { %5813 = vmatpush.msra.mxu2 %v5107_v52  ;;  %v4874_v52 = vperm.slane %v4759_v57, %v10496_v14  ;;  %v5185_v58 = vld [vmem:[%s12441_s8 + $0x770] sm:$0xff]  ;;  %v5151_v57 = vld [vmem:[%s12441_s8 + $0x660] sm:$0xff] }
 0x5f5   : > { %v4321_v16 = vpop.f32.mrf.mxu3  ;;  %v4615_v28 = vpop.f32.mrf.mxu2 }
 0x5f6   : > { %v4322_v50 = vadd.f32 %v4321_v16, %v10470_v22  ;;  %v4650_v59 = vadd.f32 %v4615_v28, %v4387_v24  ;;  %v5091_v22 = vld [vmem:[%s12441_s8 + $0x480] sm:$0xff]  ;;  %v4747_v16 = vrot.slane %v10515_v29, 4  ;;  %v4764_v28 = vsel %vm4071_vm12, %v4731_v1, %v10730_v13  ;;  %v5170_v29 = vld [vmem:[%s12441_s8 + $0x6f8] sm:$0xff] }
 0x5f7   : > { %5793 = vmatpush.msra.mxu1 %v5091_v22  ;;  %v4765_v12 = vrot.slane %v4764_v28, 4  ;;  %v5168_v28 = vld [vmem:[%s12441_s8 + $0x6e8] sm:$0xff] }
 0x5f8   : > { %v4649_v3 = vadd.f32 %v4550_v0, %v4322_v50  ;;  %v4688_v36 = vadd.f32 %v10490_v54, %v4650_v59  ;;  %v4826_v50 = vperm.slane %v4741_v21, %v10496_v14  ;;  %v4842_v0 = vperm.slane %v4747_v16, %v10496_v14  ;;  %v5152_v16 = vld [vmem:[%s12441_s8 + $0x668] sm:$0xff] }
 0x5f9   : > { %v4890_v21 = vperm.slane %v4765_v12, %v10496_v14 }
 0x5fa   : > { %v4687_v48 = vadd.f32 %v10493_v61, %v4649_v3  ;;  %v4737_v47 = vrot.slane %v4688_v36, 4  ;;  %v4858_v3 = vperm.slane %v4753_v35, %v10496_v14  ;;  %v4777_v36 = vrot.slane %v4776_v5, 4  ;;  %v5167_v5 = vld [vmem:[%s12441_s8 + $0x6e0] sm:$0xff] }
 0x5fb   : > { %v4384_v35 = vadd.f32 %v10913_v33, %v10464_v42 }
 0x5fc   : > { %v4781_v20 = vsel %vm4071_vm12, %v4687_v48, %v4737_v47  ;;  %v4782_v59 = vsel %vm4071_vm12, %v4737_v47, %v4687_v48  ;;  %v4992_v47 = vld [vmem:[%s12441_s8 + $0x168] sm:$0xff]  ;;  %v4922_v42 = vperm.slane %v4777_v36, %v10496_v14 }
 0x5fd   : > { %v4934_v24 = vperm.slane %v4781_v20, %v10496_v14  ;;  %v4783_v48 = vrot.slane %v4782_v59, 4  ;;  %v4378_v20 = vadd.f32 %v10828_v18, %v10442_v32  ;;  %v4906_v32 = vperm.slane %v4771_v62, %v10496_v14  ;;  %v5184_v18 = vld [vmem:[%s12441_s8 + $0x768] sm:$0xff]  ;;  %v4618_v33 = vpop.f32.mrf.mxu2  ;;  %v5165_v62 = vld [vmem:[%s12441_s8 + $0x6d0] sm:$0xff] }
 0x5fe   : > { %v4648_v12 = vadd.f32 %v10950_v25, %v4384_v35 }
 0x5ff   : > { %5509 = vst [vmem:[#allocation1 + $0x7] ss:$9 sm:$0xff] %v4934_v24  ;;  %v4389_v24 = vpop.f32.mrf.mxu0 }
 0x600   : > { %v4390_v46 = vadd.f32 %v4389_v24, %v10482_v41  ;;  %v4324_v41 = vpop.f32.mrf.mxu3  ;;  %v5179_v24 = vld [vmem:[%s12441_s8 + $0x740] sm:$0xff] }
 0x602   : > { %v4652_v59 = vadd.f32 %v4618_v33, %v4390_v46 }
 0x606   : > { %v5510_v13 = vld [vmem:[#allocation1] sm:$0xff]  ;;  %v11048_v1 = vld [vmem:[#allocation1 + $0x9] sm:$0xff]  ;;  %v11050_v49 = vld [vmem:[#allocation1 + $0x12] sm:$0xff] }
 0x607   : > { %v11059_v55 = vld [vmem:[#allocation1 + $0x1b] sm:$0xff]  ;;  %v5514_v38 = vld [vmem:[#allocation1 + $0x24] sm:$0xff]  ;;  %v5515_v43 = vld [vmem:[#allocation1 + $0x2d] sm:$0xff]  ;;  %5614 = vmatmul.f32.vlgmr.msra.gmra.mxu3 %v5510_v13  ;;  %v4644_v13 = vadd.f32 %v10885_v56, %v4378_v20  ;;  %v4325_v56 = vadd.f32 %v4324_v41, %v10480_v45 }
 0x608   : > { %v5516_v51 = vld [vmem:[#allocation1 + $0x36] sm:$0xff]  ;;  %v11064_v22 = vld [vmem:[#allocation1 + $0x3f] sm:$0xff]  ;;  %5638 = vmatpush.msra.mxu3 %v4994_v31  ;;  %5694 = vmatmul.f32.vlgmr.msra.gmra.mxu0 %v5514_v38 }
 0x609   : > { %5518 = vst [vmem:[#allocation1] ss:$9 sm:$0xff] %v4826_v50  ;;  %5714 = vmatmul.f32.vlgmr.msrb.gmra.mxu1 %v5515_v43  ;;  %5734 = vmatmul.f32.vlgmr.msrb.gmra.mxu2 %v5516_v51  ;;  %v4991_v31 = vld [vmem:[%s12441_s8 + $0x160] sm:$0xff]  ;;  %v4319_v50 = vadd.f32 %v10948_v2, %v10462_v37  ;;  %v5166_v37 = vld [vmem:[%s12441_s8 + $0x6d8] sm:$0xff]  ;;  %v4989_v45 = vld [vmem:[%s12441_s8 + $0x150] sm:$0xff]  ;;  %v4553_v51 = vpop.f32.mrf.mxu1 }
 0x60a   : > { %5519 = vst [vmem:[#allocation1 + $0x1] ss:$9 sm:$0xff] %v4842_v0  ;;  %5838 = vmatpush.msra.mxu0 %v5154_v11  ;;  %5858 = vmatpush.msrb.mxu1 %v5170_v29  ;;  %v4623_v11 = vadd.f32 %v10487_v63, %v4283_v7  ;;  %v11105_v29 = vadd.f32 %v10490_v54, %v4624_v60  ;;  %v5182_v2 = vld [vmem:[%s12441_s8 + $0x758] sm:$0xff]  ;;  %v5149_v43 = vld [vmem:[%s12441_s8 + $0x650] sm:$0xff]  ;;  %v5163_v20 = vld [vmem:[%s12441_s8 + $0x6c0] sm:$0xff] }
 0x60b   : > { %5520 = vst [vmem:[#allocation1 + $0x2] ss:$9 sm:$0xff] %v4858_v3  ;;  %5878 = vmatpush.msrb.mxu2 %v5186_v34  ;;  %5639 = vmatpush.msra.mxu3 %v4993_v6  ;;  %v4313_v63 = vadd.f32 %v10883_v17, %v10448_v30  ;;  %v4938_v34 = vperm.slane %v4783_v48, %v10496_v14  ;;  %v4990_v30 = vld [vmem:[%s12441_s8 + $0x158] sm:$0xff]  ;;  %v5148_v3 = vld [vmem:[%s12441_s8 + $0x648] sm:$0xff]  ;;  %v5147_v48 = vld [vmem:[%s12441_s8 + $0x640] sm:$0xff] }
 0x60c   : > { %5521 = vst [vmem:[#allocation1 + $0x3] ss:$9 sm:$0xff] %v4874_v52  ;;  %5839 = vmatpush.msra.mxu0 %v5153_v8  ;;  %5859 = vmatpush.msrb.mxu1 %v5169_v15  ;;  %v5150_v17 = vld [vmem:[%s12441_s8 + $0x658] sm:$0xff]  ;;  %v11138_v25 = vadd.f32 %v10493_v61, %v4623_v11  ;;  %v4724_v38 = vrot.slane %v11105_v29, 4  ;;  %v11150_v0 = vadd.f32 %v10490_v54, %v4644_v13  ;;  %v5180_v15 = vld [vmem:[%s12441_s8 + $0x748] sm:$0xff]  ;;  %v5155_v29 = vld [vmem:[%s12441_s8 + $0x680] sm:$0xff] }
 0x60d   : > { %5522 = vst [vmem:[#allocation1 + $0x4] ss:$9 sm:$0xff] %v4890_v21  ;;  %5879 = vmatpush.msrb.mxu2 %v5185_v58  ;;  %5640 = vmatpush.msra.mxu3 %v4992_v47  ;;  %v4643_v7 = vadd.f32 %v10870_v19, %v4313_v63  ;;  %v4647_v6 = vadd.f32 %v10955_v40, %v4319_v50  ;;  %v4988_v19 = vld [vmem:[%s12441_s8 + $0x148] sm:$0xff]  ;;  %v4986_v21 = vld [vmem:[%s12441_s8 + $0x138] sm:$0xff]  ;;  %v4985_v50 = vld [vmem:[%s12441_s8 + $0x130] sm:$0xff] }
 0x60e   : > { %5523 = vst [vmem:[#allocation1 + $0x5] ss:$9 sm:$0xff] %v4906_v32  ;;  %5840 = vmatpush.msra.mxu0 %v5152_v16  ;;  %5860 = vmatpush.msrb.mxu1 %v5168_v28  ;;  %v11160_v60 = vadd.f32 %v10490_v54, %v4648_v12  ;;  %v4651_v36 = vadd.f32 %v4553_v51, %v4325_v56  ;;  %v5164_v40 = vld [vmem:[%s12441_s8 + $0x6c8] sm:$0xff]  ;;  %v4734_v47 = vrot.slane %v11150_v0, 4  ;;  %v5143_v51 = vld [vmem:[%s12441_s8 + $0x620] sm:$0xff] }
 0x60f   : > { %5524 = vst [vmem:[#allocation1 + $0x6] ss:$9 sm:$0xff] %v4922_v42  ;;  %5880 = vmatpush.msrb.mxu2 %v5184_v18  ;;  %5641 = vmatpush.msra.mxu3 %v4991_v31  ;;  %v11169_v8 = vadd.f32 %v10490_v54, %v4652_v59  ;;  %v4742_v52 = vsel %vm4071_vm12, %v11138_v25, %v4724_v38  ;;  %v4987_v54 = vld [vmem:[%s12441_s8 + $0x140] sm:$0xff]  ;;  %v5146_v18 = vld [vmem:[%s12441_s8 + $0x638] sm:$0xff]  ;;  %v5177_v59 = vld [vmem:[%s12441_s8 + $0x730] sm:$0xff] }
 0x610   : > { %5525 = vst [vmem:[#allocation1 + $0x7] ss:$9 sm:$0xff] %v4938_v34  ;;  %5841 = vmatpush.msra.mxu0 %v5151_v57  ;;  %5861 = vmatpush.msrb.mxu1 %v5167_v5  ;;  %v11188_v58 = vadd.f32 %v10493_v61, %v4643_v7  ;;  %v11201_v16 = vadd.f32 %v10493_v61, %v4647_v6  ;;  %v4736_v28 = vrot.slane %v11160_v60, 4  ;;  %v5162_v34 = vld [vmem:[%s12441_s8 + $0x6b8] sm:$0xff]  ;;  %v5176_v7 = vld [vmem:[%s12441_s8 + $0x728] sm:$0xff]  ;;  %v5159_v6 = vld [vmem:[%s12441_s8 + $0x6a0] sm:$0xff] }
 0x611   : > { %5881 = vmatpush.msrb.mxu2 %v5183_v4  ;;  %5634 = vmatmul.f32.vlgmr.msrb.gmra.mxu3 %v11048_v1  ;;  %v5181_v1 = vld [vmem:[%s12441_s8 + $0x750] sm:$0xff]  ;;  %v4830_v31 = vperm.slane %v4742_v52, %v10496_v14  ;;  %v11215_v33 = vadd.f32 %v10493_v61, %v4651_v36  ;;  %v4738_v57 = vrot.slane %v11169_v8, 4  ;;  %v4846_v5 = vperm.slane %v10523_v39, %v10496_v14  ;;  %v5178_v39 = vld [vmem:[%s12441_s8 + $0x738] sm:$0xff] }
 0x612   : > { %5642 = vmatpush.msra.mxu3 %v4990_v30  ;;  %5842 = vmatpush.msra.mxu0 %v5150_v17  ;;  %v4862_v61 = vperm.slane %v10566_v26, %v10496_v14  ;;  %v4772_v4 = vsel %vm4071_vm12, %v11188_v58, %v4734_v47  ;;  %v4878_v12 = vperm.slane %v10681_v27, %v10496_v14  ;;  %v5145_v30 = vld [vmem:[%s12441_s8 + $0x630] sm:$0xff]  ;;  %v5142_v36 = vld [vmem:[%s12441_s8 + $0x618] sm:$0xff] }
 0x613   : > { %5862 = vmatpush.msrb.mxu1 %v5166_v37  ;;  %5882 = vmatpush.msrb.mxu2 %v5182_v2  ;;  %v4778_v26 = vsel %vm4071_vm12, %v11201_v16, %v4736_v28  ;;  %v5161_v17 = vld [vmem:[%s12441_s8 + $0x6b0] sm:$0xff]  ;;  %v4894_v56 = vperm.slane %v10807_v10, %v10496_v14  ;;  %v4784_v27 = vsel %vm4071_vm12, %v11215_v33, %v4738_v57  ;;  %v4984_v37 = vld [vmem:[%s12441_s8 + $0x128] sm:$0xff] }
 0x614   : > { %5643 = vmatpush.msra.mxu3 %v4989_v45  ;;  %5843 = vmatpush.msra.mxu0 %v5149_v43  ;;  %v4910_v2 = vperm.slane %v4772_v4, %v10496_v14  ;;  %v5144_v10 = vld [vmem:[%s12441_s8 + $0x628] sm:$0xff]  ;;  %v4926_v43 = vperm.slane %v4778_v26, %v10496_v14  ;;  %v4981_v52 = vld [vmem:[%s12441_s8 + $0x110] sm:$0xff]  ;;  %v5234_v4 = vld [vmem:[%s12441_s8 + $0x8f8] sm:$0xff] }
 0x615   : > { %5863 = vmatpush.msrb.mxu1 %v5165_v62  ;;  %5883 = vmatpush.msrb.mxu2 %v5181_v1  ;;  %v5160_v45 = vld [vmem:[%s12441_s8 + $0x6a8] sm:$0xff]  ;;  %v4983_v62 = vld [vmem:[%s12441_s8 + $0x120] sm:$0xff]  ;;  %v4942_v1 = vperm.slane %v4784_v27, %v10496_v14  ;;  %v5217_v26 = vld [vmem:[%s12441_s8 + $0x870] sm:$0xff]  ;;  %v4768_v27 = vrot.slane %v10810_v53, 4 }
 0x616   : > { %5644 = vmatpush.msra.mxu3 %v4988_v19  ;;  %5844 = vmatpush.msra.mxu0 %v5148_v3  ;;  %v5175_v19 = vld [vmem:[%s12441_s8 + $0x720] sm:$0xff]  ;;  %v4982_v3 = vld [vmem:[%s12441_s8 + $0x118] sm:$0xff]  ;;  %v5233_v60 = vld [vmem:[%s12441_s8 + $0x8f0] sm:$0xff] }
 0x617   : > { %v5526_v35 = vld [vmem:[#allocation1] sm:$0xff]  ;;  %v5527_v46 = vld [vmem:[#allocation1 + $0x9] sm:$0xff]  ;;  %v5528_v32 = vld [vmem:[#allocation1 + $0x12] sm:$0xff]  ;;  %5864 = vmatpush.msrb.mxu1 %v5164_v40  ;;  %5884 = vmatpush.msrb.mxu2 %v5180_v15 }
 0x618   : > { %v11208_v11 = vld [vmem:[#allocation1 + $0x1b] sm:$0xff]  ;;  %v11210_v42 = vld [vmem:[#allocation1 + $0x24] sm:$0xff]  ;;  %v11212_v41 = vld [vmem:[#allocation1 + $0x2d] sm:$0xff]  ;;  %5774 = vmatmul.f32.vlgmr.msrb.gmra.mxu0 %v5526_v35  ;;  %5794 = vmatmul.f32.vlgmr.msra.gmra.mxu1 %v5527_v46  ;;  %v4743_v46 = vsel %vm4071_vm12, %v4724_v38, %v11138_v25 }
 0x619   : > { %v11220_v63 = vld [vmem:[#allocation1 + $0x36] sm:$0xff]  ;;  %v11222_v13 = vld [vmem:[#allocation1 + $0x3f] sm:$0xff]  ;;  %5814 = vmatmul.f32.vlgmr.msra.gmra.mxu2 %v5528_v32  ;;  %5645 = vmatpush.msra.mxu3 %v4987_v54  ;;  %v5156_v35 = vld [vmem:[%s12441_s8 + $0x688] sm:$0xff]  ;;  %v4744_v38 = vrot.slane %v4743_v46, 4 }
 0x61a   : > { %5534 = vst [vmem:[#allocation1] ss:$9 sm:$0xff] %v4830_v31  ;;  %5845 = vmatpush.msra.mxu0 %v5147_v48  ;;  %5865 = vmatpush.msrb.mxu1 %v5163_v20  ;;  %v5158_v40 = vld [vmem:[%s12441_s8 + $0x698] sm:$0xff]  ;;  %v5141_v54 = vld [vmem:[%s12441_s8 + $0x610] sm:$0xff]  ;;  %v5172_v32 = vld [vmem:[%s12441_s8 + $0x708] sm:$0xff] }
 0x61b   : > { %5535 = vst [vmem:[#allocation1 + $0x1] ss:$9 sm:$0xff] %v4846_v5  ;;  %5885 = vmatpush.msrb.mxu2 %v5179_v24  ;;  %5646 = vmatpush.msra.mxu3 %v4986_v21  ;;  %v5174_v15 = vld [vmem:[%s12441_s8 + $0x718] sm:$0xff]  ;;  %v5157_v48 = vld [vmem:[%s12441_s8 + $0x690] sm:$0xff]  ;;  %v4980_v24 = vld [vmem:[%s12441_s8 + $0x108] sm:$0xff] }
 0x61c   : > { %5536 = vst [vmem:[#allocation1 + $0x2] ss:$9 sm:$0xff] %v4862_v61  ;;  %5846 = vmatpush.msra.mxu0 %v5146_v18  ;;  %5866 = vmatpush.msrb.mxu1 %v5162_v34  ;;  %v5173_v20 = vld [vmem:[%s12441_s8 + $0x710] sm:$0xff]  ;;  %v5140_v21 = vld [vmem:[%s12441_s8 + $0x608] sm:$0xff]  ;;  %v4979_v18 = vld [vmem:[%s12441_s8 + $0x100] sm:$0xff]  ;;  %v4750_v61 = vrot.slane %v10526_v44, 4  ;;  %v4773_v44 = vsel %vm4071_vm12, %v4734_v47, %v11188_v58  ;;  %v4834_v47 = vperm.slane %v4744_v38, %v10496_v14 }
 0x61d   : > { %5537 = vst [vmem:[#allocation1 + $0x3] ss:$9 sm:$0xff] %v4878_v12  ;;  %5886 = vmatpush.msrb.mxu2 %v5178_v39  ;;  %5647 = vmatpush.msra.mxu3 %v4985_v50  ;;  %v5139_v31 = vld [vmem:[%s12441_s8 + $0x600] sm:$0xff]  ;;  %v5010_v5 = vld [vmem:[%s12441_s8 + $0x1f8] sm:$0xff]  ;;  %v5009_v50 = vld [vmem:[%s12441_s8 + $0x1f0] sm:$0xff]  ;;  %v4756_v12 = vrot.slane %v10569_v23, 4  ;;  %v4779_v23 = vsel %vm4071_vm12, %v4736_v28, %v11201_v16 }
 0x61e   : > { %5538 = vst [vmem:[#allocation1 + $0x4] ss:$9 sm:$0xff] %v4894_v56  ;;  %5847 = vmatpush.msra.mxu0 %v5145_v30  ;;  %5867 = vmatpush.msrb.mxu1 %v5161_v17  ;;  %v5171_v25 = vld [vmem:[%s12441_s8 + $0x700] sm:$0xff]  ;;  %v5218_v34 = vld [vmem:[%s12441_s8 + $0x878] sm:$0xff]  ;;  %v4762_v56 = vrot.slane %v10684_v9, 4  ;;  %v4785_v9 = vsel %vm4071_vm12, %v4738_v57, %v11215_v33  ;;  %v4774_v53 = vrot.slane %v4773_v44, 4 }
 0x61f   : > { %5539 = vst [vmem:[#allocation1 + $0x5] ss:$9 sm:$0xff] %v4910_v2  ;;  %5887 = vmatpush.msrb.mxu2 %v5177_v59  ;;  %5648 = vmatpush.msra.mxu3 %v4984_v37  ;;  %v5250_v39 = vld [vmem:[%s12441_s8 + $0x978] sm:$0xff]  ;;  %v5249_v8 = vld [vmem:[%s12441_s8 + $0x970] sm:$0xff]  ;;  %v4866_v57 = vperm.slane %v4756_v12, %v10496_v14  ;;  %v5216_v59 = vld [vmem:[%s12441_s8 + $0x868] sm:$0xff] }
 0x620   : > { %5540 = vst [vmem:[#allocation1 + $0x6] ss:$9 sm:$0xff] %v4926_v43  ;;  %5848 = vmatpush.msra.mxu0 %v5144_v10  ;;  %5868 = vmatpush.msrb.mxu1 %v5160_v45  ;;  %v5232_v37 = vld [vmem:[%s12441_s8 + $0x8e8] sm:$0xff]  ;;  %v4882_v2 = vperm.slane %v4762_v56, %v10496_v14  ;;  %v4786_v10 = vrot.slane %v4785_v9, 4  ;;  %v5007_v43 = vld [vmem:[%s12441_s8 + $0x1e0] sm:$0xff]  ;;  %v5210_v38 = vld [vmem:[%s12441_s8 + $0x838] sm:$0xff] }
 0x621   : > { %5541 = vst [vmem:[#allocation1 + $0x7] ss:$9 sm:$0xff] %v4942_v1  ;;  %5888 = vmatpush.msrb.mxu2 %v5176_v7  ;;  %5649 = vmatpush.msra.mxu3 %v4983_v62  ;;  %v5248_v45 = vld [vmem:[%s12441_s8 + $0x968] sm:$0xff]  ;;  %v4898_v7 = vperm.slane %v4768_v27, %v10496_v14  ;;  %v5215_v62 = vld [vmem:[%s12441_s8 + $0x860] sm:$0xff] }
 0x622   : > { %5849 = vmatpush.msra.mxu0 %v5143_v51  ;;  %5869 = vmatpush.msrb.mxu1 %v5159_v6  ;;  %v5231_v1 = vld [vmem:[%s12441_s8 + $0x8e0] sm:$0xff]  ;;  %v4914_v51 = vperm.slane %v4774_v53, %v10496_v14  ;;  %v5244_v46 = vld [vmem:[%s12441_s8 + $0x948] sm:$0xff]  ;;  %v5222_v53 = vld [vmem:[%s12441_s8 + $0x898] sm:$0xff] }
 0x623   : > { %5889 = vmatpush.msrb.mxu2 %v5175_v19  ;;  %5650 = vmatpush.msra.mxu3 %v4982_v3  ;;  %v5247_v6 = vld [vmem:[%s12441_s8 + $0x960] sm:$0xff]  ;;  %v5006_v19 = vld [vmem:[%s12441_s8 + $0x1d8] sm:$0xff]  ;;  %v5000_v12 = vld [vmem:[%s12441_s8 + $0x1a8] sm:$0xff] }
 0x624   : > { %5850 = vmatpush.msra.mxu0 %v5142_v36  ;;  %5870 = vmatpush.msrb.mxu1 %v5158_v40  ;;  %v5214_v36 = vld [vmem:[%s12441_s8 + $0x858] sm:$0xff]  ;;  %v5208_v44 = vld [vmem:[%s12441_s8 + $0x828] sm:$0xff]  ;;  %v5223_v27 = vld [vmem:[%s12441_s8 + $0x8a0] sm:$0xff] }
 0x625   : > { %5890 = vmatpush.msrb.mxu2 %v5174_v15  ;;  %5651 = vmatpush.msra.mxu3 %v4981_v52  ;;  %v5230_v40 = vld [vmem:[%s12441_s8 + $0x8d8] sm:$0xff]  ;;  %v4946_v15 = vperm.slane %v4786_v10, %v10496_v14  ;;  %v5240_v56 = vld [vmem:[%s12441_s8 + $0x928] sm:$0xff]  ;;  %v5239_v9 = vld [vmem:[%s12441_s8 + $0x920] sm:$0xff] }
 0x626   : > { %5851 = vmatpush.msra.mxu0 %v5141_v54  ;;  %5871 = vmatpush.msrb.mxu1 %v5157_v48  ;;  %v5246_v52 = vld [vmem:[%s12441_s8 + $0x958] sm:$0xff]  ;;  %v5005_v54 = vld [vmem:[%s12441_s8 + $0x1d0] sm:$0xff]  ;;  %v5220_v10 = vld [vmem:[%s12441_s8 + $0x888] sm:$0xff] }
 0x627   : > { %5891 = vmatpush.msrb.mxu2 %v5173_v20  ;;  %5652 = vmatpush.msra.mxu3 %v4980_v24  ;;  %v5213_v48 = vld [vmem:[%s12441_s8 + $0x850] sm:$0xff]  ;;  %v5004_v24 = vld [vmem:[%s12441_s8 + $0x1c8] sm:$0xff] }
 0x628   : > { %5852 = vmatpush.msra.mxu0 %v5140_v21  ;;  %5872 = vmatpush.msrb.mxu1 %v5156_v35  ;;  %v11364_v30 = vld [vmem:[#allocation1] sm:$0xff]  ;;  %v11378_v58 = vld [vmem:[#allocation1 + $0x12] sm:$0xff]  ;;  %v5212_v21 = vld [vmem:[%s12441_s8 + $0x848] sm:$0xff] }
 0x629   : > { %5892 = vmatpush.msrb.mxu2 %v5172_v32  ;;  %5653 = vmatpush.msra.mxu3 %v4979_v18  ;;  %v11366_v17 = vld [vmem:[#allocation1 + $0x1b] sm:$0xff]  ;;  %v11391_v16 = vld [vmem:[#allocation1 + $0x24] sm:$0xff]  ;;  %v11393_v28 = vld [vmem:[#allocation1 + $0x2d] sm:$0xff] }
 0x62a   : > { %5853 = vmatpush.msra.mxu0 %v5139_v31  ;;  %5873 = vmatpush.msrb.mxu1 %v5155_v29  ;;  %v11374_v0 = vld [vmem:[#allocation1 + $0x3f] sm:$0xff]  ;;  %v11402_v33 = vld [vmem:[#allocation1 + $0x36] sm:$0xff]  ;;  %v5228_v35 = vld [vmem:[%s12441_s8 + $0x8c8] sm:$0xff] }
 0x62b   : > { %5893 = vmatpush.msrb.mxu2 %v5171_v25  ;;  %5654 = vmatmul.f32.vlgmr.msra.gmra.mxu3 %v11050_v49  ;;  %v11376_v49 = vld [vmem:[#allocation1 + $0x9] sm:$0xff]  ;;  %v5003_v32 = vld [vmem:[%s12441_s8 + $0x1c0] sm:$0xff]  ;;  %v5002_v25 = vld [vmem:[%s12441_s8 + $0x1b8] sm:$0xff] }
 0x62c   : > { %5658 = vmatpush.msrb.mxu3 %v5010_v5  ;;  %5854 = vmatmul.f32.vlgmr.msra.gmra.mxu0 %v11210_v42  ;;  %v4850_v42 = vperm.slane %v4750_v61, %v10496_v14  ;;  %5550 = vst [vmem:[#allocation1] ss:$9 sm:$0xff] %v4834_v47  ;;  %v5245_v20 = vld [vmem:[%s12441_s8 + $0x950] sm:$0xff]  ;;  %v5211_v18 = vld [vmem:[%s12441_s8 + $0x840] sm:$0xff]  ;;  %v5226_v5 = vld [vmem:[%s12441_s8 + $0x8b8] sm:$0xff] }
 0x62d   : > { %5874 = vmatmul.f32.vlgmr.msrb.gmra.mxu1 %v11212_v41  ;;  %5894 = vmatmul.f32.vlgmr.msrb.gmra.mxu2 %v11220_v63  ;;  %v5008_v41 = vld [vmem:[%s12441_s8 + $0x1e8] sm:$0xff]  ;;  %v4780_v63 = vrot.slane %v4779_v23, 4  ;;  %5552 = vst [vmem:[#allocation1 + $0x2] ss:$9 sm:$0xff] %v4866_v57  ;;  %v5227_v31 = vld [vmem:[%s12441_s8 + $0x8c0] sm:$0xff]  ;;  %v5001_v61 = vld [vmem:[%s12441_s8 + $0x1b0] sm:$0xff] }
 0x62e   : > { %5918 = vmatpush.msrb.mxu0 %v5218_v34  ;;  %5938 = vmatpush.msra.mxu1 %v5234_v4  ;;  %5551 = vst [vmem:[#allocation1 + $0x1] ss:$9 sm:$0xff] %v4850_v42  ;;  %v5243_v29 = vld [vmem:[%s12441_s8 + $0x940] sm:$0xff]  ;;  %v5242_v34 = vld [vmem:[%s12441_s8 + $0x938] sm:$0xff]  ;;  %v5209_v4 = vld [vmem:[%s12441_s8 + $0x830] sm:$0xff] }
 0x62f   : > { %5958 = vmatpush.msra.mxu2 %v5250_v39  ;;  %5659 = vmatpush.msrb.mxu3 %v5009_v50  ;;  %5553 = vst [vmem:[#allocation1 + $0x3] ss:$9 sm:$0xff] %v4882_v2  ;;  %v4930_v3 = vperm.slane %v4780_v63, %v10496_v14  ;;  %v5229_v14 = vld [vmem:[%s12441_s8 + $0x8d0] sm:$0xff]  ;;  %v4999_v23 = vld [vmem:[%s12441_s8 + $0x1a0] sm:$0xff]  ;;  %v5206_v42 = vld [vmem:[%s12441_s8 + $0x818] sm:$0xff] }
 0x630   : > { %5919 = vmatpush.msrb.mxu0 %v5217_v26  ;;  %5939 = vmatpush.msra.mxu1 %v5233_v60  ;;  %5554 = vst [vmem:[#allocation1 + $0x4] ss:$9 sm:$0xff] %v4898_v7  ;;  %v5225_v39 = vld [vmem:[%s12441_s8 + $0x8b0] sm:$0xff]  ;;  %v5224_v26 = vld [vmem:[%s12441_s8 + $0x8a8] sm:$0xff]  ;;  %v5207_v47 = vld [vmem:[%s12441_s8 + $0x820] sm:$0xff] }
 0x631   : > { %5959 = vmatpush.msra.mxu2 %v5249_v8  ;;  %5660 = vmatpush.msrb.mxu3 %v5008_v41  ;;  %5555 = vst [vmem:[#allocation1 + $0x5] ss:$9 sm:$0xff] %v4914_v51  ;;  %v5241_v50 = vld [vmem:[%s12441_s8 + $0x930] sm:$0xff]  ;;  %v4998_v60 = vld [vmem:[%s12441_s8 + $0x198] sm:$0xff]  ;;  %v5204_v2 = vld [vmem:[%s12441_s8 + $0x808] sm:$0xff] }
 0x632   : > { %5920 = vmatpush.msrb.mxu0 %v5216_v59  ;;  %5940 = vmatpush.msra.mxu1 %v5232_v37  ;;  %5556 = vst [vmem:[#allocation1 + $0x6] ss:$9 sm:$0xff] %v4930_v3  ;;  %v5238_v8 = vld [vmem:[%s12441_s8 + $0x918] sm:$0xff]  ;;  %v4997_v41 = vld [vmem:[%s12441_s8 + $0x190] sm:$0xff]  ;;  %v4996_v37 = vld [vmem:[%s12441_s8 + $0x188] sm:$0xff] }
 0x633   : > { %5960 = vmatpush.msra.mxu2 %v5248_v45  ;;  %5661 = vmatpush.msrb.mxu3 %v5007_v43  ;;  %5557 = vst [vmem:[#allocation1 + $0x7] ss:$9 sm:$0xff] %v4946_v15  ;;  %v5205_v57 = vld [vmem:[%s12441_s8 + $0x810] sm:$0xff]  ;;  %v5236_v45 = vld [vmem:[%s12441_s8 + $0x908] sm:$0xff]  ;;  %v4995_v43 = vld [vmem:[%s12441_s8 + $0x180] sm:$0xff] }
 0x634   : > { %5921 = vmatpush.msrb.mxu0 %v5215_v62  ;;  %5941 = vmatpush.msra.mxu1 %v5231_v1  ;;  %v5221_v63 = vld [vmem:[%s12441_s8 + $0x890] sm:$0xff]  ;;  %v5203_v7 = vld [vmem:[%s12441_s8 + $0x800] sm:$0xff]  ;;  %v5074_v51 = vld [vmem:[%s12441_s8 + $0x3f8] sm:$0xff] }
 0x635   : > { %5961 = vmatpush.msra.mxu2 %v5247_v6  ;;  %5662 = vmatpush.msrb.mxu3 %v5006_v19  ;;  %v5237_v59 = vld [vmem:[%s12441_s8 + $0x910] sm:$0xff]  ;;  %v5219_v62 = vld [vmem:[%s12441_s8 + $0x880] sm:$0xff]  ;;  %v5282_v6 = vld [vmem:[%s12441_s8 + $0xa78] sm:$0xff] }
 0x636   : > { %5922 = vmatpush.msrb.mxu0 %v5214_v36  ;;  %5942 = vmatpush.msra.mxu1 %v5230_v40  ;;  %v5235_v1 = vld [vmem:[%s12441_s8 + $0x900] sm:$0xff]  ;;  %v5298_v19 = vld [vmem:[%s12441_s8 + $0xaf8] sm:$0xff]  ;;  %v5073_v36 = vld [vmem:[%s12441_s8 + $0x3f0] sm:$0xff] }
 0x637   : > { %5962 = vmatpush.msra.mxu2 %v5246_v52  ;;  %5663 = vmatpush.msrb.mxu3 %v5005_v54  ;;  %v5314_v3 = vld [vmem:[%s12441_s8 + $0xb78] sm:$0xff]  ;;  %v5313_v40 = vld [vmem:[%s12441_s8 + $0xb70] sm:$0xff]  ;;  %v5296_v15 = vld [vmem:[%s12441_s8 + $0xae8] sm:$0xff] }
 0x638   : > { %5923 = vmatpush.msrb.mxu0 %v5213_v48  ;;  %5943 = vmatpush.msra.mxu1 %v5229_v14  ;;  %v5312_v52 = vld [vmem:[%s12441_s8 + $0xb68] sm:$0xff]  ;;  %v5071_v54 = vld [vmem:[%s12441_s8 + $0x3e0] sm:$0xff] }
 0x639   : > { %5963 = vmatpush.msra.mxu2 %v5245_v20  ;;  %5664 = vmatpush.msrb.mxu3 %v5004_v24  ;;  %v5279_v48 = vld [vmem:[%s12441_s8 + $0xa60] sm:$0xff]  ;;  %v5070_v24 = vld [vmem:[%s12441_s8 + $0x3d8] sm:$0xff] }
 0x63a   : > { %5924 = vmatpush.msrb.mxu0 %v5212_v21  ;;  %5944 = vmatpush.msra.mxu1 %v5228_v35  ;;  %v5295_v14 = vld [vmem:[%s12441_s8 + $0xae0] sm:$0xff]  ;;  %v5278_v21 = vld [vmem:[%s12441_s8 + $0xa58] sm:$0xff] }
 0x63b   : > { %5964 = vmatpush.msra.mxu2 %v5244_v46  ;;  %5665 = vmatpush.msrb.mxu3 %v5003_v32  ;;  %v5311_v20 = vld [vmem:[%s12441_s8 + $0xb60] sm:$0xff]  ;;  %v5294_v35 = vld [vmem:[%s12441_s8 + $0xad8] sm:$0xff]  ;;  %v5069_v32 = vld [vmem:[%s12441_s8 + $0x3d0] sm:$0xff] }
 0x63c   : > { %5925 = vmatpush.msrb.mxu0 %v5211_v18  ;;  %5945 = vmatpush.msra.mxu1 %v5227_v31  ;;  %v5310_v46 = vld [vmem:[%s12441_s8 + $0xb58] sm:$0xff]  ;;  %v5277_v18 = vld [vmem:[%s12441_s8 + $0xa50] sm:$0xff] }
 0x63d   : > { %5965 = vmatpush.msra.mxu2 %v5243_v29  ;;  %5666 = vmatpush.msrb.mxu3 %v5002_v25  ;;  %v5293_v31 = vld [vmem:[%s12441_s8 + $0xad0] sm:$0xff]  ;;  %v5068_v25 = vld [vmem:[%s12441_s8 + $0x3c8] sm:$0xff] }
 0x63e   : > { %5926 = vmatpush.msrb.mxu0 %v5210_v38  ;;  %5946 = vmatpush.msra.mxu1 %v5226_v5  ;;  %v5309_v29 = vld [vmem:[%s12441_s8 + $0xb50] sm:$0xff]  ;;  %v5276_v38 = vld [vmem:[%s12441_s8 + $0xa48] sm:$0xff] }
 0x63f   : > { %5966 = vmatpush.msra.mxu2 %v5242_v34  ;;  %5667 = vmatpush.msrb.mxu3 %v5001_v61  ;;  %v5292_v5 = vld [vmem:[%s12441_s8 + $0xac8] sm:$0xff]  ;;  %v5067_v61 = vld [vmem:[%s12441_s8 + $0x3c0] sm:$0xff] }
 0x640   : > { %5927 = vmatpush.msrb.mxu0 %v5209_v4  ;;  %5947 = vmatpush.msra.mxu1 %v5225_v39  ;;  %v5308_v34 = vld [vmem:[%s12441_s8 + $0xb48] sm:$0xff]  ;;  %v5275_v4 = vld [vmem:[%s12441_s8 + $0xa40] sm:$0xff] }
 0x641   : > { %5967 = vmatpush.msra.mxu2 %v5241_v50  ;;  %5668 = vmatpush.msrb.mxu3 %v5000_v12  ;;  %v5291_v39 = vld [vmem:[%s12441_s8 + $0xac0] sm:$0xff]  ;;  %v5066_v12 = vld [vmem:[%s12441_s8 + $0x3b8] sm:$0xff] }
 0x642   : > { %5928 = vmatpush.msrb.mxu0 %v5208_v44  ;;  %5948 = vmatpush.msra.mxu1 %v5224_v26  ;;  %v5307_v50 = vld [vmem:[%s12441_s8 + $0xb40] sm:$0xff]  ;;  %v5274_v44 = vld [vmem:[%s12441_s8 + $0xa38] sm:$0xff] }
 0x643   : > { %5968 = vmatpush.msra.mxu2 %v5240_v56  ;;  %5669 = vmatpush.msrb.mxu3 %v4999_v23  ;;  %v5290_v26 = vld [vmem:[%s12441_s8 + $0xab8] sm:$0xff]  ;;  %v5065_v23 = vld [vmem:[%s12441_s8 + $0x3b0] sm:$0xff] }
 0x644   : > { %5929 = vmatpush.msrb.mxu0 %v5207_v47  ;;  %5949 = vmatpush.msra.mxu1 %v5223_v27  ;;  %v5306_v56 = vld [vmem:[%s12441_s8 + $0xb38] sm:$0xff]  ;;  %v5273_v47 = vld [vmem:[%s12441_s8 + $0xa30] sm:$0xff] }
 0x645   : > { %5969 = vmatpush.msra.mxu2 %v5239_v9  ;;  %5670 = vmatpush.msrb.mxu3 %v4998_v60  ;;  %v5289_v27 = vld [vmem:[%s12441_s8 + $0xab0] sm:$0xff]  ;;  %v5064_v60 = vld [vmem:[%s12441_s8 + $0x3a8] sm:$0xff] }
 0x646   : > { %5930 = vmatpush.msrb.mxu0 %v5206_v42  ;;  %5950 = vmatpush.msra.mxu1 %v5222_v53  ;;  %v5305_v9 = vld [vmem:[%s12441_s8 + $0xb30] sm:$0xff]  ;;  %v5272_v42 = vld [vmem:[%s12441_s8 + $0xa28] sm:$0xff] }
 0x647   : > { %5970 = vmatpush.msra.mxu2 %v5238_v8  ;;  %5671 = vmatpush.msrb.mxu3 %v4997_v41  ;;  %v5288_v53 = vld [vmem:[%s12441_s8 + $0xaa8] sm:$0xff]  ;;  %v5063_v41 = vld [vmem:[%s12441_s8 + $0x3a0] sm:$0xff] }
 0x648   : > { %5931 = vmatpush.msrb.mxu0 %v5205_v57  ;;  %5951 = vmatpush.msra.mxu1 %v5221_v63  ;;  %v5304_v8 = vld [vmem:[%s12441_s8 + $0xb28] sm:$0xff]  ;;  %v5271_v57 = vld [vmem:[%s12441_s8 + $0xa20] sm:$0xff] }
 0x649   : > { %5971 = vmatpush.msra.mxu2 %v5237_v59  ;;  %5672 = vmatpush.msrb.mxu3 %v4996_v37  ;;  %v5287_v63 = vld [vmem:[%s12441_s8 + $0xaa0] sm:$0xff]  ;;  %v5062_v37 = vld [vmem:[%s12441_s8 + $0x398] sm:$0xff] }
 0x64a   : > { %5932 = vmatpush.msrb.mxu0 %v5204_v2  ;;  %5952 = vmatpush.msra.mxu1 %v5220_v10  ;;  %v5303_v59 = vld [vmem:[%s12441_s8 + $0xb20] sm:$0xff]  ;;  %v5270_v2 = vld [vmem:[%s12441_s8 + $0xa18] sm:$0xff] }
 0x64b   : > { %5972 = vmatpush.msra.mxu2 %v5236_v45  ;;  %5673 = vmatpush.msrb.mxu3 %v4995_v43  ;;  %v5286_v10 = vld [vmem:[%s12441_s8 + $0xa98] sm:$0xff]  ;;  %v5061_v43 = vld [vmem:[%s12441_s8 + $0x390] sm:$0xff] }
 0x64c   : > { %5933 = vmatpush.msrb.mxu0 %v5203_v7  ;;  %5953 = vmatpush.msra.mxu1 %v5219_v62  ;;  %v5302_v45 = vld [vmem:[%s12441_s8 + $0xb18] sm:$0xff]  ;;  %v5269_v7 = vld [vmem:[%s12441_s8 + $0xa10] sm:$0xff] }
 0x64d   : > { %5973 = vmatpush.msra.mxu2 %v5235_v1  ;;  %5674 = vmatmul.f32.vlgmr.msrb.gmra.mxu3 %v11059_v55  ;;  %v5281_v55 = vld [vmem:[%s12441_s8 + $0xa70] sm:$0xff] }
 0x64e   : > { %5738 = vmatpush.msra.mxu3 %v5074_v51  ;;  %5934 = vmatmul.f32.vlgmr.msrb.gmra.mxu0 %v11364_v30  ;;  %v5297_v30 = vld [vmem:[%s12441_s8 + $0xaf0] sm:$0xff]  ;;  %v5060_v51 = vld [vmem:[%s12441_s8 + $0x388] sm:$0xff] }
 0x64f   : > { %5954 = vmatmul.f32.vlgmr.msra.gmra.mxu1 %v11376_v49  ;;  %5974 = vmatmul.f32.vlgmr.msra.gmra.mxu2 %v11378_v58  ;;  %v5072_v49 = vld [vmem:[%s12441_s8 + $0x3e8] sm:$0xff]  ;;  %v5285_v62 = vld [vmem:[%s12441_s8 + $0xa90] sm:$0xff] }
 0x650   : > { %5998 = vmatpush.msra.mxu0 %v5282_v6  ;;  %6018 = vmatpush.msrb.mxu1 %v5298_v19  ;;  %v5280_v58 = vld [vmem:[%s12441_s8 + $0xa68] sm:$0xff]  ;;  %v5301_v1 = vld [vmem:[%s12441_s8 + $0xb10] sm:$0xff] }
 0x651   : > { %6038 = vmatpush.msrb.mxu2 %v5314_v3  ;;  %5739 = vmatpush.msra.mxu3 %v5073_v36  ;;  %v5268_v6 = vld [vmem:[%s12441_s8 + $0xa08] sm:$0xff]  ;;  %v5059_v36 = vld [vmem:[%s12441_s8 + $0x380] sm:$0xff] }
 0x652   : > { %5999 = vmatpush.msra.mxu0 %v5281_v55  ;;  %6019 = vmatpush.msrb.mxu1 %v5297_v30  ;;  %v5284_v19 = vld [vmem:[%s12441_s8 + $0xa88] sm:$0xff]  ;;  %v5267_v55 = vld [vmem:[%s12441_s8 + $0xa00] sm:$0xff] }
 0x653   : > { %6039 = vmatpush.msrb.mxu2 %v5313_v40  ;;  %5740 = vmatpush.msra.mxu3 %v5072_v49  ;;  %v5300_v3 = vld [vmem:[%s12441_s8 + $0xb08] sm:$0xff]  ;;  %v5283_v30 = vld [vmem:[%s12441_s8 + $0xa80] sm:$0xff]  ;;  %v5138_v49 = vld [vmem:[%s12441_s8 + $0x5f8] sm:$0xff] }
 0x654   : > { %6000 = vmatpush.msra.mxu0 %v5280_v58  ;;  %6020 = vmatpush.msrb.mxu1 %v5296_v15  ;;  %v5299_v40 = vld [vmem:[%s12441_s8 + $0xb00] sm:$0xff]  ;;  %v5346_v58 = vld [vmem:[%s12441_s8 + $0xc78] sm:$0xff] }
 0x655   : > { %6040 = vmatpush.msrb.mxu2 %v5312_v52  ;;  %5741 = vmatpush.msra.mxu3 %v5071_v54  ;;  %v5362_v15 = vld [vmem:[%s12441_s8 + $0xcf8] sm:$0xff]  ;;  %v5137_v54 = vld [vmem:[%s12441_s8 + $0x5f0] sm:$0xff] }
 0x656   : > { %6001 = vmatpush.msra.mxu0 %v5279_v48  ;;  %6021 = vmatpush.msrb.mxu1 %v5295_v14  ;;  %v5378_v52 = vld [vmem:[%s12441_s8 + $0xd78] sm:$0xff]  ;;  %v5377_v48 = vld [vmem:[%s12441_s8 + $0xd70] sm:$0xff]  ;;  %v5360_v14 = vld [vmem:[%s12441_s8 + $0xce8] sm:$0xff] }
 0x657   : > { %6041 = vmatpush.msrb.mxu2 %v5311_v20  ;;  %5742 = vmatpush.msra.mxu3 %v5070_v24  ;;  %v5376_v20 = vld [vmem:[%s12441_s8 + $0xd68] sm:$0xff]  ;;  %v5135_v24 = vld [vmem:[%s12441_s8 + $0x5e0] sm:$0xff] }
 0x658   : > { %6002 = vmatpush.msra.mxu0 %v5278_v21  ;;  %6022 = vmatpush.msrb.mxu1 %v5294_v35  ;;  %v5343_v21 = vld [vmem:[%s12441_s8 + $0xc60] sm:$0xff] }
 0x659   : > { %6042 = vmatpush.msrb.mxu2 %v5310_v46  ;;  %5743 = vmatpush.msra.mxu3 %v5069_v32  ;;  %v5359_v35 = vld [vmem:[%s12441_s8 + $0xce0] sm:$0xff]  ;;  %v5134_v32 = vld [vmem:[%s12441_s8 + $0x5d8] sm:$0xff] }
 0x65a   : > { %6003 = vmatpush.msra.mxu0 %v5277_v18  ;;  %6023 = vmatpush.msrb.mxu1 %v5293_v31  ;;  %v5375_v46 = vld [vmem:[%s12441_s8 + $0xd60] sm:$0xff]  ;;  %v5342_v18 = vld [vmem:[%s12441_s8 + $0xc58] sm:$0xff] }
 0x65b   : > { %6043 = vmatpush.msrb.mxu2 %v5309_v29  ;;  %5744 = vmatpush.msra.mxu3 %v5068_v25  ;;  %v5358_v31 = vld [vmem:[%s12441_s8 + $0xcd8] sm:$0xff]  ;;  %v5133_v25 = vld [vmem:[%s12441_s8 + $0x5d0] sm:$0xff] }
 0x65c   : > { %6004 = vmatpush.msra.mxu0 %v5276_v38  ;;  %6024 = vmatpush.msrb.mxu1 %v5292_v5  ;;  %v5374_v29 = vld [vmem:[%s12441_s8 + $0xd58] sm:$0xff]  ;;  %v5341_v38 = vld [vmem:[%s12441_s8 + $0xc50] sm:$0xff] }
 0x65d   : > { %6044 = vmatpush.msrb.mxu2 %v5308_v34  ;;  %5745 = vmatpush.msra.mxu3 %v5067_v61  ;;  %v5357_v5 = vld [vmem:[%s12441_s8 + $0xcd0] sm:$0xff]  ;;  %v5132_v61 = vld [vmem:[%s12441_s8 + $0x5c8] sm:$0xff] }
 0x65e   : > { %6005 = vmatpush.msra.mxu0 %v5275_v4  ;;  %6025 = vmatpush.msrb.mxu1 %v5291_v39  ;;  %v5373_v34 = vld [vmem:[%s12441_s8 + $0xd50] sm:$0xff]  ;;  %v5340_v4 = vld [vmem:[%s12441_s8 + $0xc48] sm:$0xff] }
 0x65f   : > { %6045 = vmatpush.msrb.mxu2 %v5307_v50  ;;  %5746 = vmatpush.msra.mxu3 %v5066_v12  ;;  %v5356_v39 = vld [vmem:[%s12441_s8 + $0xcc8] sm:$0xff]  ;;  %v5131_v12 = vld [vmem:[%s12441_s8 + $0x5c0] sm:$0xff] }
 0x660   : > { %6006 = vmatpush.msra.mxu0 %v5274_v44  ;;  %6026 = vmatpush.msrb.mxu1 %v5290_v26  ;;  %v5372_v50 = vld [vmem:[%s12441_s8 + $0xd48] sm:$0xff]  ;;  %v5339_v44 = vld [vmem:[%s12441_s8 + $0xc40] sm:$0xff] }
 0x661   : > { %6046 = vmatpush.msrb.mxu2 %v5306_v56  ;;  %5747 = vmatpush.msra.mxu3 %v5065_v23  ;;  %v5355_v26 = vld [vmem:[%s12441_s8 + $0xcc0] sm:$0xff]  ;;  %v5130_v23 = vld [vmem:[%s12441_s8 + $0x5b8] sm:$0xff] }
 0x662   : > { %6007 = vmatpush.msra.mxu0 %v5273_v47  ;;  %6027 = vmatpush.msrb.mxu1 %v5289_v27  ;;  %v5371_v56 = vld [vmem:[%s12441_s8 + $0xd40] sm:$0xff]  ;;  %v5338_v47 = vld [vmem:[%s12441_s8 + $0xc38] sm:$0xff] }
 0x663   : > { %6047 = vmatpush.msrb.mxu2 %v5305_v9  ;;  %5748 = vmatpush.msra.mxu3 %v5064_v60  ;;  %v5354_v27 = vld [vmem:[%s12441_s8 + $0xcb8] sm:$0xff]  ;;  %v5129_v60 = vld [vmem:[%s12441_s8 + $0x5b0] sm:$0xff] }
 0x664   : > { %6008 = vmatpush.msra.mxu0 %v5272_v42  ;;  %6028 = vmatpush.msrb.mxu1 %v5288_v53  ;;  %v5370_v9 = vld [vmem:[%s12441_s8 + $0xd38] sm:$0xff]  ;;  %v5337_v42 = vld [vmem:[%s12441_s8 + $0xc30] sm:$0xff] }
 0x665   : > { %6048 = vmatpush.msrb.mxu2 %v5304_v8  ;;  %5749 = vmatpush.msra.mxu3 %v5063_v41  ;;  %v5353_v53 = vld [vmem:[%s12441_s8 + $0xcb0] sm:$0xff]  ;;  %v5128_v41 = vld [vmem:[%s12441_s8 + $0x5a8] sm:$0xff] }
 0x666   : > { %6009 = vmatpush.msra.mxu0 %v5271_v57  ;;  %6029 = vmatpush.msrb.mxu1 %v5287_v63  ;;  %v5369_v8 = vld [vmem:[%s12441_s8 + $0xd30] sm:$0xff]  ;;  %v5336_v57 = vld [vmem:[%s12441_s8 + $0xc28] sm:$0xff] }
 0x667   : > { %6049 = vmatpush.msrb.mxu2 %v5303_v59  ;;  %5750 = vmatpush.msra.mxu3 %v5062_v37  ;;  %v5352_v63 = vld [vmem:[%s12441_s8 + $0xca8] sm:$0xff]  ;;  %v5127_v37 = vld [vmem:[%s12441_s8 + $0x5a0] sm:$0xff] }
 0x668   : > { %6010 = vmatpush.msra.mxu0 %v5270_v2  ;;  %6030 = vmatpush.msrb.mxu1 %v5286_v10  ;;  %v5368_v59 = vld [vmem:[%s12441_s8 + $0xd28] sm:$0xff]  ;;  %v5335_v2 = vld [vmem:[%s12441_s8 + $0xc20] sm:$0xff] }
 0x669   : > { %6050 = vmatpush.msrb.mxu2 %v5302_v45  ;;  %5751 = vmatpush.msra.mxu3 %v5061_v43  ;;  %v5351_v10 = vld [vmem:[%s12441_s8 + $0xca0] sm:$0xff]  ;;  %v5126_v43 = vld [vmem:[%s12441_s8 + $0x598] sm:$0xff] }
 0x66a   : > { %6011 = vmatpush.msra.mxu0 %v5269_v7  ;;  %6031 = vmatpush.msrb.mxu1 %v5285_v62  ;;  %v5367_v45 = vld [vmem:[%s12441_s8 + $0xd20] sm:$0xff]  ;;  %v5334_v7 = vld [vmem:[%s12441_s8 + $0xc18] sm:$0xff] }
 0x66b   : > { %6051 = vmatpush.msrb.mxu2 %v5301_v1  ;;  %5752 = vmatpush.msra.mxu3 %v5060_v51  ;;  %v5350_v62 = vld [vmem:[%s12441_s8 + $0xc98] sm:$0xff]  ;;  %v5125_v51 = vld [vmem:[%s12441_s8 + $0x590] sm:$0xff] }
 0x66c   : > { %6012 = vmatpush.msra.mxu0 %v5268_v6  ;;  %6032 = vmatpush.msrb.mxu1 %v5284_v19  ;;  %v5366_v1 = vld [vmem:[%s12441_s8 + $0xd18] sm:$0xff]  ;;  %v5333_v6 = vld [vmem:[%s12441_s8 + $0xc10] sm:$0xff] }
 0x66d   : > { %6052 = vmatpush.msrb.mxu2 %v5300_v3  ;;  %5753 = vmatpush.msra.mxu3 %v5059_v36  ;;  %v5349_v19 = vld [vmem:[%s12441_s8 + $0xc90] sm:$0xff]  ;;  %v5124_v36 = vld [vmem:[%s12441_s8 + $0x588] sm:$0xff] }
 0x66e   : > { %6013 = vmatpush.msra.mxu0 %v5267_v55  ;;  %6033 = vmatpush.msrb.mxu1 %v5283_v30  ;;  %v5365_v3 = vld [vmem:[%s12441_s8 + $0xd10] sm:$0xff]  ;;  %v5332_v55 = vld [vmem:[%s12441_s8 + $0xc08] sm:$0xff] }
 0x66f   : > { %6053 = vmatpush.msrb.mxu2 %v5299_v40  ;;  %5754 = vmatmul.f32.vlgmr.msra.gmra.mxu3 %v11064_v22  ;;  %v5345_v22 = vld [vmem:[%s12441_s8 + $0xc70] sm:$0xff]  ;;  %v5348_v30 = vld [vmem:[%s12441_s8 + $0xc88] sm:$0xff] }
 0x670   : > { %5818 = vmatpush.msrb.mxu3 %v5138_v49  ;;  %6014 = vmatmul.f32.vlgmr.msra.gmra.mxu0 %v11391_v16  ;;  %v5361_v16 = vld [vmem:[%s12441_s8 + $0xcf0] sm:$0xff]  ;;  %v5364_v40 = vld [vmem:[%s12441_s8 + $0xd08] sm:$0xff]  ;;  %v5123_v49 = vld [vmem:[%s12441_s8 + $0x580] sm:$0xff] }
 0x671   : > { %6034 = vmatmul.f32.vlgmr.msrb.gmra.mxu1 %v11393_v28  ;;  %6054 = vmatmul.f32.vlgmr.msrb.gmra.mxu2 %v11402_v33  ;;  %v5136_v28 = vld [vmem:[%s12441_s8 + $0x5e8] sm:$0xff] }
 0x672   : > { %6078 = vmatpush.msrb.mxu0 %v5346_v58  ;;  %6098 = vmatpush.msra.mxu1 %v5362_v15  ;;  %v5344_v33 = vld [vmem:[%s12441_s8 + $0xc68] sm:$0xff]  ;;  %v5331_v58 = vld [vmem:[%s12441_s8 + $0xc00] sm:$0xff] }
 0x673   : > { %6118 = vmatpush.msra.mxu2 %v5378_v52  ;;  %5819 = vmatpush.msrb.mxu3 %v5137_v54  ;;  %v5347_v15 = vld [vmem:[%s12441_s8 + $0xc80] sm:$0xff]  ;;  %v5202_v54 = vld [vmem:[%s12441_s8 + $0x7f8] sm:$0xff] }
 0x674   : > { %6079 = vmatpush.msrb.mxu0 %v5345_v22  ;;  %6099 = vmatpush.msra.mxu1 %v5361_v16  ;;  %v5363_v52 = vld [vmem:[%s12441_s8 + $0xd00] sm:$0xff]  ;;  %v5559_v16 = vld [vmem:[#allocation1 + $0x9] sm:$0xff] }
 0x675   : > { %6119 = vmatpush.msra.mxu2 %v5377_v48  ;;  %5820 = vmatpush.msrb.mxu3 %v5136_v28  ;;  %v5558_v22 = vld [vmem:[#allocation1] sm:$0xff]  ;;  %v5410_v48 = vld [vmem:[%s12441_s8 + $0xe78] sm:$0xff] }
 0x676   : > { %6080 = vmatpush.msrb.mxu0 %v5344_v33  ;;  %6100 = vmatpush.msra.mxu1 %v5360_v14  ;;  %v5426_v28 = vld [vmem:[%s12441_s8 + $0xef8] sm:$0xff] }
 0x677   : > { %6120 = vmatpush.msra.mxu2 %v5376_v20  ;;  %5821 = vmatpush.msrb.mxu3 %v5135_v24  ;;  %v5560_v33 = vld [vmem:[#allocation1 + $0x12] sm:$0xff] }
 0x678   : > { %6081 = vmatpush.msrb.mxu0 %v5343_v21  ;;  %6101 = vmatpush.msra.mxu1 %v5359_v35  ;;  %v5442_v14 = vld [vmem:[%s12441_s8 + $0xf78] sm:$0xff]  ;;  %v5409_v20 = vld [vmem:[%s12441_s8 + $0xe70] sm:$0xff]  ;;  %v5200_v35 = vld [vmem:[%s12441_s8 + $0x7e8] sm:$0xff] }
 0x679   : > { %6121 = vmatpush.msra.mxu2 %v5375_v46  ;;  %5822 = vmatpush.msrb.mxu3 %v5134_v32  ;;  %v5425_v24 = vld [vmem:[%s12441_s8 + $0xef0] sm:$0xff]  ;;  %v5408_v46 = vld [vmem:[%s12441_s8 + $0xe68] sm:$0xff] }
 0x67a   : > { %6082 = vmatpush.msrb.mxu0 %v5342_v18  ;;  %6102 = vmatpush.msra.mxu1 %v5358_v31  ;;  %v5441_v21 = vld [vmem:[%s12441_s8 + $0xf70] sm:$0xff]  ;;  %v5424_v32 = vld [vmem:[%s12441_s8 + $0xee8] sm:$0xff]  ;;  %v5199_v31 = vld [vmem:[%s12441_s8 + $0x7e0] sm:$0xff] }
 0x67b   : > { %6122 = vmatpush.msra.mxu2 %v5374_v29  ;;  %5823 = vmatpush.msrb.mxu3 %v5133_v25  ;;  %v5440_v18 = vld [vmem:[%s12441_s8 + $0xf68] sm:$0xff]  ;;  %v5407_v29 = vld [vmem:[%s12441_s8 + $0xe60] sm:$0xff] }
 0x67c   : > { %6083 = vmatpush.msrb.mxu0 %v5341_v38  ;;  %6103 = vmatpush.msra.mxu1 %v5357_v5  ;;  %v5423_v25 = vld [vmem:[%s12441_s8 + $0xee0] sm:$0xff]  ;;  %v5198_v5 = vld [vmem:[%s12441_s8 + $0x7d8] sm:$0xff] }
 0x67d   : > { %6123 = vmatpush.msra.mxu2 %v5373_v34  ;;  %5824 = vmatpush.msrb.mxu3 %v5132_v61  ;;  %v5439_v38 = vld [vmem:[%s12441_s8 + $0xf60] sm:$0xff]  ;;  %v5406_v34 = vld [vmem:[%s12441_s8 + $0xe58] sm:$0xff] }
 0x67e   : > { %6084 = vmatpush.msrb.mxu0 %v5340_v4  ;;  %6104 = vmatpush.msra.mxu1 %v5356_v39  ;;  %v5422_v61 = vld [vmem:[%s12441_s8 + $0xed8] sm:$0xff]  ;;  %v5197_v39 = vld [vmem:[%s12441_s8 + $0x7d0] sm:$0xff] }
 0x67f   : > { %6124 = vmatpush.msra.mxu2 %v5372_v50  ;;  %5825 = vmatpush.msrb.mxu3 %v5131_v12  ;;  %v5438_v4 = vld [vmem:[%s12441_s8 + $0xf58] sm:$0xff]  ;;  %v5405_v50 = vld [vmem:[%s12441_s8 + $0xe50] sm:$0xff] }
 0x680   : > { %6085 = vmatpush.msrb.mxu0 %v5339_v44  ;;  %6105 = vmatpush.msra.mxu1 %v5355_v26  ;;  %v5421_v12 = vld [vmem:[%s12441_s8 + $0xed0] sm:$0xff]  ;;  %v5196_v26 = vld [vmem:[%s12441_s8 + $0x7c8] sm:$0xff] }
 0x681   : > { %6125 = vmatpush.msra.mxu2 %v5371_v56  ;;  %5826 = vmatpush.msrb.mxu3 %v5130_v23  ;;  %v5437_v44 = vld [vmem:[%s12441_s8 + $0xf50] sm:$0xff]  ;;  %v5404_v56 = vld [vmem:[%s12441_s8 + $0xe48] sm:$0xff] }
 0x682   : > { %6086 = vmatpush.msrb.mxu0 %v5338_v47  ;;  %6106 = vmatpush.msra.mxu1 %v5354_v27  ;;  %v5420_v23 = vld [vmem:[%s12441_s8 + $0xec8] sm:$0xff]  ;;  %v5195_v27 = vld [vmem:[%s12441_s8 + $0x7c0] sm:$0xff] }
 0x683   : > { %6126 = vmatpush.msra.mxu2 %v5370_v9  ;;  %5827 = vmatpush.msrb.mxu3 %v5129_v60  ;;  %v5436_v47 = vld [vmem:[%s12441_s8 + $0xf48] sm:$0xff]  ;;  %v5403_v9 = vld [vmem:[%s12441_s8 + $0xe40] sm:$0xff] }
 0x684   : > { %6087 = vmatpush.msrb.mxu0 %v5337_v42  ;;  %6107 = vmatpush.msra.mxu1 %v5353_v53  ;;  %v5419_v60 = vld [vmem:[%s12441_s8 + $0xec0] sm:$0xff]  ;;  %v5194_v53 = vld [vmem:[%s12441_s8 + $0x7b8] sm:$0xff] }
 0x685   : > { %6127 = vmatpush.msra.mxu2 %v5369_v8  ;;  %5828 = vmatpush.msrb.mxu3 %v5128_v41  ;;  %v5435_v42 = vld [vmem:[%s12441_s8 + $0xf40] sm:$0xff]  ;;  %v5402_v8 = vld [vmem:[%s12441_s8 + $0xe38] sm:$0xff] }
 0x686   : > { %6088 = vmatpush.msrb.mxu0 %v5336_v57  ;;  %6108 = vmatpush.msra.mxu1 %v5352_v63  ;;  %v5418_v41 = vld [vmem:[%s12441_s8 + $0xeb8] sm:$0xff]  ;;  %v5193_v63 = vld [vmem:[%s12441_s8 + $0x7b0] sm:$0xff] }
 0x687   : > { %6128 = vmatpush.msra.mxu2 %v5368_v59  ;;  %5829 = vmatpush.msrb.mxu3 %v5127_v37  ;;  %v5434_v57 = vld [vmem:[%s12441_s8 + $0xf38] sm:$0xff]  ;;  %v5401_v59 = vld [vmem:[%s12441_s8 + $0xe30] sm:$0xff] }
 0x688   : > { %6089 = vmatpush.msrb.mxu0 %v5335_v2  ;;  %6109 = vmatpush.msra.mxu1 %v5351_v10  ;;  %v5417_v37 = vld [vmem:[%s12441_s8 + $0xeb0] sm:$0xff]  ;;  %v5192_v10 = vld [vmem:[%s12441_s8 + $0x7a8] sm:$0xff] }
 0x689   : > { %6129 = vmatpush.msra.mxu2 %v5367_v45  ;;  %5830 = vmatpush.msrb.mxu3 %v5126_v43  ;;  %v5433_v2 = vld [vmem:[%s12441_s8 + $0xf30] sm:$0xff]  ;;  %v5400_v45 = vld [vmem:[%s12441_s8 + $0xe28] sm:$0xff] }
 0x68a   : > { %6090 = vmatpush.msrb.mxu0 %v5334_v7  ;;  %6110 = vmatpush.msra.mxu1 %v5350_v62  ;;  %v5416_v43 = vld [vmem:[%s12441_s8 + $0xea8] sm:$0xff]  ;;  %v5191_v62 = vld [vmem:[%s12441_s8 + $0x7a0] sm:$0xff] }
 0x68b   : > { %6130 = vmatpush.msra.mxu2 %v5366_v1  ;;  %5831 = vmatpush.msrb.mxu3 %v5125_v51  ;;  %v5432_v7 = vld [vmem:[%s12441_s8 + $0xf28] sm:$0xff]  ;;  %v5399_v1 = vld [vmem:[%s12441_s8 + $0xe20] sm:$0xff] }
 0x68c   : > { %6091 = vmatpush.msrb.mxu0 %v5333_v6  ;;  %6111 = vmatpush.msra.mxu1 %v5349_v19  ;;  %v5415_v51 = vld [vmem:[%s12441_s8 + $0xea0] sm:$0xff]  ;;  %v5190_v19 = vld [vmem:[%s12441_s8 + $0x798] sm:$0xff] }
 0x68d   : > { %6131 = vmatpush.msra.mxu2 %v5365_v3  ;;  %5832 = vmatpush.msrb.mxu3 %v5124_v36  ;;  %v5431_v6 = vld [vmem:[%s12441_s8 + $0xf20] sm:$0xff]  ;;  %v5398_v3 = vld [vmem:[%s12441_s8 + $0xe18] sm:$0xff] }
 0x68e   : > { %6092 = vmatpush.msrb.mxu0 %v5332_v55  ;;  %6112 = vmatpush.msra.mxu1 %v5348_v30  ;;  %v5414_v36 = vld [vmem:[%s12441_s8 + $0xe98] sm:$0xff]  ;;  %v5189_v30 = vld [vmem:[%s12441_s8 + $0x790] sm:$0xff] }
 0x68f   : > { %6132 = vmatpush.msra.mxu2 %v5364_v40  ;;  %5833 = vmatpush.msrb.mxu3 %v5123_v49  ;;  %v5430_v55 = vld [vmem:[%s12441_s8 + $0xf18] sm:$0xff]  ;;  %v5397_v40 = vld [vmem:[%s12441_s8 + $0xe10] sm:$0xff] }
 0x690   : > { %6093 = vmatpush.msrb.mxu0 %v5331_v58  ;;  %6113 = vmatpush.msra.mxu1 %v5347_v15  ;;  %v5413_v49 = vld [vmem:[%s12441_s8 + $0xe90] sm:$0xff]  ;;  %v5188_v15 = vld [vmem:[%s12441_s8 + $0x788] sm:$0xff] }
 0x691   : > { %6133 = vmatpush.msra.mxu2 %v5363_v52  ;;  %5834 = vmatmul.f32.vlgmr.msrb.gmra.mxu3 %v11208_v11  ;;  %v5201_v11 = vld [vmem:[%s12441_s8 + $0x7f0] sm:$0xff]  ;;  %v5396_v52 = vld [vmem:[%s12441_s8 + $0xe08] sm:$0xff] }
 0x692   : > { %5898 = vmatpush.msra.mxu3 %v5202_v54  ;;  %6094 = vmatmul.f32.vlgmr.msrb.gmra.mxu0 %v5558_v22  ;;  %v5429_v58 = vld [vmem:[%s12441_s8 + $0xf10] sm:$0xff]  ;;  %v5412_v54 = vld [vmem:[%s12441_s8 + $0xe88] sm:$0xff] }
 0x693   : > { %6114 = vmatmul.f32.vlgmr.msra.gmra.mxu1 %v5559_v16  ;;  %6134 = vmatmul.f32.vlgmr.msra.gmra.mxu2 %v5560_v33  ;;  %v5428_v22 = vld [vmem:[%s12441_s8 + $0xf08] sm:$0xff]  ;;  %v5187_v16 = vld [vmem:[%s12441_s8 + $0x780] sm:$0xff] }
 0x694   : > { %6158 = vmatpush.msra.mxu0 %v5410_v48  ;;  %6178 = vmatpush.msrb.mxu1 %v5426_v28  ;;  %v5395_v48 = vld [vmem:[%s12441_s8 + $0xe00] sm:$0xff] }
 0x695   : > { %6198 = vmatpush.msrb.mxu2 %v5442_v14  ;;  %5899 = vmatpush.msra.mxu3 %v5201_v11  ;;  %v5411_v28 = vld [vmem:[%s12441_s8 + $0xe80] sm:$0xff]  ;;  %v5266_v14 = vld [vmem:[%s12441_s8 + $0x9f8] sm:$0xff] }
 0x696   : > { %6159 = vmatpush.msra.mxu0 %v5409_v20  ;;  %6179 = vmatpush.msrb.mxu1 %v5425_v24  ;;  %v5427_v33 = vld [vmem:[%s12441_s8 + $0xf00] sm:$0xff]  ;;  %v5265_v20 = vld [vmem:[%s12441_s8 + $0x9f0] sm:$0xff] }
 0x697   : > { %6199 = vmatpush.msrb.mxu2 %v5441_v21  ;;  %5900 = vmatpush.msra.mxu3 %v5200_v35  ;;  %v5562_v11 = vld [vmem:[#allocation1 + $0x24] sm:$0xff]  ;;  %v5563_v24 = vld [vmem:[#allocation1 + $0x2d] sm:$0xff]  ;;  %v5564_v21 = vld [vmem:[#allocation1 + $0x36] sm:$0xff] }
 0x698   : > { %6160 = vmatpush.msra.mxu0 %v5408_v46  ;;  %6180 = vmatpush.msrb.mxu1 %v5424_v32  ;;  %v5264_v35 = vld [vmem:[%s12441_s8 + $0x9e8] sm:$0xff]  ;;  %v5262_v46 = vld [vmem:[%s12441_s8 + $0x9d8] sm:$0xff]  ;;  %v5261_v32 = vld [vmem:[%s12441_s8 + $0x9d0] sm:$0xff] }
 0x699   : > { %6200 = vmatpush.msrb.mxu2 %v5440_v18  ;;  %5901 = vmatpush.msra.mxu3 %v5199_v31  ;;  %v5260_v18 = vld [vmem:[%s12441_s8 + $0x9c8] sm:$0xff]  ;;  %v5259_v31 = vld [vmem:[%s12441_s8 + $0x9c0] sm:$0xff] }
 0x69a   : > { %6161 = vmatpush.msra.mxu0 %v5407_v29  ;;  %6181 = vmatpush.msrb.mxu1 %v5423_v25  ;;  %v5258_v29 = vld [vmem:[%s12441_s8 + $0x9b8] sm:$0xff]  ;;  %v5257_v25 = vld [vmem:[%s12441_s8 + $0x9b0] sm:$0xff] }
 0x69b   : > { %6201 = vmatpush.msrb.mxu2 %v5439_v38  ;;  %5902 = vmatpush.msra.mxu3 %v5198_v5  ;;  %v5256_v38 = vld [vmem:[%s12441_s8 + $0x9a8] sm:$0xff]  ;;  %v5255_v5 = vld [vmem:[%s12441_s8 + $0x9a0] sm:$0xff] }
 0x69c   : > { %6162 = vmatpush.msra.mxu0 %v5406_v34  ;;  %6182 = vmatpush.msrb.mxu1 %v5422_v61  ;;  %v5254_v34 = vld [vmem:[%s12441_s8 + $0x998] sm:$0xff]  ;;  %v5253_v61 = vld [vmem:[%s12441_s8 + $0x990] sm:$0xff] }
 0x69d   : > { %6202 = vmatpush.msrb.mxu2 %v5438_v4  ;;  %5903 = vmatpush.msra.mxu3 %v5197_v39  ;;  %v5252_v4 = vld [vmem:[%s12441_s8 + $0x988] sm:$0xff]  ;;  %v5251_v39 = vld [vmem:[%s12441_s8 + $0x980] sm:$0xff] }
 0x69e   : > { %6163 = vmatpush.msra.mxu0 %v5405_v50  ;;  %6183 = vmatpush.msrb.mxu1 %v5421_v12  ;;  %v5330_v50 = vld [vmem:[%s12441_s8 + $0xbf8] sm:$0xff]  ;;  %v5329_v12 = vld [vmem:[%s12441_s8 + $0xbf0] sm:$0xff] }
 0x69f   : > { %6203 = vmatpush.msrb.mxu2 %v5437_v44  ;;  %5904 = vmatpush.msra.mxu3 %v5196_v26  ;;  %v5328_v44 = vld [vmem:[%s12441_s8 + $0xbe8] sm:$0xff]  ;;  %v5327_v26 = vld [vmem:[%s12441_s8 + $0xbe0] sm:$0xff] }
 0x6a0   : > { %6164 = vmatpush.msra.mxu0 %v5404_v56  ;;  %6184 = vmatpush.msrb.mxu1 %v5420_v23  ;;  %v5326_v56 = vld [vmem:[%s12441_s8 + $0xbd8] sm:$0xff]  ;;  %v5324_v23 = vld [vmem:[%s12441_s8 + $0xbc8] sm:$0xff] }
 0x6a1   : > { %6204 = vmatpush.msrb.mxu2 %v5436_v47  ;;  %5905 = vmatpush.msra.mxu3 %v5195_v27  ;;  %v5323_v47 = vld [vmem:[%s12441_s8 + $0xbc0] sm:$0xff]  ;;  %v5322_v27 = vld [vmem:[%s12441_s8 + $0xbb8] sm:$0xff] }
 0x6a2   : > { %6165 = vmatpush.msra.mxu0 %v5403_v9  ;;  %6185 = vmatpush.msrb.mxu1 %v5419_v60  ;;  %v5321_v9 = vld [vmem:[%s12441_s8 + $0xbb0] sm:$0xff]  ;;  %v5320_v60 = vld [vmem:[%s12441_s8 + $0xba8] sm:$0xff] }
 0x6a3   : > { %6205 = vmatpush.msrb.mxu2 %v5435_v42  ;;  %5906 = vmatpush.msra.mxu3 %v5194_v53  ;;  %v5319_v42 = vld [vmem:[%s12441_s8 + $0xba0] sm:$0xff]  ;;  %v5318_v53 = vld [vmem:[%s12441_s8 + $0xb98] sm:$0xff] }
 0x6a4   : > { %6166 = vmatpush.msra.mxu0 %v5402_v8  ;;  %6186 = vmatpush.msrb.mxu1 %v5418_v41  ;;  %v5317_v8 = vld [vmem:[%s12441_s8 + $0xb90] sm:$0xff]  ;;  %v5316_v41 = vld [vmem:[%s12441_s8 + $0xb88] sm:$0xff] }
 0x6a5   : > { %6206 = vmatpush.msrb.mxu2 %v5434_v57  ;;  %5907 = vmatpush.msra.mxu3 %v5193_v63  ;;  %v5315_v57 = vld [vmem:[%s12441_s8 + $0xb80] sm:$0xff]  ;;  %v5394_v63 = vld [vmem:[%s12441_s8 + $0xdf8] sm:$0xff] }
 0x6a6   : > { %6167 = vmatpush.msra.mxu0 %v5401_v59  ;;  %6187 = vmatpush.msrb.mxu1 %v5417_v37  ;;  %v5393_v59 = vld [vmem:[%s12441_s8 + $0xdf0] sm:$0xff]  ;;  %v5392_v37 = vld [vmem:[%s12441_s8 + $0xde8] sm:$0xff] }
 0x6a7   : > { %6207 = vmatpush.msrb.mxu2 %v5433_v2  ;;  %5908 = vmatpush.msra.mxu3 %v5192_v10  ;;  %v5391_v2 = vld [vmem:[%s12441_s8 + $0xde0] sm:$0xff]  ;;  %v5390_v10 = vld [vmem:[%s12441_s8 + $0xdd8] sm:$0xff] }
 0x6a8   : > { %6168 = vmatpush.msra.mxu0 %v5400_v45  ;;  %6188 = vmatpush.msrb.mxu1 %v5416_v43  ;;  %v5388_v45 = vld [vmem:[%s12441_s8 + $0xdc8] sm:$0xff]  ;;  %v5387_v43 = vld [vmem:[%s12441_s8 + $0xdc0] sm:$0xff] }
 0x6a9   : > { %6208 = vmatpush.msrb.mxu2 %v5432_v7  ;;  %5909 = vmatpush.msra.mxu3 %v5191_v62  ;;  %v5386_v7 = vld [vmem:[%s12441_s8 + $0xdb8] sm:$0xff]  ;;  %v5385_v62 = vld [vmem:[%s12441_s8 + $0xdb0] sm:$0xff] }
 0x6aa   : > { %6169 = vmatpush.msra.mxu0 %v5399_v1  ;;  %6189 = vmatpush.msrb.mxu1 %v5415_v51  ;;  %v5384_v1 = vld [vmem:[%s12441_s8 + $0xda8] sm:$0xff]  ;;  %v5383_v51 = vld [vmem:[%s12441_s8 + $0xda0] sm:$0xff] }
 0x6ab   : > { %6209 = vmatpush.msrb.mxu2 %v5431_v6  ;;  %5910 = vmatpush.msra.mxu3 %v5190_v19  ;;  %v5382_v6 = vld [vmem:[%s12441_s8 + $0xd98] sm:$0xff]  ;;  %v5381_v19 = vld [vmem:[%s12441_s8 + $0xd90] sm:$0xff] }
 0x6ac   : > { %6170 = vmatpush.msra.mxu0 %v5398_v3  ;;  %6190 = vmatpush.msrb.mxu1 %v5414_v36  ;;  %v5380_v3 = vld [vmem:[%s12441_s8 + $0xd88] sm:$0xff]  ;;  %v5379_v36 = vld [vmem:[%s12441_s8 + $0xd80] sm:$0xff] }
 0x6ad   : > { %6210 = vmatpush.msrb.mxu2 %v5430_v55  ;;  %5911 = vmatpush.msra.mxu3 %v5189_v30  ;;  %v5458_v55 = vld [vmem:[%s12441_s8 + $0xff8] sm:$0xff] }
 0x6ae   : > { %6171 = vmatpush.msra.mxu0 %v5397_v40  ;;  %6191 = vmatpush.msrb.mxu1 %v5413_v49  ;;  %v5561_v30 = vld [vmem:[#allocation1 + $0x1b] sm:$0xff]  ;;  %v5457_v40 = vld [vmem:[%s12441_s8 + $0xff0] sm:$0xff]  ;;  %v5456_v49 = vld [vmem:[%s12441_s8 + $0xfe8] sm:$0xff] }
 0x6af   : > { %6211 = vmatpush.msrb.mxu2 %v5429_v58  ;;  %5912 = vmatpush.msra.mxu3 %v5188_v15  ;;  %v5455_v58 = vld [vmem:[%s12441_s8 + $0xfe0] sm:$0xff]  ;;  %v5454_v15 = vld [vmem:[%s12441_s8 + $0xfd8] sm:$0xff] }
 0x6b0   : > { %6172 = vmatpush.msra.mxu0 %v5396_v52  ;;  %6192 = vmatpush.msrb.mxu1 %v5412_v54  ;;  %v5453_v52 = vld [vmem:[%s12441_s8 + $0xfd0] sm:$0xff]  ;;  %v5452_v54 = vld [vmem:[%s12441_s8 + $0xfc8] sm:$0xff] }
 0x6b1   : > { %6212 = vmatpush.msrb.mxu2 %v5428_v22  ;;  %5913 = vmatpush.msra.mxu3 %v5187_v16  ;;  %v5451_v22 = vld [vmem:[%s12441_s8 + $0xfc0] sm:$0xff]  ;;  %v5450_v16 = vld [vmem:[%s12441_s8 + $0xfb8] sm:$0xff] }
 0x6b2   : > { %6173 = vmatpush.msra.mxu0 %v5395_v48  ;;  %6193 = vmatpush.msrb.mxu1 %v5411_v28  ;;  %v5449_v48 = vld [vmem:[%s12441_s8 + $0xfb0] sm:$0xff]  ;;  %v5448_v28 = vld [vmem:[%s12441_s8 + $0xfa8] sm:$0xff] }
 0x6b3   : > { %6213 = vmatpush.msrb.mxu2 %v5427_v33  ;;  %5914 = vmatmul.f32.vlgmr.msra.gmra.mxu3 %v11222_v13  ;;  %v5263_v13 = vld [vmem:[%s12441_s8 + $0x9e0] sm:$0xff] }
 0x6b4   : > { %5978 = vmatpush.msrb.mxu3 %v5266_v14  ;;  %6174 = vmatmul.f32.vlgmr.msra.gmra.mxu0 %v5562_v11  ;;  %v5447_v33 = vld [vmem:[%s12441_s8 + $0xfa0] sm:$0xff]  ;;  %v5446_v14 = vld [vmem:[%s12441_s8 + $0xf98] sm:$0xff]  ;;  %v5445_v11 = vld [vmem:[%s12441_s8 + $0xf90] sm:$0xff] }
 0x6b5   : > { %6194 = vmatmul.f32.vlgmr.msrb.gmra.mxu1 %v5563_v24  ;;  %6214 = vmatmul.f32.vlgmr.msrb.gmra.mxu2 %v5564_v21  ;;  %v5443_v24 = vld [vmem:[%s12441_s8 + $0xf80] sm:$0xff] }
 0x6b6   : > { %5979 = vmatpush.msrb.mxu3 %v5265_v20  ;;  %v5444_v20 = vld [vmem:[%s12441_s8 + $0xf88] sm:$0xff]  ;;  %v5565_v21 = vld [vmem:[#allocation1 + $0x3f] sm:$0xff] }
 0x6b8   : > { %5980 = vmatpush.msrb.mxu3 %v5264_v35  ;;  %v5615_v35 = vpop.f32.mrf.mxu3 }
 0x6ba   : > { %5981 = vmatpush.msrb.mxu3 %v5263_v13 }
 0x6bc   : > { %5982 = vmatpush.msrb.mxu3 %v5262_v46 }
 0x6be   : > { %5983 = vmatpush.msrb.mxu3 %v5261_v32  ;;  %v6917_v32 = vld [vmem:[%s12442_s9] ss:$0 sm:$0xff] }
 0x6c0   : > { %5984 = vmatpush.msrb.mxu3 %v5260_v18  ;;  %v5635_v13 = vpop.f32.mrf.mxu3  ;;  %v5616_v18 = vadd.f32 %v6917_v32, %v5615_v35 }
 0x6c2   : > { %5985 = vmatpush.msrb.mxu3 %v5259_v31  ;;  %v5636_v31 = vadd.f32 %v5635_v13, %v5616_v18 }
 0x6c4   : > { %5986 = vmatpush.msrb.mxu3 %v5258_v29 }
 0x6c6   : > { %5987 = vmatpush.msrb.mxu3 %v5257_v25 }
 0x6c8   : > { %5988 = vmatpush.msrb.mxu3 %v5256_v38  ;;  %v5655_v46 = vpop.f32.mrf.mxu3 }
 0x6c9   : > { %v5656_v25 = vadd.f32 %v5655_v46, %v5636_v31 }
 0x6ca   : > { %5989 = vmatpush.msrb.mxu3 %v5255_v5  ;;  %v5695_v5 = vpop.f32.mrf.mxu0 }
 0x6cc   : > { %5990 = vmatpush.msrb.mxu3 %v5254_v34 }
 0x6ce   : > { %5991 = vmatpush.msrb.mxu3 %v5253_v61  ;;  %v5715_v61 = vpop.f32.mrf.mxu1 }
 0x6d0   : > { %5992 = vmatpush.msrb.mxu3 %v5252_v4  ;;  %v5675_v29 = vpop.f32.mrf.mxu3 }
 0x6d1   : > { %v5676_v38 = vadd.f32 %v5675_v29, %v5656_v25 }
 0x6d2   : > { %5993 = vmatpush.msrb.mxu3 %v5251_v39  ;;  %v5735_v39 = vpop.f32.mrf.mxu2 }
 0x6d3   : > { %5994 = vmatmul.f32.vlgmr.msrb.gmra.mxu3 %v11366_v17  ;;  %v5325_v17 = vld [vmem:[%s12441_s8 + $0xbd0] sm:$0xff]  ;;  %v5696_v34 = vadd.f32 %v5695_v5, %v5676_v38 }
 0x6d4   : > { %6058 = vmatpush.msra.mxu3 %v5330_v50 }
 0x6d5   : > { %v5716_v4 = vadd.f32 %v5715_v61, %v5696_v34 }
 0x6d6   : > { %6059 = vmatpush.msra.mxu3 %v5329_v12 }
 0x6d7   : > { %v5736_v12 = vadd.f32 %v5735_v39, %v5716_v4 }
 0x6d8   : > { %6060 = vmatpush.msra.mxu3 %v5328_v44 }
 0x6da   : > { %6061 = vmatpush.msra.mxu3 %v5327_v26  ;;  %v5775_v26 = vpop.f32.mrf.mxu0 }
 0x6dc   : > { %6062 = vmatpush.msra.mxu3 %v5326_v56 }
 0x6de   : > { %6063 = vmatpush.msra.mxu3 %v5325_v17  ;;  %v5795_v17 = vpop.f32.mrf.mxu1 }
 0x6e0   : > { %6064 = vmatpush.msra.mxu3 %v5324_v23 }
 0x6e2   : > { %6065 = vmatpush.msra.mxu3 %v5323_v47  ;;  %v5815_v47 = vpop.f32.mrf.mxu2 }
 0x6e4   : > { %6066 = vmatpush.msra.mxu3 %v5322_v27 }
 0x6e6   : > { %6067 = vmatpush.msra.mxu3 %v5321_v9 }
 0x6e8   : > { %6068 = vmatpush.msra.mxu3 %v5320_v60 }
 0x6ea   : > { %6069 = vmatpush.msra.mxu3 %v5319_v42  ;;  %v5855_v42 = vpop.f32.mrf.mxu0 }
 0x6ec   : > { %6070 = vmatpush.msra.mxu3 %v5318_v53 }
 0x6ee   : > { %6071 = vmatpush.msra.mxu3 %v5317_v8  ;;  %v5875_v8 = vpop.f32.mrf.mxu1 }
 0x6f0   : > { %6072 = vmatpush.msra.mxu3 %v5316_v41 }
 0x6f2   : > { %6073 = vmatpush.msra.mxu3 %v5315_v57  ;;  %v5755_v50 = vpop.f32.mrf.mxu3  ;;  %v6251_v57 = vld [vmem:[%s12443_s10 + $0x60] sm:$0xf] }
 0x6f3   : > { %6074 = vmatmul.f32.vlgmr.msra.gmra.mxu3 %v11374_v0  ;;  %v5389_v0 = vld [vmem:[%s12441_s8 + $0xdd0] sm:$0xff]  ;;  %v5756_v44 = vadd.f32 %v5755_v50, %v5736_v12  ;;  %6854 = vmatpush.msk.msrb.mxu0 %vm4071_vm12, %v6251_v57  ;;  %v6918_v12 = vld [vmem:[%s12444_s11] ss:$0 sm:$0xff] }
 0x6f4   : > { %6138 = vmatpush.msrb.mxu3 %v5394_v63  ;;  %v6250_v63 = vld [vmem:[%s12443_s10 + $0x58] sm:$0xff] }
 0x6f5   : > { %v5776_v56 = vadd.f32 %v5775_v26, %v5756_v44  ;;  %6267 = vmatpush.msrb.mxu0 %v6250_v63 }
 0x6f6   : > { %6139 = vmatpush.msrb.mxu3 %v5393_v59  ;;  %v6249_v59 = vld [vmem:[%s12443_s10 + $0x50] sm:$0xff] }
 0x6f7   : > { %v5796_v23 = vadd.f32 %v5795_v17, %v5776_v56  ;;  %6268 = vmatpush.msrb.mxu0 %v6249_v59 }
 0x6f8   : > { %6140 = vmatpush.msrb.mxu3 %v5392_v37  ;;  %v5895_v37 = vpop.f32.mrf.mxu2 }
 0x6f9   : > { %v5816_v9 = vadd.f32 %v5815_v47, %v5796_v23 }
 0x6fa   : > { %6141 = vmatpush.msrb.mxu3 %v5391_v2 }
 0x6fc   : > { %6142 = vmatpush.msrb.mxu3 %v5390_v10 }
 0x6fe   : > { %6143 = vmatpush.msrb.mxu3 %v5389_v0  ;;  %v6248_v0 = vld [vmem:[%s12443_s10 + $0x48] sm:$0xff] }
 0x6ff   : > { %6269 = vmatpush.msrb.mxu0 %v6248_v0 }
 0x700   : > { %6144 = vmatpush.msrb.mxu3 %v5388_v45 }
 0x702   : > { %6145 = vmatpush.msrb.mxu3 %v5387_v43  ;;  %v6247_v43 = vld [vmem:[%s12443_s10 + $0x40] sm:$0xff] }
 0x703   : > { %6270 = vmatpush.msrb.mxu0 %v6247_v43 }
 0x704   : > { %6146 = vmatpush.msrb.mxu3 %v5386_v7  ;;  %v6246_v7 = vld [vmem:[%s12443_s10 + $0x38] sm:$0xff] }
 0x705   : > { %6271 = vmatpush.msrb.mxu0 %v6246_v7 }
 0x706   : > { %6147 = vmatpush.msrb.mxu3 %v5385_v62  ;;  %v5935_v62 = vpop.f32.mrf.mxu0 }
 0x708   : > { %6148 = vmatpush.msrb.mxu3 %v5384_v1 }
 0x70a   : > { %6149 = vmatpush.msrb.mxu3 %v5383_v51  ;;  %v6245_v51 = vld [vmem:[%s12443_s10 + $0x30] sm:$0xff] }
 0x70b   : > { %6272 = vmatpush.msrb.mxu0 %v6245_v51 }
 0x70c   : > { %6150 = vmatpush.msrb.mxu3 %v5382_v6  ;;  %v6244_v6 = vld [vmem:[%s12443_s10 + $0x28] sm:$0xff] }
 0x70d   : > { %6273 = vmatpush.msrb.mxu0 %v6244_v6 }
 0x70e   : > { %6151 = vmatpush.msrb.mxu3 %v5381_v19  ;;  %v5955_v19 = vpop.f32.mrf.mxu1 }
 0x710   : > { %6152 = vmatpush.msrb.mxu3 %v5380_v3 }
 0x712   : > { %6153 = vmatpush.msrb.mxu3 %v5379_v36  ;;  %v6243_v36 = vld [vmem:[%s12443_s10 + $0x20] sm:$0xff] }
 0x713   : > { %6154 = vmatmul.f32.vlgmr.msrb.gmra.mxu3 %v5561_v30  ;;  %v5975_v30 = vpop.f32.mrf.mxu2  ;;  %6274 = vmatpush.msrb.mxu0 %v6243_v36 }
 0x714   : > { %6218 = vmatpush.msra.mxu3 %v5458_v55  ;;  %v5835_v27 = vpop.f32.mrf.mxu3  ;;  %v6242_v55 = vld [vmem:[%s12443_s10 + $0x18] sm:$0xff] }
 0x715   : > { %v5836_v60 = vadd.f32 %v5835_v27, %v5816_v9  ;;  %6275 = vmatpush.msrb.mxu0 %v6242_v55 }
 0x716   : > { %6219 = vmatpush.msra.mxu3 %v5457_v40 }
 0x717   : > { %v5856_v53 = vadd.f32 %v5855_v42, %v5836_v60 }
 0x718   : > { %6220 = vmatpush.msra.mxu3 %v5456_v49 }
 0x719   : > { %v5876_v41 = vadd.f32 %v5875_v8, %v5856_v53 }
 0x71a   : > { %6221 = vmatpush.msra.mxu3 %v5455_v58 }
 0x71b   : > { %v5896_v10 = vadd.f32 %v5895_v37, %v5876_v41 }
 0x71c   : > { %6222 = vmatpush.msra.mxu3 %v5454_v15  ;;  %v6015_v15 = vpop.f32.mrf.mxu0 }
 0x71e   : > { %6223 = vmatpush.msra.mxu3 %v5453_v52 }
 0x720   : > { %6224 = vmatpush.msra.mxu3 %v5452_v54  ;;  %v6035_v54 = vpop.f32.mrf.mxu1 }
 0x722   : > { %6225 = vmatpush.msra.mxu3 %v5451_v22 }
 0x724   : > { %6226 = vmatpush.msra.mxu3 %v5450_v16  ;;  %v6055_v16 = vpop.f32.mrf.mxu2 }
 0x726   : > { %6227 = vmatpush.msra.mxu3 %v5449_v48 }
 0x728   : > { %6228 = vmatpush.msra.mxu3 %v5448_v28  ;;  %v6115_v35 = vpop.f32.mrf.mxu1 }
 0x72a   : > { %6229 = vmatpush.msra.mxu3 %v5447_v33  ;;  %v6241_v33 = vld [vmem:[%s12443_s10 + $0x10] sm:$0xff] }
 0x72b   : > { %6276 = vmatpush.msrb.mxu0 %v6241_v33 }
 0x72c   : > { %6230 = vmatpush.msra.mxu3 %v5446_v14  ;;  %v6240_v14 = vld [vmem:[%s12443_s10 + $0x8] sm:$0xff]  ;;  %v6135_v46 = vpop.f32.mrf.mxu2 }
 0x72d   : > { %6277 = vmatpush.msrb.mxu0 %v6240_v14 }
 0x72e   : > { %6231 = vmatpush.msra.mxu3 %v5445_v11 }
 0x730   : > { %6232 = vmatpush.msra.mxu3 %v5444_v20  ;;  %v6239_v20 = vld [vmem:[%s12443_s10] sm:$0xff] }
 0x731   : > { %6278 = vmatpush.msrb.mxu0 %v6239_v20 }
 0x732   : > { %6233 = vmatpush.msra.mxu3 %v5443_v24  ;;  %v6095_v24 = vpop.f32.mrf.mxu0  ;;  %v6195_v38 = vpop.f32.mrf.mxu1 }
 0x733   : > { %6234 = vmatmul.f32.vlgmr.msra.gmra.mxu3 %v5565_v21 }
 0x736   : > { %v5915_v2 = vpop.f32.mrf.mxu3 }
 0x737   : > { %v5916_v45 = vadd.f32 %v5915_v2, %v5896_v10 }
 0x738   : > { %v6215_v34 = vpop.f32.mrf.mxu2 }
 0x739   : > { %v5936_v1 = vadd.f32 %v5935_v62, %v5916_v45 }
 0x73a   : > { %v6175_v29 = vpop.f32.mrf.mxu0 }
 0x73b   : > { %v5956_v3 = vadd.f32 %v5955_v19, %v5936_v1 }
 0x73d   : > { %v5976_v49 = vadd.f32 %v5975_v30, %v5956_v3 }
 0x756   : > { %v5995_v40 = vpop.f32.mrf.mxu3 }
 0x757   : > { %v5996_v58 = vadd.f32 %v5995_v40, %v5976_v49 }
 0x759   : > { %v6016_v52 = vadd.f32 %v6015_v15, %v5996_v58 }
 0x75b   : > { %v6036_v22 = vadd.f32 %v6035_v54, %v6016_v52 }
 0x75d   : > { %v6056_v28 = vadd.f32 %v6055_v16, %v6036_v22 }
 0x776   : > { %v6075_v48 = vpop.f32.mrf.mxu3 }
 0x777   : > { %v6076_v11 = vadd.f32 %v6075_v48, %v6056_v28 }
 0x779   : > { %v6096_v21 = vadd.f32 %v6095_v24, %v6076_v11 }
 0x77b   : > { %v6116_v13 = vadd.f32 %v6115_v35, %v6096_v21 }
 0x77d   : > { %v6136_v18 = vadd.f32 %v6135_v46, %v6116_v13 }
 0x796   : > { %v6155_v32 = vpop.f32.mrf.mxu3 }
 0x797   : > { %v6156_v31 = vadd.f32 %v6155_v32, %v6136_v18 }
 0x799   : > { %v6176_v25 = vadd.f32 %v6175_v29, %v6156_v31 }
 0x79b   : > { %v6196_v5 = vadd.f32 %v6195_v38, %v6176_v25 }
 0x79d   : > { %v6216_v61 = vadd.f32 %v6215_v34, %v6196_v5 }
 0x7b6   : > { %v6235_v4 = vpop.f32.mrf.mxu3 }
 0x7b7   : > { %v6236_v39 = vadd.f32 %v6235_v4, %v6216_v61 }
 0x7b9   : > { %v6238_v50 = vmax.f32 %v6236_v39, 0.0 }
 0x7bb   : > { %6855 = vmatmul.msk.f32.vlgmr.msrb.gmra.mxu0 %vm6256_vm15, %v6238_v50 }
 0x838   : > { %v6280_v44 = vpop.f32.mrf.mxu0 }
 0x839   : > { %v6281_v26 = vadd.f32 %v6918_v12, %v6280_v44 }
 0x83b   : > { %6283 = vst [vmem:[%s409_s25] sm:$0xff] %v6281_v26 }
 0x83c   : > { %6953 = shalt.err (!%p6950_p3)
}
 0x83d   : > { %6877 = dma.vmem_to_hbm [thread:$0]  (%p7093_p5), %s6298_s19, 128, %s6300_s26, %s6285_s27  }
 0x83e PF: > { %p6883_p4 = scmp.ge.s32.totalorder %s6988_s24, 2  ;;  %s6311_s29 = sand.u32 1, %s6976_s21  }
 0x83f   : > { %s6312_s23 = scalar_lea.sflag [#allocation4], %s6311_s29 }
 0x840   : > { %p6880_p7 = pnand %p6883_p4, %p7097_p6 }
 0x842   : > { %p6881_p8 = pneg %p6880_p7 }
 0x844   : > { %6971 = dma.done.wait (%p6881_p8), %s6312_s23, 128  }
 0x845   : > { %6973 = vsyncadd (%p6881_p8), %s6312_s23, 4294967168  ;;  %s12759_s24 = sld [smem:[#allocation7_spill]]  ;;  %s12762_s21 = smov %s6980_s22 }
 0x846   : > { %s12760_s0 = sld [smem:[#allocation6_spill]] }
 0x847   : > { %s12761_s23 = sld [smem:[#allocation8_spill]] }
 0x84b   : > { %p22_p9 = scmp.ge.s32.totalorder %s12759_s24, 4  }
 0x84c   : > { %s12763_s22 = smov %s12760_s0 }
 0x84d   :  { %24 = sbr.rel (!%p22_p9) target bundleno = 5 (0x5), region = 114 }
 0x852   :  { %6318 = vsyncpa [#allocation4], 1 }
 0x853   :  { %6320 = vsyncpa [#allocation4 + $0x1], 1 }

</bundles_post_ra>
